<compile_context>
chip_gen: v6e
topology: v6e:2x2x1
jax: 0.10.0
libtpu: 0.0.40
codegen_flags: <defaults>
</compile_context>

<pallas_src>
import jax
import jax.numpy as jnp
from jax.experimental import pallas as pl
from jax.experimental.pallas import tpu as pltpu


def _pad_up(n, m):
    return ((n + m - 1) // m) * m


# ---------------------------------------------------------------------------
# Fused kernel body
# ---------------------------------------------------------------------------
def _make_fused_kernel(n_blocks, block_dims):
    """block_dims: tuple of (H, W, Cin, Cout) per conv block (pre-pool spatial size)."""
    n_in = 1 + 2 * n_blocks + 2   # x, (w, shift) per block, (wl, bl)

    def kernel(*refs):
        x_ref = refs[0]
        wl_ref = refs[1 + 2 * n_blocks]
        bl_ref = refs[2 + 2 * n_blocks]
        o_ref = refs[n_in]
        halo_refs = refs[n_in + 1:]

        # --- halo border init: zero only the 1-pixel border strips ------------
        # (interiors are fully overwritten below; done every step because the
        #  "parallel" batch axis may be split across TensorCores).
        for b in range(n_blocks):
            H, W, Cin, _ = block_dims[b]
            href = halo_refs[b]
            tb = href.shape[0]
            z_row = jnp.zeros((tb, 1, W + 2, Cin), href.dtype)
            z_col = jnp.zeros((tb, H + 2, 1, Cin), href.dtype)
            href[:, 0:1, :, :] = z_row
            href[:, H + 1:H + 2, :, :] = z_row
            href[:, :, 0:1, :] = z_col
            href[:, :, W + 1:W + 2, :] = z_col

        # --- block 0 interior = input image (already bf16) --------------------
        H0, W0, _, _ = block_dims[0]
        halo_refs[0][:, 1:H0 + 1, 1:W0 + 1, :] = x_ref[...]

        # --- conv blocks -------------------------------------------------------
        y = None
        for b in range(n_blocks):
            H, W, Cin, Cout = block_dims[b]
            href = halo_refs[b]
            w_ref = refs[1 + 2 * b]          # (9*Cin, Cout) bf16, BN scale folded
            shift_ref = refs[2 + 2 * b]      # (1, Cout) f32 folded BN shift
            tb = href.shape[0]
            M = tb * H * W

            # im2col slab built in VMEM values: concat the 9 shifted windows along
            # the channel axis -> contraction depth K = 9*Cin for a single GEMM.
            cols = []
            for t in range(9):
                i, j = t // 3, t % 3
                cols.append(href[:, i:i + H, j:j + W, :])          # (tb,H,W,Cin) bf16
            slab = jnp.concatenate(cols, axis=-1).reshape(M, 9 * Cin)

            # One MXU GEMM per block, f32 accumulation.
            acc = jnp.dot(slab, w_ref[...], preferred_element_type=jnp.float32)

            # Folded-BN shift + ReLU epilogue in f32 (safe on v5e's f32-only VPU).
            y = jnp.maximum(acc + shift_ref[...], 0.0).reshape(tb, H, W, Cout)

            # Fused MaxPool2d(kernel=2, stride=2) — never leaves VMEM.
            y = y.reshape(tb, H // 2, 2, W, Cout)
            y = jnp.maximum(y[:, :, 0], y[:, :, 1])
            y = y.reshape(tb, H // 2, W // 2, 2, Cout)
            y = jnp.maximum(y[:, :, :, 0, :], y[:, :, :, 1, :])

            if b + 1 < n_blocks:
                Hn, Wn = H // 2, W // 2
                # Single bf16 cast per element per block, at the scratch store.
                halo_refs[b + 1][:, 1:Hn + 1, 1:Wn + 1, :] = y.astype(jnp.bfloat16)

        # --- encoder tail: global mean pool ------------------------------------
        tb, Hf, Wf, Cf = y.shape
        feats = jnp.sum(y.reshape(tb, Hf * Wf, Cf), axis=1) * (1.0 / (Hf * Wf))   # (tb,Cf) f32

        # --- linear classifier head (128-lane-padded logits slab) ---------------
        logits = jnp.dot(feats, wl_ref[...], preferred_element_type=jnp.float32) + bl_ref[...]
        o_ref[...] = logits.astype(o_ref.dtype)

    return kernel


# ---------------------------------------------------------------------------
# VMEM accounting / tile selection (padded footprints, per-generation budget)
# ---------------------------------------------------------------------------
def _vmem_per_sample_bytes(H, W, Cin, conv_params):
    """Per-sample VMEM footprint, accounting for Mosaic (sublane, lane) tile padding
    (bf16 -> 16 sublanes, f32 -> 8 sublanes, 128 lanes)."""
    total = 0
    h, w, c = H, W, Cin
    # input tile (bf16), double-buffered by the BlockSpec pipeline
    total += 2 * h * _pad_up(w, 16) * _pad_up(c, 128) * 2
    for p in conv_params:
        cout = p["shift"].shape[-1]
        # halo scratch (bf16): (h+2, w+2, c)
        total += (h + 2) * _pad_up(w + 2, 16) * _pad_up(c, 128) * 2
        # live im2col slab value (bf16): (h*w, 9*c)
        total += _pad_up(h * w, 16) * _pad_up(9 * c, 128) * 2
        # live f32 GEMM result + pooling temporaries
        total += 2 * _pad_up(h * w, 8) * _pad_up(cout, 128) * 4
        h, w, c = h // 2, w // 2, cout
    return int(total * 1.25)   # headroom for compiler temporaries


def _vmem_budgets():
    """(batch-tile budget, vmem_limit_bytes), sized per generation.
    v5e/v6e: 128 MiB physical -> ~51 MiB tile budget / 96 MiB limit.
    v7x:      64 MiB physical -> ~25 MiB tile budget / 48 MiB limit (also the fallback)."""
    cap = 64 << 20
    try:
        cap = int(getattr(pltpu.get_tpu_info(), "vmem_capacity_bytes", cap))
    except Exception:
        pass
    return int(cap * 0.4), int(cap * 0.75)


def _pick_batch_tile(B, per_sample_bytes, budget_bytes):
    # Legal tiles: multiples of 8 dividing B (sublane-friendly output blocks), or B itself.
    cands = {B}
    t = 8
    while t < B:
        if B % t == 0:
            cands.add(t)
        t += 8
    cands = sorted(cands)
    fits = [t for t in cands if t * per_sample_bytes <= budget_bytes]
    if not fits:
        return cands[0]                       # smallest legal tile; never ignore the budget
    multi = [t for t in fits if B // t >= 2]  # >=2 parallel steps -> both v7x TensorCores
    return max(multi) if multi else max(fits)


# ---------------------------------------------------------------------------
# Wrapper
# ---------------------------------------------------------------------------
def classifier_forward(x_nchw, conv_params, linear_params):
    """Forward pass of `Classifier` (encoder -> classifier) as one fused Pallas kernel."""
    # NCHW (PyTorch) -> NHWC; DMA the image as bf16 (it is the MXU operand dtype anyway).
    x = jnp.transpose(x_nchw, (0, 2, 3, 1)).astype(jnp.bfloat16)
    B, H, W, Cin = x.shape
    n_blocks = len(conv_params)
    assert H % (2 ** n_blocks) == 0 and W % (2 ** n_blocks) == 0

    wl, bl = linear_params
    hid, n_classes = wl.shape
    n_pad = _pad_up(n_classes, 128)                       # lane-dense logits slab
    wl_p = jnp.pad(wl.astype(jnp.float32), ((0, 0), (0, n_pad - n_classes)))
    bl_p = jnp.pad(bl.astype(jnp.float32).reshape(1, -1), ((0, 0), (0, n_pad - n_classes)))

    budget, vmem_limit = _vmem_budgets()
    per_sample = _vmem_per_sample_bytes(H, W, Cin, conv_params)
    tb = _pick_batch_tile(B, per_sample, budget)
    grid = (B // tb,)

    def full_spec(shape):
        rank = len(shape)
        return pl.BlockSpec(tuple(shape), lambda i, _r=rank: (0,) * _r)

    block_dims = []
    inputs = [x]
    in_specs = [pl.BlockSpec((tb, H, W, Cin), lambda i: (i, 0, 0, 0))]
    scratch_shapes = []
    h, w, c = H, W, Cin
    for p in conv_params:
        cout = p["shift"].shape[-1]
        block_dims.append((h, w, c, cout))
        inputs.extend([p["w"], p["shift"]])
        in_specs.append(full_spec(p["w"].shape))
        in_specs.append(full_spec(p["shift"].shape))
        scratch_shapes.append(pltpu.VMEM((tb, h + 2, w + 2, c), jnp.bfloat16))
        h, w, c = h // 2, w // 2, cout
    inputs.extend([wl_p, bl_p])
    in_specs.append(full_spec(wl_p.shape))
    in_specs.append(full_spec(bl_p.shape))

    logits_pad = pl.pallas_call(
        _make_fused_kernel(n_blocks, tuple(block_dims)),
        out_shape=jax.ShapeDtypeStruct((B, n_pad), jnp.float32),
        grid=grid,
        in_specs=in_specs,
        out_specs=pl.BlockSpec((tb, n_pad), lambda i: (i, 0)),
        scratch_shapes=scratch_shapes,
        compiler_params=pltpu.CompilerParams(
            dimension_semantics=("parallel",),
            vmem_limit_bytes=vmem_limit,
        ),
    )(*inputs)
    return logits_pad[:, :n_classes]


# ---------------------------------------------------------------------------
# Parameter init (deterministic; BN scale folded into the bf16 conv weights)
# ---------------------------------------------------------------------------
def init_params(key, in_ch=3, hid_dim=32, n_blocks=4, n_classes=5, eps=1e-5):
    conv_params = []
    for b in range(n_blocks):
        key, kw = jax.random.split(key)
        cin = in_ch if b == 0 else hid_dim
        fan_in = cin * 9
        # conv weight in (kh, kw, cin, cout) order -> (9*cin, cout): rows ordered
        # tap-major / channel-minor, matching the im2col concat order in the kernel.
        w = jax.random.normal(kw, (3, 3, cin, hid_dim), jnp.float32) * jnp.sqrt(2.0 / fan_in)
        bias = jnp.zeros((hid_dim,), jnp.float32)
        # BatchNorm (inference-style fold): gamma=1, beta=0, running_mean=0, running_var=1
        gamma = jnp.ones((hid_dim,), jnp.float32)
        beta = jnp.zeros((hid_dim,), jnp.float32)
        mean = jnp.zeros((hid_dim,), jnp.float32)
        var = jnp.ones((hid_dim,), jnp.float32)
        scale = gamma / jnp.sqrt(var + eps)
        shift = beta + scale * (bias - mean)
        w_folded = (w * scale[None, None, None, :]).reshape(9 * cin, hid_dim).astype(jnp.bfloat16)
        conv_params.append(dict(w=w_folded, shift=shift.reshape(1, hid_dim)))
    key, k1, k2 = jax.random.split(key, 3)
    bound = 1.0 / jnp.sqrt(hid_dim)
    wl = jax.random.uniform(k1, (hid_dim, n_classes), jnp.float32, -bound, bound)
    bl = jax.random.uniform(k2, (1, n_classes), jnp.float32, -bound, bound)
    return conv_params, (wl, bl)


if __name__ == "__main__":
    key = jax.random.PRNGKey(0)
    key, pkey, xkey = jax.random.split(key, 3)

    B, C_in, S = 2, 3, 16
    hid_dim, n_classes = 32, 5

    conv_params, linear_params = init_params(
        pkey, in_ch=C_in, hid_dim=hid_dim, n_blocks=4, n_classes=n_classes
    )
    x = jax.random.normal(xkey, (B, C_in, S, S), jnp.float32)

    fwd = jax.jit(classifier_forward)
    logits = fwd(x, conv_params, linear_params)
    logits = jax.block_until_ready(logits)
    assert logits.shape == (B, n_classes)
    print("KERNEL_OK")
</pallas_src>

<mosaic_0001>
module attributes {stable_mosaic.version = 11 : i64} {
  func.func @kernel(%arg0: i32, %arg1: memref<2x16x16x3xbf16, #tpu.memory_space<vmem>>, %arg2: memref<27x32xbf16, #tpu.memory_space<vmem>>, %arg3: memref<1x32xf32, #tpu.memory_space<vmem>>, %arg4: memref<288x32xbf16, #tpu.memory_space<vmem>>, %arg5: memref<1x32xf32, #tpu.memory_space<vmem>>, %arg6: memref<288x32xbf16, #tpu.memory_space<vmem>>, %arg7: memref<1x32xf32, #tpu.memory_space<vmem>>, %arg8: memref<288x32xbf16, #tpu.memory_space<vmem>>, %arg9: memref<1x32xf32, #tpu.memory_space<vmem>>, %arg10: memref<32x128xf32, #tpu.memory_space<vmem>>, %arg11: memref<1x128xf32, #tpu.memory_space<vmem>>, %arg12: memref<2x128xf32, #tpu.memory_space<vmem>>, %arg13: memref<2x18x18x3xbf16, #tpu.memory_space<vmem>>, %arg14: memref<2x10x10x32xbf16, #tpu.memory_space<vmem>>, %arg15: memref<2x6x6x32xbf16, #tpu.memory_space<vmem>>, %arg16: memref<2x4x4x32xbf16, #tpu.memory_space<vmem>>) attributes {dimension_semantics = [#tpu.dimension_semantics<parallel>], iteration_bounds = array<i64: 1>, scalar_prefetch = 0 : i64, scratch_operands = 4 : i64, tpu.core_type = #tpu.core_type<tc>, window_params = [{transform_indices = @transform_0, window_bounds = array<i64: 2, 16, 16, 3>}, {pipeline_mode = #tpu.pipeline_mode<synchronous>, transform_indices = @transform_1, window_bounds = array<i64: 27, 32>}, {pipeline_mode = #tpu.pipeline_mode<synchronous>, transform_indices = @transform_2, window_bounds = array<i64: 1, 32>}, {pipeline_mode = #tpu.pipeline_mode<synchronous>, transform_indices = @transform_3, window_bounds = array<i64: 288, 32>}, {pipeline_mode = #tpu.pipeline_mode<synchronous>, transform_indices = @transform_4, window_bounds = array<i64: 1, 32>}, {pipeline_mode = #tpu.pipeline_mode<synchronous>, transform_indices = @transform_5, window_bounds = array<i64: 288, 32>}, {pipeline_mode = #tpu.pipeline_mode<synchronous>, transform_indices = @transform_6, window_bounds = array<i64: 1, 32>}, {pipeline_mode = #tpu.pipeline_mode<synchronous>, transform_indices = @transform_7, window_bounds = array<i64: 288, 32>}, {pipeline_mode = #tpu.pipeline_mode<synchronous>, transform_indices = @transform_8, window_bounds = array<i64: 1, 32>}, {pipeline_mode = #tpu.pipeline_mode<synchronous>, transform_indices = @transform_9, window_bounds = array<i64: 32, 128>}, {pipeline_mode = #tpu.pipeline_mode<synchronous>, transform_indices = @transform_10, window_bounds = array<i64: 1, 128>}, {transform_indices = @transform_11, window_bounds = array<i64: 2, 128>}]} {
    %cst = arith.constant 0.000000e+00 : bf16
    %0 = vector.broadcast %cst : bf16 to vector<2x1x18x3xbf16>
    %cst_0 = arith.constant 0.000000e+00 : bf16
    %1 = vector.broadcast %cst_0 : bf16 to vector<2x18x1x3xbf16>
    %c0 = arith.constant 0 : index
    %c0_1 = arith.constant 0 : index
    %c0_2 = arith.constant 0 : index
    %c0_3 = arith.constant 0 : index
    %2 = vector.load %arg13[%c0, %c0_1, %c0_2, %c0_3] : memref<2x18x18x3xbf16, #tpu.memory_space<vmem>>, vector<2x1x18x3xbf16>
    tpu.vector_store %arg13[%c0, %c0_1, %c0_2, %c0_3], %0 {strides = array<i32>} : memref<2x18x18x3xbf16, #tpu.memory_space<vmem>>, vector<2x1x18x3xbf16>,
    %c0_4 = arith.constant 0 : index
    %c17 = arith.constant 17 : index
    %c0_5 = arith.constant 0 : index
    %c0_6 = arith.constant 0 : index
    %3 = vector.load %arg13[%c0_4, %c17, %c0_5, %c0_6] : memref<2x18x18x3xbf16, #tpu.memory_space<vmem>>, vector<2x1x18x3xbf16>
    tpu.vector_store %arg13[%c0_4, %c17, %c0_5, %c0_6], %0 {strides = array<i32>} : memref<2x18x18x3xbf16, #tpu.memory_space<vmem>>, vector<2x1x18x3xbf16>,
    %c0_7 = arith.constant 0 : index
    %c0_8 = arith.constant 0 : index
    %c0_9 = arith.constant 0 : index
    %c0_10 = arith.constant 0 : index
    %4 = vector.load %arg13[%c0_7, %c0_8, %c0_9, %c0_10] : memref<2x18x18x3xbf16, #tpu.memory_space<vmem>>, vector<2x18x1x3xbf16>
    tpu.vector_store %arg13[%c0_7, %c0_8, %c0_9, %c0_10], %1 {strides = array<i32>} : memref<2x18x18x3xbf16, #tpu.memory_space<vmem>>, vector<2x18x1x3xbf16>,
    %c0_11 = arith.constant 0 : index
    %c0_12 = arith.constant 0 : index
    %c17_13 = arith.constant 17 : index
    %c0_14 = arith.constant 0 : index
    %5 = vector.load %arg13[%c0_11, %c0_12, %c17_13, %c0_14] : memref<2x18x18x3xbf16, #tpu.memory_space<vmem>>, vector<2x18x1x3xbf16>
    tpu.vector_store %arg13[%c0_11, %c0_12, %c17_13, %c0_14], %1 {strides = array<i32>} : memref<2x18x18x3xbf16, #tpu.memory_space<vmem>>, vector<2x18x1x3xbf16>,
    %cst_15 = arith.constant 0.000000e+00 : bf16
    %6 = vector.broadcast %cst_15 : bf16 to vector<2x1x10x32xbf16>
    %cst_16 = arith.constant 0.000000e+00 : bf16
    %7 = vector.broadcast %cst_16 : bf16 to vector<2x10x1x32xbf16>
    %c0_17 = arith.constant 0 : index
    %c0_18 = arith.constant 0 : index
    %c0_19 = arith.constant 0 : index
    %c0_20 = arith.constant 0 : index
    %8 = vector.load %arg14[%c0_17, %c0_18, %c0_19, %c0_20] : memref<2x10x10x32xbf16, #tpu.memory_space<vmem>>, vector<2x1x10x32xbf16>
    tpu.vector_store %arg14[%c0_17, %c0_18, %c0_19, %c0_20], %6 {strides = array<i32>} : memref<2x10x10x32xbf16, #tpu.memory_space<vmem>>, vector<2x1x10x32xbf16>,
    %c0_21 = arith.constant 0 : index
    %c9 = arith.constant 9 : index
    %c0_22 = arith.constant 0 : index
    %c0_23 = arith.constant 0 : index
    %9 = vector.load %arg14[%c0_21, %c9, %c0_22, %c0_23] : memref<2x10x10x32xbf16, #tpu.memory_space<vmem>>, vector<2x1x10x32xbf16>
    tpu.vector_store %arg14[%c0_21, %c9, %c0_22, %c0_23], %6 {strides = array<i32>} : memref<2x10x10x32xbf16, #tpu.memory_space<vmem>>, vector<2x1x10x32xbf16>,
    %c0_24 = arith.constant 0 : index
    %c0_25 = arith.constant 0 : index
    %c0_26 = arith.constant 0 : index
    %c0_27 = arith.constant 0 : index
    %10 = vector.load %arg14[%c0_24, %c0_25, %c0_26, %c0_27] : memref<2x10x10x32xbf16, #tpu.memory_space<vmem>>, vector<2x10x1x32xbf16>
    tpu.vector_store %arg14[%c0_24, %c0_25, %c0_26, %c0_27], %7 {strides = array<i32>} : memref<2x10x10x32xbf16, #tpu.memory_space<vmem>>, vector<2x10x1x32xbf16>,
    %c0_28 = arith.constant 0 : index
    %c0_29 = arith.constant 0 : index
    %c9_30 = arith.constant 9 : index
    %c0_31 = arith.constant 0 : index
    %11 = vector.load %arg14[%c0_28, %c0_29, %c9_30, %c0_31] : memref<2x10x10x32xbf16, #tpu.memory_space<vmem>>, vector<2x10x1x32xbf16>
    tpu.vector_store %arg14[%c0_28, %c0_29, %c9_30, %c0_31], %7 {strides = array<i32>} : memref<2x10x10x32xbf16, #tpu.memory_space<vmem>>, vector<2x10x1x32xbf16>,
    %cst_32 = arith.constant 0.000000e+00 : bf16
    %12 = vector.broadcast %cst_32 : bf16 to vector<2x1x6x32xbf16>
    %cst_33 = arith.constant 0.000000e+00 : bf16
    %13 = vector.broadcast %cst_33 : bf16 to vector<2x6x1x32xbf16>
    %c0_34 = arith.constant 0 : index
    %c0_35 = arith.constant 0 : index
    %c0_36 = arith.constant 0 : index
    %c0_37 = arith.constant 0 : index
    %14 = vector.load %arg15[%c0_34, %c0_35, %c0_36, %c0_37] : memref<2x6x6x32xbf16, #tpu.memory_space<vmem>>, vector<2x1x6x32xbf16>
    tpu.vector_store %arg15[%c0_34, %c0_35, %c0_36, %c0_37], %12 {strides = array<i32>} : memref<2x6x6x32xbf16, #tpu.memory_space<vmem>>, vector<2x1x6x32xbf16>,
    %c0_38 = arith.constant 0 : index
    %c5 = arith.constant 5 : index
    %c0_39 = arith.constant 0 : index
    %c0_40 = arith.constant 0 : index
    %15 = vector.load %arg15[%c0_38, %c5, %c0_39, %c0_40] : memref<2x6x6x32xbf16, #tpu.memory_space<vmem>>, vector<2x1x6x32xbf16>
    tpu.vector_store %arg15[%c0_38, %c5, %c0_39, %c0_40], %12 {strides = array<i32>} : memref<2x6x6x32xbf16, #tpu.memory_space<vmem>>, vector<2x1x6x32xbf16>,
    %c0_41 = arith.constant 0 : index
    %c0_42 = arith.constant 0 : index
    %c0_43 = arith.constant 0 : index
    %c0_44 = arith.constant 0 : index
    %16 = vector.load %arg15[%c0_41, %c0_42, %c0_43, %c0_44] : memref<2x6x6x32xbf16, #tpu.memory_space<vmem>>, vector<2x6x1x32xbf16>
    tpu.vector_store %arg15[%c0_41, %c0_42, %c0_43, %c0_44], %13 {strides = array<i32>} : memref<2x6x6x32xbf16, #tpu.memory_space<vmem>>, vector<2x6x1x32xbf16>,
    %c0_45 = arith.constant 0 : index
    %c0_46 = arith.constant 0 : index
    %c5_47 = arith.constant 5 : index
    %c0_48 = arith.constant 0 : index
    %17 = vector.load %arg15[%c0_45, %c0_46, %c5_47, %c0_48] : memref<2x6x6x32xbf16, #tpu.memory_space<vmem>>, vector<2x6x1x32xbf16>
    tpu.vector_store %arg15[%c0_45, %c0_46, %c5_47, %c0_48], %13 {strides = array<i32>} : memref<2x6x6x32xbf16, #tpu.memory_space<vmem>>, vector<2x6x1x32xbf16>,
    %cst_49 = arith.constant 0.000000e+00 : bf16
    %18 = vector.broadcast %cst_49 : bf16 to vector<2x1x4x32xbf16>
    %cst_50 = arith.constant 0.000000e+00 : bf16
    %19 = vector.broadcast %cst_50 : bf16 to vector<2x4x1x32xbf16>
    %c0_51 = arith.constant 0 : index
    %c0_52 = arith.constant 0 : index
    %c0_53 = arith.constant 0 : index
    %c0_54 = arith.constant 0 : index
    %20 = vector.load %arg16[%c0_51, %c0_52, %c0_53, %c0_54] : memref<2x4x4x32xbf16, #tpu.memory_space<vmem>>, vector<2x1x4x32xbf16>
    tpu.vector_store %arg16[%c0_51, %c0_52, %c0_53, %c0_54], %18 {strides = array<i32>} : memref<2x4x4x32xbf16, #tpu.memory_space<vmem>>, vector<2x1x4x32xbf16>,
    %c0_55 = arith.constant 0 : index
    %c3 = arith.constant 3 : index
    %c0_56 = arith.constant 0 : index
    %c0_57 = arith.constant 0 : index
    %21 = vector.load %arg16[%c0_55, %c3, %c0_56, %c0_57] : memref<2x4x4x32xbf16, #tpu.memory_space<vmem>>, vector<2x1x4x32xbf16>
    tpu.vector_store %arg16[%c0_55, %c3, %c0_56, %c0_57], %18 {strides = array<i32>} : memref<2x4x4x32xbf16, #tpu.memory_space<vmem>>, vector<2x1x4x32xbf16>,
    %c0_58 = arith.constant 0 : index
    %c0_59 = arith.constant 0 : index
    %c0_60 = arith.constant 0 : index
    %c0_61 = arith.constant 0 : index
    %22 = vector.load %arg16[%c0_58, %c0_59, %c0_60, %c0_61] : memref<2x4x4x32xbf16, #tpu.memory_space<vmem>>, vector<2x4x1x32xbf16>
    tpu.vector_store %arg16[%c0_58, %c0_59, %c0_60, %c0_61], %19 {strides = array<i32>} : memref<2x4x4x32xbf16, #tpu.memory_space<vmem>>, vector<2x4x1x32xbf16>,
    %c0_62 = arith.constant 0 : index
    %c0_63 = arith.constant 0 : index
    %c3_64 = arith.constant 3 : index
    %c0_65 = arith.constant 0 : index
    %23 = vector.load %arg16[%c0_62, %c0_63, %c3_64, %c0_65] : memref<2x4x4x32xbf16, #tpu.memory_space<vmem>>, vector<2x4x1x32xbf16>
    tpu.vector_store %arg16[%c0_62, %c0_63, %c3_64, %c0_65], %19 {strides = array<i32>} : memref<2x4x4x32xbf16, #tpu.memory_space<vmem>>, vector<2x4x1x32xbf16>,
    %c0_66 = arith.constant 0 : index
    %c0_67 = arith.constant 0 : index
    %c0_68 = arith.constant 0 : index
    %c0_69 = arith.constant 0 : index
    %24 = vector.load %arg1[%c0_66, %c0_67, %c0_68, %c0_69] : memref<2x16x16x3xbf16, #tpu.memory_space<vmem>>, vector<2x16x16x3xbf16>
    %c0_70 = arith.constant 0 : index
    %c1 = arith.constant 1 : index
    %c1_71 = arith.constant 1 : index
    %c0_72 = arith.constant 0 : index
    %25 = vector.load %arg13[%c0_70, %c1, %c1_71, %c0_72] : memref<2x18x18x3xbf16, #tpu.memory_space<vmem>>, vector<2x16x16x3xbf16>
    tpu.vector_store %arg13[%c0_70, %c1, %c1_71, %c0_72], %24 {strides = array<i32>} : memref<2x18x18x3xbf16, #tpu.memory_space<vmem>>, vector<2x16x16x3xbf16>,
    %c0_73 = arith.constant 0 : index
    %c0_74 = arith.constant 0 : index
    %c0_75 = arith.constant 0 : index
    %c0_76 = arith.constant 0 : index
    %26 = vector.load %arg13[%c0_73, %c0_74, %c0_75, %c0_76] : memref<2x18x18x3xbf16, #tpu.memory_space<vmem>>, vector<2x16x16x3xbf16>
    %c0_77 = arith.constant 0 : index
    %c0_78 = arith.constant 0 : index
    %c1_79 = arith.constant 1 : index
    %c0_80 = arith.constant 0 : index
    %27 = vector.load %arg13[%c0_77, %c0_78, %c1_79, %c0_80] : memref<2x18x18x3xbf16, #tpu.memory_space<vmem>>, vector<2x16x16x3xbf16>
    %c0_81 = arith.constant 0 : index
    %c0_82 = arith.constant 0 : index
    %c2 = arith.constant 2 : index
    %c0_83 = arith.constant 0 : index
    %28 = vector.load %arg13[%c0_81, %c0_82, %c2, %c0_83] : memref<2x18x18x3xbf16, #tpu.memory_space<vmem>>, vector<2x16x16x3xbf16>
    %c0_84 = arith.constant 0 : index
    %c1_85 = arith.constant 1 : index
    %c0_86 = arith.constant 0 : index
    %c0_87 = arith.constant 0 : index
    %29 = vector.load %arg13[%c0_84, %c1_85, %c0_86, %c0_87] : memref<2x18x18x3xbf16, #tpu.memory_space<vmem>>, vector<2x16x16x3xbf16>
    %c0_88 = arith.constant 0 : index
    %c1_89 = arith.constant 1 : index
    %c1_90 = arith.constant 1 : index
    %c0_91 = arith.constant 0 : index
    %30 = vector.load %arg13[%c0_88, %c1_89, %c1_90, %c0_91] : memref<2x18x18x3xbf16, #tpu.memory_space<vmem>>, vector<2x16x16x3xbf16>
    %c0_92 = arith.constant 0 : index
    %c1_93 = arith.constant 1 : index
    %c2_94 = arith.constant 2 : index
    %c0_95 = arith.constant 0 : index
    %31 = vector.load %arg13[%c0_92, %c1_93, %c2_94, %c0_95] : memref<2x18x18x3xbf16, #tpu.memory_space<vmem>>, vector<2x16x16x3xbf16>
    %c0_96 = arith.constant 0 : index
    %c2_97 = arith.constant 2 : index
    %c0_98 = arith.constant 0 : index
    %c0_99 = arith.constant 0 : index
    %32 = vector.load %arg13[%c0_96, %c2_97, %c0_98, %c0_99] : memref<2x18x18x3xbf16, #tpu.memory_space<vmem>>, vector<2x16x16x3xbf16>
    %c0_100 = arith.constant 0 : index
    %c2_101 = arith.constant 2 : index
    %c1_102 = arith.constant 1 : index
    %c0_103 = arith.constant 0 : index
    %33 = vector.load %arg13[%c0_100, %c2_101, %c1_102, %c0_103] : memref<2x18x18x3xbf16, #tpu.memory_space<vmem>>, vector<2x16x16x3xbf16>
    %c0_104 = arith.constant 0 : index
    %c2_105 = arith.constant 2 : index
    %c2_106 = arith.constant 2 : index
    %c0_107 = arith.constant 0 : index
    %34 = vector.load %arg13[%c0_104, %c2_105, %c2_106, %c0_107] : memref<2x18x18x3xbf16, #tpu.memory_space<vmem>>, vector<2x16x16x3xbf16>
    %35 = tpu.concatenate %26, %27, %28, %29, %30, %31, %32, %33, %34 in 3 : vector<2x16x16x3xbf16>, vector<2x16x16x3xbf16>, vector<2x16x16x3xbf16>, vector<2x16x16x3xbf16>, vector<2x16x16x3xbf16>, vector<2x16x16x3xbf16>, vector<2x16x16x3xbf16>, vector<2x16x16x3xbf16>, vector<2x16x16x3xbf16> -> vector<2x16x16x27xbf16>
    %36 = vector.shape_cast %35 : vector<2x16x16x27xbf16> to vector<512x27xbf16>
    %c0_108 = arith.constant 0 : index
    %c0_109 = arith.constant 0 : index
    %37 = vector.load %arg2[%c0_108, %c0_109] : memref<27x32xbf16, #tpu.memory_space<vmem>>, vector<27x32xbf16>
    %cst_110 = arith.constant dense<0.000000e+00> : vector<512x32xf32>
    %38 = tpu.matmul %36, %37, %cst_110 {dimension_numbers = #tpu.dot_dimension_numbers<[1], [0], [0], [1], [0, 0, 1, 1], [], []>} : vector<512x27xbf16>, vector<27x32xbf16>, vector<512x32xf32> -> vector<512x32xf32>
    %c0_111 = arith.constant 0 : index
    %c0_112 = arith.constant 0 : index
    %39 = vector.load %arg3[%c0_111, %c0_112] : memref<1x32xf32, #tpu.memory_space<vmem>>, vector<1x32xf32>
    %40 = vector.broadcast %39 : vector<1x32xf32> to vector<512x32xf32>
    %41 = arith.addf %38, %40 : vector<512x32xf32>
    %cst_113 = arith.constant 0.000000e+00 : f32
    %42 = vector.broadcast %cst_113 : f32 to vector<512x32xf32>
    %43 = arith.maximumf %41, %42 : vector<512x32xf32>
    %44 = vector.shape_cast %43 : vector<512x32xf32> to vector<2x16x16x32xf32>
    %45 = vector.shape_cast %44 : vector<2x16x16x32xf32> to vector<2x8x2x16x32xf32>
    %46 = vector.extract_strided_slice %45 {offsets = [0, 0, 0, 0, 0], sizes = [2, 8, 1, 16, 32], strides = [1, 1, 1, 1, 1]} : vector<2x8x2x16x32xf32> to vector<2x8x1x16x32xf32>
    %47 = vector.shape_cast %46 : vector<2x8x1x16x32xf32> to vector<2x8x16x32xf32>
    %48 = vector.extract_strided_slice %45 {offsets = [0, 0, 1, 0, 0], sizes = [2, 8, 1, 16, 32], strides = [1, 1, 1, 1, 1]} : vector<2x8x2x16x32xf32> to vector<2x8x1x16x32xf32>
    %49 = vector.shape_cast %48 : vector<2x8x1x16x32xf32> to vector<2x8x16x32xf32>
    %50 = arith.maximumf %47, %49 : vector<2x8x16x32xf32>
    %51 = vector.shape_cast %50 : vector<2x8x16x32xf32> to vector<2x8x8x2x32xf32>
    %52 = vector.extract_strided_slice %51 {offsets = [0, 0, 0, 0, 0], sizes = [2, 8, 8, 1, 32], strides = [1, 1, 1, 1, 1]} : vector<2x8x8x2x32xf32> to vector<2x8x8x1x32xf32>
    %53 = vector.shape_cast %52 : vector<2x8x8x1x32xf32> to vector<2x8x8x32xf32>
    %54 = vector.extract_strided_slice %51 {offsets = [0, 0, 0, 1, 0], sizes = [2, 8, 8, 1, 32], strides = [1, 1, 1, 1, 1]} : vector<2x8x8x2x32xf32> to vector<2x8x8x1x32xf32>
    %55 = vector.shape_cast %54 : vector<2x8x8x1x32xf32> to vector<2x8x8x32xf32>
    %56 = arith.maximumf %53, %55 : vector<2x8x8x32xf32>
    %57 = arith.truncf %56 : vector<2x8x8x32xf32> to vector<2x8x8x32xbf16>
    %c0_114 = arith.constant 0 : index
    %c1_115 = arith.constant 1 : index
    %c1_116 = arith.constant 1 : index
    %c0_117 = arith.constant 0 : index
    %58 = vector.load %arg14[%c0_114, %c1_115, %c1_116, %c0_117] : memref<2x10x10x32xbf16, #tpu.memory_space<vmem>>, vector<2x8x8x32xbf16>
    tpu.vector_store %arg14[%c0_114, %c1_115, %c1_116, %c0_117], %57 {strides = array<i32>} : memref<2x10x10x32xbf16, #tpu.memory_space<vmem>>, vector<2x8x8x32xbf16>,
    %c0_118 = arith.constant 0 : index
    %c0_119 = arith.constant 0 : index
    %c0_120 = arith.constant 0 : index
    %c0_121 = arith.constant 0 : index
    %59 = vector.load %arg14[%c0_118, %c0_119, %c0_120, %c0_121] : memref<2x10x10x32xbf16, #tpu.memory_space<vmem>>, vector<2x8x8x32xbf16>
    %c0_122 = arith.constant 0 : index
    %c0_123 = arith.constant 0 : index
    %c1_124 = arith.constant 1 : index
    %c0_125 = arith.constant 0 : index
    %60 = vector.load %arg14[%c0_122, %c0_123, %c1_124, %c0_125] : memref<2x10x10x32xbf16, #tpu.memory_space<vmem>>, vector<2x8x8x32xbf16>
    %c0_126 = arith.constant 0 : index
    %c0_127 = arith.constant 0 : index
    %c2_128 = arith.constant 2 : index
    %c0_129 = arith.constant 0 : index
    %61 = vector.load %arg14[%c0_126, %c0_127, %c2_128, %c0_129] : memref<2x10x10x32xbf16, #tpu.memory_space<vmem>>, vector<2x8x8x32xbf16>
    %c0_130 = arith.constant 0 : index
    %c1_131 = arith.constant 1 : index
    %c0_132 = arith.constant 0 : index
    %c0_133 = arith.constant 0 : index
    %62 = vector.load %arg14[%c0_130, %c1_131, %c0_132, %c0_133] : memref<2x10x10x32xbf16, #tpu.memory_space<vmem>>, vector<2x8x8x32xbf16>
    %c0_134 = arith.constant 0 : index
    %c1_135 = arith.constant 1 : index
    %c1_136 = arith.constant 1 : index
    %c0_137 = arith.constant 0 : index
    %63 = vector.load %arg14[%c0_134, %c1_135, %c1_136, %c0_137] : memref<2x10x10x32xbf16, #tpu.memory_space<vmem>>, vector<2x8x8x32xbf16>
    %c0_138 = arith.constant 0 : index
    %c1_139 = arith.constant 1 : index
    %c2_140 = arith.constant 2 : index
    %c0_141 = arith.constant 0 : index
    %64 = vector.load %arg14[%c0_138, %c1_139, %c2_140, %c0_141] : memref<2x10x10x32xbf16, #tpu.memory_space<vmem>>, vector<2x8x8x32xbf16>
    %c0_142 = arith.constant 0 : index
    %c2_143 = arith.constant 2 : index
    %c0_144 = arith.constant 0 : index
    %c0_145 = arith.constant 0 : index
    %65 = vector.load %arg14[%c0_142, %c2_143, %c0_144, %c0_145] : memref<2x10x10x32xbf16, #tpu.memory_space<vmem>>, vector<2x8x8x32xbf16>
    %c0_146 = arith.constant 0 : index
    %c2_147 = arith.constant 2 : index
    %c1_148 = arith.constant 1 : index
    %c0_149 = arith.constant 0 : index
    %66 = vector.load %arg14[%c0_146, %c2_147, %c1_148, %c0_149] : memref<2x10x10x32xbf16, #tpu.memory_space<vmem>>, vector<2x8x8x32xbf16>
    %c0_150 = arith.constant 0 : index
    %c2_151 = arith.constant 2 : index
    %c2_152 = arith.constant 2 : index
    %c0_153 = arith.constant 0 : index
    %67 = vector.load %arg14[%c0_150, %c2_151, %c2_152, %c0_153] : memref<2x10x10x32xbf16, #tpu.memory_space<vmem>>, vector<2x8x8x32xbf16>
    %68 = tpu.concatenate %59, %60, %61, %62, %63, %64, %65, %66, %67 in 3 : vector<2x8x8x32xbf16>, vector<2x8x8x32xbf16>, vector<2x8x8x32xbf16>, vector<2x8x8x32xbf16>, vector<2x8x8x32xbf16>, vector<2x8x8x32xbf16>, vector<2x8x8x32xbf16>, vector<2x8x8x32xbf16>, vector<2x8x8x32xbf16> -> vector<2x8x8x288xbf16>
    %69 = vector.shape_cast %68 : vector<2x8x8x288xbf16> to vector<128x288xbf16>
    %c0_154 = arith.constant 0 : index
    %c0_155 = arith.constant 0 : index
    %70 = vector.load %arg4[%c0_154, %c0_155] : memref<288x32xbf16, #tpu.memory_space<vmem>>, vector<288x32xbf16>
    %cst_156 = arith.constant dense<0.000000e+00> : vector<128x32xf32>
    %71 = tpu.matmul %69, %70, %cst_156 {dimension_numbers = #tpu.dot_dimension_numbers<[1], [0], [0], [1], [0, 0, 1, 1], [], []>} : vector<128x288xbf16>, vector<288x32xbf16>, vector<128x32xf32> -> vector<128x32xf32>
    %c0_157 = arith.constant 0 : index
    %c0_158 = arith.constant 0 : index
    %72 = vector.load %arg5[%c0_157, %c0_158] : memref<1x32xf32, #tpu.memory_space<vmem>>, vector<1x32xf32>
    %73 = vector.broadcast %72 : vector<1x32xf32> to vector<128x32xf32>
    %74 = arith.addf %71, %73 : vector<128x32xf32>
    %cst_159 = arith.constant 0.000000e+00 : f32
    %75 = vector.broadcast %cst_159 : f32 to vector<128x32xf32>
    %76 = arith.maximumf %74, %75 : vector<128x32xf32>
    %77 = vector.shape_cast %76 : vector<128x32xf32> to vector<2x8x8x32xf32>
    %78 = vector.shape_cast %77 : vector<2x8x8x32xf32> to vector<2x4x2x8x32xf32>
    %79 = vector.extract_strided_slice %78 {offsets = [0, 0, 0, 0, 0], sizes = [2, 4, 1, 8, 32], strides = [1, 1, 1, 1, 1]} : vector<2x4x2x8x32xf32> to vector<2x4x1x8x32xf32>
    %80 = vector.shape_cast %79 : vector<2x4x1x8x32xf32> to vector<2x4x8x32xf32>
    %81 = vector.extract_strided_slice %78 {offsets = [0, 0, 1, 0, 0], sizes = [2, 4, 1, 8, 32], strides = [1, 1, 1, 1, 1]} : vector<2x4x2x8x32xf32> to vector<2x4x1x8x32xf32>
    %82 = vector.shape_cast %81 : vector<2x4x1x8x32xf32> to vector<2x4x8x32xf32>
    %83 = arith.maximumf %80, %82 : vector<2x4x8x32xf32>
    %84 = vector.shape_cast %83 : vector<2x4x8x32xf32> to vector<2x4x4x2x32xf32>
    %85 = vector.extract_strided_slice %84 {offsets = [0, 0, 0, 0, 0], sizes = [2, 4, 4, 1, 32], strides = [1, 1, 1, 1, 1]} : vector<2x4x4x2x32xf32> to vector<2x4x4x1x32xf32>
    %86 = vector.shape_cast %85 : vector<2x4x4x1x32xf32> to vector<2x4x4x32xf32>
    %87 = vector.extract_strided_slice %84 {offsets = [0, 0, 0, 1, 0], sizes = [2, 4, 4, 1, 32], strides = [1, 1, 1, 1, 1]} : vector<2x4x4x2x32xf32> to vector<2x4x4x1x32xf32>
    %88 = vector.shape_cast %87 : vector<2x4x4x1x32xf32> to vector<2x4x4x32xf32>
    %89 = arith.maximumf %86, %88 : vector<2x4x4x32xf32>
    %90 = arith.truncf %89 : vector<2x4x4x32xf32> to vector<2x4x4x32xbf16>
    %c0_160 = arith.constant 0 : index
    %c1_161 = arith.constant 1 : index
    %c1_162 = arith.constant 1 : index
    %c0_163 = arith.constant 0 : index
    %91 = vector.load %arg15[%c0_160, %c1_161, %c1_162, %c0_163] : memref<2x6x6x32xbf16, #tpu.memory_space<vmem>>, vector<2x4x4x32xbf16>
    tpu.vector_store %arg15[%c0_160, %c1_161, %c1_162, %c0_163], %90 {strides = array<i32>} : memref<2x6x6x32xbf16, #tpu.memory_space<vmem>>, vector<2x4x4x32xbf16>,
    %c0_164 = arith.constant 0 : index
    %c0_165 = arith.constant 0 : index
    %c0_166 = arith.constant 0 : index
    %c0_167 = arith.constant 0 : index
    %92 = vector.load %arg15[%c0_164, %c0_165, %c0_166, %c0_167] : memref<2x6x6x32xbf16, #tpu.memory_space<vmem>>, vector<2x4x4x32xbf16>
    %c0_168 = arith.constant 0 : index
    %c0_169 = arith.constant 0 : index
    %c1_170 = arith.constant 1 : index
    %c0_171 = arith.constant 0 : index
    %93 = vector.load %arg15[%c0_168, %c0_169, %c1_170, %c0_171] : memref<2x6x6x32xbf16, #tpu.memory_space<vmem>>, vector<2x4x4x32xbf16>
    %c0_172 = arith.constant 0 : index
    %c0_173 = arith.constant 0 : index
    %c2_174 = arith.constant 2 : index
    %c0_175 = arith.constant 0 : index
    %94 = vector.load %arg15[%c0_172, %c0_173, %c2_174, %c0_175] : memref<2x6x6x32xbf16, #tpu.memory_space<vmem>>, vector<2x4x4x32xbf16>
    %c0_176 = arith.constant 0 : index
    %c1_177 = arith.constant 1 : index
    %c0_178 = arith.constant 0 : index
    %c0_179 = arith.constant 0 : index
    %95 = vector.load %arg15[%c0_176, %c1_177, %c0_178, %c0_179] : memref<2x6x6x32xbf16, #tpu.memory_space<vmem>>, vector<2x4x4x32xbf16>
    %c0_180 = arith.constant 0 : index
    %c1_181 = arith.constant 1 : index
    %c1_182 = arith.constant 1 : index
    %c0_183 = arith.constant 0 : index
    %96 = vector.load %arg15[%c0_180, %c1_181, %c1_182, %c0_183] : memref<2x6x6x32xbf16, #tpu.memory_space<vmem>>, vector<2x4x4x32xbf16>
    %c0_184 = arith.constant 0 : index
    %c1_185 = arith.constant 1 : index
    %c2_186 = arith.constant 2 : index
    %c0_187 = arith.constant 0 : index
    %97 = vector.load %arg15[%c0_184, %c1_185, %c2_186, %c0_187] : memref<2x6x6x32xbf16, #tpu.memory_space<vmem>>, vector<2x4x4x32xbf16>
    %c0_188 = arith.constant 0 : index
    %c2_189 = arith.constant 2 : index
    %c0_190 = arith.constant 0 : index
    %c0_191 = arith.constant 0 : index
    %98 = vector.load %arg15[%c0_188, %c2_189, %c0_190, %c0_191] : memref<2x6x6x32xbf16, #tpu.memory_space<vmem>>, vector<2x4x4x32xbf16>
    %c0_192 = arith.constant 0 : index
    %c2_193 = arith.constant 2 : index
    %c1_194 = arith.constant 1 : index
    %c0_195 = arith.constant 0 : index
    %99 = vector.load %arg15[%c0_192, %c2_193, %c1_194, %c0_195] : memref<2x6x6x32xbf16, #tpu.memory_space<vmem>>, vector<2x4x4x32xbf16>
    %c0_196 = arith.constant 0 : index
    %c2_197 = arith.constant 2 : index
    %c2_198 = arith.constant 2 : index
    %c0_199 = arith.constant 0 : index
    %100 = vector.load %arg15[%c0_196, %c2_197, %c2_198, %c0_199] : memref<2x6x6x32xbf16, #tpu.memory_space<vmem>>, vector<2x4x4x32xbf16>
    %101 = tpu.concatenate %92, %93, %94, %95, %96, %97, %98, %99, %100 in 3 : vector<2x4x4x32xbf16>, vector<2x4x4x32xbf16>, vector<2x4x4x32xbf16>, vector<2x4x4x32xbf16>, vector<2x4x4x32xbf16>, vector<2x4x4x32xbf16>, vector<2x4x4x32xbf16>, vector<2x4x4x32xbf16>, vector<2x4x4x32xbf16> -> vector<2x4x4x288xbf16>
    %102 = vector.shape_cast %101 : vector<2x4x4x288xbf16> to vector<32x288xbf16>
    %c0_200 = arith.constant 0 : index
    %c0_201 = arith.constant 0 : index
    %103 = vector.load %arg6[%c0_200, %c0_201] : memref<288x32xbf16, #tpu.memory_space<vmem>>, vector<288x32xbf16>
    %cst_202 = arith.constant dense<0.000000e+00> : vector<32x32xf32>
    %104 = tpu.matmul %102, %103, %cst_202 {dimension_numbers = #tpu.dot_dimension_numbers<[1], [0], [0], [1], [0, 0, 1, 1], [], []>} : vector<32x288xbf16>, vector<288x32xbf16>, vector<32x32xf32> -> vector<32x32xf32>
    %c0_203 = arith.constant 0 : index
    %c0_204 = arith.constant 0 : index
    %105 = vector.load %arg7[%c0_203, %c0_204] : memref<1x32xf32, #tpu.memory_space<vmem>>, vector<1x32xf32>
    %106 = vector.broadcast %105 : vector<1x32xf32> to vector<32x32xf32>
    %107 = arith.addf %104, %106 : vector<32x32xf32>
    %cst_205 = arith.constant 0.000000e+00 : f32
    %108 = vector.broadcast %cst_205 : f32 to vector<32x32xf32>
    %109 = arith.maximumf %107, %108 : vector<32x32xf32>
    %110 = vector.shape_cast %109 : vector<32x32xf32> to vector<2x4x4x32xf32>
    %111 = vector.shape_cast %110 : vector<2x4x4x32xf32> to vector<2x2x2x4x32xf32>
    %112 = vector.extract_strided_slice %111 {offsets = [0, 0, 0, 0, 0], sizes = [2, 2, 1, 4, 32], strides = [1, 1, 1, 1, 1]} : vector<2x2x2x4x32xf32> to vector<2x2x1x4x32xf32>
    %113 = vector.shape_cast %112 : vector<2x2x1x4x32xf32> to vector<2x2x4x32xf32>
    %114 = vector.extract_strided_slice %111 {offsets = [0, 0, 1, 0, 0], sizes = [2, 2, 1, 4, 32], strides = [1, 1, 1, 1, 1]} : vector<2x2x2x4x32xf32> to vector<2x2x1x4x32xf32>
    %115 = vector.shape_cast %114 : vector<2x2x1x4x32xf32> to vector<2x2x4x32xf32>
    %116 = arith.maximumf %113, %115 : vector<2x2x4x32xf32>
    %117 = vector.shape_cast %116 : vector<2x2x4x32xf32> to vector<2x2x2x2x32xf32>
    %118 = vector.extract_strided_slice %117 {offsets = [0, 0, 0, 0, 0], sizes = [2, 2, 2, 1, 32], strides = [1, 1, 1, 1, 1]} : vector<2x2x2x2x32xf32> to vector<2x2x2x1x32xf32>
    %119 = vector.shape_cast %118 : vector<2x2x2x1x32xf32> to vector<2x2x2x32xf32>
    %120 = vector.extract_strided_slice %117 {offsets = [0, 0, 0, 1, 0], sizes = [2, 2, 2, 1, 32], strides = [1, 1, 1, 1, 1]} : vector<2x2x2x2x32xf32> to vector<2x2x2x1x32xf32>
    %121 = vector.shape_cast %120 : vector<2x2x2x1x32xf32> to vector<2x2x2x32xf32>
    %122 = arith.maximumf %119, %121 : vector<2x2x2x32xf32>
    %123 = arith.truncf %122 : vector<2x2x2x32xf32> to vector<2x2x2x32xbf16>
    %c0_206 = arith.constant 0 : index
    %c1_207 = arith.constant 1 : index
    %c1_208 = arith.constant 1 : index
    %c0_209 = arith.constant 0 : index
    %124 = vector.load %arg16[%c0_206, %c1_207, %c1_208, %c0_209] : memref<2x4x4x32xbf16, #tpu.memory_space<vmem>>, vector<2x2x2x32xbf16>
    tpu.vector_store %arg16[%c0_206, %c1_207, %c1_208, %c0_209], %123 {strides = array<i32>} : memref<2x4x4x32xbf16, #tpu.memory_space<vmem>>, vector<2x2x2x32xbf16>,
    %c0_210 = arith.constant 0 : index
    %c0_211 = arith.constant 0 : index
    %c0_212 = arith.constant 0 : index
    %c0_213 = arith.constant 0 : index
    %125 = vector.load %arg16[%c0_210, %c0_211, %c0_212, %c0_213] : memref<2x4x4x32xbf16, #tpu.memory_space<vmem>>, vector<2x2x2x32xbf16>
    %c0_214 = arith.constant 0 : index
    %c0_215 = arith.constant 0 : index
    %c1_216 = arith.constant 1 : index
    %c0_217 = arith.constant 0 : index
    %126 = vector.load %arg16[%c0_214, %c0_215, %c1_216, %c0_217] : memref<2x4x4x32xbf16, #tpu.memory_space<vmem>>, vector<2x2x2x32xbf16>
    %c0_218 = arith.constant 0 : index
    %c0_219 = arith.constant 0 : index
    %c2_220 = arith.constant 2 : index
    %c0_221 = arith.constant 0 : index
    %127 = vector.load %arg16[%c0_218, %c0_219, %c2_220, %c0_221] : memref<2x4x4x32xbf16, #tpu.memory_space<vmem>>, vector<2x2x2x32xbf16>
    %c0_222 = arith.constant 0 : index
    %c1_223 = arith.constant 1 : index
    %c0_224 = arith.constant 0 : index
    %c0_225 = arith.constant 0 : index
    %128 = vector.load %arg16[%c0_222, %c1_223, %c0_224, %c0_225] : memref<2x4x4x32xbf16, #tpu.memory_space<vmem>>, vector<2x2x2x32xbf16>
    %c0_226 = arith.constant 0 : index
    %c1_227 = arith.constant 1 : index
    %c1_228 = arith.constant 1 : index
    %c0_229 = arith.constant 0 : index
    %129 = vector.load %arg16[%c0_226, %c1_227, %c1_228, %c0_229] : memref<2x4x4x32xbf16, #tpu.memory_space<vmem>>, vector<2x2x2x32xbf16>
    %c0_230 = arith.constant 0 : index
    %c1_231 = arith.constant 1 : index
    %c2_232 = arith.constant 2 : index
    %c0_233 = arith.constant 0 : index
    %130 = vector.load %arg16[%c0_230, %c1_231, %c2_232, %c0_233] : memref<2x4x4x32xbf16, #tpu.memory_space<vmem>>, vector<2x2x2x32xbf16>
    %c0_234 = arith.constant 0 : index
    %c2_235 = arith.constant 2 : index
    %c0_236 = arith.constant 0 : index
    %c0_237 = arith.constant 0 : index
    %131 = vector.load %arg16[%c0_234, %c2_235, %c0_236, %c0_237] : memref<2x4x4x32xbf16, #tpu.memory_space<vmem>>, vector<2x2x2x32xbf16>
    %c0_238 = arith.constant 0 : index
    %c2_239 = arith.constant 2 : index
    %c1_240 = arith.constant 1 : index
    %c0_241 = arith.constant 0 : index
    %132 = vector.load %arg16[%c0_238, %c2_239, %c1_240, %c0_241] : memref<2x4x4x32xbf16, #tpu.memory_space<vmem>>, vector<2x2x2x32xbf16>
    %c0_242 = arith.constant 0 : index
    %c2_243 = arith.constant 2 : index
    %c2_244 = arith.constant 2 : index
    %c0_245 = arith.constant 0 : index
    %133 = vector.load %arg16[%c0_242, %c2_243, %c2_244, %c0_245] : memref<2x4x4x32xbf16, #tpu.memory_space<vmem>>, vector<2x2x2x32xbf16>
    %134 = tpu.concatenate %125, %126, %127, %128, %129, %130, %131, %132, %133 in 3 : vector<2x2x2x32xbf16>, vector<2x2x2x32xbf16>, vector<2x2x2x32xbf16>, vector<2x2x2x32xbf16>, vector<2x2x2x32xbf16>, vector<2x2x2x32xbf16>, vector<2x2x2x32xbf16>, vector<2x2x2x32xbf16>, vector<2x2x2x32xbf16> -> vector<2x2x2x288xbf16>
    %135 = vector.shape_cast %134 : vector<2x2x2x288xbf16> to vector<8x288xbf16>
    %c0_246 = arith.constant 0 : index
    %c0_247 = arith.constant 0 : index
    %136 = vector.load %arg8[%c0_246, %c0_247] : memref<288x32xbf16, #tpu.memory_space<vmem>>, vector<288x32xbf16>
    %cst_248 = arith.constant dense<0.000000e+00> : vector<8x32xf32>
    %137 = tpu.matmul %135, %136, %cst_248 {dimension_numbers = #tpu.dot_dimension_numbers<[1], [0], [0], [1], [0, 0, 1, 1], [], []>} : vector<8x288xbf16>, vector<288x32xbf16>, vector<8x32xf32> -> vector<8x32xf32>
    %c0_249 = arith.constant 0 : index
    %c0_250 = arith.constant 0 : index
    %138 = vector.load %arg9[%c0_249, %c0_250] : memref<1x32xf32, #tpu.memory_space<vmem>>, vector<1x32xf32>
    %139 = vector.broadcast %138 : vector<1x32xf32> to vector<8x32xf32>
    %140 = arith.addf %137, %139 : vector<8x32xf32>
    %cst_251 = arith.constant 0.000000e+00 : f32
    %141 = vector.broadcast %cst_251 : f32 to vector<8x32xf32>
    %142 = arith.maximumf %140, %141 : vector<8x32xf32>
    %143 = vector.shape_cast %142 : vector<8x32xf32> to vector<2x2x2x32xf32>
    %144 = vector.shape_cast %143 : vector<2x2x2x32xf32> to vector<2x1x2x2x32xf32>
    %145 = vector.extract_strided_slice %144 {offsets = [0, 0, 0, 0, 0], sizes = [2, 1, 1, 2, 32], strides = [1, 1, 1, 1, 1]} : vector<2x1x2x2x32xf32> to vector<2x1x1x2x32xf32>
    %146 = vector.shape_cast %145 : vector<2x1x1x2x32xf32> to vector<2x1x2x32xf32>
    %147 = vector.extract_strided_slice %144 {offsets = [0, 0, 1, 0, 0], sizes = [2, 1, 1, 2, 32], strides = [1, 1, 1, 1, 1]} : vector<2x1x2x2x32xf32> to vector<2x1x1x2x32xf32>
    %148 = vector.shape_cast %147 : vector<2x1x1x2x32xf32> to vector<2x1x2x32xf32>
    %149 = arith.maximumf %146, %148 : vector<2x1x2x32xf32>
    %150 = vector.shape_cast %149 : vector<2x1x2x32xf32> to vector<2x1x1x2x32xf32>
    %151 = vector.extract_strided_slice %150 {offsets = [0, 0, 0, 0, 0], sizes = [2, 1, 1, 1, 32], strides = [1, 1, 1, 1, 1]} : vector<2x1x1x2x32xf32> to vector<2x1x1x1x32xf32>
    %152 = vector.shape_cast %151 : vector<2x1x1x1x32xf32> to vector<2x1x1x32xf32>
    %153 = vector.extract_strided_slice %150 {offsets = [0, 0, 0, 1, 0], sizes = [2, 1, 1, 1, 32], strides = [1, 1, 1, 1, 1]} : vector<2x1x1x2x32xf32> to vector<2x1x1x1x32xf32>
    %154 = vector.shape_cast %153 : vector<2x1x1x1x32xf32> to vector<2x1x1x32xf32>
    %155 = arith.maximumf %152, %154 : vector<2x1x1x32xf32>
    %156 = vector.shape_cast %155 : vector<2x1x1x32xf32> to vector<2x1x32xf32>
    %cst_252 = arith.constant dense<0.000000e+00> : vector<2x32xf32>
    %157 = vector.multi_reduction <add>, %156, %cst_252 [1] : vector<2x1x32xf32> to vector<2x32xf32>
    %cst_253 = arith.constant 1.000000e+00 : f32
    %158 = vector.broadcast %cst_253 : f32 to vector<2x32xf32>
    %159 = arith.mulf %157, %158 : vector<2x32xf32>
    %c0_254 = arith.constant 0 : index
    %c0_255 = arith.constant 0 : index
    %160 = vector.load %arg10[%c0_254, %c0_255] : memref<32x128xf32, #tpu.memory_space<vmem>>, vector<32x128xf32>
    %cst_256 = arith.constant dense<0.000000e+00> : vector<2x128xf32>
    %161 = tpu.matmul %159, %160, %cst_256 {dimension_numbers = #tpu.dot_dimension_numbers<[1], [0], [0], [1], [0, 0, 1, 1], [], []>} : vector<2x32xf32>, vector<32x128xf32>, vector<2x128xf32> -> vector<2x128xf32>
    %c0_257 = arith.constant 0 : index
    %c0_258 = arith.constant 0 : index
    %162 = vector.load %arg11[%c0_257, %c0_258] : memref<1x128xf32, #tpu.memory_space<vmem>>, vector<1x128xf32>
    %163 = vector.broadcast %162 : vector<1x128xf32> to vector<2x128xf32>
    %164 = arith.addf %161, %163 : vector<2x128xf32>
    %c0_259 = arith.constant 0 : index
    %c0_260 = arith.constant 0 : index
    %165 = vector.load %arg12[%c0_259, %c0_260] : memref<2x128xf32, #tpu.memory_space<vmem>>, vector<2x128xf32>
    tpu.vector_store %arg12[%c0_259, %c0_260], %164 {strides = array<i32>} : memref<2x128xf32, #tpu.memory_space<vmem>>, vector<2x128xf32>,
    return
  }
  func.func @transform_0(%arg0: i32) -> (i32, i32, i32, i32) {
    %c0_i32 = arith.constant 0 : i32
    %c0_i32_0 = arith.constant 0 : i32
    %c0_i32_1 = arith.constant 0 : i32
    %c0_i32_2 = arith.constant 0 : i32
    return %arg0, %c0_i32, %c0_i32_0, %c0_i32_1 : i32, i32, i32, i32
  }
  func.func @transform_1(%arg0: i32) -> (i32, i32) {
    %c0_i32 = arith.constant 0 : i32
    %c0_i32_0 = arith.constant 0 : i32
    %c0_i32_1 = arith.constant 0 : i32
    return %c0_i32, %c0_i32_0 : i32, i32
  }
  func.func @transform_2(%arg0: i32) -> (i32, i32) {
    %c0_i32 = arith.constant 0 : i32
    %c0_i32_0 = arith.constant 0 : i32
    %c0_i32_1 = arith.constant 0 : i32
    return %c0_i32, %c0_i32_0 : i32, i32
  }
  func.func @transform_3(%arg0: i32) -> (i32, i32) {
    %c0_i32 = arith.constant 0 : i32
    %c0_i32_0 = arith.constant 0 : i32
    %c0_i32_1 = arith.constant 0 : i32
    return %c0_i32, %c0_i32_0 : i32, i32
  }
  func.func @transform_4(%arg0: i32) -> (i32, i32) {
    %c0_i32 = arith.constant 0 : i32
    %c0_i32_0 = arith.constant 0 : i32
    %c0_i32_1 = arith.constant 0 : i32
    return %c0_i32, %c0_i32_0 : i32, i32
  }
  func.func @transform_5(%arg0: i32) -> (i32, i32) {
    %c0_i32 = arith.constant 0 : i32
    %c0_i32_0 = arith.constant 0 : i32
    %c0_i32_1 = arith.constant 0 : i32
    return %c0_i32, %c0_i32_0 : i32, i32
  }
  func.func @transform_6(%arg0: i32) -> (i32, i32) {
    %c0_i32 = arith.constant 0 : i32
    %c0_i32_0 = arith.constant 0 : i32
    %c0_i32_1 = arith.constant 0 : i32
    return %c0_i32, %c0_i32_0 : i32, i32
  }
  func.func @transform_7(%arg0: i32) -> (i32, i32) {
    %c0_i32 = arith.constant 0 : i32
    %c0_i32_0 = arith.constant 0 : i32
    %c0_i32_1 = arith.constant 0 : i32
    return %c0_i32, %c0_i32_0 : i32, i32
  }
  func.func @transform_8(%arg0: i32) -> (i32, i32) {
    %c0_i32 = arith.constant 0 : i32
    %c0_i32_0 = arith.constant 0 : i32
    %c0_i32_1 = arith.constant 0 : i32
    return %c0_i32, %c0_i32_0 : i32, i32
  }
  func.func @transform_9(%arg0: i32) -> (i32, i32) {
    %c0_i32 = arith.constant 0 : i32
    %c0_i32_0 = arith.constant 0 : i32
    %c0_i32_1 = arith.constant 0 : i32
    return %c0_i32, %c0_i32_0 : i32, i32
  }
  func.func @transform_10(%arg0: i32) -> (i32, i32) {
    %c0_i32 = arith.constant 0 : i32
    %c0_i32_0 = arith.constant 0 : i32
    %c0_i32_1 = arith.constant 0 : i32
    return %c0_i32, %c0_i32_0 : i32, i32
  }
  func.func @transform_11(%arg0: i32) -> (i32, i32) {
    %c0_i32 = arith.constant 0 : i32
    %c0_i32_0 = arith.constant 0 : i32
    return %arg0, %c0_i32 : i32, i32
  }
}

</mosaic_0001>

<bundles_post_ra>
// kernel: classifier_forward.1
= control target key start
LH: loop header
LB: loop body
LE: loop exit
PB: predicated region body
PF: predicated region fallthrough
CT: control target
= control target key end

     0   :  { %vm43_vm0 = vcmask 16384   ;;  %vm20437_vm1 = vsmask.f32 256  ;;  %v64_v0 = vld [vmem:[#allocation2 + $0x18] sm:$0x1]  ;;  %vm20444_vm5 = vcmask 19456   ;;  %s20424_s0 = inlined_call_operand.vmem [shape: bf16[2,16,16,3], index: 0, kind: input, shape index: {}]   ;;  %s20425_s1 = inlined_call_operand.vmem [shape: bf16[27,32], index: 1, kind: input, shape index: {}]   ;;  %s20426_s2 = inlined_call_operand.vmem [shape: f32[1,32], index: 2, kind: input, shape index: {}]   ;;  %s20427_s3 = inlined_call_operand.vmem [shape: bf16[288,32], index: 3, kind: input, shape index: {}]   ;;  %s20428_s4 = inlined_call_operand.vmem [shape: f32[1,32], index: 4, kind: input, shape index: {}]   ;;  %s20429_s5 = inlined_call_operand.vmem [shape: bf16[288,32], index: 5, kind: input, shape index: {}]   ;;  %s20430_s6 = inlined_call_operand.vmem [shape: f32[1,32], index: 6, kind: input, shape index: {}]   ;;  %s20431_s7 = inlined_call_operand.vmem [shape: bf16[288,32], index: 7, kind: input, shape index: {}]   ;;  %s20432_s8 = inlined_call_operand.vmem [shape: f32[1,32], index: 8, kind: input, shape index: {}]   ;;  %s20433_s9 = inlined_call_operand.vmem [shape: f32[32,128], index: 9, kind: input, shape index: {}]   ;;  %s20434_s10 = inlined_call_operand.vmem [shape: f32[1,128], index: 10, kind: input, shape index: {}]   ;;  %s20435_s11 = inlined_call_operand.hbm [shape: f32[2,128], index: 11, kind: output, shape index: {}]  }
   0x1   :  { %vm15120_vm2 = vmand %vm43_vm0, %vm20437_vm1  ;;  %vm20436_vm3 = vsmask.f32 7938  ;;  %v550_v2 = vld [vmem:[%s20424_s0 + $0x8] sm:$0xf]  ;;  %v551_v3 = vld [vmem:[%s20424_s0 + $0xc] sm:$0xf] }
   0x2   :  { %v65_v4 = vsel %vm15120_vm2, 0, %v64_v0  ;;  %vm612_vm4 = vsmask.f32 4368  ;;  %v632_v5 = vshrl.u32 %v550_v2, 16  ;;  %v635_v6 = vshll.u32 %v550_v2, 16  ;;  %vm15155_vm7 = vmand %vm43_vm0, %vm20436_vm3  ;;  %s15041_s14 = smov 9  }
   0x3   :  { %66 = vst [vmem:[#allocation2 + $0x18] sm:$0x1] %v65_v4  ;;  %v640_v7 = vshrl.u32 %v551_v3, 16  ;;  %v643_v8 = vshll.u32 %v551_v3, 16  ;;  %v61_v9 = vld [vmem:[#allocation2 + $0xc] sm:$0x1]  ;;  %vm15144_vm6 = vmor %vm20437_vm1, %vm612_vm4 }
   0x4   :  { %v548_v10 = vld [vmem:[%s20424_s0] sm:$0xf]  ;;  %v634_v11 = vrot.slane %v632_v5, 7  ;;  %v62_v12 = vsel %vm15120_vm2, 0, %v61_v9  ;;  %v549_v13 = vld [vmem:[%s20424_s0 + $0x4] sm:$0xf]  ;;  %vm15167_vm8 = vmand %vm20444_vm5, %vm20436_vm3 }
   0x5   :  { %v615_v14 = vshrl.u32 %v548_v10, 16  ;;  %v15140_v15 = vrot.slane %v640_v7, 7  ;;  %63 = vst [vmem:[#allocation2 + $0xc] sm:$0x1] %v62_v12  ;;  %v618_v16 = vshll.u32 %v548_v10, 16  ;;  %v623_v17 = vshrl.u32 %v549_v13, 16 }
   0x6   :  { %v626_v18 = vshll.u32 %v549_v13, 16  ;;  %v67_v19 = vld [vmem:[#allocation2 + $0x24] sm:$0x1]  ;;  %v638_v21 = vrot.slane %v634_v11, 4  ;;  %v552_v24 = vld [vmem:[%s20424_s0 + $0x10] sm:$0xf]  ;;  %v637_v26 = vor.u32 %v635_v6, %v634_v11 }
   0x7   :  { %v617_v22 = vrot.slane %v615_v14, 7  ;;  %v68_v23 = vsel %vm15120_vm2, 0, %v67_v19  ;;  %v645_v27 = vor.u32 %v643_v8, %v15140_v15  ;;  %v15160_v28 = vrot.slane %v623_v17, 7  ;;  %v553_v29 = vld [vmem:[%s20424_s0 + $0x14] sm:$0xf]  ;;  %s15042_s15 = smov 18  }
   0x8   :  { %69 = vst [vmem:[#allocation2 + $0x24] sm:$0x1] %v68_v23  ;;  %v649_v30 = vshrl.u32 %v552_v24, 16  ;;  %v652_v33 = vshll.u32 %v552_v24, 16  ;;  %v657_v34 = vshrl.u32 %v553_v29, 16  ;;  %v660_v43 = vshll.u32 %v553_v29, 16 }
   0x9   :  { %v621_v32 = vrot.slane %v617_v22, 4  ;;  %v171_v35 = vld [vmem:[#allocation2 + $0x14] sm:$0x1]  ;;  %v646_v36 = vsel %vm15144_vm6, %v638_v21, %v645_v27  ;;  %v620_v37 = vor.u32 %v618_v16, %v617_v22  ;;  %v628_v38 = vor.u32 %v626_v18, %v15160_v28  ;;  %v174_v40 = vld [vmem:[#allocation2 + $0x20] sm:$0x1]  ;;  %s15043_s16 = smov 15  }
   0xa   :  { %v651_v39 = vrot.slane %v649_v30, 7  ;;  %v1264_v41 = vld [vmem:[#allocation2 + $0x18] sm:$0xf]  ;;  %1267 = vst.msk [vmem:[#allocation2 + $0x1c] sm:$0xf] %vm20444_vm5, %v646_v36  ;;  %v15175_v42 = vrot.slane %v657_v34, 7 }
   0xb   :  { %v172_v44 = vsel %vm15155_vm7, 0, %v171_v35  ;;  %v1265_v45 = vsel %vm15167_vm8, %v637_v26, %v1264_v41  ;;  %v629_v46 = vsel %vm15144_vm6, %v621_v32, %v628_v38  ;;  %v177_v49 = vld [vmem:[#allocation2 + $0x2c] sm:$0x1]  ;;  %v70_v50 = vld [vmem:[#allocation2 + $0x30] sm:$0x1]  ;;  %v175_v53 = vsel %vm15155_vm7, 0, %v174_v40 }
   0xc   :  { %v654_v47 = vor.u32 %v652_v33, %v651_v39  ;;  %v655_v48 = vrot.slane %v651_v39, 4  ;;  %173 = vst [vmem:[#allocation2 + $0x14] sm:$0x1] %v172_v44  ;;  %1266 = vst [vmem:[#allocation2 + $0x18] sm:$0xf] %v1265_v45  ;;  %v662_v52 = vor.u32 %v660_v43, %v15175_v42  ;;  %v20438_v55 = vmov 0  }
   0xd   :  { %v1257_v51 = vld [vmem:[#allocation2 + $0xc] sm:$0xf]  ;;  %1260 = vst.msk [vmem:[#allocation2 + $0x10] sm:$0xf] %vm20444_vm5, %v629_v46  ;;  %41 = vst.msk [vmem:[#allocation2] sm:$0xf] %vm20444_vm5, %v20438_v55 }
   0xe   :  { %v1258_v54 = vsel %vm15167_vm8, %v620_v37, %v1257_v51  ;;  %42 = vst.msk [vmem:[#allocation2 + $0x4] sm:$0xf] %vm20444_vm5, %v20438_v55  ;;  %45 = vst.msk [vmem:[#allocation2 + $0xd8] sm:$0xf] %vm20444_vm5, %v20438_v55  ;;  %v178_v56 = vsel %vm15155_vm7, 0, %v177_v49  ;;  %v71_v57 = vsel %vm15120_vm2, 0, %v70_v50  ;;  %v663_v59 = vsel %vm15144_vm6, %v655_v48, %v662_v52 }
   0xf   :  { %44 = vst.msk [vmem:[#allocation2 + $0x8] sm:$0x1] %vm43_vm0, %v20438_v55  ;;  %47 = vst.msk [vmem:[#allocation2 + $0xe0] sm:$0x1] %vm43_vm0, %v20438_v55  ;;  %v15220_v58 = vld [vmem:[%s20424_s0 + $0x18] sm:$0xf] }
  0x10   :  { %46 = vst.msk [vmem:[#allocation2 + $0xdc] sm:$0xf] %vm20444_vm5, %v20438_v55  ;;  %49 = vst.msk [vmem:[#allocation2 + $0xcc] sm:$0xf] %vm20444_vm5, %v20438_v55  ;;  %v1271_v60 = vld [vmem:[#allocation2 + $0x24] sm:$0xf] }
  0x11   :  { %50 = vst.msk [vmem:[#allocation2 + $0xd0] sm:$0xf] %vm20444_vm5, %v20438_v55  ;;  %52 = vst.msk [vmem:[#allocation2 + $0x1a4] sm:$0xf] %vm20444_vm5, %v20438_v55  ;;  %v555_v61 = vld [vmem:[%s20424_s0 + $0x1c] sm:$0xf]  ;;  %v1272_v0 = vsel %vm15167_vm8, %v654_v47, %v1271_v60 }
  0x12   :  { %51 = vst.msk [vmem:[#allocation2 + $0xd4] sm:$0x1] %vm43_vm0, %v20438_v55  ;;  %54 = vst.msk [vmem:[#allocation2 + $0x1ac] sm:$0x1] %vm43_vm0, %v20438_v55  ;;  %v666_v62 = vshrl.u32 %v15220_v58, 16  ;;  %v630_v63 = vrot.slane %v15160_v28, 4 }
  0x13   :  { %53 = vst.msk [vmem:[#allocation2 + $0x1a8] sm:$0xf] %vm20444_vm5, %v20438_v55  ;;  %176 = vst [vmem:[#allocation2 + $0x20] sm:$0x1] %v175_v53  ;;  %v674_v2 = vshrl.u32 %v555_v61, 16  ;;  %v677_v6 = vshll.u32 %v555_v61, 16 }
  0x14   :  { %1259 = vst [vmem:[#allocation2 + $0xc] sm:$0xf] %v1258_v54  ;;  %179 = vst [vmem:[#allocation2 + $0x2c] sm:$0x1] %v178_v56  ;;  %v180_v3 = vld [vmem:[#allocation2 + $0x38] sm:$0x1] }
  0x15   :  { %72 = vst [vmem:[#allocation2 + $0x30] sm:$0x1] %v71_v57  ;;  %1274 = vst.msk [vmem:[#allocation2 + $0x28] sm:$0xf] %vm20444_vm5, %v663_v59  ;;  %v73_v4 = vld [vmem:[#allocation2 + $0x3c] sm:$0x1] }
  0x16   :  { %1273 = vst [vmem:[#allocation2 + $0x24] sm:$0xf] %v1272_v0  ;;  %v15232_v5 = vrot.slane %v666_v62, 7  ;;  %v181_v7 = vsel %vm15155_vm7, 0, %v180_v3  ;;  %v74_v8 = vsel %vm15120_vm2, 0, %v73_v4  ;;  %v15239_v12 = vrot.slane %v674_v2, 7 }
  0x17   :  { %v1612_v9 = vld [vmem:[#allocation2 + $0x1c] sm:$0xf]  ;;  %182 = vst [vmem:[#allocation2 + $0x38] sm:$0x1] %v181_v7  ;;  %75 = vst [vmem:[#allocation2 + $0x3c] sm:$0x1] %v74_v8 }
  0x18   :  { %v1261_v10 = vld [vmem:[#allocation2 + $0x14] sm:$0x1]  ;;  %v672_v11 = vrot.slane %v15232_v5, 4  ;;  %v1611_v13 = vld [vmem:[#allocation2 + $0x18] sm:$0xf]  ;;  %v679_v23 = vor.u32 %v677_v6, %v15239_v12  ;;  %v647_v28 = vrot.slane %v15140_v15, 4 }
  0x19   :  { %v1706_v14 = vld [vmem:[#allocation2 + $0x18] sm:$0xe]  ;;  %v1610_v16 = vld [vmem:[#allocation2 + $0x10] sm:$0xf]  ;;  %v1262_v17 = vsel %vm15120_vm2, %v630_v63, %v1261_v10  ;;  %v15243_v18 = vcombine.low %v1611_v13, %v1612_v9  ;;  %v15245_v21 = vld [vmem:[#allocation2 + $0x1c] sm:$0xf] }
  0x1a   :  { %v1738_v19 = vld [vmem:[#allocation2 + $0x18] sm:$0xf]  ;;  %1263 = vst [vmem:[#allocation2 + $0x14] sm:$0x1] %v1262_v17  ;;  %v168_v22 = vld [vmem:[#allocation2 + $0x8] sm:$0x1]  ;;  %v13153_v29 = vcombine.low %v1706_v14, %v1612_v9  ;;  %v680_v15 = vsel %vm15144_vm6, %v672_v11, %v679_v23 }
  0x1b   :  { %v1609_v24 = vld [vmem:[#allocation2 + $0xc] sm:$0xf]  ;;  %v169_v27 = vsel %vm15155_vm7, 0, %v168_v22  ;;  %2990 = vrot.lane.b32.xlu1 %v15243_v18, %s15041_s14  ;;  %v15257_v34 = vld [vmem:[#allocation2 + $0x4] sm:$0xf]  ;;  %v664_v35 = vrot.slane %v15175_v42, 4  ;;  %v15269_v40 = vcombine.low %v1738_v19, %v15245_v21 }
  0x1c   :  { %v1705_v26 = vld [vmem:[#allocation2 + $0xc] sm:$0xe]  ;;  %v15253_v30 = vcombine.low %v1609_v24, %v1610_v16  ;;  %v15255_v33 = vld [vmem:[#allocation2 + $0x28] sm:$0xf]  ;;  %170 = vst [vmem:[#allocation2 + $0x8] sm:$0x1] %v169_v27 }
  0x1d   :  { %v13152_v32 = vcombine.low %v1705_v26, %v1610_v16  ;;  %v1740_v36 = vld [vmem:[#allocation2 + $0x24] sm:$0xf]  ;;  %vm20452_vm9 = vcmask 1046528   ;;  %v669_v37 = vshll.u32 %v15220_v58, 16  ;;  %v1834_v39 = vld [vmem:[#allocation2 + $0x18] sm:$0xe] }
  0x1e   :  { %2988 = vrot.lane.b32.xlu0 %v15253_v30, %s15041_s14  ;;  %v15266_v38 = vcombine.low %v1740_v36, %v15255_v33  ;;  %v1577_v41 = vld [vmem:[#allocation2] sm:$0xe]  ;;  %v58_v43 = vld [vmem:[#allocation2] sm:$0x1]  ;;  %1281 = vst.msk [vmem:[#allocation2 + $0x34] sm:$0xf] %vm20444_vm5, %v680_v15  ;;  %v13248_v59 = vcombine.low %v1834_v39, %v15245_v21 }
  0x1f   :  { %v3163_v42 = vshll.u32 %v15243_v18, 16  ;;  %v13056_v44 = vcombine.low %v1577_v41, %v15257_v34  ;;  %v59_v45 = vsel %vm15120_vm2, 0, %v58_v43  ;;  %v1268_v46 = vld [vmem:[#allocation2 + $0x20] sm:$0x1]  ;;  %v1483_v47 = vld [vmem:[#allocation2 + $0xc] sm:$0xf] }
  0x20   :  { %4014 = vrot.lane.b32.xlu1 %v15266_v38, %s15042_s15  ;;  %v3692_v48 = vrot.slane %v13152_v32, 1  ;;  %60 = vst [vmem:[#allocation2] sm:$0x1] %v59_v45  ;;  %v1269_v49 = vsel %vm15120_vm2, %v647_v28, %v1268_v46  ;;  %v1484_v50 = vld [vmem:[#allocation2 + $0x10] sm:$0xf]  ;;  %v15280_v52 = vrot.slane %v13153_v29, 1 }
  0x21   :  { %v1578_v51 = vld [vmem:[#allocation2 + $0xc] sm:$0xe]  ;;  %v15282_v53 = vld [vmem:[#allocation2 + $0x14] ss:$0 sps:$4 sm:$0x11]   ;;  %v15284_v54 = vcombine.low %v1483_v47, %v1484_v50  ;;  %v3161_v57 = vshrl.u32 %v15243_v18, 16 }
  0x22   :  { %1270 = vst [vmem:[#allocation2 + $0x20] sm:$0x1] %v1269_v49  ;;  %v13057_v56 = vcombine.low %v1578_v51, %v1484_v50  ;;  %4012 = vrot.lane.b32.xlu0 %v15269_v40, %s15042_s15  ;;  %v2668_v60 = vrot.slane %v13056_v44, 1  ;;  %v14479_v61 = vld [vmem:[#allocation2 + $0x14] ss:$0 sps:$4 sm:$0x11]  }
  0x23   :  { %v3693_v62 = vrot.slane %v15282_v53, 1  ;;  %v14475_v63 = vld [vmem:[#allocation2 + $0x8] ss:$0 sps:$4 sm:$0x11]   ;;  %v4187_v0 = vshll.u32 %v15266_v38, 16  ;;  %v3165_v3 = vrot.slane %v3163_v42, 1 }
  0x24   :  { %v2671_v2 = vrot.slane %v13057_v56, 1  ;;  %v2138_v4 = vshll.u32 %v15284_v54, 16  ;;  %v1275_v6 = vld [vmem:[#allocation2 + $0x2c] sm:$0x1]  ;;  %v2669_v8 = vrot.slane %v14475_v63, 1  ;;  %v2672_v9 = vrot.slane %v14479_v61, 1 }
  0x25   :  { %v3694_v7 = vsel %vm20452_vm9, %v3692_v48, %v3693_v62  ;;  %vm2122_vm10 = vsmask.f32 7424  ;;  %v2131_v10 = vshll.u32 %v14475_v63, 16  ;;  %v15294_v11 = vld [vmem:[#allocation2 + $0x1c] sm:$0xf]  ;;  %v3151_v13 = vshll.u32 %v15253_v30, 16 }
  0x26   :  { %3788 = vrot.lane.b32.xlu0 %v3694_v7, %s15043_s16  ;;  %v4716_v14 = vrot.slane %v13248_v59, 1  ;;  %v2143_v16 = vshll.u32 %v14479_v61, 16  ;;  %v1276_v17 = vsel %vm15120_vm2, %v664_v35, %v1275_v6  ;;  %v1485_v18 = vld [vmem:[#allocation2 + $0x18] sm:$0xf]  ;;  %v2670_v19 = vsel %vm20452_vm9, %v2668_v60, %v2669_v8  ;;  %s15044_s17 = smov 6   ;;  %s15045_s18 = smov 24  }
  0x27   :  { %v1481_v21 = vld [vmem:[#allocation2] sm:$0xf]  ;;  %v2136_v22 = vshrl.u32 %v15284_v54, 16  ;;  %v2140_v23 = vrot.slane %v2138_v4, 1  ;;  %1277 = vst [vmem:[#allocation2 + $0x2c] sm:$0x1] %v1276_v17  ;;  %2764 = vrot.lane.b32.xlu1 %v2670_v19, %s15044_s17  ;;  %v2673_v35 = vsel %vm20452_vm9, %v2671_v2, %v2672_v9  ;;  %v3166_v39 = vor.u32 %v3165_v3, %v3161_v57 }
  0x28   :  { %v4185_v24 = vshrl.u32 %v15266_v38, 16  ;;  %v15305_v26 = vcombine.low %v1481_v21, %v15257_v34  ;;  %v4189_v28 = vrot.slane %v4187_v0, 1  ;;  %v1487_v29 = vld [vmem:[#allocation2 + $0x24] sm:$0xf]  ;;  %v15309_v32 = vld [vmem:[#allocation2 + $0x28] sm:$0xf]  ;;  %v15313_v41 = vcombine.low %v1485_v18, %v15294_v11 }
  0x29   :  { %v15307_v27 = vld [vmem:[#allocation2 + $0x20] ss:$0 sps:$4 sm:$0x11]   ;;  %v2133_v15 = vrot.slane %v2131_v10, 1  ;;  %v2145_v42 = vrot.slane %v2143_v16, 1  ;;  %v2141_v46 = vor.u32 %v2140_v23, %v2136_v22  ;;  %v3149_v47 = vshrl.u32 %v15253_v30, 16 }
  0x2a   :  { %v14481_v36 = vld [vmem:[#allocation2 + $0x20] ss:$0 sps:$4 sm:$0x11]   ;;  %v4717_v38 = vrot.slane %v15307_v27, 1  ;;  %v2124_v43 = vshrl.u32 %v15305_v26, 16  ;;  %v2126_v34 = vshll.u32 %v15305_v26, 16  ;;  %v15329_v30 = vcombine.low %v1487_v29, %v15309_v32 }
  0x2b   :  { %v3696_v44 = vrot.slane %v14481_v36, 1  ;;  %v3168_v45 = vshll.u32 %v14481_v36, 16  ;;  %v15319_v48 = vld [vmem:[#allocation2 + $0x20] ss:$0 sps:$4 sm:$0x11]   ;;  %2766 = vrot.lane.b32.xlu1 %v2673_v35, %s15044_s17  ;;  %v3153_v51 = vrot.slane %v3151_v13, 1  ;;  %v671_v0 = vor.u32 %v669_v37, %v15232_v5 }
  0x2c   :  { %v4718_v49 = vsel %vm20452_vm9, %v4716_v14, %v4717_v38  ;;  %v2128_v50 = vrot.slane %v2126_v34, 1  ;;  %v2150_v56 = vshll.u32 %v15313_v41, 16  ;;  %v3156_v60 = vshll.u32 %v15282_v53, 16  ;;  %v1835_v2 = vld [vmem:[#allocation2 + $0x24] sm:$0xe]  ;;  %s15046_s19 = smov 3  }
  0x2d   :  { %4812 = vrot.lane.b32.xlu0 %v4718_v49, %s15045_s18  ;;  %v3697_v57 = vsel %vm20452_vm9, %v15280_v52, %v3696_v44  ;;  %v3170_v59 = vrot.slane %v3168_v45, 1  ;;  %v4175_v61 = vshll.u32 %v15269_v40, 16  ;;  %v2146_v3 = vsel %vm2122_vm10, %v2141_v46, %v2145_v42  ;;  %v1580_v18 = vld [vmem:[#allocation2 + $0x24] sm:$0xe]  ;;  %v1579_v22 = vld [vmem:[#allocation2 + $0x18] sm:$0xe] }
  0x2e   :  { %v2129_v62 = vor.u32 %v2128_v50, %v2124_v43  ;;  %v15332_v63 = vld [vmem:[#allocation2 + $0x2c] ss:$0 sps:$4 sm:$0x11]   ;;  %v4190_v4 = vor.u32 %v4189_v28, %v4185_v24  ;;  %v2155_v52 = vshll.u32 %v15319_v48, 16  ;;  %v681_v53 = vrot.slane %v15239_v12, 4  ;;  %s15047_s20 = smov 12  }
  0x2f   :  { %3790 = vrot.lane.b32.xlu1 %v3697_v57, %s15043_s16  ;;  %v4192_v7 = vshll.u32 %v15332_v63, 16  ;;  %v2148_v8 = vshrl.u32 %v15313_v41, 16  ;;  %v2152_v9 = vrot.slane %v2150_v56, 1  ;;  %v15344_v10 = vld [vmem:[#allocation2 + $0x2c] ss:$0 sps:$4 sm:$0x11]   ;;  %v3171_v58 = vsel %vm2122_vm10, %v3166_v39, %v3170_v59 }
  0x30   :  { %v2134_v6 = vsel %vm2122_vm10, %v2129_v62, %v2133_v15  ;;  %v3154_v5 = vor.u32 %v3153_v51, %v3149_v47  ;;  %v3158_v37 = vrot.slane %v3156_v60, 1  ;;  %v2162_v12 = vshll.u32 %v15329_v30, 16  ;;  %v1278_v23 = vld [vmem:[#allocation2 + $0x30] sm:$0xf]  ;;  %v1282_v36 = vld [vmem:[#allocation2 + $0x38] sm:$0x1] }
  0x31   :  { %2507 = vrot.lane.b32.xlu0 %v2134_v6, %s15046_s19  ;;  %v4194_v13 = vrot.slane %v4192_v7, 1  ;;  %v4173_v14 = vshrl.u32 %v15269_v40, 16  ;;  %v4177_v16 = vrot.slane %v4175_v61, 1  ;;  %v4180_v17 = vshll.u32 %v15307_v27, 16  ;;  %v557_v15 = vld [vmem:[%s20424_s0 + $0x24] sm:$0xf] }
  0x32   :  { %v13249_v19 = vcombine.low %v1835_v2, %v15255_v33  ;;  %v2157_v21 = vrot.slane %v2155_v52, 1  ;;  %v2153_v24 = vor.u32 %v2152_v9, %v2148_v8  ;;  %v2160_v28 = vshrl.u32 %v15329_v30, 16  ;;  %v556_v33 = vld [vmem:[%s20424_s0 + $0x20] sm:$0xf]  ;;  %v1613_v34 = vld [vmem:[#allocation2 + $0x24] sm:$0xf] }
  0x33   :  { %3534 = vrot.lane.b32.xlu1 %v3171_v58, %s15047_s20  ;;  %v2164_v29 = vrot.slane %v2162_v12, 1  ;;  %v2167_v35 = vshll.u32 %v15344_v10, 16  ;;  %v4195_v40 = vsel %vm2122_vm10, %v4190_v4, %v4194_v13  ;;  %v3159_v27 = vsel %vm2122_vm10, %v3154_v5, %v3158_v37  ;;  %v15366_v42 = vld [vmem:[#allocation2 + $0x28] sm:$0xf]  ;;  %v183_v49 = vld [vmem:[#allocation2 + $0x44] sm:$0x1] }
  0x34   :  { %v4178_v39 = vor.u32 %v4177_v16, %v4173_v14  ;;  %v4182_v38 = vrot.slane %v4180_v17, 1  ;;  %v1279_v43 = vsel %vm15167_vm8, %v671_v0, %v1278_v23  ;;  %v1283_v44 = vsel %vm15120_vm2, %v681_v53, %v1282_v36  ;;  %s15048_s25 = smov 21   ;;  %v76_v59 = vld [vmem:[#allocation2 + $0x48] sm:$0x1]  ;;  %v15380_v2 = vld [vmem:[#allocation2 + $0x34] sm:$0xf] }
  0x35   :  { %2509 = vrot.lane.b32.xlu0 %v2146_v3, %s15046_s19  ;;  %v4719_v45 = vrot.slane %v13249_v19, 1  ;;  %v13059_v46 = vcombine.low %v1580_v18, %v15309_v32  ;;  %v13058_v47 = vcombine.low %v1579_v22, %v15294_v11  ;;  %1280 = vst [vmem:[#allocation2 + $0x30] sm:$0xf] %v1279_v43  ;;  %1284 = vst [vmem:[#allocation2 + $0x38] sm:$0x1] %v1283_v44  ;;  %v2169_v56 = vrot.slane %v2167_v35, 1 }
  0x36   :  { %v2158_v50 = vsel %vm2122_vm10, %v2153_v24, %v2157_v21  ;;  %v2165_v51 = vor.u32 %v2164_v29, %v2160_v28  ;;  %v683_v57 = vshrl.u32 %v556_v33, 16  ;;  %v15376_v60 = vcombine.low %v1613_v34, %v15366_v42  ;;  %v1285_v53 = vld [vmem:[#allocation2 + $0x3c] sm:$0xf]  ;;  %v15389_v7 = vld [vmem:[%s20424_s0 + $0x28] sm:$0xf] }
  0x37   :  { %4558 = vrot.lane.b32.xlu1 %v4195_v40, %s15048_s25  ;;  %v686_v32 = vshll.u32 %v556_v33, 16  ;;  %v691_v61 = vshrl.u32 %v557_v15, 16  ;;  %v694_v11 = vshll.u32 %v557_v15, 16  ;;  %v4183_v62 = vsel %vm2122_vm10, %v4178_v39, %v4182_v38  ;;  %v15393_v9 = vld [vmem:[#allocation2 + $0x2c] ss:$0 sps:$4 sm:$0x11]  }
  0x38   :  { %v4720_v0 = vrot.slane %v15332_v63, 1  ;;  %v685_v3 = vrot.slane %v683_v57, 7  ;;  %v184_v4 = vsel %vm15155_vm7, 0, %v183_v49  ;;  %v77_v6 = vsel %vm15120_vm2, 0, %v76_v59  ;;  %v1707_v13 = vld [vmem:[#allocation2 + $0x24] sm:$0xe] }
  0x39   :  { %3532 = vrot.lane.b32.xlu0 %v3159_v27, %s15047_s20  ;;  %v693_v52 = vrot.slane %v691_v61, 7  ;;  %185 = vst [vmem:[#allocation2 + $0x44] sm:$0x1] %v184_v4  ;;  %v2677_v63 = vrot.slane %v13059_v46, 1  ;;  %v2678_v8 = vrot.slane %v15344_v10, 1  ;;  %v2170_v37 = vsel %vm2122_vm10, %v2165_v51, %v2169_v56 }
  0x3a   :  { %v688_v58 = vor.u32 %v686_v32, %v685_v3  ;;  %v689_v5 = vrot.slane %v685_v3, 4  ;;  %78 = vst [vmem:[#allocation2 + $0x48] sm:$0x1] %v77_v6  ;;  %v2674_v12 = vrot.slane %v13058_v47, 1  ;;  %v3175_v14 = vshll.u32 %v15376_v60, 16 }
  0x3b   :  { %2511 = vrot.lane.b32.xlu1 %v2158_v50, %s15046_s19  ;;  %v696_v16 = vor.u32 %v694_v11, %v693_v52  ;;  %v15398_v17 = vld [vmem:[#allocation2 + $0x34] sm:$0xf]  ;;  %v4721_v18 = vsel %vm20452_vm9, %v4719_v45, %v4720_v0  ;;  %v2675_v10 = vrot.slane %v15319_v48, 1  ;;  %v700_v22 = vshrl.u32 %v15389_v7, 16  ;;  %v15435_v61 = vld [vmem:[%s20424_s0 + $0x2c] sm:$0xf] }
  0x3c   :  { %v1615_v19 = vld [vmem:[#allocation2 + $0x30] sm:$0xf]  ;;  %v1286_v21 = vsel %vm15167_vm8, %v688_v58, %v1285_v53  ;;  %v15406_v24 = vld [vmem:[#allocation2 + $0x38] ss:$0 sps:$4 sm:$0x11]   ;;  %v698_v29 = vrot.slane %v693_v52, 4  ;;  %v2679_v48 = vsel %vm20452_vm9, %v2677_v63, %v2678_v8  ;;  %v13154_v40 = vcombine.low %v1707_v13, %v15366_v42 }
  0x3d   :  { %4556 = vrot.lane.b32.xlu0 %v4183_v62, %s15048_s25  ;;  %v13091_v23 = vcombine.low %v1615_v19, %v15380_v2  ;;  %v697_v28 = vsel %vm15144_vm6, %v689_v5, %v696_v16  ;;  %1287 = vst [vmem:[#allocation2 + $0x3c] sm:$0xf] %v1286_v21  ;;  %v1742_v35 = vld [vmem:[#allocation2 + $0x30] sm:$0xf]  ;;  %v3173_v27 = vshrl.u32 %v15376_v60, 16  ;;  %v3180_v33 = vshll.u32 %v15393_v9, 16 }
  0x3e   :  { %v1708_v36 = vld [vmem:[#allocation2 + $0x30] sm:$0xe]  ;;  %1288 = vst.msk [vmem:[#allocation2 + $0x40] sm:$0xf] %vm20444_vm5, %v697_v28  ;;  %v3192_v38 = vshll.u32 %v15406_v24, 16  ;;  %v3177_v43 = vrot.slane %v3175_v14, 1  ;;  %v2676_v34 = vsel %vm20452_vm9, %v2674_v12, %v2675_v10  ;;  %v15420_v44 = vcombine.low %v1742_v35, %v15398_v17 }
  0x3f   :  { %2513 = vrot.lane.b32.xlu1 %v2170_v37, %s15046_s19  ;;  %v3187_v15 = vshll.u32 %v13091_v23, 16  ;;  %v3185_v39 = vshrl.u32 %v13091_v23, 16  ;;  %v15422_v42 = vld [vmem:[#allocation2 + $0x34] sm:$0xf]  ;;  %v1489_v49 = vld [vmem:[#allocation2 + $0x30] sm:$0xf]  ;;  %v13155_v56 = vcombine.low %v1708_v36, %v15380_v2 }
  0x40   :  { %v1289_v45 = vld [vmem:[#allocation2 + $0x44] sm:$0x1]  ;;  %v15426_v50 = vrot.slane %v700_v22, 7  ;;  %v703_v51 = vshll.u32 %v15389_v7, 16  ;;  %v3698_v57 = vrot.slane %v13154_v40, 1  ;;  %v3699_v59 = vrot.slane %v15393_v9, 1 }
  0x41   :  { %4814 = vrot.lane.b32.xlu0 %v4721_v18, %s15045_s18  ;;  %v3189_v46 = vrot.slane %v3187_v15, 1  ;;  %v1290_v47 = vsel %vm15120_vm2, %v698_v29, %v1289_v45  ;;  %v1836_v32 = vld [vmem:[#allocation2 + $0x30] sm:$0xe]  ;;  %v3194_v62 = vrot.slane %v3192_v38, 1  ;;  %v3178_v0 = vor.u32 %v3177_v43, %v3173_v27  ;;  %v1292_v10 = vld [vmem:[#allocation2 + $0x48] sm:$0xf] }
  0x42   :  { %1291 = vst [vmem:[#allocation2 + $0x44] sm:$0x1] %v1290_v47  ;;  %v3182_v3 = vrot.slane %v3180_v33, 1  ;;  %v4199_v52 = vshll.u32 %v15420_v44, 16  ;;  %v15442_v53 = vcombine.low %v1489_v49, %v15422_v42  ;;  %v13250_v7 = vcombine.low %v1836_v32, %v15398_v17 }
  0x43   :  { %2770 = vrot.lane.b32.xlu1 %v2679_v48, %s15044_s17  ;;  %v3190_v11 = vor.u32 %v3189_v46, %v3185_v39  ;;  %v15439_v2 = vld [vmem:[#allocation2 + $0x38] ss:$0 sps:$4 sm:$0x11]   ;;  %v705_v63 = vor.u32 %v703_v51, %v15426_v50  ;;  %v708_v8 = vshrl.u32 %v15435_v61, 16  ;;  %v711_v9 = vshll.u32 %v15435_v61, 16 }
  0x44   :  { %v1744_v4 = vld [vmem:[#allocation2 + $0x3c] sm:$0xf]  ;;  %v3701_v58 = vrot.slane %v13155_v56, 1  ;;  %v3702_v5 = vrot.slane %v15406_v24, 1  ;;  %v4197_v12 = vshrl.u32 %v15420_v44, 16  ;;  %v3183_v16 = vsel %vm2122_vm10, %v3178_v0, %v3182_v3 }
  0x45   :  { %2768 = vrot.lane.b32.xlu0 %v2676_v34, %s15044_s17  ;;  %v15444_v6 = vld [vmem:[#allocation2 + $0x40] sm:$0xf]  ;;  %v15456_v13 = vld [vmem:[#allocation2 + $0x38] ss:$0 sps:$4 sm:$0x11]   ;;  %v3195_v14 = vsel %vm2122_vm10, %v3190_v11, %v3194_v62  ;;  %v4201_v22 = vrot.slane %v4199_v52, 1  ;;  %v1293_v35 = vsel %vm15167_vm8, %v705_v63, %v1292_v10  ;;  %v3700_v36 = vsel %vm20452_vm9, %v3698_v57, %v3699_v59 }
  0x46   :  { %v15453_v37 = vcombine.low %v1744_v4, %v15444_v6  ;;  %v1491_v17 = vld [vmem:[#allocation2 + $0x3c] sm:$0xf]  ;;  %v15462_v18 = vld [vmem:[#allocation2 + $0x40] sm:$0xf]  ;;  %v2174_v24 = vshll.u32 %v15442_v53, 16  ;;  %v4722_v29 = vrot.slane %v13250_v7, 1  ;;  %v3703_v48 = vsel %vm20452_vm9, %v3701_v58, %v3702_v5 }
  0x47   :  { %2994 = vrot.lane.b32.xlu1 %v13091_v23, %s15041_s14  ;;  %v1837_v19 = vld [vmem:[#allocation2 + $0x3c] sm:$0xe]  ;;  %v4204_v23 = vshll.u32 %v15439_v2, 16  ;;  %v2172_v40 = vshrl.u32 %v15442_v53, 16  ;;  %v15478_v27 = vcombine.low %v1491_v17, %v15462_v18  ;;  %1294 = vst [vmem:[#allocation2 + $0x48] sm:$0xf] %v1293_v35  ;;  %v4202_v34 = vor.u32 %v4201_v22, %v4197_v12 }
  0x48   :  { %v4211_v21 = vshll.u32 %v15453_v37, 16  ;;  %v4209_v15 = vshrl.u32 %v15453_v37, 16  ;;  %v2179_v43 = vshll.u32 %v15456_v13, 16  ;;  %v2176_v46 = vrot.slane %v2174_v24, 1  ;;  %v186_v57 = vld [vmem:[#allocation2 + $0x50] sm:$0x1] }
  0x49   :  { %2992 = vrot.lane.b32.xlu0 %v15376_v60, %s15041_s14  ;;  %v15467_v28 = vld [vmem:[#allocation2 + $0x44] ss:$0 sps:$4 sm:$0x11]   ;;  %v15469_v60 = vld [vmem:[#allocation2 + $0x30] sm:$0xe]  ;;  %v4206_v45 = vrot.slane %v4204_v23, 1  ;;  %v13251_v49 = vcombine.low %v1837_v19, %v15444_v6 }
  0x4a   :  { %v15480_v33 = vld [vmem:[#allocation2 + $0x44] ss:$0 sps:$4 sm:$0x11]   ;;  %v4213_v39 = vrot.slane %v4211_v21, 1  ;;  %v4216_v38 = vshll.u32 %v15467_v28, 16  ;;  %v4723_v47 = vrot.slane %v15439_v2, 1  ;;  %v13060_v11 = vcombine.low %v15469_v60, %v15422_v42 }
  0x4b   :  { %3538 = vrot.lane.b32.xlu1 %v3195_v14, %s15047_s20  ;;  %v706_v51 = vrot.slane %v15426_v50, 4  ;;  %v15489_v56 = vrot.slane %v708_v8, 7  ;;  %v2186_v59 = vshll.u32 %v15478_v27, 16  ;;  %v2191_v32 = vshll.u32 %v15480_v33, 16  ;;  %v1582_v61 = vld [vmem:[#allocation2 + $0x3c] sm:$0xe] }
  0x4c   :  { %v79_v62 = vld [vmem:[#allocation2 + $0x54] sm:$0x1]  ;;  %v4214_v0 = vor.u32 %v4213_v39, %v4209_v15  ;;  %v4218_v3 = vrot.slane %v4216_v38, 1  ;;  %v2181_v4 = vrot.slane %v2179_v43, 1  ;;  %v560_v52 = vld [vmem:[%s20424_s0 + $0x30] sm:$0xf]  ;;  %v4207_v6 = vsel %vm2122_vm10, %v4202_v34, %v4206_v45 }
  0x4d   :  { %3536 = vrot.lane.b32.xlu0 %v3183_v16, %s15047_s20  ;;  %v713_v50 = vor.u32 %v711_v9, %v15489_v56  ;;  %v561_v2 = vld [vmem:[%s20424_s0 + $0x34] sm:$0xf]  ;;  %v2177_v7 = vor.u32 %v2176_v46, %v2172_v40  ;;  %v15506_v42 = vsel %vm20452_vm9, %v4722_v29, %v4723_v47  ;;  %v1617_v63 = vld [vmem:[#allocation2 + $0x3c] sm:$0xf]  ;;  %v187_v8 = vsel %vm15155_vm7, 0, %v186_v57 }
  0x4e   :  { %v189_v58 = vld [vmem:[#allocation2 + $0x5c] sm:$0x1]  ;;  %v2184_v9 = vshrl.u32 %v15478_v27, 16  ;;  %v15511_v5 = vrot.slane %v13251_v49, 1  ;;  %v13061_v12 = vcombine.low %v1582_v61, %v15462_v18  ;;  %v15516_v16 = vld [vmem:[#allocation2 + $0x40] sm:$0xf]  ;;  %v4219_v23 = vsel %vm2122_vm10, %v4214_v0, %v4218_v3 }
  0x4f   :  { %3794 = vrot.lane.b32.xlu1 %v3703_v48, %s15043_s16  ;;  %v714_v14 = vsel %vm15144_vm6, %v706_v51, %v713_v50  ;;  %188 = vst [vmem:[#allocation2 + $0x50] sm:$0x1] %v187_v8  ;;  %v82_v17 = vld [vmem:[#allocation2 + $0x60] sm:$0x1]  ;;  %v2188_v10 = vrot.slane %v2186_v59, 1  ;;  %v2193_v19 = vrot.slane %v2191_v32, 1  ;;  %v2182_v60 = vsel %vm2122_vm10, %v2177_v7, %v2181_v4 }
  0x50   :  { %1295 = vst.msk [vmem:[#allocation2 + $0x4c] sm:$0xf] %vm20444_vm5, %v714_v14  ;;  %v80_v21 = vsel %vm15120_vm2, 0, %v79_v62  ;;  %v717_v22 = vshrl.u32 %v560_v52, 16  ;;  %v562_v18 = vld [vmem:[%s20424_s0 + $0x38] sm:$0xf]  ;;  %v15531_v35 = vcombine.low %v1617_v63, %v15516_v16 }
  0x51   :  { %3792 = vrot.lane.b32.xlu0 %v3700_v36, %s15043_s16  ;;  %81 = vst [vmem:[#allocation2 + $0x54] sm:$0x1] %v80_v21  ;;  %v720_v24 = vshll.u32 %v560_v52, 16  ;;  %v728_v29 = vshll.u32 %v561_v2, 16  ;;  %v190_v36 = vsel %vm15155_vm7, 0, %v189_v58  ;;  %v715_v15 = vrot.slane %v15489_v56, 4 }
  0x52   :  { %v719_v48 = vrot.slane %v717_v22, 7  ;;  %v15538_v40 = vld [vmem:[%s20424_s0 + $0x3c] sm:$0xf]  ;;  %191 = vst [vmem:[#allocation2 + $0x5c] sm:$0x1] %v190_v36  ;;  %v83_v38 = vsel %vm15120_vm2, 0, %v82_v17  ;;  %v2189_v45 = vor.u32 %v2188_v10, %v2184_v9 }
  0x53   :  { %4018 = vrot.lane.b32.xlu1 %v15453_v37, %s15042_s15  ;;  %v725_v37 = vshrl.u32 %v561_v2, 16  ;;  %v734_v43 = vshrl.u32 %v562_v18, 16  ;;  %v85_v34 = vld [vmem:[#allocation2 + $0x6c] sm:$0x1]  ;;  %84 = vst [vmem:[#allocation2 + $0x60] sm:$0x1] %v83_v38 }
  0x54   :  { %v722_v46 = vor.u32 %v720_v24, %v719_v48  ;;  %v723_v47 = vrot.slane %v719_v48, 4  ;;  %v737_v49 = vshll.u32 %v562_v18, 16  ;;  %v1619_v51 = vld [vmem:[#allocation2 + $0x48] sm:$0xf]  ;;  %v742_v56 = vshrl.u32 %v15538_v40, 16 }
  0x55   :  { %4016 = vrot.lane.b32.xlu0 %v15420_v44, %s15042_s15  ;;  %v192_v44 = vld [vmem:[#allocation2 + $0x68] sm:$0x1]  ;;  %v727_v39 = vrot.slane %v725_v37, 7  ;;  %v15545_v59 = vrot.slane %v734_v43, 7  ;;  %v4726_v61 = vrot.slane %v15467_v28, 1  ;;  %v2683_v62 = vrot.slane %v13061_v12, 1 }
  0x56   :  { %v193_v32 = vsel %vm15155_vm7, 0, %v192_v44  ;;  %v2680_v0 = vrot.slane %v13060_v11, 1  ;;  %v1296_v3 = vld [vmem:[#allocation2 + $0x50] sm:$0x1]  ;;  %v86_v4 = vsel %vm15120_vm2, 0, %v85_v34  ;;  %v2684_v50 = vrot.slane %v15480_v33, 1 }
  0x57   :  { %4562 = vrot.lane.b32.xlu1 %v4219_v23, %s15048_s25  ;;  %v730_v57 = vor.u32 %v728_v29, %v727_v39  ;;  %194 = vst [vmem:[#allocation2 + $0x68] sm:$0x1] %v193_v32  ;;  %v15554_v52 = vld [vmem:[#allocation2 + $0x4c] sm:$0xf]  ;;  %v1297_v2 = vsel %vm15120_vm2, %v715_v15, %v1296_v3  ;;  %v732_v7 = vrot.slane %v727_v39, 4  ;;  %v2194_v11 = vsel %vm2122_vm10, %v2189_v45, %v2193_v19 }
  0x58   :  { %87 = vst [vmem:[#allocation2 + $0x6c] sm:$0x1] %v86_v4  ;;  %v564_v28 = vld [vmem:[%s20424_s0 + $0x40] sm:$0xf]  ;;  %v15566_v33 = vcombine.low %v1619_v51, %v15554_v52  ;;  %v3199_v63 = vshll.u32 %v15531_v35, 16  ;;  %v739_v12 = vor.u32 %v737_v49, %v15545_v59  ;;  %v744_v14 = vrot.slane %v742_v56, 7 }
  0x59   :  { %4560 = vrot.lane.b32.xlu0 %v4207_v6, %s15048_s25  ;;  %v731_v6 = vsel %vm15144_vm6, %v723_v47, %v730_v57  ;;  %1298 = vst [vmem:[#allocation2 + $0x50] sm:$0x1] %v1297_v2  ;;  %v15569_v8 = vld [vmem:[#allocation2 + $0x44] ss:$0 sps:$4 sm:$0x11]   ;;  %v745_v17 = vshll.u32 %v15538_v40, 16  ;;  %v4727_v10 = vsel %vm20452_vm9, %v15511_v5, %v4726_v61 }
  0x5a   :  { %v1299_v58 = vld [vmem:[#allocation2 + $0x54] sm:$0xf]  ;;  %1302 = vst.msk [vmem:[#allocation2 + $0x58] sm:$0xf] %vm20444_vm5, %v731_v6  ;;  %v2681_v19 = vrot.slane %v15456_v13, 1  ;;  %v3211_v21 = vshll.u32 %v15566_v33, 16 }
  0x5b   :  { %2515 = vrot.lane.b32.xlu1 %v2182_v60, %s15046_s19  ;;  %v1300_v9 = vsel %vm15167_vm8, %v722_v46, %v1299_v58  ;;  %v1303_v22 = vld [vmem:[#allocation2 + $0x5c] sm:$0x1]  ;;  %v751_v18 = vshrl.u32 %v564_v28, 16  ;;  %v1709_v23 = vld [vmem:[#allocation2 + $0x3c] sm:$0xe]  ;;  %v740_v37 = vrot.slane %v15545_v59, 4  ;;  %v747_v39 = vor.u32 %v745_v17, %v744_v14 }
  0x5c   :  { %1301 = vst [vmem:[#allocation2 + $0x54] sm:$0xf] %v1300_v9  ;;  %v1304_v24 = vsel %vm15120_vm2, %v732_v7, %v1303_v22  ;;  %v1306_v29 = vld [vmem:[#allocation2 + $0x60] sm:$0xf]  ;;  %v1710_v60 = vld [vmem:[#allocation2 + $0x48] sm:$0xe]  ;;  %v2682_v45 = vsel %vm20452_vm9, %v2680_v0, %v2681_v19  ;;  %v13156_v61 = vcombine.low %v1709_v23, %v15516_v16 }
  0x5d   :  { %4816 = vrot.lane.b32.xlu0 %v15506_v42, %s15045_s18  ;;  %v2685_v42 = vsel %vm20452_vm9, %v2683_v62, %v2684_v50  ;;  %v3209_v5 = vshrl.u32 %v15566_v33, 16  ;;  %v3197_v13 = vshrl.u32 %v15531_v35, 16  ;;  %v3201_v48 = vrot.slane %v3199_v63, 1  ;;  %1305 = vst [vmem:[#allocation2 + $0x5c] sm:$0x1] %v1304_v24 }
  0x5e   :  { %v754_v36 = vshll.u32 %v564_v28, 16  ;;  %v3213_v40 = vrot.slane %v3211_v21, 1  ;;  %v1746_v44 = vld [vmem:[#allocation2 + $0x48] sm:$0xf]  ;;  %v15590_v15 = vld [vmem:[#allocation2 + $0x4c] sm:$0xf]  ;;  %v1307_v43 = vsel %vm15167_vm8, %v739_v12, %v1306_v29  ;;  %v748_v59 = vsel %vm15144_vm6, %v740_v37, %v747_v39 }
  0x5f   :  { %2517 = vrot.lane.b32.xlu1 %v2194_v11, %s15046_s19  ;;  %v749_v38 = vrot.slane %v744_v14, 4  ;;  %v1310_v34 = vld [vmem:[#allocation2 + $0x68] sm:$0x1]  ;;  %v3204_v46 = vshll.u32 %v15569_v8, 16  ;;  %1308 = vst [vmem:[#allocation2 + $0x60] sm:$0xf] %v1307_v43  ;;  %v13157_v32 = vcombine.low %v1710_v60, %v15554_v52  ;;  %v3202_v50 = vor.u32 %v3201_v48, %v3197_v13 }
  0x60   :  { %v15596_v47 = vrot.slane %v751_v18, 7  ;;  %v1313_v49 = vld [vmem:[#allocation2 + $0x6c] sm:$0xf]  ;;  %v14511_v51 = vld [vmem:[#allocation2 + $0x50] ss:$0 sps:$4 sm:$0x11]   ;;  %v3214_v3 = vor.u32 %v3213_v40, %v3209_v5  ;;  %v13188_v16 = vcombine.low %v1746_v44, %v15590_v15 }
  0x61   :  { %4818 = vrot.lane.b32.xlu0 %v4727_v10, %s15045_s18  ;;  %v1493_v57 = vld [vmem:[#allocation2 + $0x48] sm:$0xf]  ;;  %v1311_v56 = vsel %vm15120_vm2, %v749_v38, %v1310_v34  ;;  %v15605_v62 = vld [vmem:[#allocation2 + $0x58] sm:$0xf]  ;;  %1309 = vst.msk [vmem:[#allocation2 + $0x64] sm:$0xf] %vm20444_vm5, %v748_v59 }
  0x62   :  { %1312 = vst [vmem:[#allocation2 + $0x68] sm:$0x1] %v1311_v56  ;;  %v756_v0 = vor.u32 %v754_v36, %v15596_v47  ;;  %v3216_v4 = vshll.u32 %v14511_v51, 16  ;;  %v15610_v6 = vld [vmem:[#allocation2 + $0x4c] sm:$0xf]  ;;  %v3206_v7 = vrot.slane %v3204_v46, 1 }
  0x63   :  { %2774 = vrot.lane.b32.xlu1 %v2685_v42, %s15044_s17  ;;  %v1748_v2 = vld [vmem:[#allocation2 + $0x54] sm:$0xf]  ;;  %v3707_v63 = vrot.slane %v13157_v32, 1  ;;  %v3708_v58 = vrot.slane %v14511_v51, 1  ;;  %v3704_v9 = vrot.slane %v13156_v61, 1  ;;  %v15621_v14 = vcombine.low %v1493_v57, %v15610_v6 }
  0x64   :  { %v13189_v52 = vcombine.low %v1748_v2, %v15605_v62  ;;  %v1314_v28 = vsel %vm15167_vm8, %v756_v0, %v1313_v49  ;;  %v3218_v11 = vrot.slane %v3216_v4, 1  ;;  %v15618_v12 = vld [vmem:[#allocation2 + $0x50] ss:$0 sps:$4 sm:$0x11]   ;;  %v3207_v21 = vsel %vm2122_vm10, %v3202_v50, %v3206_v7  ;;  %v1495_v18 = vld [vmem:[#allocation2 + $0x54] sm:$0xf] }
  0x65   :  { %2772 = vrot.lane.b32.xlu0 %v2682_v45, %s15044_s17  ;;  %1315 = vst [vmem:[#allocation2 + $0x6c] sm:$0xf] %v1314_v28  ;;  %v15626_v19 = vld [vmem:[#allocation2 + $0x5c] ss:$0 sps:$4 sm:$0x11]   ;;  %v4223_v22 = vshll.u32 %v13188_v16, 16  ;;  %v3709_v24 = vsel %vm20452_vm9, %v3707_v63, %v3708_v58 }
  0x66   :  { %v3219_v17 = vsel %vm2122_vm10, %v3214_v3, %v3218_v11  ;;  %v4235_v10 = vshll.u32 %v13189_v52, 16  ;;  %v15630_v42 = vld [vmem:[#allocation2 + $0x58] sm:$0xf]  ;;  %v15632_v23 = vld [vmem:[#allocation2 + $0x50] ss:$0 sps:$4 sm:$0x11]  }
  0x67   :  { %2998 = vrot.lane.b32.xlu1 %v15566_v33, %s15041_s14  ;;  %v3705_v33 = vrot.slane %v15569_v8, 1  ;;  %v4233_v37 = vshrl.u32 %v13189_v52, 16  ;;  %v4240_v60 = vshll.u32 %v15626_v19, 16  ;;  %v15640_v8 = vcombine.low %v1495_v18, %v15630_v42  ;;  %v565_v40 = vld [vmem:[%s20424_s0 + $0x44] sm:$0xf] }
  0x68   :  { %v4237_v29 = vrot.slane %v4235_v10, 1  ;;  %v4221_v13 = vshrl.u32 %v13188_v16, 16  ;;  %v4225_v48 = vrot.slane %v4223_v22, 1  ;;  %v4228_v36 = vshll.u32 %v15618_v12, 16  ;;  %v1838_v44 = vld [vmem:[#allocation2 + $0x48] sm:$0xe] }
  0x69   :  { %2996 = vrot.lane.b32.xlu0 %v15531_v35, %s15041_s14  ;;  %v2198_v35 = vshll.u32 %v15621_v14, 16  ;;  %v3706_v5 = vsel %vm20452_vm9, %v3704_v9, %v3705_v33  ;;  %v2196_v39 = vshrl.u32 %v15621_v14, 16  ;;  %v2203_v38 = vshll.u32 %v15632_v23, 16  ;;  %v15650_v34 = vld [vmem:[#allocation2 + $0x5c] ss:$0 sps:$4 sm:$0x11]  }
  0x6a   :  { %v1839_v45 = vld [vmem:[#allocation2 + $0x54] sm:$0xe]  ;;  %v4238_v46 = vor.u32 %v4237_v29, %v4233_v37  ;;  %v4242_v49 = vrot.slane %v4240_v60, 1  ;;  %v2210_v51 = vshll.u32 %v15640_v8, 16  ;;  %v759_v57 = vshrl.u32 %v565_v40, 16 }
  0x6b   :  { %3542 = vrot.lane.b32.xlu1 %v3219_v17, %s15047_s20  ;;  %v2200_v43 = vrot.slane %v2198_v35, 1  ;;  %v13252_v59 = vcombine.low %v1838_v44, %v15590_v15  ;;  %v4226_v56 = vor.u32 %v4225_v48, %v4221_v13  ;;  %v4230_v32 = vrot.slane %v4228_v36, 1  ;;  %v1583_v0 = vld [vmem:[#allocation2 + $0x48] sm:$0xe]  ;;  %v195_v4 = vld [vmem:[#allocation2 + $0x74] sm:$0x1] }
  0x6c   :  { %v2205_v61 = vrot.slane %v2203_v38, 1  ;;  %v762_v3 = vshll.u32 %v565_v40, 16  ;;  %v13253_v50 = vcombine.low %v1839_v45, %v15605_v62  ;;  %v2208_v7 = vshrl.u32 %v15640_v8, 16  ;;  %v1623_v11 = vld [vmem:[#allocation2 + $0x60] sm:$0xf] }
  0x6d   :  { %3540 = vrot.lane.b32.xlu0 %v3207_v21, %s15047_s20  ;;  %v2201_v2 = vor.u32 %v2200_v43, %v2196_v39  ;;  %v2215_v28 = vshll.u32 %v15650_v34, 16  ;;  %v1624_v63 = vld [vmem:[#allocation2 + $0x64] sm:$0xf]  ;;  %v4243_v15 = vsel %vm2122_vm10, %v4238_v46, %v4242_v49  ;;  %v2212_v58 = vrot.slane %v2210_v51, 1  ;;  %v1584_v9 = vld [vmem:[#allocation2 + $0x54] sm:$0xe] }
  0x6e   :  { %v757_v17 = vrot.slane %v15596_v47, 4  ;;  %v761_v10 = vrot.slane %v759_v57, 7  ;;  %v4231_v62 = vsel %vm2122_vm10, %v4226_v56, %v4230_v32  ;;  %v4728_v21 = vrot.slane %v13252_v59, 1  ;;  %v1712_v33 = vld [vmem:[#allocation2 + $0x60] sm:$0xe] }
  0x6f   :  { %3798 = vrot.lane.b32.xlu1 %v3709_v24, %s15043_s16  ;;  %v13062_v22 = vcombine.low %v1583_v0, %v15610_v6  ;;  %v15665_v18 = vcombine.low %v1623_v11, %v1624_v63  ;;  %v1621_v24 = vld [vmem:[#allocation2 + $0x54] sm:$0xf]  ;;  %v15667_v35 = vld [vmem:[#allocation2 + $0x58] sm:$0xf]  ;;  %v196_v37 = vsel %vm15155_vm7, 0, %v195_v4  ;;  %v4731_v47 = vrot.slane %v13253_v50, 1 }
  0x70   :  { %v4732_v29 = vrot.slane %v15626_v19, 1  ;;  %v13063_v60 = vcombine.low %v1584_v9, %v15630_v42  ;;  %197 = vst [vmem:[#allocation2 + $0x74] sm:$0x1] %v196_v37  ;;  %v2206_v6 = vsel %vm2122_vm10, %v2201_v2, %v2205_v61  ;;  %v88_v48 = vld [vmem:[#allocation2 + $0x78] sm:$0x1]  ;;  %v13159_v40 = vcombine.low %v1712_v33, %v1624_v63 }
  0x71   :  { %3796 = vrot.lane.b32.xlu0 %v3706_v5, %s15043_s16  ;;  %v2217_v5 = vrot.slane %v2215_v28, 1  ;;  %v1711_v44 = vld [vmem:[#allocation2 + $0x54] sm:$0xe]  ;;  %v15680_v39 = vcombine.low %v1621_v24, %v15667_v35  ;;  %v566_v19 = vld [vmem:[%s20424_s0 + $0x48] sm:$0xf]  ;;  %v2690_v38 = vrot.slane %v15650_v34, 1 }
  0x72   :  { %v567_v42 = vld [vmem:[%s20424_s0 + $0x4c] sm:$0xf]  ;;  %v2686_v43 = vrot.slane %v13062_v22, 1  ;;  %v3235_v45 = vshll.u32 %v15665_v18, 16  ;;  %v4733_v49 = vsel %vm20452_vm9, %v4731_v47, %v4732_v29  ;;  %v2689_v51 = vrot.slane %v13063_v60, 1 }
  0x73   :  { %4022 = vrot.lane.b32.xlu1 %v13189_v52, %s15042_s15  ;;  %v4729_v52 = vrot.slane %v15618_v12, 1  ;;  %v2213_v12 = vor.u32 %v2212_v58, %v2208_v7  ;;  %v15691_v46 = vld [vmem:[#allocation2 + $0x68] ss:$0 sps:$4 sm:$0x11]   ;;  %v2687_v57 = vrot.slane %v15632_v23, 1  ;;  %v766_v56 = vrot.slane %v761_v10, 4 }
  0x74   :  { %v15696_v59 = vld [vmem:[#allocation2 + $0x5c] ss:$0 sps:$4 sm:$0x11]   ;;  %v13158_v34 = vcombine.low %v1711_v44, %v15667_v35  ;;  %v3233_v61 = vshrl.u32 %v15665_v18, 16  ;;  %v1750_v0 = vld [vmem:[#allocation2 + $0x60] sm:$0xf]  ;;  %v2691_v33 = vsel %vm20452_vm9, %v2689_v51, %v2690_v38 }
  0x75   :  { %4020 = vrot.lane.b32.xlu0 %v13188_v16, %s15042_s15  ;;  %v764_v16 = vor.u32 %v762_v3, %v761_v10  ;;  %v4730_v36 = vsel %vm20452_vm9, %v4728_v21, %v4729_v52  ;;  %v2218_v32 = vsel %vm2122_vm10, %v2213_v12, %v2217_v5  ;;  %v1751_v3 = vld [vmem:[#allocation2 + $0x64] sm:$0xf]  ;;  %v89_v4 = vsel %vm15120_vm2, 0, %v88_v48  ;;  %v1752_v9 = vld [vmem:[#allocation2 + $0x6c] sm:$0xf] }
  0x76   :  { %v3223_v50 = vshll.u32 %v15680_v39, 16  ;;  %v15705_v2 = vrot.slane %v13159_v40, 1  ;;  %90 = vst [vmem:[#allocation2 + $0x78] sm:$0x1] %v89_v4  ;;  %v768_v23 = vshrl.u32 %v566_v19, 16  ;;  %v776_v7 = vshrl.u32 %v567_v42, 16 }
  0x77   :  { %4566 = vrot.lane.b32.xlu1 %v4243_v15, %s15048_s25  ;;  %v765_v13 = vsel %vm15144_vm6, %v757_v17, %v764_v16  ;;  %v3237_v28 = vrot.slane %v3235_v45, 1  ;;  %v3240_v11 = vshll.u32 %v15691_v46, 16  ;;  %v1317_v63 = vld [vmem:[#allocation2 + $0x74] sm:$0x1]  ;;  %v771_v15 = vshll.u32 %v566_v19, 16 }
  0x78   :  { %1316 = vst.msk [vmem:[#allocation2 + $0x70] sm:$0xf] %vm20444_vm5, %v765_v13  ;;  %v779_v58 = vshll.u32 %v567_v42, 16  ;;  %v1840_v17 = vld [vmem:[#allocation2 + $0x60] sm:$0xe]  ;;  %v15709_v10 = vcombine.low %v1750_v0, %v1751_v3  ;;  %v770_v21 = vrot.slane %v768_v23, 7  ;;  %v2688_v22 = vsel %vm20452_vm9, %v2686_v43, %v2687_v57 }
  0x79   :  { %4564 = vrot.lane.b32.xlu0 %v4231_v62, %s15048_s25  ;;  %v1318_v62 = vsel %vm15120_vm2, %v766_v56, %v1317_v63  ;;  %v15713_v52 = vrot.slane %v776_v7, 7  ;;  %v1497_v35 = vld [vmem:[#allocation2 + $0x60] sm:$0xf]  ;;  %v15720_v16 = vld [vmem:[#allocation2 + $0x64] sm:$0xf]  ;;  %v3221_v37 = vshrl.u32 %v15680_v39, 16  ;;  %v3238_v42 = vor.u32 %v3237_v28, %v3233_v61 }
  0x7a   :  { %1319 = vst [vmem:[#allocation2 + $0x74] sm:$0x1] %v1318_v62  ;;  %v3225_v47 = vrot.slane %v3223_v50, 1  ;;  %v3228_v29 = vshll.u32 %v15696_v59, 16  ;;  %v3714_v60 = vrot.slane %v15691_v46, 1  ;;  %v773_v5 = vor.u32 %v771_v15, %v770_v21 }
  0x7b   :  { %2519 = vrot.lane.b32.xlu1 %v2206_v6, %s15046_s19  ;;  %v13254_v6 = vcombine.low %v1840_v17, %v1751_v3  ;;  %v15725_v12 = vld [vmem:[#allocation2 + $0x68] ss:$0 sps:$4 sm:$0x11]   ;;  %v774_v13 = vrot.slane %v770_v21, 4  ;;  %v781_v48 = vor.u32 %v779_v58, %v15713_v52  ;;  %v4247_v44 = vshll.u32 %v15709_v10, 16 }
  0x7c   :  { %v15734_v19 = vcombine.low %v1497_v35, %v15720_v16  ;;  %v3242_v38 = vrot.slane %v3240_v11, 1  ;;  %v3711_v43 = vrot.slane %v15696_v59, 1  ;;  %v3230_v51 = vrot.slane %v3228_v29, 1  ;;  %v15748_v61 = vld [vmem:[#allocation2 + $0x68] ss:$0 sps:$4 sm:$0x11]  }
  0x7d   :  { %4820 = vrot.lane.b32.xlu0 %v4730_v36, %s15045_s18  ;;  %v3710_v36 = vrot.slane %v13158_v34, 1  ;;  %v782_v45 = vsel %vm15144_vm6, %v774_v13, %v781_v48  ;;  %v1320_v46 = vld [vmem:[#allocation2 + $0x78] sm:$0xf]  ;;  %v4245_v57 = vshrl.u32 %v15709_v10, 16  ;;  %v198_v34 = vld [vmem:[#allocation2 + $0x80] sm:$0x1]  ;;  %v3715_v63 = vsel %vm20452_vm9, %v15705_v2, %v3714_v60 }
  0x7e   :  { %v1321_v56 = vsel %vm15167_vm8, %v773_v5, %v1320_v46  ;;  %1323 = vst.msk [vmem:[#allocation2 + $0x7c] sm:$0xf] %vm20444_vm5, %v782_v45  ;;  %v4252_v59 = vshll.u32 %v15725_v12, 16  ;;  %v4734_v0 = vrot.slane %v13254_v6, 1  ;;  %vm5483_vm11 = vcmask 1044480  }
  0x7f   :  { %2521 = vrot.lane.b32.xlu1 %v2218_v32, %s15046_s19  ;;  %v15718_v24 = vld [vmem:[#allocation2 + $0x70] sm:$0xf]  ;;  %v14547_v32 = vld [vmem:[%s20425_s1 + $0x8] sm:$0x3f]   ;;  %1322 = vst [vmem:[#allocation2 + $0x78] sm:$0xf] %v1321_v56  ;;  %v3243_v7 = vsel %vm2122_vm10, %v3238_v42, %v3242_v38  ;;  %v3712_v13 = vsel %vm20452_vm9, %v3710_v36, %v3711_v43 }
  0x80   :  { %v15730_v40 = vcombine.low %v1752_v9, %v15718_v24  ;;  %v4249_v4 = vrot.slane %v4247_v44, 1  ;;  %v2222_v50 = vshll.u32 %v15734_v19, 16  ;;  %v1499_v23 = vld [vmem:[#allocation2 + $0x6c] sm:$0xf]  ;;  %vm5484_vm12 = vcmask 1045504  }
  0x81   :  { %4822 = vrot.lane.b32.xlu0 %v4733_v49, %s15045_s18  ;;  %v3226_v49 = vor.u32 %v3225_v47, %v3221_v37  ;;  %v15757_v28 = vld [vmem:[#allocation2 + $0x74] ss:$0 sps:$4 sm:$0x11]   ;;  %v15049_v15 = vmov 65535   ;;  %v199_v9 = vsel %vm15155_vm7, 0, %v198_v34  ;;  %v4254_v17 = vrot.slane %v4252_v59, 1 }
  0x82   :  { %v4259_v3 = vshll.u32 %v15730_v40, 16  ;;  %v5485_v58 = vsel %vm5483_vm11, 4294967295, %v15049_v15  ;;  %v2220_v62 = vshrl.u32 %v15734_v19, 16  ;;  %200 = vst [vmem:[#allocation2 + $0x80] sm:$0x1] %v199_v9  ;;  %v2227_v2 = vshll.u32 %v15748_v61, 16 }
  0x83   :  { %2778 = vrot.lane.b32.xlu1 %v2691_v33, %s15044_s17  ;;  %v3231_v11 = vsel %vm2122_vm10, %v3226_v49, %v3230_v51  ;;  %v5486_v21 = vsel %vm5484_vm12, %v5485_v58, 0  ;;  %v4250_v33 = vor.u32 %v4249_v4, %v4245_v57  ;;  %v1585_v35 = vld [vmem:[#allocation2 + $0x60] sm:$0xe]  ;;  %v1841_v29 = vld [vmem:[#allocation2 + $0x6c] sm:$0xe]  ;;  %v4257_v60 = vshrl.u32 %v15730_v40, 16 }
  0x84   :  { %v5488_v37 = vand.u32 %v14547_v32, %v5486_v21  ;;  %v14550_v47 = vld [vmem:[%s20425_s1] sm:$0xff]   ;;  %v4261_v6 = vrot.slane %v4259_v3, 1  ;;  %v1586_v44 = vld [vmem:[#allocation2 + $0x6c] sm:$0xe]  ;;  %v13064_v46 = vcombine.low %v1585_v35, %v15720_v16  ;;  %v2693_v49 = vrot.slane %v15748_v61, 1 }
  0x85   :  { %2776 = vrot.lane.b32.xlu0 %v2688_v22, %s15044_s17  ;;  %v2224_v22 = vrot.slane %v2222_v50, 1  ;;  %v1625_v42 = vld [vmem:[#allocation2 + $0x6c] sm:$0xf]  ;;  %v91_v38 = vld [vmem:[#allocation2 + $0x84] sm:$0x1]  ;;  %v783_v51 = vrot.slane %v15713_v52, 4  ;;  %v13255_v56 = vcombine.low %v1841_v29, %v15718_v24  ;;  %v4255_v16 = vsel %vm2122_vm10, %v4250_v33, %v4254_v17 }
  0x86   :  { %14333 = vmatprep.subr.bf16.mxu0 %v5488_v37  ;;  %v568_v36 = vld [vmem:[%s20424_s0 + $0x50] sm:$0xf]  ;;  %v569_v43 = vld [vmem:[%s20424_s0 + $0x54] sm:$0xf]  ;;  %v2229_v34 = vrot.slane %v2227_v2, 1  ;;  %v92_v50 = vsel %vm15120_vm2, 0, %v91_v38 }
  0x87   :  { %3002 = vrot.lane.b32.xlu1 %v15665_v18, %s15041_s14  ;;  %v15762_v18 = vld [vmem:[#allocation2 + $0x70] sm:$0xf]  ;;  %14334 = vmatpush3.bf16.msra.mxu0 %v5488_v37  ;;  %v2225_v32 = vor.u32 %v2224_v22, %v2220_v62  ;;  %v15799_v52 = vld [vmem:[#allocation2 + $0x74] ss:$0 sps:$4 sm:$0x11]   ;;  %v793_v15 = vshrl.u32 %v569_v43, 16 }
  0x88   :  { %v15777_v5 = vcombine.low %v1499_v23, %v15762_v18  ;;  %v15801_v59 = vld [vmem:[#allocation2 + $0x70] sm:$0xf]  ;;  %14335 = vmatprep.subr.bf16.mxu0 %v14550_v47  ;;  %v201_v23 = vld [vmem:[#allocation2 + $0x8c] sm:$0x1]  ;;  %v13065_v24 = vcombine.low %v1586_v44, %v15762_v18  ;;  %93 = vst [vmem:[#allocation2 + $0x84] sm:$0x1] %v92_v50 }
  0x89   :  { %3000 = vrot.lane.b32.xlu0 %v15680_v39, %s15041_s14  ;;  %v4735_v39 = vrot.slane %v15725_v12, 1  ;;  %v4264_v12 = vshll.u32 %v15757_v28, 16  ;;  %v15808_v58 = vrot.slane %v13064_v46, 1  ;;  %v15810_v9 = vld [vmem:[#allocation2 + $0x7c] sm:$0xf]  ;;  %v15813_v17 = vcombine.low %v1625_v42, %v15801_v59 }
  0x8a   :  { %v2234_v4 = vshll.u32 %v15777_v5, 16  ;;  %v94_v21 = vld [vmem:[#allocation2 + $0x90] sm:$0x1]  ;;  %v2239_v22 = vshll.u32 %v15799_v52, 16  ;;  %v1627_v2 = vld [vmem:[#allocation2 + $0x78] sm:$0xf] }
  0x8b   :  { %3546 = vrot.lane.b32.xlu1 %v3243_v7, %s15047_s20  ;;  %v15783_v45 = vsel %vm20452_vm9, %v4734_v0, %v4735_v39  ;;  %v4262_v0 = vor.u32 %v4261_v6, %v4257_v60  ;;  %v4266_v3 = vrot.slane %v4264_v12, 1  ;;  %v1324_v7 = vld [vmem:[#allocation2 + $0x80] sm:$0x1]  ;;  %14336 = vmatpush3.bf16.msra.mxu0 %v14550_v47  ;;  %v796_v39 = vshll.u32 %v569_v43, 16  ;;  %v570_v12 = vld [vmem:[%s20424_s0 + $0x58] sm:$0xf] }
  0x8c   :  { %v1325_v62 = vsel %vm15120_vm2, %v783_v51, %v1324_v7  ;;  %v795_v37 = vrot.slane %v793_v15, 7  ;;  %v202_v29 = vsel %vm15155_vm7, 0, %v201_v23  ;;  %v2236_v60 = vrot.slane %v2234_v4, 1  ;;  %v15855_v7 = vld [vmem:[#allocation2 + $0x74] ss:$0 sps:$4 sm:$0x11]  }
  0x8d   :  { %3544 = vrot.lane.b32.xlu0 %v3231_v11, %s15047_s20  ;;  %v15780_v48 = vpop.permute.xlu1 %2990  ;;  %v785_v11 = vshrl.u32 %v568_v36, 16  ;;  %1326 = vst [vmem:[#allocation2 + $0x80] sm:$0x1] %v1325_v62  ;;  %v4267_v47 = vsel %vm2122_vm10, %v4262_v0, %v4266_v3  ;;  %v4737_v6 = vrot.slane %v13255_v56, 1  ;;  %203 = vst [vmem:[#allocation2 + $0x8c] sm:$0x1] %v202_v29  ;;  %v2230_v23 = vsel %vm2122_vm10, %v2225_v32, %v2229_v34 }
  0x8e   :  { %v798_v38 = vor.u32 %v796_v39, %v795_v37  ;;  %v4738_v46 = vrot.slane %v15757_v28, 1  ;;  %v2696_v51 = vrot.slane %v15799_v52, 1  ;;  %v3247_v43 = vshll.u32 %v15813_v17, 16  ;;  %v15845_v0 = vld [vmem:[#allocation2 + $0x6c] sm:$0xe] }
  0x8f   :  { %3802 = vrot.lane.b32.xlu1 %v3715_v63, %s15043_s16  ;;  %v788_v63 = vshll.u32 %v568_v36, 16  ;;  %v787_v35 = vrot.slane %v785_v11, 7  ;;  %v15841_v36 = vcombine.low %v1627_v2, %v15810_v9  ;;  %v2241_v56 = vrot.slane %v2239_v22, 1  ;;  %v1754_v15 = vld [vmem:[#allocation2 + $0x78] sm:$0xf] }
  0x90   :  { %v15795_v57 = vpop.permute.xlu0 %2988  ;;  %v95_v4 = vsel %vm15120_vm2, 0, %v94_v21  ;;  %v802_v50 = vshrl.u32 %v570_v12, 16  ;;  %v800_v11 = vrot.slane %v795_v37, 4  ;;  %v204_v39 = vld [vmem:[#allocation2 + $0x98] sm:$0x1]  ;;  %vm4876_vm13 = vcmask 23552  }
  0x91   :  { %3800 = vrot.lane.b32.xlu0 %v3712_v13, %s15043_s16  ;;  %v15833_v13 = vrot.slane %v13065_v24, 1  ;;  %v790_v44 = vor.u32 %v788_v63, %v787_v35  ;;  %v791_v42 = vrot.slane %v787_v35, 4  ;;  %v1327_v63 = vld [vmem:[#allocation2 + $0x84] sm:$0xf]  ;;  %96 = vst [vmem:[#allocation2 + $0x90] sm:$0x1] %v95_v4 }
  0x92   :  { %v15819_v18 = vpop.permute.xlu1 %4014  ;;  %v97_v22 = vld [vmem:[#allocation2 + $0x9c] sm:$0x1]  ;;  %v804_v2 = vrot.slane %v802_v50, 7  ;;  %v805_v35 = vshll.u32 %v570_v12, 16  ;;  %v3259_v29 = vshll.u32 %v15841_v36, 16  ;;  %vm20450_vm14 = vcmask 48128  }
  0x93   :  { %4026 = vrot.lane.b32.xlu1 %v15730_v40, %s15042_s15  ;;  %v2232_v40 = vshrl.u32 %v15777_v5, 16  ;;  %v799_v3 = vsel %vm15144_vm6, %v791_v42, %v798_v38  ;;  %v1328_v32 = vsel %vm15167_vm8, %v790_v44, %v1327_v63  ;;  %v15864_v34 = vld [vmem:[#allocation2 + $0x7c] sm:$0xf]  ;;  %v13160_v42 = vcombine.low %v15845_v0, %v15801_v59 }
  0x94   :  { %v15821_v33 = vpop.permute.xlu0 %4012  ;;  %1330 = vst.msk [vmem:[#allocation2 + $0x88] sm:$0xf] %vm20444_vm5, %v799_v3  ;;  %1329 = vst [vmem:[#allocation2 + $0x84] sm:$0xf] %v1328_v32  ;;  %v1331_v38 = vld [vmem:[#allocation2 + $0x8c] sm:$0x1]  ;;  %v807_v59 = vor.u32 %v805_v35, %v804_v2  ;;  %v2694_v35 = vsel %vm20452_vm9, %v15808_v58, %v2693_v49 }
  0x95   :  { %4024 = vrot.lane.b32.xlu0 %v15709_v10, %s15042_s15  ;;  %v571_v10 = vld [vmem:[%s20424_s0 + $0x5c] sm:$0xf]  ;;  %v2237_v24 = vor.u32 %v2236_v60, %v2232_v40  ;;  %v4739_v60 = vsel %vm20452_vm9, %v4737_v6, %v4738_v46  ;;  %v15876_v44 = vld [vmem:[#allocation2 + $0x80] ss:$0 sps:$4 sm:$0x11]   ;;  %v1332_v3 = vsel %vm15120_vm2, %v800_v11, %v1331_v38  ;;  %v808_v6 = vrot.slane %v804_v2, 4 }
  0x96   :  { %v810_v62 = vshrl.u32 %v571_v10, 16  ;;  %v813_v37 = vshll.u32 %v571_v10, 16  ;;  %v15879_v10 = vcombine.low %v1754_v15, %v15864_v34  ;;  %v15883_v4 = vld [vmem:[#allocation2 + $0x7c] sm:$0xf]  ;;  %1333 = vst [vmem:[#allocation2 + $0x8c] sm:$0x1] %v1332_v3 }
  0x97   :  { %4570 = vrot.lane.b32.xlu1 %v4267_v47, %s15048_s25  ;;  %v1501_v47 = vld [vmem:[#allocation2 + $0x78] sm:$0xf]  ;;  %v2242_v12 = vsel %vm2122_vm10, %v2237_v24, %v2241_v56  ;;  %v205_v56 = vsel %vm15155_vm7, 0, %v204_v39  ;;  %v98_v0 = vsel %vm15120_vm2, 0, %v97_v22  ;;  %v3245_v24 = vshrl.u32 %v15813_v17, 16 }
  0x98   :  { %v15852_v28 = vpop.permute.xlu0 %3788  ;;  %v15867_v40 = vrot.slane %v810_v62, 7  ;;  %v3249_v11 = vrot.slane %v3247_v43, 1  ;;  %v3252_v63 = vshll.u32 %v15855_v7, 16  ;;  %206 = vst [vmem:[#allocation2 + $0x98] sm:$0x1] %v205_v56  ;;  %vm20449_vm15 = vcmask 72704  }
  0x99   :  { %4568 = vrot.lane.b32.xlu0 %v4255_v16, %s15048_s25  ;;  %v15858_v21 = vpop.permute.xlu1 %2764  ;;  %v15860_v16 = vld [vmem:[#allocation2 + $0x78] sm:$0xe]  ;;  %99 = vst [vmem:[#allocation2 + $0x9c] sm:$0x1] %v98_v0  ;;  %v3257_v15 = vshrl.u32 %v15841_v36, 16  ;;  %v3261_v62 = vrot.slane %v3259_v29, 1  ;;  %v15901_v39 = vcombine.low %v1501_v47, %v15883_v4 }
  0x9a   :  { %vm20448_vm0 = vcmask 97280   ;;  %v3264_v43 = vshll.u32 %v15876_v44, 16  ;;  %v1334_v32 = vld [vmem:[#allocation2 + $0x90] sm:$0xf]  ;;  %vm20451_vm4 = vcmask 121856   ;;  %vm20447_vm11 = vcmask 146432  }
  0x9b   :  { %2523 = vrot.lane.b32.xlu1 %v2230_v23, %s15046_s19  ;;  %v13161_v23 = vcombine.low %v15860_v16, %v15810_v9  ;;  %v2697_v9 = vsel %vm20452_vm9, %v15833_v13, %v2696_v51  ;;  %v1842_v16 = vld [vmem:[#allocation2 + $0x78] sm:$0xe]  ;;  %v15918_v52 = vld [vmem:[#allocation2 + $0x88] sm:$0xf]  ;;  %v4271_v13 = vshll.u32 %v15879_v10, 16  ;;  %v1335_v51 = vsel %vm15167_vm8, %v807_v59, %v1334_v32 }
  0x9c   :  { %v3250_v47 = vor.u32 %v3249_v11, %v3245_v24  ;;  %v15923_v38 = vrot.slane %v13160_v42, 1  ;;  %v3717_v61 = vrot.slane %v15855_v7, 1  ;;  %1336 = vst [vmem:[#allocation2 + $0x90] sm:$0xf] %v1335_v51  ;;  %v3262_v49 = vor.u32 %v3261_v62, %v3257_v15 }
  0x9d   :  { %4824 = vrot.lane.b32.xlu0 %v15783_v45, %s15045_s18  ;;  %v15885_v46 = vpop.permute.xlu1 %2766  ;;  %v815_v45 = vor.u32 %v813_v37, %v15867_v40  ;;  %v1756_v37 = vld [vmem:[#allocation2 + $0x84] sm:$0xf]  ;;  %v3719_v58 = vrot.slane %v13161_v23, 1  ;;  %v13256_v3 = vcombine.low %v1842_v16, %v15864_v34  ;;  %v4269_v7 = vshrl.u32 %v15879_v10, 16 }
  0x9e   :  { %v15933_v42 = vcombine.low %v1756_v37, %v15918_v52  ;;  %v3720_v0 = vrot.slane %v15876_v44, 1  ;;  %vm20443_vm12 = vcmask 195584   ;;  %v4273_v23 = vrot.slane %v4271_v13, 1  ;;  %v15960_v32 = vld [vmem:[#allocation2 + $0x8c] ss:$0 sps:$4 sm:$0x11]  }
  0x9f   :  { %v15892_v50 = vpop.permute.xlu0 %4812  ;;  %2525 = vrot.lane.b32.xlu1 %v2242_v12, %s15046_s19  ;;  %v816_v22 = vsel %vm15144_vm6, %v808_v6, %v815_v45  ;;  %v1587_v12 = vld [vmem:[#allocation2 + $0x78] sm:$0xe]  ;;  %v2246_v6 = vshll.u32 %v15901_v39, 16  ;;  %v3266_v45 = vrot.slane %v3264_v43, 1  ;;  %v2244_v34 = vshrl.u32 %v15901_v39, 16 }
  0xa0   :  { %1337 = vst.msk [vmem:[#allocation2 + $0x94] sm:$0xf] %vm20444_vm5, %v816_v22  ;;  %v13066_v24 = vcombine.low %v1587_v12, %v15883_v4  ;;  %vm20445_vm3 = vcmask 171008   ;;  %vm20442_vm1 = vcmask 220160   ;;  %v15949_v22 = vrot.slane %v13256_v3, 1 }
  0xa1   :  { %4826 = vrot.lane.b32.xlu0 %v4739_v60, %s15045_s18  ;;  %v15912_v2 = vpop.permute.xlu1 %3790  ;;  %v3254_v60 = vrot.slane %v3252_v63, 1  ;;  %v15941_v63 = vld [vmem:[#allocation2 + $0x80] ss:$0 sps:$4 sm:$0x11]   ;;  %v2248_v44 = vrot.slane %v2246_v6, 1  ;;  %v3721_v37 = vsel %vm20452_vm9, %v3719_v58, %v3720_v0 }
  0xa2   :  { %v1503_v4 = vld [vmem:[#allocation2 + $0x84] sm:$0xf]  ;;  %v15965_v13 = vrot.slane %v13066_v24, 1  ;;  %v3718_v24 = vsel %vm20452_vm9, %v15923_v38, %v3717_v61 }
  0xa3   :  { %v2508_v29 = vpop.permute.xlu0 %2507  ;;  %2782 = vrot.lane.b32.xlu1 %v2697_v9, %s15044_s17  ;;  %v15951_v9 = vld [vmem:[#allocation2 + $0x88] sm:$0xf]  ;;  %v3255_v16 = vsel %vm2122_vm10, %v3250_v47, %v3254_v60 }
  0xa4   :  { %v4878_v59 = vsel %vm4876_vm13, %v15305_v26, %v2508_v29  ;;  %v15939_v26 = vld [vmem:[#allocation2 + $0x80] ss:$0 sps:$4 sm:$0x11]   ;;  %v15981_v58 = vcombine.low %v1503_v4, %v15951_v9  ;;  %v4274_v4 = vor.u32 %v4273_v23, %v4269_v7  ;;  %v573_v7 = vld [vmem:[%s20424_s0 + $0x64] sm:$0xf] }
  0xa5   :  { %2780 = vrot.lane.b32.xlu0 %v2694_v35, %s15044_s17  ;;  %v3535_v56 = vpop.permute.xlu1 %3534  ;;  %v4943_v15 = vsel %vm20450_vm14, %v4878_v59, %v15858_v21  ;;  %v3267_v21 = vsel %vm2122_vm10, %v3262_v49, %v3266_v45  ;;  %v4276_v47 = vshll.u32 %v15939_v26, 16  ;;  %v4741_v60 = vrot.slane %v15939_v26, 1 }
  0xa6   :  { %v5008_v51 = vsel %vm20449_vm15, %v4943_v15, %v15795_v57  ;;  %v2251_v49 = vshll.u32 %v15941_v63, 16  ;;  %v1338_v57 = vld [vmem:[#allocation2 + $0x98] sm:$0x1]  ;;  %v4288_v45 = vshll.u32 %v15960_v32, 16  ;;  %v15998_v15 = vld [vmem:[#allocation2 + $0x88] sm:$0xf] }
  0xa7   :  { %v2510_v11 = vpop.permute.xlu0 %2509  ;;  %3006 = vrot.lane.b32.xlu1 %v15841_v36, %s15041_s14  ;;  %v16061_v26 = vld [vmem:[#allocation2 + $0x94] sm:$0xf] }
  0xa8   :  { %v4880_v62 = vsel %vm4876_vm13, %v15284_v54, %v2510_v11  ;;  %v4283_v54 = vshll.u32 %v15933_v42, 16  ;;  %v15995_v11 = vld [vmem:[#allocation2 + $0x84] sm:$0xe] }
  0xa9   :  { %v4945_v43 = vsel %vm20450_vm14, %v4880_v62, %v15885_v46  ;;  %3004 = vrot.lane.b32.xlu0 %v15813_v17, %s15041_s14  ;;  %v4559_v35 = vpop.permute.xlu1 %4558  ;;  %v817_v46 = vrot.slane %v15867_v40, 4  ;;  %v4281_v40 = vshrl.u32 %v15933_v42, 16 }
  0xaa   :  { %v5010_v36 = vsel %vm20449_vm15, %v4945_v43, %v15780_v48  ;;  %v572_v48 = vld [vmem:[%s20424_s0 + $0x60] sm:$0xf]  ;;  %v4285_v59 = vrot.slane %v4283_v54, 1  ;;  %v4278_v43 = vrot.slane %v4276_v47, 1  ;;  %v1629_v54 = vld [vmem:[#allocation2 + $0x84] sm:$0xf] }
  0xab   :  { %v5075_v17 = vsel %vm20448_vm0, %v5010_v36, %v3535_v56  ;;  %v3533_v29 = vpop.permute.xlu0 %3532  ;;  %3550 = vrot.lane.b32.xlu1 %v3267_v21, %s15047_s20  ;;  %v2249_v21 = vor.u32 %v2248_v44, %v2244_v34  ;;  %v2258_v36 = vshll.u32 %v15981_v58, 16  ;;  %v822_v23 = vshll.u32 %v572_v48, 16 }
  0xac   :  { %v5073_v12 = vsel %vm20448_vm0, %v5008_v51, %v3533_v29  ;;  %v5140_v3 = vsel %vm20451_vm4, %v5075_v17, %v15912_v2  ;;  %v2699_v2 = vrot.slane %v15941_v63, 1  ;;  %v4286_v44 = vor.u32 %v4285_v59, %v4281_v40  ;;  %v1631_v17 = vld [vmem:[#allocation2 + $0x90] sm:$0xf]  ;;  %v16015_v51 = vld [vmem:[#allocation2 + $0x94] sm:$0xf] }
  0xad   :  { %v5138_v6 = vsel %vm20451_vm4, %v5073_v12, %v15852_v28  ;;  %3548 = vrot.lane.b32.xlu0 %v3255_v16, %s15047_s20  ;;  %v15989_v56 = vpop.permute.xlu1 %2511  ;;  %v819_v28 = vshrl.u32 %v572_v48, 16  ;;  %v16000_v16 = vld [vmem:[#allocation2 + $0x8c] ss:$0 sps:$4 sm:$0x11]   ;;  %v5205_v38 = vsel %vm20447_vm11, %v5140_v3, %v15819_v18  ;;  %v2253_v18 = vrot.slane %v2251_v49, 1 }
  0xae   :  { %v5203_v0 = vsel %vm20447_vm11, %v5138_v6, %v15821_v33  ;;  %v1339_v33 = vsel %vm15120_vm2, %v817_v46, %v1338_v57  ;;  %v4290_v46 = vrot.slane %v4288_v45, 1  ;;  %v13257_v29 = vcombine.low %v15995_v11, %v15918_v52  ;;  %v100_v40 = vld [vmem:[#allocation2 + $0xa8] sm:$0x1]  ;;  %v1341_v45 = vld [vmem:[#allocation2 + $0x9c] sm:$0xf] }
  0xaf   :  { %v4557_v62 = vpop.permute.xlu0 %4556  ;;  %3806 = vrot.lane.b32.xlu1 %v3721_v37, %s15043_s16  ;;  %1340 = vst [vmem:[#allocation2 + $0x98] sm:$0x1] %v1339_v33  ;;  %v2256_v47 = vshrl.u32 %v15981_v58, 16  ;;  %v16024_v48 = vcombine.low %v1629_v54, %v15998_v15  ;;  %v821_v12 = vrot.slane %v819_v28, 7  ;;  %v5270_v49 = vsel %vm20445_vm3, %v5205_v38, %v4559_v35  ;;  %v16101_v63 = vld [vmem:[%s20424_s0 + $0x6c] sm:$0xf] }
  0xb0   :  { %v5268_v61 = vsel %vm20445_vm3, %v5203_v0, %v4557_v62  ;;  %v2263_v3 = vshll.u32 %v16000_v16, 16  ;;  %v827_v6 = vshrl.u32 %v573_v7, 16  ;;  %v830_v59 = vshll.u32 %v573_v7, 16  ;;  %v1715_v62 = vld [vmem:[#allocation2 + $0x84] sm:$0xe] }
  0xb1   :  { %3804 = vrot.lane.b32.xlu0 %v3718_v24, %s15043_s16  ;;  %v5333_v34 = vsel %vm20443_vm12, %v5268_v61, %v15892_v50  ;;  %v16018_v37 = vpop.permute.xlu1 %2513  ;;  %v207_v50 = vld [vmem:[#allocation2 + $0xa4] sm:$0x1]  ;;  %v2260_v52 = vrot.slane %v2258_v36, 1  ;;  %v1588_v24 = vld [vmem:[#allocation2 + $0x84] sm:$0xe]  ;;  %v16032_v11 = vcombine.low %v1631_v17, %v16015_v51  ;;  %v824_v28 = vor.u32 %v822_v23, %v821_v12 }
  0xb2   :  { %14337 = vmatprep.mubr.msk.bf16.mxu0 %vm20442_vm1, %v5333_v34  ;;  %v4291_v35 = vsel %vm2122_vm10, %v4286_v44, %v4290_v46  ;;  %v825_v54 = vrot.slane %v821_v12, 4  ;;  %v829_v33 = vrot.slane %v827_v6, 7  ;;  %v208_v38 = vsel %vm15155_vm7, 0, %v207_v50  ;;  %v16044_v7 = vld [vmem:[#allocation2 + $0x8c] ss:$0 sps:$4 sm:$0x11]  }
  0xb3   :  { %v4815_v57 = vpop.permute.xlu0 %4814  ;;  %4030 = vrot.lane.b32.xlu1 %v15933_v42, %s15042_s15  ;;  %v4279_v61 = vsel %vm2122_vm10, %v4274_v4, %v4278_v43  ;;  %v3271_v36 = vshll.u32 %v16024_v48, 16  ;;  %209 = vst [vmem:[#allocation2 + $0xa4] sm:$0x1] %v208_v38  ;;  %v101_v23 = vsel %vm15120_vm2, 0, %v100_v40  ;;  %v4742_v44 = vsel %vm20452_vm9, %v15949_v22, %v4741_v60  ;;  %v1716_v43 = vld [vmem:[#allocation2 + $0x90] sm:$0xe] }
  0xb4   :  { %v5335_v0 = vsel %vm20443_vm12, %v5270_v49, %v4815_v57  ;;  %v13067_v4 = vcombine.low %v1588_v24, %v15951_v9  ;;  %v832_v46 = vor.u32 %v830_v59, %v829_v33  ;;  %v1758_v17 = vld [vmem:[#allocation2 + $0x90] sm:$0xf]  ;;  %102 = vst [vmem:[#allocation2 + $0xa8] sm:$0x1] %v101_v23  ;;  %v2254_v12 = vsel %vm2122_vm10, %v2249_v21, %v2253_v18  ;;  %v16084_v24 = vld [vmem:[%s20424_s0 + $0x68] sm:$0xf] }
  0xb5   :  { %4028 = vrot.lane.b32.xlu0 %v15879_v10, %s15042_s15  ;;  %14338 = vmatmul.mubr.msk.bf16.vlgmr.msra.gmra.mxu0 %vm20442_vm1, %v5335_v0  ;;  %v16040_v42 = vpop.permute.xlu1 %2770  ;;  %v1342_v10 = vsel %vm15167_vm8, %v824_v28, %v1341_v45  ;;  %v4743_v50 = vrot.slane %v13257_v29, 1  ;;  %v3283_v40 = vshll.u32 %v16032_v11, 16  ;;  %v13162_v49 = vcombine.low %v1715_v62, %v15998_v15  ;;  %v1505_v0 = vld [vmem:[#allocation2 + $0x90] sm:$0xf] }
  0xb6   :  { %1343 = vst [vmem:[#allocation2 + $0x9c] sm:$0xf] %v1342_v10  ;;  %v2261_v22 = vor.u32 %v2260_v52, %v2256_v47  ;;  %v2265_v9 = vrot.slane %v2263_v3, 1  ;;  %v4744_v60 = vrot.slane %v15960_v32, 1  ;;  %v833_v57 = vsel %vm15144_vm6, %v825_v54, %v832_v46  ;;  %v16079_v52 = vld [vmem:[#allocation2 + $0x94] sm:$0xf] }
  0xb7   :  { %v16050_v34 = vpop.permute.xlu0 %2768  ;;  %4574 = vrot.lane.b32.xlu1 %v4291_v35, %s15048_s25  ;;  %v3269_v21 = vshrl.u32 %v16024_v48, 16  ;;  %v3273_v18 = vrot.slane %v3271_v36, 1  ;;  %v3276_v29 = vshll.u32 %v16044_v7, 16  ;;  %v834_v59 = vrot.slane %v829_v33, 4  ;;  %1344 = vst.msk [vmem:[#allocation2 + $0xa0] sm:$0xf] %vm20444_vm5, %v833_v57 }
  0xb8   :  { %v2701_v45 = vrot.slane %v13067_v4, 1  ;;  %v2702_v47 = vrot.slane %v16000_v16, 1  ;;  %v13163_v32 = vcombine.low %v1716_v43, %v16015_v51  ;;  %v16077_v3 = vcombine.low %v1758_v17, %v16061_v26  ;;  %v16091_v28 = vld [vmem:[#allocation2 + $0x98] ss:$0 sps:$4 sm:$0x11]  }
  0xb9   :  { %4572 = vrot.lane.b32.xlu0 %v4279_v61, %s15048_s25  ;;  %v16067_v6 = vpop.permute.xlu1 %2994  ;;  %v2700_v16 = vsel %vm20452_vm9, %v15965_v13, %v2699_v2  ;;  %v3281_v51 = vshrl.u32 %v16032_v11, 16  ;;  %v3285_v35 = vrot.slane %v3283_v40, 1  ;;  %v2266_v62 = vsel %vm2122_vm10, %v2261_v22, %v2265_v9  ;;  %v16107_v23 = vld [vmem:[#allocation2 + $0x98] ss:$0 sps:$4 sm:$0x11]  }
  0xba   :  { %v4745_v54 = vsel %vm20452_vm9, %v4743_v50, %v4744_v60  ;;  %v3722_v33 = vrot.slane %v13162_v49, 1  ;;  %v3723_v38 = vrot.slane %v16044_v7, 1  ;;  %v1345_v61 = vld [vmem:[#allocation2 + $0xa4] sm:$0x1]  ;;  %v3274_v2 = vor.u32 %v3273_v18, %v3269_v21  ;;  %v210_v4 = vld [vmem:[#allocation2 + $0xb0] sm:$0x1] }
  0xbb   :  { %v16072_v15 = vpop.permute.xlu0 %2992  ;;  %2527 = vrot.lane.b32.xlu1 %v2254_v12, %s15046_s19  ;;  %v3278_v36 = vrot.slane %v3276_v29, 1  ;;  %v1346_v10 = vsel %vm15120_vm2, %v834_v59, %v1345_v61  ;;  %v4882_v7 = vsel %vm4876_vm13, %v15313_v41, %v15989_v56  ;;  %v2703_v46 = vsel %vm20452_vm9, %v2701_v45, %v2702_v47  ;;  %v1844_v12 = vld [vmem:[#allocation2 + $0x90] sm:$0xe]  ;;  %v16123_v9 = vld [vmem:[#allocation2 + $0x98] ss:$0 sps:$4 sm:$0x11]  }
  0xbc   :  { %v3725_v17 = vrot.slane %v13163_v32, 1  ;;  %v4295_v50 = vshll.u32 %v16077_v3, 16  ;;  %1347 = vst [vmem:[#allocation2 + $0xa4] sm:$0x1] %v1346_v10  ;;  %v16119_v40 = vld [vmem:[#allocation2 + $0x90] sm:$0xe]  ;;  %v3286_v49 = vor.u32 %v3285_v35, %v3281_v51  ;;  %v4884_v60 = vsel %vm4876_vm13, %v15329_v30, %v16018_v37 }
  0xbd   :  { %4828 = vrot.lane.b32.xlu0 %v4742_v44, %s15045_s18  ;;  %v16103_v13 = vpop.permute.xlu1 %3538  ;;  %v16110_v44 = vcombine.low %v1505_v0, %v16079_v52  ;;  %v3288_v22 = vshll.u32 %v16091_v28, 16  ;;  %v836_v41 = vshrl.u32 %v16084_v24, 16  ;;  %v844_v56 = vshrl.u32 %v16101_v63, 16  ;;  %v1760_v21 = vld [vmem:[#allocation2 + $0x9c] sm:$0xf] }
  0xbe   :  { %v16132_v57 = vsel %vm20452_vm9, %v3722_v33, %v3723_v38  ;;  %v16134_v18 = vld [vmem:[#allocation2 + $0xa0] sm:$0xf]  ;;  %v839_v29 = vshll.u32 %v16084_v24, 16  ;;  %v211_v59 = vsel %vm15155_vm7, 0, %v210_v4  ;;  %v16142_v47 = vsel %vm2122_vm10, %v3274_v2, %v3278_v36  ;;  %v1348_v61 = vld [vmem:[#allocation2 + $0xa8] sm:$0xf] }
  0xbf   :  { %v16115_v43 = vpop.permute.xlu0 %3536  ;;  %2529 = vrot.lane.b32.xlu1 %v2266_v62, %s15046_s19  ;;  %v13258_v30 = vcombine.low %v1844_v12, %v16061_v26  ;;  %v4300_v37 = vshll.u32 %v16107_v23, 16  ;;  %v2270_v32 = vshll.u32 %v16110_v44, 16  ;;  %212 = vst [vmem:[#allocation2 + $0xb0] sm:$0x1] %v211_v59  ;;  %v13068_v24 = vcombine.low %v16119_v40, %v16079_v52 }
  0xc0   :  { %v838_v51 = vrot.slane %v836_v41, 7  ;;  %v846_v35 = vrot.slane %v844_v56, 7  ;;  %v847_v62 = vshll.u32 %v16101_v63, 16  ;;  %v16155_v26 = vcombine.low %v1760_v21, %v16134_v18  ;;  %v1507_v41 = vld [vmem:[#allocation2 + $0x9c] sm:$0xf] }
  0xc1   :  { %4830 = vrot.lane.b32.xlu0 %v4745_v54, %s15045_s18  ;;  %v16139_v45 = vpop.permute.xlu1 %3794  ;;  %v3726_v54 = vrot.slane %v16091_v28, 1  ;;  %v4293_v33 = vshrl.u32 %v16077_v3, 16  ;;  %v2275_v38 = vshll.u32 %v16123_v9, 16  ;;  %v3290_v2 = vrot.slane %v3288_v22, 1  ;;  %v16174_v56 = vld [vmem:[#allocation2 + $0xa0] sm:$0xf] }
  0xc2   :  { %v4297_v52 = vrot.slane %v4295_v50, 1  ;;  %v2268_v36 = vshrl.u32 %v16110_v44, 16  ;;  %v841_v10 = vor.u32 %v839_v29, %v838_v51  ;;  %v16163_v4 = vrot.slane %v4300_v37, 1  ;;  %v16172_v50 = vld [vmem:[#allocation2 + $0x9c] sm:$0xe] }
  0xc3   :  { %v16147_v0 = vpop.permute.xlu0 %3792  ;;  %2786 = vrot.lane.b32.xlu1 %v2703_v46, %s15044_s17  ;;  %v2272_v28 = vrot.slane %v2270_v32, 1  ;;  %v16165_v46 = vrot.slane %v13258_v30, 1  ;;  %v4747_v12 = vrot.slane %v16107_v23, 1  ;;  %v4949_v40 = vsel %vm20450_vm14, %v4884_v60, %v16040_v42  ;;  %v16186_v60 = vld [vmem:[#allocation2 + $0x9c] sm:$0xe] }
  0xc4   :  { %v849_v21 = vor.u32 %v847_v62, %v846_v35  ;;  %v1349_v29 = vsel %vm15167_vm8, %v841_v10, %v1348_v61  ;;  %v5014_v59 = vsel %vm20449_vm15, %v4949_v40, %v16067_v6  ;;  %v3727_v42 = vsel %vm20452_vm9, %v3725_v17, %v3726_v54  ;;  %v16193_v37 = vld [vmem:[#allocation2 + $0xa4] ss:$0 sps:$4 sm:$0x11]   ;;  %v103_v62 = vld [vmem:[#allocation2 + $0xb4] sm:$0x1] }
  0xc5   :  { %2784 = vrot.lane.b32.xlu0 %v2700_v16, %s15044_s17  ;;  %v16161_v63 = vpop.permute.xlu1 %4018  ;;  %v4947_v16 = vsel %vm20450_vm14, %v4882_v7, %v16050_v34  ;;  %v4307_v34 = vshll.u32 %v16155_v26, 16  ;;  %v16184_v7 = vrot.slane %v2275_v38, 1  ;;  %1350 = vst [vmem:[#allocation2 + $0xa8] sm:$0xf] %v1349_v29  ;;  %v3291_v6 = vsel %vm2122_vm10, %v3286_v49, %v3290_v2  ;;  %v576_v54 = vld [vmem:[%s20424_s0 + $0x70] sm:$0xf] }
  0xc6   :  { %v5012_v30 = vsel %vm20449_vm15, %v4947_v16, %v16072_v15  ;;  %v842_v17 = vrot.slane %v838_v51, 4  ;;  %v1352_v32 = vld [vmem:[#allocation2 + $0xb0] sm:$0x1]  ;;  %v16201_v61 = vcombine.low %v1507_v41, %v16174_v56  ;;  %v16203_v15 = vrot.slane %v13068_v24, 1  ;;  %v1633_v40 = vld [vmem:[#allocation2 + $0x9c] sm:$0xf] }
  0xc7   :  { %v4017_v22 = vpop.permute.xlu0 %4016  ;;  %3010 = vrot.lane.b32.xlu1 %v16032_v11, %s15041_s14  ;;  %v16195_v11 = vor.u32 %v4297_v52, %v4293_v33  ;;  %v851_v49 = vrot.slane %v846_v35, 4  ;;  %v577_v33 = vld [vmem:[%s20424_s0 + $0x74] sm:$0xf]  ;;  %v5079_v51 = vsel %vm20448_vm0, %v5014_v59, %v16103_v13  ;;  %v5077_v2 = vsel %vm20448_vm0, %v5012_v30, %v16115_v43  ;;  %v16225_v43 = vld [vmem:[#allocation2 + $0xa0] sm:$0xf] }
  0xc8   :  { %v16213_v10 = vor.u32 %v2272_v28, %v2268_v36  ;;  %v850_v24 = vsel %vm15144_vm6, %v842_v17, %v849_v21  ;;  %v5144_v35 = vsel %vm20451_vm4, %v5079_v51, %v16139_v45  ;;  %v13259_v16 = vcombine.low %v16172_v50, %v16134_v18  ;;  %v213_v28 = vld [vmem:[#allocation2 + $0xbc] sm:$0x1]  ;;  %v106_v59 = vld [vmem:[#allocation2 + $0xc0] sm:$0x1] }
  0xc9   :  { %3008 = vrot.lane.b32.xlu0 %v16024_v48, %s15041_s14  ;;  %v4563_v38 = vpop.permute.xlu1 %4562  ;;  %v2705_v48 = vrot.slane %v16123_v9, 1  ;;  %v13069_v13 = vcombine.low %v16186_v60, %v16174_v56  ;;  %1351 = vst.msk [vmem:[#allocation2 + $0xac] sm:$0xf] %vm20444_vm5, %v850_v24  ;;  %v1353_v36 = vsel %vm15120_vm2, %v851_v49, %v1352_v32  ;;  %v5142_v41 = vsel %vm20451_vm4, %v5077_v2, %v16147_v0  ;;  %v16242_v51 = vld [vmem:[#allocation2 + $0xa4] ss:$0 sps:$4 sm:$0x11]  }
  0xca   :  { %v4305_v45 = vshrl.u32 %v16155_v26, 16  ;;  %v4309_v21 = vrot.slane %v4307_v34, 1  ;;  %v4312_v29 = vshll.u32 %v16193_v37, 16  ;;  %1354 = vst [vmem:[#allocation2 + $0xb0] sm:$0x1] %v1353_v36  ;;  %v5207_v30 = vsel %vm20447_vm11, %v5142_v41, %v4017_v22 }
  0xcb   :  { %v4561_v52 = vpop.permute.xlu0 %4560  ;;  %3554 = vrot.lane.b32.xlu1 %v3291_v6, %s15047_s20  ;;  %v2282_v17 = vshll.u32 %v16201_v61, 16  ;;  %v104_v32 = vsel %vm15120_vm2, 0, %v103_v62  ;;  %v853_v0 = vshrl.u32 %v576_v54, 16  ;;  %v16245_v34 = vcombine.low %v1633_v40, %v16225_v43 }
  0xcc   :  { %v5272_v49 = vsel %vm20445_vm3, %v5207_v30, %v4561_v52  ;;  %105 = vst [vmem:[#allocation2 + $0xb4] sm:$0x1] %v104_v32  ;;  %v856_v2 = vshll.u32 %v576_v54, 16  ;;  %v861_v24 = vshrl.u32 %v577_v33, 16  ;;  %v2280_v36 = vshrl.u32 %v16201_v61, 16 }
  0xcd   :  { %3552 = vrot.lane.b32.xlu0 %v16142_v47, %s15047_s20  ;;  %v16236_v6 = vpop.permute.xlu1 %2515  ;;  %v855_v41 = vrot.slane %v853_v0, 7  ;;  %v864_v62 = vshll.u32 %v577_v33, 16  ;;  %v4310_v52 = vor.u32 %v4309_v21, %v4305_v45  ;;  %v4314_v30 = vrot.slane %v4312_v29, 1  ;;  %v16263_v21 = vld [vmem:[#allocation2 + $0xa4] ss:$0 sps:$4 sm:$0x11]  }
  0xce   :  { %v863_v40 = vrot.slane %v861_v24, 7  ;;  %v214_v54 = vsel %vm15155_vm7, 0, %v213_v28  ;;  %v5209_v32 = vsel %vm20447_vm11, %v5144_v35, %v16161_v63  ;;  %v107_v33 = vsel %vm15120_vm2, 0, %v106_v59  ;;  %v1635_v35 = vld [vmem:[#allocation2 + $0xa8] sm:$0xf] }
  0xcf   :  { %v4817_v47 = vpop.permute.xlu0 %4816  ;;  %3810 = vrot.lane.b32.xlu1 %v3727_v42, %s15043_s16  ;;  %v2284_v42 = vrot.slane %v2282_v17, 1  ;;  %215 = vst [vmem:[#allocation2 + $0xbc] sm:$0x1] %v214_v54  ;;  %v2287_v45 = vshll.u32 %v16242_v51, 16  ;;  %v858_v29 = vor.u32 %v856_v2, %v855_v41  ;;  %108 = vst [vmem:[#allocation2 + $0xc0] sm:$0x1] %v107_v33  ;;  %v4315_v59 = vsel %vm2122_vm10, %v4310_v52, %v4314_v30 }
  0xd0   :  { %v5337_v22 = vsel %vm20443_vm12, %v5272_v49, %v4817_v47  ;;  %v859_v47 = vrot.slane %v855_v41, 4  ;;  %v866_v28 = vor.u32 %v864_v62, %v863_v40  ;;  %v16268_v17 = vld [vmem:[#allocation2 + $0xac] sm:$0xf]  ;;  %v1717_v24 = vld [vmem:[#allocation2 + $0x9c] sm:$0xe]  ;;  %v4749_v52 = vrot.slane %v13259_v16, 1 }
  0xd1   :  { %3808 = vrot.lane.b32.xlu0 %v16132_v57, %s15043_s16  ;;  %14341 = vmatprep.mubr.msk.bf16.mxu0 %vm20442_vm1, %v5337_v22  ;;  %v16257_v49 = vpop.permute.xlu1 %2517  ;;  %v5274_v57 = vsel %vm20445_vm3, %v5209_v32, %v4563_v38  ;;  %v16273_v38 = vld [vmem:[%s20424_s0 + $0x78] sm:$0xf]  ;;  %v1762_v22 = vld [vmem:[#allocation2 + $0xa8] sm:$0xf]  ;;  %v16284_v41 = vld [vmem:[#allocation2 + $0xac] sm:$0xf]  ;;  %v2285_v56 = vor.u32 %v2284_v42, %v2280_v36 }
  0xd2   :  { %v867_v2 = vsel %vm15144_vm6, %v859_v47, %v866_v28  ;;  %v3295_v30 = vshll.u32 %v16245_v34, 16  ;;  %v868_v54 = vrot.slane %v863_v40, 4  ;;  %v4750_v32 = vrot.slane %v16193_v37, 1  ;;  %v1718_v40 = vld [vmem:[#allocation2 + $0xa8] sm:$0xe] }
  0xd3   :  { %v4819_v0 = vpop.permute.xlu0 %4818  ;;  %4034 = vrot.lane.b32.xlu1 %v16155_v26, %s15042_s15  ;;  %v4303_v26 = vsel %vm2122_vm10, %v16195_v11, %v16163_v4  ;;  %v1355_v4 = vld [vmem:[#allocation2 + $0xb4] sm:$0xf]  ;;  %1358 = vst.msk [vmem:[#allocation2 + $0xb8] sm:$0xf] %vm20444_vm5, %v867_v2  ;;  %v2707_v47 = vrot.slane %v13069_v13, 1  ;;  %v2289_v50 = vrot.slane %v2287_v45, 1  ;;  %v16311_v37 = vcombine.low %v1762_v22, %v16284_v41 }
  0xd4   :  { %v5339_v63 = vsel %vm20443_vm12, %v5274_v57, %v4819_v0  ;;  %v1356_v18 = vsel %vm15167_vm8, %v858_v29, %v1355_v4  ;;  %v3293_v16 = vshrl.u32 %v16245_v34, 16  ;;  %v3300_v60 = vshll.u32 %v16263_v21, 16  ;;  %v1509_v57 = vld [vmem:[#allocation2 + $0xa8] sm:$0xf]  ;;  %v16327_v42 = vld [vmem:[#allocation2 + $0xac] sm:$0xf] }
  0xd5   :  { %4032 = vrot.lane.b32.xlu0 %v16077_v3, %s15042_s15  ;;  %14342 = vmatmul.mubr.msk.bf16.gmra.mxu0 %vm20442_vm1, %v5339_v63  ;;  %v16286_v62 = vpop.permute.xlu1 %2774  ;;  %v2278_v3 = vsel %vm2122_vm10, %v16213_v10, %v16184_v7  ;;  %v16303_v7 = vcombine.low %v1635_v35, %v16268_v17  ;;  %v2708_v10 = vrot.slane %v16242_v51, 1  ;;  %1357 = vst [vmem:[#allocation2 + $0xb4] sm:$0xf] %v1356_v18  ;;  %v870_v0 = vshrl.u32 %v16273_v38, 16 }
  0xd6   :  { %v13164_v13 = vcombine.low %v1717_v24, %v16225_v43  ;;  %v1359_v33 = vld [vmem:[#allocation2 + $0xbc] sm:$0x1]  ;;  %v4748_v51 = vsel %vm20452_vm9, %v16165_v46, %v4747_v12  ;;  %v16323_v29 = vld [vmem:[#allocation2 + $0xb0] ss:$0 sps:$4 sm:$0x11]   ;;  %v3297_v28 = vrot.slane %v3295_v30, 1  ;;  %v4751_v23 = vsel %vm20452_vm9, %v4749_v52, %v4750_v32 }
  0xd7   :  { %v16296_v11 = vpop.permute.xlu0 %2772  ;;  %4578 = vrot.lane.b32.xlu1 %v4315_v59, %s15048_s25  ;;  %v1360_v36 = vsel %vm15120_vm2, %v868_v54, %v1359_v33  ;;  %v3307_v63 = vshll.u32 %v16303_v7, 16  ;;  %v16332_v35 = vld [vmem:[#allocation2 + $0xb0] ss:$0 sps:$4 sm:$0x11]   ;;  %v1846_v24 = vld [vmem:[#allocation2 + $0xa8] sm:$0xe]  ;;  %v2709_v46 = vsel %vm20452_vm9, %v2707_v47, %v2708_v10  ;;  %v13165_v12 = vcombine.low %v1718_v40, %v16268_v17 }
  0xd8   :  { %1361 = vst [vmem:[#allocation2 + $0xbc] sm:$0x1] %v1360_v36  ;;  %v4319_v59 = vshll.u32 %v16311_v37, 16  ;;  %v3728_v2 = vrot.slane %v13164_v13, 1  ;;  %v16342_v22 = vcombine.low %v1509_v57, %v16327_v42  ;;  %v16346_v54 = vrot.slane %v870_v0, 7 }
  0xd9   :  { %4576 = vrot.lane.b32.xlu0 %v4303_v26, %s15048_s25  ;;  %v16317_v45 = vpop.permute.xlu1 %2998  ;;  %v2290_v26 = vsel %vm2122_vm10, %v2285_v56, %v2289_v50  ;;  %v16344_v30 = vld [vmem:[#allocation2 + $0xb0] ss:$0 sps:$4 sm:$0x11]   ;;  %v3298_v52 = vor.u32 %v3297_v28, %v3293_v16  ;;  %v3302_v4 = vrot.slane %v3300_v60, 1  ;;  %v3729_v17 = vrot.slane %v16263_v21, 1 }
  0xda   :  { %v873_v32 = vshll.u32 %v16273_v38, 16  ;;  %v3305_v18 = vshrl.u32 %v16303_v7, 16  ;;  %v3309_v50 = vrot.slane %v3307_v63, 1  ;;  %v3312_v10 = vshll.u32 %v16323_v29, 16  ;;  %v1362_v21 = vld [vmem:[#allocation2 + $0xc0] sm:$0xf] }
  0xdb   :  { %v16329_v43 = vpop.permute.xlu0 %2996  ;;  %2531 = vrot.lane.b32.xlu1 %v2278_v3, %s15046_s19  ;;  %v13260_v40 = vcombine.low %v1846_v24, %v16284_v41  ;;  %v3731_v56 = vrot.slane %v13165_v12, 1  ;;  %v4317_v13 = vshrl.u32 %v16311_v37, 16  ;;  %v4321_v16 = vrot.slane %v4319_v59, 1  ;;  %v16374_v63 = vld [vmem:[#allocation2 + $0xb8] sm:$0xf] }
  0xdc   :  { %v4324_v60 = vshll.u32 %v16332_v35, 16  ;;  %v3732_v38 = vrot.slane %v16323_v29, 1  ;;  %v2294_v33 = vshll.u32 %v16342_v22, 16  ;;  %v2299_v57 = vshll.u32 %v16344_v30, 16  ;;  %v1764_v36 = vld [vmem:[#allocation2 + $0xb4] sm:$0xf] }
  0xdd   :  { %4832 = vrot.lane.b32.xlu0 %v4748_v51, %s15045_s18  ;;  %v16348_v3 = vpop.permute.xlu1 %3542  ;;  %v875_v0 = vor.u32 %v873_v32, %v16346_v54  ;;  %v4886_v41 = vsel %vm4876_vm13, %v15442_v53, %v16236_v6  ;;  %v2706_v28 = vsel %vm20452_vm9, %v16203_v15, %v2705_v48  ;;  %v3310_v24 = vor.u32 %v3309_v50, %v3305_v18  ;;  %v579_v53 = vld [vmem:[%s20424_s0 + $0x7c] sm:$0xf]  ;;  %v16398_v18 = vld [vmem:[#allocation2 + $0xb8] sm:$0xf] }
  0xde   :  { %v16377_v12 = vsel %vm20452_vm9, %v3728_v2, %v3729_v17  ;;  %v4888_v9 = vsel %vm4876_vm13, %v15478_v27, %v16257_v49  ;;  %v3303_v15 = vsel %vm2122_vm10, %v3298_v52, %v3302_v4  ;;  %v4322_v48 = vor.u32 %v4321_v16, %v4317_v13  ;;  %v216_v2 = vld [vmem:[#allocation2 + $0xc8] sm:$0x1]  ;;  %v1637_v13 = vld [vmem:[#allocation2 + $0xb4] sm:$0xf]  ;;  %v16409_v16 = vld [vmem:[#allocation2 + $0xb8] sm:$0xf] }
  0xdf   :  { %v16352_v47 = vpop.permute.xlu0 %3540  ;;  %2533 = vrot.lane.b32.xlu1 %v2290_v26, %s15046_s19  ;;  %v1363_v6 = vsel %vm15167_vm8, %v875_v0, %v1362_v21  ;;  %v4326_v59 = vrot.slane %v4324_v60, 1  ;;  %v16389_v26 = vld [vmem:[#allocation2 + $0xa8] sm:$0xe]  ;;  %v4953_v17 = vsel %vm20450_vm14, %v4888_v9, %v16286_v62  ;;  %v16395_v32 = vcombine.low %v1764_v36, %v16374_v63  ;;  %v16416_v0 = vld [vmem:[#allocation2 + $0xbc] ss:$0 sps:$4 sm:$0x11]  }
  0xe0   :  { %1364 = vst [vmem:[#allocation2 + $0xc0] sm:$0xf] %v1363_v6  ;;  %v2292_v27 = vshrl.u32 %v16342_v22, 16  ;;  %v4752_v49 = vrot.slane %v13260_v40, 1  ;;  %v4951_v52 = vsel %vm20450_vm14, %v4886_v41, %v16296_v11  ;;  %v16405_v50 = vsel %vm20452_vm9, %v3731_v56, %v3732_v38  ;;  %v219_v41 = vld [vmem:[#allocation2 + $0xd4] sm:$0x1] }
  0xe1   :  { %4834 = vrot.lane.b32.xlu0 %v4751_v23, %s15045_s18  ;;  %v16368_v51 = vpop.permute.xlu1 %3798  ;;  %v3314_v23 = vrot.slane %v3312_v10, 1  ;;  %v2296_v62 = vrot.slane %v2294_v33, 1  ;;  %v16407_v10 = vrot.slane %v2299_v57, 1  ;;  %v5018_v40 = vsel %vm20449_vm15, %v4953_v17, %v16317_v45  ;;  %v109_v57 = vld [vmem:[#allocation2 + $0xcc] sm:$0x1] }
  0xe2   :  { %v5016_v60 = vsel %vm20449_vm15, %v4951_v52, %v16329_v43  ;;  %v4753_v56 = vrot.slane %v16332_v35, 1  ;;  %v16422_v38 = vsel %vm2122_vm10, %v4322_v48, %v4326_v59  ;;  %v13070_v45 = vcombine.low %v16389_v26, %v16327_v42  ;;  %v115_v52 = vld [vmem:[#allocation2 + $0xe4] sm:$0x1] }
  0xe3   :  { %v3797_v29 = vpop.permute.xlu0 %3796  ;;  %2790 = vrot.lane.b32.xlu1 %v2709_v46, %s15044_s17  ;;  %v1511_v46 = vld [vmem:[#allocation2 + $0xb4] sm:$0xf]  ;;  %v3315_v11 = vsel %vm2122_vm10, %v3310_v24, %v3314_v23  ;;  %v878_v43 = vshrl.u32 %v579_v53, 16  ;;  %v4331_v35 = vshll.u32 %v16395_v32, 16  ;;  %v217_v36 = vsel %vm15155_vm7, 0, %v216_v2 }
  0xe4   :  { %v16425_v33 = vcombine.low %v1511_v46, %v16398_v18  ;;  %v112_v24 = vld [vmem:[#allocation2 + $0xd8] sm:$0x1]  ;;  %v5083_v23 = vsel %vm20448_vm0, %v5018_v40, %v16348_v3  ;;  %v16439_v9 = vor.u32 %v2296_v62, %v2292_v27  ;;  %v876_v48 = vrot.slane %v16346_v54, 4  ;;  %218 = vst [vmem:[#allocation2 + $0xc8] sm:$0x1] %v217_v36 }
  0xe5   :  { %2788 = vrot.lane.b32.xlu0 %v2706_v28, %s15044_s17  ;;  %v16402_v4 = vpop.permute.xlu1 %4022  ;;  %v2711_v28 = vrot.slane %v16344_v30, 1  ;;  %v880_v59 = vrot.slane %v878_v43, 7  ;;  %v5081_v17 = vsel %vm20448_vm0, %v5016_v60, %v16352_v47  ;;  %v4329_v46 = vshrl.u32 %v16395_v32, 16  ;;  %v225_v27 = vld [vmem:[#allocation2 + $0xec] sm:$0x1] }
  0xe6   :  { %v16446_v2 = vsel %vm20452_vm9, %v4752_v49, %v4753_v56  ;;  %v16449_v3 = vcombine.low %v1637_v13, %v16409_v16  ;;  %v5146_v62 = vsel %vm20451_vm4, %v5081_v17, %v3797_v29  ;;  %v4336_v54 = vshll.u32 %v16416_v0, 16  ;;  %v16458_v60 = vld [vmem:[%s20424_s0 + $0x80] sm:$0xf]  ;;  %v581_v49 = vld [vmem:[%s20424_s0 + $0x84] sm:$0xf] }
  0xe7   :  { %v4021_v21 = vpop.permute.xlu0 %4020  ;;  %3014 = vrot.lane.b32.xlu1 %v16303_v7, %s15041_s14  ;;  %v881_v7 = vshll.u32 %v579_v53, 16  ;;  %v2306_v40 = vshll.u32 %v16425_v33, 16  ;;  %v4333_v13 = vrot.slane %v4331_v35, 1  ;;  %v885_v29 = vrot.slane %v880_v59, 4  ;;  %v118_v43 = vld [vmem:[#allocation2 + $0xf0] sm:$0x1] }
  0xe8   :  { %v220_v56 = vsel %vm15155_vm7, 0, %v219_v41  ;;  %v16471_v17 = vld [vmem:[#allocation2 + $0xb4] sm:$0xe]  ;;  %v583_v30 = vld [vmem:[%s20424_s0 + $0x8c] sm:$0xf] }
  0xe9   :  { %3012 = vrot.lane.b32.xlu0 %v16245_v34, %s15041_s14  ;;  %v16437_v6 = vpop.permute.xlu1 %4566  ;;  %v222_v34 = vld [vmem:[#allocation2 + $0xe0] sm:$0x1]  ;;  %v883_v47 = vor.u32 %v881_v7, %v880_v59  ;;  %v5211_v7 = vsel %vm20447_vm11, %v5146_v62, %v4021_v21  ;;  %221 = vst [vmem:[#allocation2 + $0xd4] sm:$0x1] %v220_v56  ;;  %v16482_v21 = vld [vmem:[#allocation2 + $0xb4] sm:$0xe] }
  0xea   :  { %v16480_v59 = vld [vmem:[#allocation2 + $0xbc] ss:$0 sps:$4 sm:$0x11]   ;;  %v887_v62 = vshrl.u32 %v16458_v60, 16 }
  0xeb   :  { %v4565_v53 = vpop.permute.xlu0 %4564  ;;  %3558 = vrot.lane.b32.xlu1 %v3315_v11, %s15047_s20  ;;  %v110_v11 = vsel %vm15120_vm2, 0, %v109_v57  ;;  %v884_v55 = vsel %vm15144_vm6, %v876_v48, %v883_v47  ;;  %v223_v57 = vsel %vm15155_vm7, 0, %v222_v34  ;;  %v116_v48 = vsel %vm15120_vm2, 0, %v115_v52 }
  0xec   :  { %111 = vst [vmem:[#allocation2 + $0xcc] sm:$0x1] %v110_v11  ;;  %v5276_v41 = vsel %vm20445_vm3, %v5211_v7, %v4565_v53  ;;  %1365 = vst.msk [vmem:[#allocation2 + $0xc4] sm:$0xf] %vm20444_vm5, %v884_v55  ;;  %v5148_v34 = vsel %vm20451_vm4, %v5083_v23, %v16368_v51  ;;  %v4338_v47 = vrot.slane %v4336_v54, 1  ;;  %v895_v55 = vshrl.u32 %v581_v49, 16 }
  0xed   :  { %3556 = vrot.lane.b32.xlu0 %v3303_v15, %s15047_s20  ;;  %v16469_v36 = vpop.permute.xlu1 %2519  ;;  %v113_v15 = vsel %vm15120_vm2, 0, %v112_v24  ;;  %224 = vst [vmem:[#allocation2 + $0xe0] sm:$0x1] %v223_v57  ;;  %v226_v24 = vsel %vm15155_vm7, 0, %v225_v27  ;;  %117 = vst [vmem:[#allocation2 + $0xe4] sm:$0x1] %v116_v48  ;;  %v5213_v52 = vsel %vm20447_vm11, %v5148_v34, %v16402_v4  ;;  %v4334_v27 = vor.u32 %v4333_v13, %v4329_v46 }
  0xee   :  { %114 = vst [vmem:[#allocation2 + $0xd8] sm:$0x1] %v113_v15  ;;  %227 = vst [vmem:[#allocation2 + $0xec] sm:$0x1] %v226_v24  ;;  %v1366_v11 = vld [vmem:[#allocation2 + $0xc8] sm:$0x1]  ;;  %v13261_v57 = vcombine.low %v16471_v17, %v16374_v63 }
  0xef   :  { %v4821_v35 = vpop.permute.xlu0 %4820  ;;  %3814 = vrot.lane.b32.xlu1 %v16405_v50, %s15043_s16  ;;  %v16500_v51 = vld [vmem:[#allocation2 + $0xbc] ss:$0 sps:$4 sm:$0x11]   ;;  %v1719_v23 = vld [vmem:[#allocation2 + $0xb4] sm:$0xe]  ;;  %v889_v56 = vrot.slane %v887_v62, 7  ;;  %v1367_v4 = vsel %vm15120_vm2, %v885_v29, %v1366_v11  ;;  %v4339_v63 = vsel %vm2122_vm10, %v4334_v27, %v4338_v47 }
  0xf0   :  { %v5341_v53 = vsel %vm20443_vm12, %v5276_v41, %v4821_v35  ;;  %v898_v7 = vshll.u32 %v581_v49, 16  ;;  %v16505_v50 = vld [vmem:[%s20424_s0 + $0x88] sm:$0xf]  ;;  %v16512_v15 = vrot.slane %v895_v55, 7  ;;  %v119_v46 = vsel %vm15120_vm2, 0, %v118_v43 }
  0xf1   :  { %3812 = vrot.lane.b32.xlu0 %v16377_v12, %s15043_s16  ;;  %14345 = vmatprep.mubr.msk.bf16.mxu0 %vm20442_vm1, %v5341_v53  ;;  %v16507_v54 = vpop.permute.xlu1 %2521  ;;  %v890_v12 = vshll.u32 %v16458_v60, 16  ;;  %v5278_v49 = vsel %vm20445_vm3, %v5213_v52, %v16437_v6  ;;  %1368 = vst [vmem:[#allocation2 + $0xc8] sm:$0x1] %v1367_v4  ;;  %v3319_v41 = vshll.u32 %v16449_v3, 16  ;;  %v893_v35 = vrot.slane %v889_v56, 4 }
  0xf2   :  { %120 = vst [vmem:[#allocation2 + $0xf0] sm:$0x1] %v119_v46  ;;  %v13071_v60 = vcombine.low %v16482_v21, %v16398_v18  ;;  %v13166_v43 = vcombine.low %v1719_v23, %v16409_v16  ;;  %v900_v6 = vor.u32 %v898_v7, %v16512_v15  ;;  %v2304_v17 = vshrl.u32 %v16425_v33, 16  ;;  %v1639_v16 = vld [vmem:[#allocation2 + $0xc0] sm:$0xf] }
  0xf3   :  { %v4823_v13 = vpop.permute.xlu0 %4822  ;;  %4038 = vrot.lane.b32.xlu1 %v16395_v32, %s15042_s15  ;;  %v2308_v48 = vrot.slane %v2306_v40, 1  ;;  %v2311_v32 = vshll.u32 %v16480_v59, 16  ;;  %v2302_v18 = vsel %vm2122_vm10, %v16439_v9, %v16407_v10  ;;  %v16541_v21 = vld [vmem:[#allocation2 + $0xc4] sm:$0xf]  ;;  %v892_v62 = vor.u32 %v890_v12, %v889_v56  ;;  %v1849_v52 = vld [vmem:[#allocation2 + $0xcc] sm:$0xe] }
  0xf4   :  { %v5343_v29 = vsel %vm20443_vm12, %v5278_v49, %v4823_v13  ;;  %v901_v34 = vsel %vm15144_vm6, %v893_v35, %v900_v6  ;;  %v904_v53 = vshrl.u32 %v16505_v50, 16  ;;  %v2710_v47 = vrot.slane %v13070_v45, 1  ;;  %v1768_v7 = vld [vmem:[#allocation2 + $0xcc] sm:$0xf]  ;;  %v1514_v12 = vld [vmem:[#allocation2 + $0xdc] sm:$0xf] }
  0xf5   :  { %4036 = vrot.lane.b32.xlu0 %v16311_v37, %s15042_s15  ;;  %14346 = vmatmul.mubr.msk.bf16.gmra.mxu0 %vm20442_vm1, %v5343_v29  ;;  %v16536_v24 = vpop.permute.xlu1 %2778  ;;  %v16543_v37 = vld [vmem:[#allocation2 + $0xd0] sm:$0xf]  ;;  %v3317_v55 = vshrl.u32 %v16449_v3, 16  ;;  %v3321_v10 = vrot.slane %v3319_v41, 1  ;;  %v3324_v9 = vshll.u32 %v16500_v51, 16  ;;  %v4755_v27 = vrot.slane %v13261_v57, 1 }
  0xf6   :  { %1372 = vst.msk [vmem:[#allocation2 + $0xe8] sm:$0xf] %vm20444_vm5, %v901_v34  ;;  %v4756_v11 = vrot.slane %v16416_v0, 1  ;;  %v2713_v23 = vrot.slane %v13071_v60, 1  ;;  %v2714_v56 = vrot.slane %v16480_v59, 1  ;;  %v2309_v42 = vor.u32 %v2308_v48, %v2304_v17 }
  0xf7   :  { %v16548_v40 = vpop.permute.xlu0 %2776  ;;  %4582 = vrot.lane.b32.xlu1 %v4339_v63, %s15048_s25  ;;  %v2313_v26 = vrot.slane %v2311_v32, 1  ;;  %v16562_v45 = vcombine.low %v1639_v16, %v16541_v21  ;;  %v3734_v4 = vrot.slane %v13166_v43, 1  ;;  %v1369_v46 = vld [vmem:[#allocation2 + $0xe4] sm:$0xf]  ;;  %v1593_v49 = vld [vmem:[#allocation2 + $0xd8] sm:$0xe]  ;;  %v3322_v35 = vor.u32 %v3321_v10, %v3317_v55 }
  0xf8   :  { %v3735_v0 = vrot.slane %v16500_v51, 1  ;;  %v1370_v59 = vsel %vm15167_vm8, %v892_v62, %v1369_v46  ;;  %v16569_v57 = vrot.slane %v904_v53, 7  ;;  %v3326_v29 = vrot.slane %v3324_v9, 1  ;;  %v1720_v60 = vld [vmem:[#allocation2 + $0xc0] sm:$0xe] }
  0xf9   :  { %4580 = vrot.lane.b32.xlu0 %v16422_v38, %s15048_s25  ;;  %v16564_v13 = vpop.permute.xlu1 %3002  ;;  %v907_v38 = vshll.u32 %v16505_v50, 16  ;;  %v16575_v43 = vcombine.low %v1768_v7, %v16543_v37  ;;  %1371 = vst [vmem:[#allocation2 + $0xe4] sm:$0xf] %v1370_v59  ;;  %v1766_v6 = vld [vmem:[#allocation2 + $0xc0] sm:$0xf]  ;;  %v13263_v63 = vcombine.low %v1849_v52, %v16543_v37  ;;  %v13072_v17 = vcombine.low %v1593_v49, %v1514_v12 }
  0xfa   :  { %v16578_v51 = vld [vmem:[#allocation2 + $0xd4] ss:$0 sps:$4 sm:$0x11]   ;;  %v2314_v50 = vsel %vm2122_vm10, %v2309_v42, %v2313_v26  ;;  %v4757_v48 = vsel %vm20452_vm9, %v4755_v27, %v4756_v11  ;;  %v2712_v32 = vsel %vm20452_vm9, %v2710_v47, %v2711_v28  ;;  %v16588_v16 = vld [vmem:[#allocation2 + $0xc8] ss:$0 sps:$4 sm:$0x11]   ;;  %v2715_v37 = vsel %vm20452_vm9, %v2713_v23, %v2714_v56 }
  0xfb   :  { %v16572_v41 = vpop.permute.xlu0 %3000  ;;  %2535 = vrot.lane.b32.xlu1 %v2302_v18, %s15046_s19  ;;  %v3331_v18 = vshll.u32 %v16562_v45, 16  ;;  %v16591_v62 = vld [vmem:[#allocation2 + $0xc4] sm:$0xf]  ;;  %v1513_v53 = vld [vmem:[#allocation2 + $0xd8] sm:$0xf]  ;;  %v902_v55 = vrot.slane %v16512_v15, 4  ;;  %v909_v28 = vor.u32 %v907_v38, %v16569_v57  ;;  %v4890_v47 = vsel %vm4876_vm13, %v15621_v14, %v16469_v36 }
  0xfc   :  { %v16610_v9 = vsel %vm2122_vm10, %v3322_v35, %v3326_v29  ;;  %v13167_v52 = vcombine.low %v1720_v60, %v16541_v21  ;;  %v4355_v27 = vshll.u32 %v16575_v43, 16  ;;  %v1373_v15 = vld [vmem:[#allocation2 + $0xec] sm:$0x1]  ;;  %v1376_v11 = vld [vmem:[#allocation2 + $0xf0] sm:$0xf]  ;;  %v16616_v23 = vcombine.low %v1766_v6, %v16591_v62 }
  0xfd   :  { %4836 = vrot.lane.b32.xlu0 %v16446_v2, %s15045_s18  ;;  %v16593_v34 = vpop.permute.xlu1 %3546  ;;  %v16597_v2 = vsel %vm20452_vm9, %v3734_v4, %v3735_v0  ;;  %v4360_v56 = vshll.u32 %v16578_v51, 16  ;;  %v16619_v7 = vrot.slane %v13263_v63, 1  ;;  %v16621_v14 = vrot.slane %v13072_v17, 1  ;;  %v228_v4 = vld [vmem:[#allocation2 + $0xf8] sm:$0x1] }
  0xfe   :  { %v3329_v36 = vshrl.u32 %v16562_v45, 16  ;;  %v3333_v21 = vrot.slane %v3331_v18, 1  ;;  %v3336_v42 = vshll.u32 %v16588_v16, 16  ;;  %v912_v26 = vshrl.u32 %v583_v30, 16  ;;  %v16632_v59 = vld [vmem:[#allocation2 + $0xc0] sm:$0xe] }
  0xff   :  { %v16607_v10 = vpop.permute.xlu0 %3544  ;;  %2537 = vrot.lane.b32.xlu1 %v2314_v50, %s15046_s19  ;;  %v16628_v49 = vld [vmem:[#allocation2 + $0xc8] ss:$0 sps:$4 sm:$0x11]   ;;  %v16630_v0 = vcombine.low %v1513_v53, %v1514_v12  ;;  %v1374_v38 = vsel %vm15120_vm2, %v902_v55, %v1373_v15  ;;  %v915_v35 = vshll.u32 %v583_v30, 16  ;;  %v1377_v29 = vsel %vm15167_vm8, %v909_v28, %v1376_v11 }
 0x100   :  { %v4892_v60 = vsel %vm4876_vm13, %v15640_v8, %v16507_v54  ;;  %v3737_v63 = vrot.slane %v13167_v52, 1  ;;  %v4353_v17 = vshrl.u32 %v16575_v43, 16  ;;  %v4357_v12 = vrot.slane %v4355_v27, 1  ;;  %v16644_v50 = vld [vmem:[#allocation2 + $0xe0] ss:$0 sps:$4 sm:$0x11]  }
 0x101   :  { %4838 = vrot.lane.b32.xlu0 %v4757_v48, %s15045_s18  ;;  %v16626_v46 = vpop.permute.xlu1 %3802  ;;  %1375 = vst [vmem:[#allocation2 + $0xec] sm:$0x1] %v1374_v38  ;;  %1378 = vst [vmem:[#allocation2 + $0xf0] sm:$0xf] %v1377_v29  ;;  %v3738_v48 = vrot.slane %v16588_v16, 1  ;;  %v16648_v18 = vrot.slane %v4360_v56, 1  ;;  %v3334_v54 = vor.u32 %v3333_v21, %v3329_v36  ;;  %v4955_v56 = vsel %vm20450_vm14, %v4890_v47, %v16548_v40 }
 0x102   :  { %v4341_v53 = vshrl.u32 %v16616_v23, 16  ;;  %v4343_v8 = vshll.u32 %v16616_v23, 16  ;;  %v3338_v55 = vrot.slane %v3336_v42, 1  ;;  %v910_v30 = vrot.slane %v16569_v57, 4  ;;  %v121_v52 = vld [vmem:[#allocation2 + $0xfc] sm:$0x1] }
 0x103   :  { %v16641_v6 = vpop.permute.xlu0 %3800  ;;  %2794 = vrot.lane.b32.xlu1 %v2715_v37, %s15044_s17  ;;  %v16654_v28 = vrot.slane %v912_v26, 7  ;;  %v4348_v37 = vshll.u32 %v16628_v49, 16  ;;  %v2316_v16 = vshrl.u32 %v16630_v0, 16  ;;  %v2318_v15 = vshll.u32 %v16630_v0, 16  ;;  %v1516_v42 = vld [vmem:[#allocation2 + $0xe8] sm:$0xf] }
 0x104   :  { %v229_v11 = vsel %vm15155_vm7, 0, %v228_v4  ;;  %v4957_v57 = vsel %vm20450_vm14, %v4892_v60, %v16536_v24  ;;  %v13262_v21 = vcombine.low %v16632_v59, %v16591_v62  ;;  %v5020_v38 = vsel %vm20449_vm15, %v4955_v56, %v16572_v41  ;;  %v16685_v62 = vld [vmem:[%s20424_s0 + $0x94] sm:$0xf]  ;;  %v1515_v47 = vld [vmem:[#allocation2 + $0xe4] sm:$0xf] }
 0x105   :  { %2792 = vrot.lane.b32.xlu0 %v2712_v32, %s15044_s17  ;;  %v16656_v27 = vpop.permute.xlu1 %4026  ;;  %v584_v32 = vld [vmem:[%s20424_s0 + $0x90] sm:$0xf]  ;;  %v917_v26 = vor.u32 %v915_v35, %v16654_v28  ;;  %230 = vst [vmem:[#allocation2 + $0xf8] sm:$0x1] %v229_v11  ;;  %v5022_v4 = vsel %vm20449_vm15, %v4957_v57, %v16564_v13  ;;  %v16679_v24 = vrot.slane %v4343_v8, 1  ;;  %v2323_v40 = vshll.u32 %v16644_v50, 16 }
 0x106   :  { %v3339_v13 = vsel %vm2122_vm10, %v3334_v54, %v3338_v55  ;;  %v16692_v59 = vld [vmem:[#allocation2 + $0xe8] sm:$0xf]  ;;  %v921_v35 = vshrl.u32 %v584_v32, 16  ;;  %v3739_v60 = vsel %vm20452_vm9, %v3737_v63, %v3738_v48  ;;  %v16697_v8 = vor.u32 %v4357_v12, %v4353_v17  ;;  %v1594_v54 = vld [vmem:[#allocation2 + $0xe4] sm:$0xe] }
 0x107   :  { %v4025_v36 = vpop.permute.xlu0 %4024  ;;  %3018 = vrot.lane.b32.xlu1 %v16562_v45, %s15041_s14  ;;  %v918_v41 = vsel %vm15144_vm6, %v910_v30, %v917_v26  ;;  %v122_v45 = vsel %vm15120_vm2, 0, %v121_v52  ;;  %v16699_v11 = vrot.slane %v4348_v37, 1  ;;  %v5087_v55 = vsel %vm20448_vm0, %v5022_v4, %v16593_v34  ;;  %v1641_v63 = vld [vmem:[#allocation2 + $0xe4] sm:$0xf] }
 0x108   :  { %1379 = vst.msk [vmem:[#allocation2 + $0xf4] sm:$0xf] %vm20444_vm5, %v918_v41  ;;  %123 = vst [vmem:[#allocation2 + $0xfc] sm:$0x1] %v122_v45  ;;  %v5085_v30 = vsel %vm20448_vm0, %v5020_v38, %v16607_v10  ;;  %v919_v57 = vrot.slane %v16654_v28, 4  ;;  %v924_v17 = vshll.u32 %v584_v32, 16  ;;  %v13073_v10 = vcombine.low %v1594_v54, %v1516_v42 }
 0x109   :  { %3016 = vrot.lane.b32.xlu0 %v16449_v3, %s15041_s14  ;;  %v4571_v29 = vpop.permute.xlu1 %4570  ;;  %v16701_v3 = vrot.slane %v2318_v15, 1  ;;  %v16710_v12 = vrot.slane %v2323_v40, 1  ;;  %v16712_v48 = vrot.slane %v13262_v21, 1  ;;  %v4759_v37 = vrot.slane %v16628_v49, 1 }
 0x10a   :  { %v16715_v15 = vcombine.low %v1515_v47, %v1516_v42  ;;  %v5150_v34 = vsel %vm20451_vm4, %v5085_v30, %v16641_v6  ;;  %v923_v28 = vrot.slane %v921_v35, 7  ;;  %v929_v32 = vshrl.u32 %v16685_v62, 16  ;;  %v231_v6 = vld [vmem:[#allocation2 + $0x104] sm:$0x1] }
 0x10b   :  { %v4569_v52 = vpop.permute.xlu0 %4568  ;;  %3562 = vrot.lane.b32.xlu1 %v3339_v13, %s15047_s20  ;;  %v5215_v56 = vsel %vm20447_vm11, %v5150_v34, %v4025_v36  ;;  %v4762_v21 = vrot.slane %v16578_v51, 1  ;;  %v2717_v4 = vrot.slane %v16644_v50, 1  ;;  %v16728_v38 = vcombine.low %v1641_v63, %v16692_v59  ;;  %v16738_v35 = vld [vmem:[#allocation2 + $0xec] ss:$0 sps:$4 sm:$0x11]  }
 0x10c   :  { %20470 = vst [vmem:[#allocation9_spill] sm:$0xff] %v16715_v15  ;;  %v1380_v40 = vld [vmem:[#allocation2 + $0xf8] sm:$0x1]  ;;  %v5280_v13 = vsel %vm20445_vm3, %v5215_v56, %v4569_v52  ;;  %v926_v47 = vor.u32 %v924_v17, %v923_v28  ;;  %v932_v36 = vshll.u32 %v16685_v62, 16  ;;  %v5152_v41 = vsel %vm20451_vm4, %v5087_v55, %v16626_v46  ;;  %v1721_v46 = vld [vmem:[#allocation2 + $0xe4] sm:$0xe] }
 0x10d   :  { %3560 = vrot.lane.b32.xlu0 %v16610_v9, %s15047_s20  ;;  %v16723_v26 = vpop.permute.xlu1 %2523  ;;  %v1381_v42 = vsel %vm15120_vm2, %v919_v57, %v1380_v40  ;;  %v2328_v54 = vshrl.u32 %v16715_v15, 16  ;;  %v2330_v30 = vshll.u32 %v16715_v15, 16  ;;  %v16745_v62 = vrot.slane %v13073_v10, 1  ;;  %v16747_v52 = vld [vmem:[#allocation2 + $0xec] ss:$0 sps:$4 sm:$0x11]  }
 0x10e   :  { %1382 = vst [vmem:[#allocation2 + $0xf8] sm:$0x1] %v1381_v42  ;;  %v927_v55 = vrot.slane %v923_v28, 4  ;;  %v931_v57 = vrot.slane %v929_v32, 7  ;;  %v232_v63 = vsel %vm15155_vm7, 0, %v231_v6  ;;  %v5217_v34 = vsel %vm20447_vm11, %v5152_v41, %v16656_v27 }
 0x10f   :  { %v4825_v9 = vpop.permute.xlu0 %4824  ;;  %3818 = vrot.lane.b32.xlu1 %v3739_v60, %s15043_s16  ;;  %v1383_v60 = vld [vmem:[#allocation2 + $0xfc] sm:$0xf]  ;;  %v124_v17 = vld [vmem:[#allocation2 + $0x108] sm:$0x1]  ;;  %v1643_v10 = vld [vmem:[#allocation2 + $0xf0] sm:$0xf]  ;;  %v5282_v32 = vsel %vm20445_vm3, %v5217_v34, %v4571_v29 }
 0x110   :  { %v5345_v45 = vsel %vm20443_vm12, %v5280_v13, %v4825_v9  ;;  %v16758_v40 = vld [vmem:[#allocation2 + $0xf4] sm:$0xf]  ;;  %v1384_v28 = vsel %vm15167_vm8, %v926_v47, %v1383_v60  ;;  %233 = vst [vmem:[#allocation2 + $0x104] sm:$0x1] %v232_v63  ;;  %v3341_v13 = vshrl.u32 %v16728_v38, 16  ;;  %v3343_v27 = vshll.u32 %v16728_v38, 16 }
 0x111   :  { %3816 = vrot.lane.b32.xlu0 %v16597_v2, %s15043_s16  ;;  %14349 = vmatprep.mubr.msk.bf16.mxu0 %vm20442_vm1, %v5345_v45  ;;  %v16753_v56 = vpop.permute.xlu1 %2525  ;;  %v4346_v2 = vor.u32 %v16679_v24, %v4341_v53  ;;  %v934_v9 = vor.u32 %v932_v36, %v931_v57  ;;  %1385 = vst [vmem:[#allocation2 + $0xfc] sm:$0xf] %v1384_v28  ;;  %v2332_v24 = vrot.slane %v2330_v30, 1  ;;  %v2335_v47 = vshll.u32 %v16738_v35, 16  ;;  %v1770_v29 = vld [vmem:[#allocation2 + $0xf0] sm:$0xf] }
 0x112   :  { %v2321_v53 = vor.u32 %v16701_v3, %v2316_v16  ;;  %v4363_v36 = vsel %vm2122_vm10, %v16697_v8, %v16648_v18  ;;  %v16779_v41 = vcombine.low %v1643_v10, %v16758_v40  ;;  %v16783_v16 = vld [vmem:[#allocation2 + $0xf4] sm:$0xf]  ;;  %v936_v30 = vrot.slane %v931_v57, 4  ;;  %v1722_v63 = vld [vmem:[#allocation2 + $0xf0] sm:$0xe] }
 0x113   :  { %v4827_v6 = vpop.permute.xlu0 %4826  ;;  %4042 = vrot.lane.b32.xlu1 %v16575_v43, %s15042_s15  ;;  %v935_v43 = vsel %vm15144_vm6, %v927_v55, %v934_v9  ;;  %v4351_v45 = vsel %vm2122_vm10, %v4346_v2, %v16699_v11  ;;  %v125_v18 = vsel %vm15120_vm2, 0, %v124_v17  ;;  %v3345_v60 = vrot.slane %v3343_v27, 1  ;;  %v16802_v57 = vld [vmem:[#allocation2 + $0xf4] sm:$0xf]  ;;  %v130_v15 = vld [vmem:[#allocation2 + $0x120] sm:$0x1] }
 0x114   :  { %v5347_v42 = vsel %vm20443_vm12, %v5282_v32, %v4827_v6  ;;  %1386 = vst.msk [vmem:[#allocation2 + $0x100] sm:$0xf] %vm20444_vm5, %v935_v43  ;;  %v3348_v55 = vshll.u32 %v16747_v52, 16  ;;  %126 = vst [vmem:[#allocation2 + $0x108] sm:$0x1] %v125_v18  ;;  %v2326_v11 = vsel %vm2122_vm10, %v2321_v53, %v16710_v12  ;;  %v4760_v17 = vsel %vm20452_vm9, %v16712_v48, %v4759_v37 }
 0x115   :  { %4040 = vrot.lane.b32.xlu0 %v16616_v23, %s15042_s15  ;;  %14350 = vmatmul.mubr.msk.bf16.gmra.mxu0 %vm20442_vm1, %v5347_v42  ;;  %v16785_v3 = vpop.permute.xlu1 %2782  ;;  %v13168_v23 = vcombine.low %v1721_v46, %v16692_v59  ;;  %v16800_v59 = vcombine.low %v1770_v29, %v16783_v16  ;;  %v1517_v46 = vld [vmem:[#allocation2 + $0xf0] sm:$0xf]  ;;  %v2333_v34 = vor.u32 %v2332_v24, %v2328_v54  ;;  %v2337_v2 = vrot.slane %v2335_v47, 1  ;;  %v16813_v6 = vld [vmem:[#allocation2 + $0xf8] ss:$0 sps:$4 sm:$0x11]  }
 0x116   :  { %v3355_v10 = vshll.u32 %v16779_v41, 16  ;;  %v2720_v12 = vrot.slane %v16738_v35, 1  ;;  %v3741_v9 = vrot.slane %v16747_v52, 1  ;;  %v3346_v48 = vor.u32 %v3345_v60, %v3341_v13  ;;  %v16820_v54 = vld [vmem:[#allocation2 + $0xf8] ss:$0 sps:$4 sm:$0x11]  }
 0x117   :  { %v16793_v8 = vpop.permute.xlu0 %2780  ;;  %4586 = vrot.lane.b32.xlu1 %v4363_v36, %s15048_s25  ;;  %v1387_v28 = vld [vmem:[#allocation2 + $0x104] sm:$0x1]  ;;  %v3740_v27 = vrot.slane %v13168_v23, 1  ;;  %v3350_v37 = vrot.slane %v3348_v55, 1  ;;  %v16823_v53 = vcombine.low %v1517_v46, %v16802_v57  ;;  %v3353_v35 = vshrl.u32 %v16779_v41, 16 }
 0x118   :  { %v1388_v49 = vsel %vm15120_vm2, %v936_v30, %v1387_v28  ;;  %v13169_v24 = vcombine.low %v1722_v63, %v16758_v40  ;;  %v1772_v52 = vld [vmem:[#allocation2 + $0xfc] sm:$0xf]  ;;  %v4367_v47 = vshll.u32 %v16800_v59, 16  ;;  %v1850_v29 = vld [vmem:[#allocation2 + $0xf0] sm:$0xe]  ;;  %v2338_v13 = vsel %vm2122_vm10, %v2333_v34, %v2337_v2 }
 0x119   :  { %4584 = vrot.lane.b32.xlu0 %v4351_v45, %s15048_s25  ;;  %v16810_v32 = vpop.permute.xlu1 %3006  ;;  %1389 = vst [vmem:[#allocation2 + $0x104] sm:$0x1] %v1388_v49  ;;  %20471 = vst [vmem:[#allocation10_spill] sm:$0xff] %v16823_v53  ;;  %v4763_v36 = vsel %vm20452_vm9, %v16619_v7, %v4762_v21  ;;  %v2718_v43 = vsel %vm20452_vm9, %v16621_v14, %v2717_v4  ;;  %v3357_v45 = vrot.slane %v3355_v10, 1  ;;  %v3360_v7 = vshll.u32 %v16813_v6, 16 }
 0x11a   :  { %v16841_v23 = vld [vmem:[#allocation2 + $0xf8] ss:$0 sps:$4 sm:$0x11]   ;;  %v4894_v30 = vsel %vm4876_vm13, %v15734_v19, %v16723_v26  ;;  %v2721_v51 = vsel %vm20452_vm9, %v16745_v62, %v2720_v12  ;;  %v16850_v50 = vsel %vm20452_vm9, %v3740_v27, %v3741_v9  ;;  %v16852_v21 = vld [vmem:[#allocation2 + $0xf0] sm:$0xe]  ;;  %v16855_v4 = vsel %vm2122_vm10, %v3346_v48, %v3350_v37 }
 0x11b   :  { %v16818_v42 = vpop.permute.xlu0 %3004  ;;  %2539 = vrot.lane.b32.xlu1 %v2326_v11, %s15046_s19  ;;  %v16839_v40 = vld [vmem:[#allocation2 + $0x100] sm:$0xf]  ;;  %v4372_v60 = vshll.u32 %v16820_v54, 16  ;;  %v2342_v55 = vshll.u32 %v16823_v53, 16  ;;  %v13264_v19 = vcombine.low %v1850_v29, %v16783_v16  ;;  %v1519_v26 = vld [vmem:[#allocation2 + $0xfc] sm:$0xf]  ;;  %v4896_v62 = vsel %vm4876_vm13, %v15777_v5, %v16753_v56 }
 0x11c   :  { %v16860_v63 = vld [vmem:[#allocation2 + $0x100] sm:$0xf]  ;;  %v3743_v11 = vrot.slane %v13169_v24, 1  ;;  %v16867_v46 = vcombine.low %v1772_v52, %v16839_v40  ;;  %v1851_v34 = vld [vmem:[#allocation2 + $0xfc] sm:$0xe]  ;;  %v3358_v2 = vor.u32 %v3357_v45, %v3353_v35  ;;  %v4369_v16 = vrot.slane %v4367_v47, 1 }
 0x11d   :  { %4840 = vrot.lane.b32.xlu0 %v4760_v17, %s15045_s18  ;;  %v3551_v18 = vpop.permute.xlu1 %3550  ;;  %v4365_v17 = vshrl.u32 %v16800_v59, 16  ;;  %v2347_v10 = vshll.u32 %v16841_v23, 16  ;;  %v3362_v5 = vrot.slane %v3360_v7, 1  ;;  %v3744_v56 = vrot.slane %v16813_v6, 1  ;;  %v586_v49 = vld [vmem:[%s20424_s0 + $0x98] sm:$0xf] }
 0x11e   :  { %v2340_v27 = vshrl.u32 %v16823_v53, 16  ;;  %v16877_v9 = vcombine.low %v1519_v26, %v16860_v63  ;;  %v16882_v37 = vrot.slane %v4372_v60, 1  ;;  %v2344_v35 = vrot.slane %v2342_v55, 1  ;;  %v587_v45 = vld [vmem:[%s20424_s0 + $0x9c] sm:$0xf] }
 0x11f   :  { %v3549_v14 = vpop.permute.xlu0 %3548  ;;  %2541 = vrot.lane.b32.xlu1 %v2338_v13, %s15046_s19  ;;  %v16884_v24 = vrot.slane %v13264_v19, 1  ;;  %v13265_v52 = vcombine.low %v1851_v34, %v16839_v40  ;;  %v4961_v6 = vsel %vm20450_vm14, %v4896_v62, %v16785_v3  ;;  %v4959_v47 = vsel %vm20450_vm14, %v4894_v30, %v16793_v8  ;;  %v16906_v60 = vld [vmem:[#allocation2 + $0x100] sm:$0xf]  ;;  %v234_v55 = vld [vmem:[#allocation2 + $0x110] sm:$0x1] }
 0x120   :  { %v4379_v29 = vshll.u32 %v16867_v46, 16  ;;  %v16898_v40 = vld [vmem:[#allocation2 + $0x104] ss:$0 sps:$4 sm:$0x11]   ;;  %v4377_v3 = vshrl.u32 %v16867_v46, 16  ;;  %v16901_v7 = vor.u32 %v4369_v16, %v4365_v17  ;;  %v16903_v8 = vrot.slane %v2347_v10, 1 }
 0x121   :  { %4842 = vrot.lane.b32.xlu0 %v4763_v36, %s15045_s18  ;;  %v3807_v12 = vpop.permute.xlu1 %3806  ;;  %v1596_v36 = vld [vmem:[#allocation2 + $0xfc] sm:$0xe]  ;;  %v5026_v19 = vsel %vm20449_vm15, %v4961_v6, %v16810_v32  ;;  %v3745_v62 = vsel %vm20452_vm9, %v3743_v11, %v3744_v56  ;;  %v16913_v34 = vld [vmem:[#allocation2 + $0x104] ss:$0 sps:$4 sm:$0x11]   ;;  %v2354_v17 = vshll.u32 %v16877_v9, 16  ;;  %v3363_v30 = vsel %vm2122_vm10, %v3358_v2, %v3362_v5 }
 0x122   :  { %v5091_v16 = vsel %vm20448_vm0, %v5026_v19, %v3551_v18  ;;  %v16918_v13 = vrot.slane %v13265_v52, 1  ;;  %v938_v28 = vshrl.u32 %v586_v49, 16  ;;  %v16923_v6 = vor.u32 %v2344_v35, %v2340_v27  ;;  %v1390_v5 = vld [vmem:[#allocation2 + $0x108] sm:$0xf]  ;;  %v127_v52 = vld [vmem:[#allocation2 + $0x114] sm:$0x1] }
 0x123   :  { %v3805_v48 = vpop.permute.xlu0 %3804  ;;  %2798 = vrot.lane.b32.xlu1 %v2721_v51, %s15044_s17  ;;  %v1645_v51 = vld [vmem:[#allocation2 + $0xfc] sm:$0xf]  ;;  %v941_v11 = vshll.u32 %v586_v49, 16  ;;  %v13075_v18 = vcombine.low %v1596_v36, %v16860_v63  ;;  %v949_v2 = vshll.u32 %v587_v45, 16  ;;  %v16932_v27 = vrot.slane %v2354_v17, 1 }
 0x124   :  { %v940_v56 = vrot.slane %v938_v28, 7  ;;  %v16935_v49 = vcombine.low %v1645_v51, %v16906_v60  ;;  %v589_v63 = vld [vmem:[%s20424_s0 + $0xa4] sm:$0xf]  ;;  %v5156_v28 = vsel %vm20451_vm4, %v5091_v16, %v3807_v12  ;;  %v2359_v17 = vshll.u32 %v16913_v34, 16  ;;  %v237_v53 = vld [vmem:[#allocation2 + $0x11c] sm:$0x1] }
 0x125   :  { %2796 = vrot.lane.b32.xlu0 %v2718_v43, %s15044_s17  ;;  %v5024_v43 = vsel %vm20449_vm15, %v4959_v47, %v16818_v42  ;;  %v4031_v26 = vpop.permute.xlu1 %4030  ;;  %v4381_v42 = vrot.slane %v4379_v29, 1  ;;  %v946_v47 = vshrl.u32 %v587_v45, 16  ;;  %v16950_v12 = vld [vmem:[%s20424_s0 + $0xa8] sm:$0xf] }
 0x126   :  { %v5089_v32 = vsel %vm20448_vm0, %v5024_v43, %v3549_v14  ;;  %v588_v14 = vld [vmem:[%s20424_s0 + $0xa0] sm:$0xf]  ;;  %v943_v29 = vor.u32 %v941_v11, %v940_v56  ;;  %v944_v36 = vrot.slane %v940_v56, 4 }
 0x127   :  { %v4029_v10 = vpop.permute.xlu0 %4028  ;;  %3022 = vrot.lane.b32.xlu1 %v16779_v41, %s15041_s14  ;;  %v4384_v41 = vshll.u32 %v16898_v40, 16  ;;  %v948_v45 = vrot.slane %v946_v47, 7  ;;  %v5154_v43 = vsel %vm20451_vm4, %v5089_v32, %v3805_v48  ;;  %v4382_v51 = vor.u32 %v4381_v42, %v4377_v3  ;;  %v16962_v32 = vld [vmem:[%s20424_s0 + $0xac] sm:$0xf] }
 0x128   :  { %v5219_v16 = vsel %vm20447_vm11, %v5154_v43, %v4029_v10  ;;  %v16955_v48 = vrot.slane %v13075_v18, 1  ;;  %v1391_v3 = vsel %vm15167_vm8, %v943_v29, %v1390_v5  ;;  %v955_v10 = vshrl.u32 %v588_v14, 16 }
 0x129   :  { %3020 = vrot.lane.b32.xlu0 %v16728_v38, %s15041_s14  ;;  %v4575_v19 = vpop.permute.xlu1 %4574  ;;  %v235_v38 = vsel %vm15155_vm7, 0, %v234_v55  ;;  %v4768_v55 = vrot.slane %v16898_v40, 1  ;;  %v4386_v56 = vrot.slane %v4384_v41, 1  ;;  %1392 = vst [vmem:[#allocation2 + $0x108] sm:$0xf] %v1391_v3  ;;  %v958_v5 = vshll.u32 %v588_v14, 16 }
 0x12a   :  { %236 = vst [vmem:[#allocation2 + $0x110] sm:$0x1] %v235_v38  ;;  %v963_v38 = vshrl.u32 %v589_v63, 16  ;;  %v5221_v29 = vsel %vm20447_vm11, %v5156_v28, %v4031_v26  ;;  %v957_v41 = vrot.slane %v955_v10, 7  ;;  %v966_v43 = vshll.u32 %v589_v63, 16 }
 0x12b   :  { %v4573_v35 = vpop.permute.xlu0 %4572  ;;  %3566 = vrot.lane.b32.xlu1 %v3363_v30, %s15047_s20  ;;  %v951_v30 = vor.u32 %v949_v2, %v948_v45  ;;  %v953_v2 = vrot.slane %v948_v45, 4  ;;  %v238_v14 = vsel %vm15155_vm7, 0, %v237_v53  ;;  %v131_v26 = vsel %vm15120_vm2, 0, %v130_v15 }
 0x12c   :  { %v5284_v42 = vsel %vm20445_vm3, %v5219_v16, %v4573_v35  ;;  %v972_v28 = vshrl.u32 %v16950_v12, 16  ;;  %v2726_v63 = vrot.slane %v16913_v34, 1  ;;  %239 = vst [vmem:[#allocation2 + $0x11c] sm:$0x1] %v238_v14  ;;  %132 = vst [vmem:[#allocation2 + $0x120] sm:$0x1] %v131_v26  ;;  %v960_v3 = vor.u32 %v958_v5, %v957_v41 }
 0x12d   :  { %3564 = vrot.lane.b32.xlu0 %v16855_v4, %s15047_s20  ;;  %v16965_v11 = vpop.permute.xlu1 %2527  ;;  %v128_v4 = vsel %vm15120_vm2, 0, %v127_v52  ;;  %v952_v47 = vsel %vm15144_vm6, %v944_v36, %v951_v30  ;;  %v16978_v52 = vrot.slane %v963_v38, 7  ;;  %v980_v16 = vshrl.u32 %v16962_v32, 16 }
 0x12e   :  { %129 = vst [vmem:[#allocation2 + $0x114] sm:$0x1] %v128_v4  ;;  %1393 = vst.msk [vmem:[#allocation2 + $0x10c] sm:$0xf] %vm20444_vm5, %v952_v47  ;;  %v16997_v4 = vld [vmem:[#allocation2 + $0xfc] sm:$0xe] }
 0x12f   :  { %v4829_v18 = vpop.permute.xlu0 %4828  ;;  %3822 = vrot.lane.b32.xlu1 %v3745_v62, %s15043_s16  ;;  %v5286_v62 = vsel %vm20445_vm3, %v5221_v29, %v4575_v19  ;;  %v968_v15 = vor.u32 %v966_v43, %v16978_v52  ;;  %v974_v10 = vrot.slane %v972_v28, 7  ;;  %v983_v47 = vshll.u32 %v16962_v32, 16  ;;  %v17014_v29 = vld [vmem:[#allocation2 + $0x104] ss:$0 sps:$4 sm:$0x11]  }
 0x130   :  { %v5349_v35 = vsel %vm20443_vm12, %v5284_v42, %v4829_v18  ;;  %v975_v42 = vshll.u32 %v16950_v12, 16  ;;  %v16999_v18 = vrot.slane %v980_v16, 7  ;;  %v4387_v12 = vsel %vm2122_vm10, %v4382_v51, %v4386_v56  ;;  %v1647_v38 = vld [vmem:[#allocation2 + $0x108] sm:$0xf] }
 0x131   :  { %3820 = vrot.lane.b32.xlu0 %v16850_v50, %s15043_s16  ;;  %14353 = vmatprep.mubr.msk.bf16.mxu0 %vm20442_vm1, %v5349_v35  ;;  %v16986_v36 = vpop.permute.xlu1 %2529  ;;  %v1394_v45 = vld [vmem:[#allocation2 + $0x110] sm:$0x1]  ;;  %v961_v50 = vrot.slane %v957_v41, 4  ;;  %v2361_v51 = vrot.slane %v2359_v17, 1  ;;  %v2723_v56 = vrot.slane %v16841_v23, 1  ;;  %v2350_v23 = vsel %vm2122_vm10, %v16923_v6, %v16903_v8 }
 0x132   :  { %v1395_v53 = vsel %vm15120_vm2, %v953_v2, %v1394_v45  ;;  %v4375_v2 = vsel %vm2122_vm10, %v16901_v7, %v16882_v37  ;;  %v3367_v37 = vshll.u32 %v16935_v49, 16  ;;  %v970_v7 = vrot.slane %v16978_v52, 4  ;;  %v1774_v43 = vld [vmem:[#allocation2 + $0x108] sm:$0xf] }
 0x133   :  { %v4831_v30 = vpop.permute.xlu0 %4830  ;;  %4046 = vrot.lane.b32.xlu1 %v16867_v46, %s15042_s15  ;;  %1396 = vst [vmem:[#allocation2 + $0x110] sm:$0x1] %v1395_v53  ;;  %v20472_v46 = vcombine.low %v16852_v21, %v16802_v57  ;;  %v969_v32 = vsel %vm15144_vm6, %v961_v50, %v968_v15  ;;  %v977_v26 = vor.u32 %v975_v42, %v974_v10  ;;  %v20473_v52 = vrot.slane %v16820_v54, 1  ;;  %v1724_v45 = vld [vmem:[#allocation2 + $0x108] sm:$0xe] }
 0x134   :  { %v5351_v19 = vsel %vm20443_vm12, %v5286_v62, %v4831_v30  ;;  %1400 = vst.msk [vmem:[#allocation2 + $0x118] sm:$0xf] %vm20444_vm5, %v969_v32  ;;  %v985_v17 = vor.u32 %v983_v47, %v16999_v18  ;;  %v20474_v50 = vshrl.u32 %v16877_v9, 16  ;;  %v3372_v30 = vshll.u32 %v17014_v29, 16  ;;  %v1401_v6 = vld [vmem:[#allocation2 + $0x11c] sm:$0x1] }
 0x135   :  { %4044 = vrot.lane.b32.xlu0 %v16800_v59, %s15042_s15  ;;  %14354 = vmatmul.mubr.msk.bf16.gmra.mxu0 %vm20442_vm1, %v5351_v19  ;;  %v17012_v5 = vrot.slane %v20472_v46, 1  ;;  %v17018_v59 = vpop.permute.xlu1 %2786  ;;  %v1397_v57 = vld [vmem:[#allocation2 + $0x114] sm:$0xf]  ;;  %v1648_v35 = vld [vmem:[#allocation2 + $0x10c] sm:$0xf]  ;;  %v4766_v28 = vsel %vm20452_vm9, %v16884_v24, %v20473_v52  ;;  %v13170_v8 = vcombine.low %v16997_v4, %v16906_v60  ;;  %v978_v54 = vrot.slane %v974_v10, 4 }
 0x136   :  { %v1398_v41 = vsel %vm15167_vm8, %v960_v3, %v1397_v57  ;;  %v17030_v14 = vld [vmem:[#allocation2 + $0x10c] sm:$0xf]  ;;  %v17041_v62 = vcombine.low %v1647_v38, %v1648_v35  ;;  %v2357_v16 = vor.u32 %v16932_v27, %v20474_v50  ;;  %v1404_v53 = vld [vmem:[#allocation2 + $0x120] sm:$0xf]  ;;  %v3365_v24 = vshrl.u32 %v16935_v49, 16 }
 0x137   :  { %v17026_v21 = vpop.permute.xlu0 %2784  ;;  %4590 = vrot.lane.b32.xlu1 %v4387_v12, %s15048_s25  ;;  %1399 = vst [vmem:[#allocation2 + $0x114] sm:$0xf] %v1398_v41  ;;  %v3369_v15 = vrot.slane %v3367_v37, 1  ;;  %v17052_v42 = vcombine.low %v1774_v43, %v17030_v14  ;;  %v1402_v19 = vsel %vm15120_vm2, %v970_v7, %v1401_v6  ;;  %v13171_v27 = vcombine.low %v1724_v45, %v1648_v35  ;;  %v1521_v12 = vld [vmem:[#allocation2 + $0x108] sm:$0xf] }
 0x138   :  { %1403 = vst [vmem:[#allocation2 + $0x11c] sm:$0x1] %v1402_v19  ;;  %v986_v60 = vsel %vm15144_vm6, %v978_v54, %v985_v17  ;;  %v1405_v4 = vsel %vm15167_vm8, %v977_v26, %v1404_v53  ;;  %v3379_v46 = vshll.u32 %v17041_v62, 16  ;;  %v5911_v38 = vlaneseq  ;;  %v1852_v52 = vld [vmem:[#allocation2 + $0x108] sm:$0xe] }
 0x139   :  { %4588 = vrot.lane.b32.xlu0 %v4375_v2, %s15048_s25  ;;  %v3011_v3 = vpop.permute.xlu1 %3010  ;;  %v17058_v2 = vld [vmem:[#allocation2 + $0x10c] sm:$0xf]  ;;  %1406 = vst [vmem:[#allocation2 + $0x120] sm:$0xf] %v1405_v4  ;;  %1407 = vst.msk [vmem:[#allocation2 + $0x124] sm:$0xf] %vm20444_vm5, %v986_v60  ;;  %v2362_v32 = vsel %vm2122_vm10, %v2357_v16, %v2361_v51  ;;  %v4769_v37 = vsel %vm20452_vm9, %v16918_v13, %v4768_v55  ;;  %v2727_v7 = vsel %vm20452_vm9, %v16955_v48, %v2726_v63 }
 0x13a   :  { %v17065_v10 = vld [vmem:[#allocation2 + $0x110] ss:$0 sps:$4 sm:$0x11]   ;;  %v3374_v57 = vrot.slane %v3372_v30, 1  ;;  %v3370_v26 = vor.u32 %v3369_v15, %v3365_v24  ;;  %v3746_v17 = vrot.slane %v13170_v8, 1  ;;  %v3747_v51 = vrot.slane %v17014_v29, 1 }
 0x13b   :  { %v17056_v47 = vpop.permute.xlu0 %3008  ;;  %2543 = vrot.lane.b32.xlu1 %v2350_v23, %s15046_s19  ;;  %v17079_v35 = vld [vmem:[#allocation2 + $0x118] sm:$0xf]  ;;  %v17081_v41 = vld [vmem:[#allocation2 + $0x110] ss:$0 sps:$4 sm:$0x11]   ;;  %v4391_v40 = vshll.u32 %v17052_v42, 16  ;;  %v2724_v13 = vsel %vm20452_vm9, %v17012_v5, %v2723_v56  ;;  %v17089_v63 = vcombine.low %v1521_v12, %v17058_v2  ;;  %v4898_v5 = vsel %vm4876_vm13, %v15901_v39, %v16965_v11 }
 0x13c   :  { %v3377_v34 = vshrl.u32 %v17041_v62, 16  ;;  %v3749_v55 = vrot.slane %v13171_v27, 1  ;;  %v3384_v45 = vshll.u32 %v17065_v10, 16  ;;  %v4389_v50 = vshrl.u32 %v17052_v42, 16  ;;  %v17097_v16 = vld [vmem:[#allocation2 + $0x108] sm:$0xe] }
 0x13d   :  { %4844 = vrot.lane.b32.xlu0 %v4766_v28, %s15045_s18  ;;  %v3555_v43 = vpop.permute.xlu1 %3554  ;;  %v3381_v28 = vrot.slane %v3379_v46, 1  ;;  %v4900_v56 = vsel %vm4876_vm13, %v15981_v58, %v16986_v36  ;;  %v3750_v30 = vrot.slane %v17065_v10, 1  ;;  %v4396_v8 = vshll.u32 %v17081_v41, 16  ;;  %v17108_v54 = vld [vmem:[#allocation2 + $0x118] sm:$0xf] }
 0x13e   :  { %v1776_v48 = vld [vmem:[#allocation2 + $0x114] sm:$0xf]  ;;  %v4965_v53 = vsel %vm20450_vm14, %v4900_v56, %v17018_v59  ;;  %v17113_v15 = vsel %vm2122_vm10, %v3370_v26, %v3374_v57  ;;  %v17116_v39 = vsel %vm20452_vm9, %v3746_v17, %v3747_v51  ;;  %v4393_v58 = vrot.slane %v4391_v40, 1  ;;  %v17118_v11 = vld [vmem:[#allocation2 + $0x110] ss:$0 sps:$4 sm:$0x11]  }
 0x13f   :  { %v3553_v23 = vpop.permute.xlu0 %3552  ;;  %2545 = vrot.lane.b32.xlu1 %v2362_v32, %s15046_s19  ;;  %v17094_v29 = vcombine.low %v1776_v48, %v17079_v35  ;;  %v1523_v6 = vld [vmem:[#allocation2 + $0x114] sm:$0xf]  ;;  %v4963_v36 = vsel %vm20450_vm14, %v4898_v5, %v17026_v21  ;;  %v5030_v19 = vsel %vm20449_vm15, %v4965_v53, %v3011_v3  ;;  %v17123_v12 = vld [vmem:[#allocation2 + $0x11c] ss:$0 sps:$4 sm:$0x11]   ;;  %v2366_v59 = vshll.u32 %v17089_v63, 16 }
 0x140   :  { %v13266_v60 = vcombine.low %v1852_v52, %v17030_v14  ;;  %v3382_v4 = vor.u32 %v3381_v28, %v3377_v34  ;;  %v3386_v10 = vrot.slane %v3384_v45, 1  ;;  %v17130_v32 = vcombine.low %v1523_v6, %v17108_v54  ;;  %v17137_v14 = vld [vmem:[#allocation2 + $0x11c] ss:$0 sps:$4 sm:$0x11]   ;;  %v1598_v34 = vld [vmem:[#allocation2 + $0x114] sm:$0xe] }
 0x141   :  { %4846 = vrot.lane.b32.xlu0 %v4769_v37, %s15045_s18  ;;  %v3811_v24 = vpop.permute.xlu1 %3810  ;;  %v4403_v46 = vshll.u32 %v17094_v29, 16  ;;  %v1853_v37 = vld [vmem:[#allocation2 + $0x114] sm:$0xe]  ;;  %v5028_v21 = vsel %vm20449_vm15, %v4963_v36, %v17056_v47  ;;  %v5095_v3 = vsel %vm20448_vm0, %v5030_v19, %v3555_v43  ;;  %v2364_v57 = vshrl.u32 %v17089_v63, 16  ;;  %v1651_v36 = vld [vmem:[#allocation2 + $0x120] sm:$0xf] }
 0x142   :  { %v17144_v17 = vsel %vm20452_vm9, %v3749_v55, %v3750_v30  ;;  %v4394_v51 = vor.u32 %v4393_v58, %v4389_v50  ;;  %v4398_v40 = vrot.slane %v4396_v8, 1  ;;  %v2371_v47 = vshll.u32 %v17118_v11, 16  ;;  %v1649_v30 = vld [vmem:[#allocation2 + $0x114] sm:$0xf]  ;;  %v133_v19 = vld [vmem:[#allocation2 + $0x12c] sm:$0x1] }
 0x143   :  { %v3809_v27 = vpop.permute.xlu0 %3808  ;;  %2802 = vrot.lane.b32.xlu1 %v2727_v7, %s15044_s17  ;;  %v13076_v7 = vcombine.low %v17097_v16, %v17058_v2  ;;  %v5093_v43 = vsel %vm20448_vm0, %v5028_v21, %v3553_v23  ;;  %v4408_v48 = vshll.u32 %v17123_v12, 16  ;;  %v2368_v52 = vrot.slane %v2366_v59, 1  ;;  %v240_v16 = vld [vmem:[#allocation2 + $0x128] sm:$0x1]  ;;  %v592_v21 = vld [vmem:[%s20424_s0 + $0xb0] sm:$0xf] }
 0x144   :  { %v13267_v28 = vcombine.low %v1853_v37, %v17079_v35  ;;  %v3387_v2 = vsel %vm2122_vm10, %v3382_v4, %v3386_v10  ;;  %v4401_v55 = vshrl.u32 %v17094_v29, 16  ;;  %v4405_v45 = vrot.slane %v4403_v46, 1  ;;  %v17170_v10 = vld [vmem:[#allocation2 + $0x124] sm:$0xf] }
 0x145   :  { %2800 = vrot.lane.b32.xlu0 %v2724_v13, %s15044_s17  ;;  %v17141_v26 = vpop.permute.xlu1 %4034  ;;  %v2378_v50 = vshll.u32 %v17130_v32, 16  ;;  %v5160_v5 = vsel %vm20451_vm4, %v5095_v3, %v3811_v24  ;;  %v4770_v23 = vrot.slane %v13266_v60, 1  ;;  %v2383_v56 = vshll.u32 %v17137_v14, 16  ;;  %v593_v3 = vld [vmem:[%s20424_s0 + $0xb4] sm:$0xf] }
 0x146   :  { %v13077_v35 = vcombine.low %v1598_v34, %v17108_v54  ;;  %v5158_v8 = vsel %vm20451_vm4, %v5093_v43, %v3809_v27  ;;  %v17164_v53 = vsel %vm2122_vm10, %v4394_v51, %v4398_v40  ;;  %v2373_v58 = vrot.slane %v2371_v47, 1  ;;  %v17194_v34 = vld [vmem:[#allocation2 + $0x11c] ss:$0 sps:$4 sm:$0x11]  }
 0x147   :  { %v4033_v13 = vpop.permute.xlu0 %4032  ;;  %3026 = vrot.lane.b32.xlu1 %v17041_v62, %s15041_s14  ;;  %v17160_v62 = vld [vmem:[#allocation2 + $0x118] sm:$0xf]  ;;  %v4771_v24 = vrot.slane %v17081_v41, 1  ;;  %v4410_v59 = vrot.slane %v4408_v48, 1  ;;  %v2369_v60 = vor.u32 %v2368_v52, %v2364_v57  ;;  %v2376_v4 = vshrl.u32 %v17130_v32, 16 }
 0x148   :  { %v17168_v54 = vrot.slane %v13267_v28, 1  ;;  %v4406_v27 = vor.u32 %v4405_v45, %v4401_v55  ;;  %v17173_v46 = vrot.slane %v2378_v50, 1  ;;  %v17176_v37 = vcombine.low %v1649_v30, %v17160_v62  ;;  %v17204_v28 = vld [vmem:[#allocation2 + $0x120] sm:$0xe] }
 0x149   :  { %3024 = vrot.lane.b32.xlu0 %v16935_v49, %s15041_s14  ;;  %v4579_v6 = vpop.permute.xlu1 %4578  ;;  %v241_v41 = vsel %vm15155_vm7, 0, %v240_v16  ;;  %v5223_v57 = vsel %vm20447_vm11, %v5158_v8, %v4033_v13  ;;  %v17189_v51 = vrot.slane %v2383_v56, 1  ;;  %v4774_v40 = vrot.slane %v17123_v12, 1  ;;  %v17214_v56 = vld [vmem:[#allocation2 + $0x124] sm:$0xf] }
 0x14a   :  { %v17192_v47 = vrot.slane %v13077_v35, 1  ;;  %242 = vst [vmem:[#allocation2 + $0x128] sm:$0x1] %v241_v41  ;;  %v2732_v48 = vrot.slane %v17137_v14, 1  ;;  %v17199_v52 = vrot.slane %v13076_v7, 1  ;;  %v17202_v13 = vcombine.low %v1651_v36, %v17170_v10 }
 0x14b   :  { %v4577_v49 = vpop.permute.xlu0 %4576  ;;  %3570 = vrot.lane.b32.xlu1 %v3387_v2, %s15047_s20  ;;  %v17210_v45 = vsel %vm20452_vm9, %v4770_v23, %v4771_v24  ;;  %v2729_v50 = vrot.slane %v17118_v11, 1  ;;  %v987_v16 = vrot.slane %v16999_v18, 4  ;;  %v1778_v7 = vld [vmem:[#allocation2 + $0x120] sm:$0xf]  ;;  %v3391_v8 = vshll.u32 %v17176_v37, 16 }
 0x14c   :  { %v5288_v2 = vsel %vm20445_vm3, %v5223_v57, %v4577_v49  ;;  %v3401_v30 = vshrl.u32 %v17202_v13, 16  ;;  %v1725_v36 = vld [vmem:[#allocation2 + $0x114] sm:$0xe]  ;;  %v989_v23 = vshrl.u32 %v592_v21, 16  ;;  %v5225_v24 = vsel %vm20447_vm11, %v5160_v5, %v17141_v26 }
 0x14d   :  { %3568 = vrot.lane.b32.xlu0 %v17113_v15, %s15047_s20  ;;  %v17196_v43 = vpop.permute.xlu1 %2531  ;;  %v134_v15 = vsel %vm15120_vm2, 0, %v133_v19  ;;  %v17227_v18 = vsel %vm2122_vm10, %v2369_v60, %v2373_v58  ;;  %v992_v19 = vshll.u32 %v592_v21, 16  ;;  %v997_v49 = vshrl.u32 %v593_v3, 16 }
 0x14e   :  { %135 = vst [vmem:[#allocation2 + $0x12c] sm:$0x1] %v134_v15  ;;  %v5290_v41 = vsel %vm20445_vm3, %v5225_v24, %v4579_v6  ;;  %v4411_v15 = vsel %vm2122_vm10, %v4406_v27, %v4410_v59  ;;  %v3403_v5 = vshll.u32 %v17202_v13, 16  ;;  %v13173_v58 = vcombine.low %v17204_v28, %v17170_v10 }
 0x14f   :  { %v4833_v55 = vpop.permute.xlu0 %4832  ;;  %3826 = vrot.lane.b32.xlu1 %v17144_v17, %s15043_s16  ;;  %v243_v17 = vld [vmem:[#allocation2 + $0x134] sm:$0x1]  ;;  %v17237_v60 = vrot.slane %v997_v49, 7  ;;  %v17243_v27 = vcombine.low %v1778_v7, %v17214_v56  ;;  %v3393_v24 = vrot.slane %v3391_v8, 1  ;;  %v3753_v7 = vrot.slane %v17194_v34, 1 }
 0x150   :  { %v5353_v35 = vsel %vm20443_vm12, %v5288_v2, %v4833_v55  ;;  %v991_v2 = vrot.slane %v989_v23, 7  ;;  %v1000_v55 = vshll.u32 %v593_v3, 16  ;;  %v13172_v3 = vcombine.low %v1725_v36, %v17160_v62  ;;  %v292_v49 = vld [vmem:[#allocation3 + $0x8] sm:$0x1]  ;;  %v353_v8 = vld [vmem:[#allocation3 + $0xc] sm:$0x1] }
 0x151   :  { %3824 = vrot.lane.b32.xlu0 %v17116_v39, %s15043_s16  ;;  %14357 = vmatprep.mubr.msk.bf16.mxu0 %vm20442_vm1, %v5353_v35  ;;  %v17230_v57 = vpop.permute.xlu1 %2533  ;;  %v3396_v39 = vshll.u32 %v17194_v34, 16  ;;  %v1408_v6 = vld [vmem:[#allocation2 + $0x128] sm:$0x1] }
 0x152   :  { %v994_v35 = vor.u32 %v992_v19, %v991_v2  ;;  %v995_v59 = vrot.slane %v991_v2, 4  ;;  %v1409_v10 = vsel %vm15120_vm2, %v987_v16, %v1408_v6  ;;  %v1002_v28 = vor.u32 %v1000_v55, %v17237_v60 }
 0x153   :  { %v4835_v26 = vpop.permute.xlu0 %4834  ;;  %4050 = vrot.lane.b32.xlu1 %v17094_v29, %s15042_s15  ;;  %1410 = vst [vmem:[#allocation2 + $0x128] sm:$0x1] %v1409_v10  ;;  %v3389_v29 = vshrl.u32 %v17176_v37, 16  ;;  %v3405_v16 = vrot.slane %v3403_v5, 1  ;;  %v3398_v62 = vrot.slane %v3396_v39, 1  ;;  %v4415_v6 = vshll.u32 %v17243_v27, 16 }
 0x154   :  { %v5355_v21 = vsel %vm20443_vm12, %v5290_v41, %v4835_v26  ;;  %v136_v41 = vld [vmem:[#allocation2 + $0x138] sm:$0x1]  ;;  %v1003_v36 = vsel %vm15144_vm6, %v995_v59, %v1002_v28  ;;  %v1525_v26 = vld [vmem:[#allocation2 + $0x120] sm:$0xf]  ;;  %v15050_v5 = vmov 1983009808  }
 0x155   :  { %4048 = vrot.lane.b32.xlu0 %v17052_v42, %s15042_s15  ;;  %14358 = vmatmul.mubr.msk.bf16.gmra.mxu0 %vm20442_vm1, %v5355_v21  ;;  %v17252_v23 = vpop.permute.xlu1 %2790  ;;  %v1411_v19 = vld [vmem:[#allocation2 + $0x12c] sm:$0xf]  ;;  %v244_v42 = vsel %vm15155_vm7, 0, %v243_v17  ;;  %v17264_v21 = vld [vmem:[#allocation2 + $0x124] sm:$0xf]  ;;  %v2381_v17 = vor.u32 %v17173_v46, %v2376_v4  ;;  %v5909_v39 = vunpack.c.l.s4 %v15050_v5  ;;  %vm20446_vm1 = vcmask 257024  }
 0x156   :  { %v1412_v55 = vsel %vm15167_vm8, %v994_v35, %v1411_v19  ;;  %245 = vst [vmem:[#allocation2 + $0x134] sm:$0x1] %v244_v42  ;;  %1414 = vst.msk [vmem:[#allocation2 + $0x130] sm:$0xf] %vm20444_vm5, %v1003_v36  ;;  %v17274_v35 = vrot.slane %v13173_v58, 1  ;;  %v3752_v59 = vrot.slane %v13172_v3, 1  ;;  %v3406_v14 = vor.u32 %v3405_v16, %v3401_v30 }
 0x157   :  { %v17258_v2 = vpop.permute.xlu0 %2788  ;;  %4594 = vrot.lane.b32.xlu1 %v4411_v15, %s15048_s25  ;;  %1413 = vst [vmem:[#allocation2 + $0x12c] sm:$0xf] %v1412_v55  ;;  %v1004_v15 = vrot.slane %v17237_v60, 4  ;;  %vm278_vm12 = vcmask 253952   ;;  %v20475_v10 = vmov 0   ;;  %v17286_v46 = vshrl.u32 %v5911_v38, 7 }
 0x158   :  { %277 = vst.msk [vmem:[#allocation3] sm:$0xf] %vm20446_vm1, %v20475_v10  ;;  %280 = vst.msk [vmem:[#allocation3 + $0x50] sm:$0xf] %vm20446_vm1, %v20475_v10  ;;  %v4413_v58 = vshrl.u32 %v17243_v27, 16  ;;  %v17304_v38 = vcombine.low %v1525_v26, %v17264_v21  ;;  %v137_v42 = vsel %vm15120_vm2, 0, %v136_v41  ;;  %v2386_v12 = vsel %vm2122_vm10, %v2381_v17, %v17189_v51 }
 0x159   :  { %4592 = vrot.lane.b32.xlu0 %v17164_v53, %s15048_s25  ;;  %283 = vst.msk [vmem:[#allocation3 + $0x48] sm:$0xf] %vm20446_vm1, %v20475_v10  ;;  %285 = vst.msk [vmem:[#allocation3 + $0x98] sm:$0xf] %vm20446_vm1, %v20475_v10  ;;  %v3015_v4 = vpop.permute.xlu1 %3014  ;;  %v3394_v53 = vor.u32 %v3393_v24, %v3389_v29  ;;  %vm20477_vm5 = vsmask.f32 256  ;;  %v4775_v29 = vsel %vm20452_vm9, %v17168_v54, %v4774_v40  ;;  %v5910_v36 = vunpack.c.0.s8 %v5909_v39 }
 0x15a   :  { %20476 = vst [vmem:[#allocation11_spill] sm:$0xff] %v17286_v46  ;;  %vm17291_vm3 = vmand %vm278_vm12, %vm20477_vm5  ;;  %v1854_v3 = vld [vmem:[#allocation2 + $0x120] sm:$0xe]  ;;  %vm20480_vm5 = vsmask.f32 7938  ;;  %v4417_v54 = vrot.slane %v4415_v6, 1  ;;  %v4902_v55 = vsel %vm4876_vm13, %v16110_v44, %v17196_v43  ;;  %v2733_v51 = vsel %vm20452_vm9, %v17192_v47, %v2732_v48 }
 0x15b   :  { %279 = vst.msk [vmem:[#allocation3 + $0x4] sm:$0x1] %vm278_vm12, %v20475_v10  ;;  %281 = vst.msk [vmem:[#allocation3 + $0x54] sm:$0x1] %vm278_vm12, %v20475_v10  ;;  %v17306_v28 = vpop.permute.xlu0 %3012  ;;  %v293_v24 = vsel %vm17291_vm3, 0, %v292_v49  ;;  %2547 = vrot.lane.b32.xlu1 %v17227_v18, %s15046_s19  ;;  %v2730_v18 = vsel %vm20452_vm9, %v17199_v52, %v2729_v50  ;;  %v4904_v44 = vsel %vm4876_vm13, %v16201_v61, %v17230_v57  ;;  %v2388_v57 = vshrl.u32 %v17304_v38, 16 }
 0x15c   :  { %284 = vst.msk [vmem:[#allocation3 + $0x4c] sm:$0x1] %vm278_vm12, %v20475_v10  ;;  %286 = vst.msk [vmem:[#allocation3 + $0x9c] sm:$0x1] %vm278_vm12, %v20475_v10  ;;  %v17328_v49 = vld [vmem:[#allocation2 + $0x120] sm:$0xe]  ;;  %v17355_v11 = vsel %vm20452_vm9, %v3752_v59, %v3753_v7  ;;  %v13268_v30 = vcombine.low %v1854_v3, %v17214_v56  ;;  %v4969_v16 = vsel %vm20450_vm14, %v4904_v44, %v17252_v23 }
 0x15d   :  { %vm17316_vm1 = vmand %vm278_vm12, %vm20480_vm5  ;;  %294 = vst [vmem:[#allocation3 + $0x8] sm:$0x1] %v293_v24  ;;  %4848 = vrot.lane.b32.xlu0 %v17210_v45, %s15045_s18  ;;  %v14650_v41 = vld [vmem:[#allocation2 + $0x128] ss:$0 sps:$4 sm:$0x11]   ;;  %v3559_v43 = vpop.permute.xlu1 %3558  ;;  %v17350_v45 = vsel %vm2122_vm10, %v3394_v53, %v3398_v62  ;;  %v4967_v34 = vsel %vm20450_vm14, %v4902_v55, %v17258_v2  ;;  %v17372_v62 = vsub.s32 %v5910_v36, %v17286_v46  ;;  %vm20483_vm12 = vcmask 171008  }
 0x15e   :  { %v354_v40 = vsel %vm17316_vm1, 0, %v353_v8  ;;  %138 = vst [vmem:[#allocation2 + $0x138] sm:$0x1] %v137_v42  ;;  %v2390_v8 = vshll.u32 %v17304_v38, 16  ;;  %v1415_v47 = vld [vmem:[#allocation2 + $0x134] sm:$0x1]  ;;  %v5034_v56 = vsel %vm20449_vm15, %v4969_v16, %v3015_v4  ;;  %v13078_v2 = vcombine.low %v17328_v49, %v17264_v21  ;;  %vm20484_vm5 = vmmov %vm20483_vm12 }
 0x15f   :  { %355 = vst [vmem:[#allocation3 + $0xc] sm:$0x1] %v354_v40  ;;  %v3557_v48 = vpop.permute.xlu0 %3556  ;;  %v3408_v52 = vshll.u32 %v14650_v41, 16  ;;  %v1780_v50 = vld [vmem:[#allocation2 + $0x12c] sm:$0xf]  ;;  %v1416_v61 = vsel %vm15120_vm2, %v1004_v15, %v1415_v47  ;;  %2549 = vrot.lane.b32.xlu1 %v2386_v12, %s15046_s19  ;;  %v3756_v23 = vrot.slane %v14650_v41, 1  ;;  %v4418_v4 = vor.u32 %v4417_v54, %v4413_v58 }
 0x160   :  { %v17357_v26 = vld [vmem:[#allocation2 + $0x130] sm:$0xf]  ;;  %1417 = vst [vmem:[#allocation2 + $0x134] sm:$0x1] %v1416_v61  ;;  %v2392_v39 = vrot.slane %v2390_v8, 1  ;;  %v5032_v44 = vsel %vm20449_vm15, %v4967_v34, %v17306_v28  ;;  %v5099_v47 = vsel %vm20448_vm0, %v5034_v56, %v3559_v43  ;;  %v17409_v56 = vrot.slane %v13078_v2, 1 }
 0x161   :  { %v17369_v7 = vcombine.low %v1780_v50, %v17357_v26  ;;  %v14657_v17 = vld [vmem:[#allocation2 + $0x128] ss:$0 sps:$4 sm:$0x11]   ;;  %4850 = vrot.lane.b32.xlu0 %v4775_v29, %s15045_s18  ;;  %v1527_v6 = vld [vmem:[#allocation2 + $0x12c] sm:$0xf]  ;;  %v3815_v59 = vpop.permute.xlu1 %3814  ;;  %v3410_v15 = vrot.slane %v3408_v52, 1  ;;  %v5097_v50 = vsel %vm20448_vm0, %v5032_v44, %v3557_v48 }
 0x162   :  { %v17374_v5 = vld [vmem:[#allocation2 + $0x128] ss:$0 sps:$4 sm:$0x11]   ;;  %v4420_v3 = vshll.u32 %v14657_v17, 16  ;;  %v1528_v42 = vld [vmem:[#allocation2 + $0x130] sm:$0xf]  ;;  %v2393_v41 = vor.u32 %v2392_v39, %v2388_v57 }
 0x163   :  { %v4427_v53 = vshll.u32 %v17369_v7, 16  ;;  %v2395_v24 = vshll.u32 %v17374_v5, 16  ;;  %v3813_v12 = vpop.permute.xlu0 %3812  ;;  %v4425_v36 = vshrl.u32 %v17369_v7, 16  ;;  %v4776_v29 = vrot.slane %v13268_v30, 1  ;;  %v1855_v55 = vld [vmem:[#allocation2 + $0x12c] sm:$0xe]  ;;  %2806 = vrot.lane.b32.xlu1 %v2733_v51, %s15044_s17 }
 0x164   :  { %v4777_v40 = vrot.slane %v14657_v17, 1  ;;  %v4422_v49 = vrot.slane %v4420_v3, 1  ;;  %v17390_v52 = vcombine.low %v1527_v6, %v1528_v42  ;;  %v13269_v58 = vcombine.low %v1855_v55, %v17357_v26  ;;  %v1600_v54 = vld [vmem:[#allocation2 + $0x12c] sm:$0xe]  ;;  %v594_v28 = vld [vmem:[%s20424_s0 + $0xb8] sm:$0xf] }
 0x165   :  { %v4429_v21 = vrot.slane %v4427_v53, 1  ;;  %v2397_v8 = vrot.slane %v2395_v24, 1  ;;  %2804 = vrot.lane.b32.xlu0 %v2730_v18, %s15044_s17  ;;  %v5164_v51 = vsel %vm20451_vm4, %v5099_v47, %v3815_v59  ;;  %v4039_v61 = vpop.permute.xlu1 %4038  ;;  %v3411_v57 = vsel %vm2122_vm10, %v3406_v14, %v3410_v15  ;;  %v1653_v18 = vld [vmem:[#allocation2 + $0x12c] sm:$0xf]  ;;  %v17401_v43 = vld [vmem:[#allocation2 + $0x130] sm:$0xf] }
 0x166   :  { %v3757_v30 = vsel %vm20452_vm9, %v17274_v35, %v3756_v23  ;;  %v17403_v16 = vld [vmem:[#allocation2 + $0x12c] sm:$0xe]  ;;  %v5162_v26 = vsel %vm20451_vm4, %v5097_v50, %v3813_v12  ;;  %v17407_v17 = vsel %vm20452_vm9, %v4776_v29, %v4777_v40  ;;  %v13079_v14 = vcombine.low %v1600_v54, %v1528_v42  ;;  %v595_v12 = vld [vmem:[%s20424_s0 + $0xbc] sm:$0xf] }
 0x167   :  { %v4037_v48 = vpop.permute.xlu0 %4036  ;;  %v14656_v34 = vld [vmem:[#allocation2 + $0x134] ss:$0 sps:$4 sm:$0x11]   ;;  %3030 = vrot.lane.b32.xlu1 %v17202_v13, %s15041_s14  ;;  %v17413_v35 = vor.u32 %v4429_v21, %v4425_v36  ;;  %v17416_v23 = vsel %vm2122_vm10, %v4418_v4, %v4422_v49  ;;  %v17419_v39 = vsel %vm2122_vm10, %v2393_v41, %v2397_v8  ;;  %v2402_v59 = vshll.u32 %v17390_v52, 16  ;;  %v246_v49 = vld [vmem:[#allocation2 + $0x140] sm:$0x1] }
 0x168   :  { %v17421_v6 = vld [vmem:[#allocation2 + $0x134] ss:$0 sps:$4 sm:$0x11]   ;;  %v5229_v15 = vsel %vm20447_vm11, %v5164_v51, %v4039_v61  ;;  %v4432_v2 = vshll.u32 %v14656_v34, 16  ;;  %v4779_v53 = vrot.slane %v13269_v58, 1  ;;  %v4780_v13 = vrot.slane %v14656_v34, 1 }
 0x169   :  { %3028 = vrot.lane.b32.xlu0 %v17176_v37, %s15041_s14  ;;  %v4583_v3 = vpop.permute.xlu1 %4582  ;;  %v2400_v24 = vshrl.u32 %v17390_v52, 16  ;;  %v2404_v42 = vrot.slane %v2402_v59, 1  ;;  %v17432_v36 = vcombine.low %v1653_v18, %v17401_v43  ;;  %v13174_v4 = vcombine.low %v17403_v16, %v17401_v43  ;;  %v17442_v58 = vld [vmem:[#allocation2 + $0x134] ss:$0 sps:$4 sm:$0x11]  }
 0x16a   :  { %v5227_v29 = vsel %vm20447_vm11, %v5162_v26, %v4037_v48  ;;  %v2407_v40 = vshll.u32 %v17421_v6, 16  ;;  %v2737_v55 = vrot.slane %v13079_v14, 1  ;;  %v1006_v21 = vshrl.u32 %v594_v28, 16  ;;  %v139_v18 = vld [vmem:[#allocation2 + $0x144] sm:$0x1] }
 0x16b   :  { %v4581_v37 = vpop.permute.xlu0 %4580  ;;  %v5294_v41 = vsel %vm20483_vm12, %v5229_v15, %v4583_v3  ;;  %3574 = vrot.lane.b32.xlu1 %v3411_v57, %s15047_s20  ;;  %v4434_v8 = vrot.slane %v4432_v2, 1  ;;  %v2738_v44 = vrot.slane %v17421_v6, 1  ;;  %v2735_v47 = vrot.slane %v17374_v5, 1  ;;  %v1418_v48 = vld [vmem:[#allocation2 + $0x138] sm:$0xf] }
 0x16c   :  { %v5292_v54 = vsel %vm20484_vm5, %v5227_v29, %v4581_v37  ;;  %v17448_v50 = vsel %vm20452_vm9, %v4779_v53, %v4780_v13  ;;  %v1008_v51 = vrot.slane %v1006_v21, 7  ;;  %v1009_v61 = vshll.u32 %v594_v28, 16  ;;  %v17463_v2 = vld [vmem:[%s20424_s0 + $0xc4] sm:$0xf]  ;;  %v17475_v29 = vld [vmem:[%s20426_s2] ss:$0 sm:$0xff] }
 0x16d   :  { %3572 = vrot.lane.b32.xlu0 %v17350_v45, %s15047_s20  ;;  %v17450_v43 = vpop.permute.xlu1 %2535  ;;  %v17452_v57 = vor.u32 %v2404_v42, %v2400_v24  ;;  %v1014_v16 = vshrl.u32 %v595_v12, 16  ;;  %v1017_v26 = vshll.u32 %v595_v12, 16  ;;  %v247_v34 = vsel %vm15155_vm7, 0, %v246_v49  ;;  %v596_v45 = vld [vmem:[%s20424_s0 + $0xc0] sm:$0xf] }
 0x16e   :  { %v2409_v6 = vrot.slane %v2407_v40, 1  ;;  %v1011_v59 = vor.u32 %v1009_v61, %v1008_v51  ;;  %v1012_v15 = vrot.slane %v1008_v51, 4  ;;  %248 = vst [vmem:[#allocation2 + $0x140] sm:$0x1] %v247_v34  ;;  %v3413_v28 = vshrl.u32 %v17432_v36, 16 }
 0x16f   :  { %v4837_v14 = vpop.permute.xlu0 %4836  ;;  %vm20485_vm12 = vcmask 195584   ;;  %3830 = vrot.lane.b32.xlu1 %v3757_v30, %s15043_s16  ;;  %v1016_v13 = vrot.slane %v1014_v16, 7  ;;  %v3415_v3 = vshll.u32 %v17432_v36, 16  ;;  %v3420_v24 = vshll.u32 %v17442_v58, 16  ;;  %v249_v42 = vld [vmem:[#allocation2 + $0x14c] sm:$0x1] }
 0x170   :  { %v5357_v53 = vsel %vm20485_vm12, %v5292_v54, %v4837_v14  ;;  %v295_v12 = vld [vmem:[#allocation3 + $0x10] sm:$0x1]  ;;  %vm20486_vm5 = vcmask 220160   ;;  %v1419_v30 = vsel %vm15167_vm8, %v1011_v59, %v1418_v48  ;;  %v3758_v37 = vrot.slane %v13174_v4, 1  ;;  %v356_v49 = vld [vmem:[#allocation3 + $0x14] sm:$0x1] }
 0x171   :  { %3828 = vrot.lane.b32.xlu0 %v17355_v11, %s15043_s16  ;;  %14361 = vmatprep.mubr.msk.bf16.mxu0 %vm20486_vm5, %v5357_v53  ;;  %v3759_v40 = vrot.slane %v17442_v58, 1  ;;  %v140_v21 = vsel %vm15120_vm2, 0, %v139_v18  ;;  %v2538_v54 = vpop.permute.xlu1 %2537  ;;  %v1019_v51 = vor.u32 %v1017_v26, %v1016_v13  ;;  %v1021_v11 = vrot.slane %v1016_v13, 4  ;;  %1420 = vst [vmem:[#allocation2 + $0x138] sm:$0xf] %v1419_v30 }
 0x172   :  { %v3417_v61 = vrot.slane %v3415_v3, 1  ;;  %v3422_v16 = vrot.slane %v3420_v24, 1  ;;  %141 = vst [vmem:[#allocation2 + $0x144] sm:$0x1] %v140_v21  ;;  %v4435_v14 = vsel %vm2122_vm10, %v17413_v35, %v4434_v8  ;;  %v17485_v48 = vsel %vm20452_vm9, %v2737_v55, %v2738_v44  ;;  %v142_v13 = vld [vmem:[#allocation2 + $0x150] sm:$0x1] }
 0x173   :  { %v4839_v34 = vpop.permute.xlu0 %4838  ;;  %v1023_v4 = vshrl.u32 %v596_v45, 16  ;;  %v1026_v58 = vshll.u32 %v596_v45, 16  ;;  %4054 = vrot.lane.b32.xlu1 %v17369_v7, %s15042_s15  ;;  %v1020_v18 = vsel %vm15144_vm6, %v1012_v15, %v1019_v51  ;;  %v1031_v53 = vshrl.u32 %v17463_v2, 16 }
 0x174   :  { %v5359_v59 = vsel %vm20485_vm12, %v5294_v41, %v4839_v34  ;;  %v3418_v26 = vor.u32 %v3417_v61, %v3413_v28  ;;  %vm20487_vm11 = vcmask 19456   ;;  %v1034_v55 = vshll.u32 %v17463_v2, 16 }
 0x175   :  { %v14339_v3 = vpop.f32.mrf.mxu0  ;;  %4052 = vrot.lane.b32.xlu0 %v17243_v27, %s15042_s15  ;;  %14362 = vmatmul.mubr.msk.bf16.gmra.mxu0 %vm20486_vm5, %v5359_v59  ;;  %1421 = vst.msk [vmem:[#allocation2 + $0x13c] sm:$0xf] %vm20487_vm11, %v1020_v18  ;;  %v1025_v35 = vrot.slane %v1023_v4, 7  ;;  %v250_v7 = vsel %vm15155_vm7, 0, %v249_v42  ;;  %v296_v41 = vsel %vm17291_vm3, 0, %v295_v12  ;;  %v2795_v44 = vpop.permute.xlu1 %2794  ;;  %v17507_v27 = vsel %vm20452_vm9, %v17409_v56, %v2735_v47 }
 0x176   :  { %v5533_v8 = vadd.f32 %v14339_v3, %v17475_v29  ;;  %v1422_v45 = vld [vmem:[#allocation2 + $0x140] sm:$0x1]  ;;  %v17509_v15 = vrot.slane %v1031_v53, 7  ;;  %251 = vst [vmem:[#allocation2 + $0x14c] sm:$0x1] %v250_v7  ;;  %v357_v28 = vsel %vm17316_vm1, 0, %v356_v49  ;;  %v17515_v42 = vsel %vm2122_vm10, %v17452_v57, %v2409_v6 }
 0x177   :  { %297 = vst [vmem:[#allocation3 + $0x10] sm:$0x1] %v296_v41  ;;  %v5524_v2 = vpop.f32.mrf.mxu0  ;;  %v2793_v24 = vpop.permute.xlu0 %2792  ;;  %v1423_v5 = vsel %vm15120_vm2, %v1021_v11, %v1422_v45  ;;  %v1028_v12 = vor.u32 %v1026_v58, %v1025_v35  ;;  %v1029_v56 = vrot.slane %v1025_v35, 4  ;;  %358 = vst [vmem:[#allocation3 + $0x14] sm:$0x1] %v357_v28  ;;  %v4906_v47 = vsel %vm4876_vm13, %v16342_v22, %v17450_v43 }
 0x178   :  { %v4908_v30 = vsel %vm4876_vm13, %v16425_v33, %v2538_v54  ;;  %v5525_v21 = vadd.f32 %v17475_v29, %v5524_v2  ;;  %4598 = vrot.lane.b32.xlu1 %v4435_v14, %s15048_s25  ;;  %1424 = vst [vmem:[#allocation2 + $0x140] sm:$0x1] %v1423_v5  ;;  %v1036_v57 = vor.u32 %v1034_v55, %v17509_v15  ;;  %v17530_v6 = vld [vmem:[%s20424_s0 + $0xc8] sm:$0xf]  ;;  %v5781_v49 = vmax.f32 %v5533_v8, 0.0 }
 0x179   :  { %v14340_v51 = vpop.f32.mrf.mxu0  ;;  %4596 = vrot.lane.b32.xlu0 %v17416_v23, %s15048_s25  ;;  %v1655_v22 = vld [vmem:[#allocation2 + $0x138] sm:$0xf]  ;;  %v17535_v33 = vsel %vm2122_vm10, %v3418_v26, %v3422_v16  ;;  %v17540_v54 = vsel %vm20452_vm9, %v3758_v37, %v3759_v40  ;;  %v143_v11 = vsel %vm15120_vm2, 0, %v142_v13  ;;  %v3019_v14 = vpop.permute.xlu1 %3018  ;;  %v1038_v23 = vrot.slane %v17509_v15, 4  ;;  %v1425_v58 = vld [vmem:[#allocation2 + $0x144] sm:$0xf] }
 0x17a   :  { %v17537_v43 = vld [vmem:[#allocation2 + $0x138] sm:$0xe]  ;;  %v5779_v61 = vmax.f32 %v5525_v21, 0.0  ;;  %v5536_v34 = vadd.f32 %v14340_v51, %v17475_v29  ;;  %v1037_v4 = vsel %vm15144_vm6, %v1029_v56, %v1036_v57  ;;  %144 = vst [vmem:[#allocation2 + $0x150] sm:$0x1] %v143_v11  ;;  %v4973_v59 = vsel %vm20450_vm14, %v4908_v30, %v2795_v44 }
 0x17b   :  { %v1782_v16 = vld [vmem:[#allocation2 + $0x138] sm:$0xf]  ;;  %v4971_v37 = vsel %vm20450_vm14, %v4906_v47, %v2793_v24  ;;  %v5527_v40 = vpop.f32.mrf.mxu0  ;;  %v3017_v18 = vpop.permute.xlu0 %3016  ;;  %v1426_v26 = vsel %vm15167_vm8, %v1028_v12, %v1425_v58  ;;  %1428 = vst.msk [vmem:[#allocation2 + $0x148] sm:$0xf] %vm20487_vm11, %v1037_v4  ;;  %v5038_v7 = vsel %vm20449_vm15, %v4973_v59, %v3019_v14  ;;  %vm20453_vm12 = vcmask 1042434  }
 0x17c   :  { %v1529_v53 = vld [vmem:[#allocation2 + $0x138] sm:$0xf]  ;;  %v5843_v35 = vmax.f32 %v5779_v61, %v5781_v49  ;;  %v5782_v55 = vmax.f32 %v5536_v34, 0.0  ;;  %v5528_v41 = vadd.f32 %v17475_v29, %v5527_v40  ;;  %2551 = vrot.lane.b32.xlu1 %v17419_v39, %s15046_s19  ;;  %v1656_v8 = vld [vmem:[#allocation2 + $0x13c] sm:$0xf]  ;;  %v5036_v45 = vsel %vm20449_vm15, %v4971_v37, %v3017_v18 }
 0x17d   :  { %v17553_v13 = vld [vmem:[#allocation2 + $0x138] sm:$0xe]  ;;  %1427 = vst [vmem:[#allocation2 + $0x144] sm:$0xf] %v1426_v26  ;;  %v17560_v44 = vld [vmem:[#allocation2 + $0x13c] sm:$0xf]  ;;  %4852 = vrot.lane.b32.xlu0 %v17407_v17, %s15045_s18  ;;  %v17565_v15 = vcombine.low %v1655_v22, %v1656_v8  ;;  %v13175_v28 = vcombine.low %v17537_v43, %v1656_v8  ;;  %v3563_v47 = vpop.permute.xlu1 %3562 }
 0x17e   :  { %v17569_v2 = vcombine.low %v1782_v16, %v17560_v44  ;;  %v1429_v24 = vld [vmem:[#allocation2 + $0x14c] sm:$0x1]  ;;  %v17571_v5 = vld [vmem:[#allocation2 + $0x13c] sm:$0xf]  ;;  %v5907_v39 = vcombine.high %v5843_v35, %v5843_v35  ;;  %v5914_v12 = vrot.slane %v5843_v35, %v17372_v62  ;;  %v5780_v56 = vmax.f32 %v5528_v41, 0.0 }
 0x17f   :  { %v1430_v30 = vsel %vm15120_vm2, %v1038_v23, %v1429_v24  ;;  %v17576_v21 = vld [vmem:[#allocation2 + $0x138] sm:$0xe]  ;;  %v5103_v17 = vsel %vm20448_vm0, %v5038_v7, %v3563_v47  ;;  %v3561_v57 = vpop.permute.xlu0 %3560  ;;  %v17579_v49 = vld [vmem:[#allocation2 + $0x140] ss:$0 sps:$4 sm:$0x11]   ;;  %v3425_v51 = vshrl.u32 %v17565_v15, 16  ;;  %v17583_v22 = vcombine.low %v1529_v53, %v17571_v5 }
 0x180   :  { %1431 = vst [vmem:[#allocation2 + $0x14c] sm:$0x1] %v1430_v30  ;;  %v13270_v43 = vcombine.low %v17553_v13, %v17560_v44  ;;  %v5921_v11 = vrot.slane %v5907_v39, %v17372_v62  ;;  %v5922_v61 = vcombine.high %v5914_v12, %v5914_v12  ;;  %v13315_v34 = vrot.slane %v5914_v12, 9  ;;  %2553 = vrot.lane.b32.xlu1 %v17515_v42, %s15046_s19 }
 0x181   :  { %v5844_v14 = vmax.f32 %v5780_v56, %v5782_v55  ;;  %v5101_v4 = vsel %vm20448_vm0, %v5036_v45, %v3561_v57  ;;  %4854 = vrot.lane.b32.xlu0 %v17448_v50, %s15045_s18  ;;  %v3427_v23 = vshll.u32 %v17565_v15, 16  ;;  %v3432_v58 = vshll.u32 %v17579_v49, 16  ;;  %v3819_v26 = vpop.permute.xlu1 %3818 }
 0x182   :  { %v13080_v16 = vcombine.low %v17576_v21, %v17571_v5  ;;  %v5923_v59 = vcombine.high %v5921_v11, %v5921_v11  ;;  %v13316_v37 = vrot.slane %v5922_v61, 9  ;;  %v13317_v40 = vrot.slane %v5921_v11, 9 }
 0x183   :  { %v6963_v18 = vmax.f32 %v5914_v12, %v13315_v34  ;;  %vm20455_vm5 = vcmask 1043459   ;;  %v5924_v42 = vcombine.high %v5844_v14, %v5844_v14  ;;  %v5931_v53 = vrot.slane %v5844_v14, %v17372_v62  ;;  %v3817_v50 = vpop.permute.xlu0 %3816 }
 0x184   :  { %vm7739_vm11 = vcmask 1044484   ;;  %v5168_v35 = vsel %vm20451_vm4, %v5103_v17, %v3819_v26  ;;  %v17599_v55 = vrot.slane %v13175_v28, 1  ;;  %v13318_v7 = vrot.slane %v5923_v59, 9  ;;  %2810 = vrot.lane.b32.xlu1 %v17485_v48, %s15044_s17 }
 0x185   :  { %v6964_v41 = vmax.f32 %v5922_v61, %v13316_v37  ;;  %v6965_v8 = vmax.f32 %v5921_v11, %v13317_v40  ;;  %v13987_v45 = vpack.c.bf16 %v6963_v18, %v6963_v18  ;;  %vm20454_vm0 = vcmask 1045509   ;;  %2808 = vrot.lane.b32.xlu0 %v17507_v27, %s15044_s17  ;;  %v4043_v57 = vpop.permute.xlu1 %4042 }
 0x186   :  { %v5938_v24 = vrot.slane %v5924_v42, %v17372_v62  ;;  %v5939_v39 = vcombine.high %v5931_v53, %v5931_v53  ;;  %v13319_v12 = vrot.slane %v5931_v53, 9  ;;  %v3429_v56 = vrot.slane %v3427_v23, 1 }
 0x187   :  { %v6966_v47 = vmax.f32 %v5923_v59, %v13318_v7  ;;  %v13988_v30 = vpack.c.bf16 %v6964_v41, %v6964_v41  ;;  %v13989_v28 = vpack.c.bf16 %v6965_v8, %v6965_v8  ;;  %v7603_v17 = vunpack.c.l.b16 %v13987_v45  ;;  %v4041_v48 = vpop.permute.xlu0 %4040  ;;  %v17611_v3 = vld [vmem:[#allocation2 + $0x14c] ss:$0 sps:$4 sm:$0x11]  }
 0x188   :  { %vm7745_vm15 = vcmask 1046534   ;;  %v5940_v11 = vcombine.high %v5938_v24, %v5938_v24  ;;  %v13320_v61 = vrot.slane %v5939_v39, 9  ;;  %v13321_v34 = vrot.slane %v5938_v24, 9  ;;  %3034 = vrot.lane.b32.xlu1 %v17565_v15, %s15041_s14 }
 0x189   :  { %v6967_v14 = vmax.f32 %v5931_v53, %v13319_v12  ;;  %vm7748_vm14 = vcmask 1047559   ;;  %v13990_v37 = vpack.c.bf16 %v6966_v47, %v6966_v47  ;;  %v7604_v40 = vunpack.c.l.b16 %v13988_v30  ;;  %3032 = vrot.lane.b32.xlu0 %v17432_v36, %s15041_s14  ;;  %v4587_v45 = vpop.permute.xlu1 %4586 }
 0x18a   :  { %v7605_v18 = vunpack.c.l.b16 %v13989_v28  ;;  %v5166_v26 = vsel %vm20451_vm4, %v5101_v4, %v3817_v50  ;;  %v13322_v27 = vrot.slane %v5940_v11, 9  ;;  %v6968_v23 = vmax.f32 %v5939_v39, %v13320_v61  ;;  %v8015_v4 = vld [vmem:[#allocation3 + $0xc] sm:$0x1] }
 0x18b   :  { %v6969_v59 = vmax.f32 %v5938_v24, %v13321_v34  ;;  %v13991_v42 = vpack.c.bf16 %v6967_v14, %v6967_v14  ;;  %v7606_v7 = vunpack.c.l.b16 %v13990_v37  ;;  %v7731_v41 = vrot.slane %v7603_v17, 7  ;;  %v4585_v50 = vpop.permute.xlu0 %4584  ;;  %v1784_v34 = vld [vmem:[#allocation2 + $0x144] sm:$0xf]  ;;  %v17616_v17 = vld [vmem:[#allocation2 + $0x148] sm:$0xf] }
 0x18c   :  { %v7732_v53 = vrot.slane %v7604_v40, 6  ;;  %v7735_v8 = vrot.slane %v7605_v18, 5  ;;  %v6970_v12 = vmax.f32 %v5940_v11, %v13322_v27  ;;  %v13992_v47 = vpack.c.bf16 %v6968_v23, %v6968_v23 }
 0x18d   :  { %v13993_v30 = vpack.c.bf16 %v6969_v59, %v6969_v59  ;;  %v7607_v28 = vunpack.c.l.b16 %v13991_v42  ;;  %v7738_v24 = vrot.slane %v7606_v7, 4  ;;  %vm20488_vm4 = vcmask 146432   ;;  %3576 = vrot.lane.b32.xlu0 %v17535_v33, %s15047_s20  ;;  %v8012_v33 = vld [vmem:[#allocation3 + $0x8] sm:$0xf] }
 0x18e   :  { %v7734_v39 = vsel %vm20453_vm12, %v7732_v53, %v7731_v41  ;;  %v5233_v61 = vsel %vm20488_vm4, %v5168_v35, %v4043_v57  ;;  %vm20489_vm9 = vmmov %vm20488_vm4  ;;  %v7608_v11 = vunpack.c.l.b16 %v13992_v47  ;;  %v14115_v27 = vpack.c.bf16 %v6970_v12, %v6970_v12  ;;  %v2540_v57 = vpop.permute.xlu1 %2539  ;;  %v17628_v41 = vld [vmem:[#allocation2 + $0x140] ss:$0 sps:$4 sm:$0x11]  }
 0x18f   :  { %v5231_v36 = vsel %vm20489_vm9, %v5166_v26, %v4041_v48  ;;  %v7737_v14 = vsel %vm20455_vm5, %v7735_v8, %v7734_v39  ;;  %v7609_v37 = vunpack.c.l.b16 %v13993_v30  ;;  %v7741_v40 = vrot.slane %v7607_v28, 3  ;;  %v4841_v7 = vpop.permute.xlu0 %4840 }
 0x190   :  { %v7740_v18 = vsel %vm7739_vm11, %v7738_v24, %v7737_v14  ;;  %vm20490_vm12 = vcmask 171008   ;;  %v3430_v35 = vor.u32 %v3429_v56, %v3425_v51  ;;  %v7744_v26 = vrot.slane %v7608_v11, 2  ;;  %v17635_v56 = vld [vmem:[#allocation2 + $0x140] ss:$0 sps:$4 sm:$0x11]  }
 0x191   :  { %v5296_v23 = vsel %vm20490_vm12, %v5231_v36, %v4585_v50  ;;  %v7743_v48 = vsel %vm20454_vm0, %v7741_v40, %v7740_v18  ;;  %v7747_v59 = vrot.slane %v7609_v37, 1  ;;  %v3434_v42 = vrot.slane %v3432_v58, 1  ;;  %vm20491_vm9 = vmmov %vm20490_vm12  ;;  %3832 = vrot.lane.b32.xlu0 %v17540_v54, %s15043_s16 }
 0x192   :  { %v8016_v53 = vsel %vm17291_vm3, %v14115_v27, %v8015_v4  ;;  %v5298_v8 = vsel %vm20491_vm9, %v5233_v61, %v4587_v45  ;;  %vm20492_vm4 = vcmask 195584   ;;  %v3762_v51 = vrot.slane %v17579_v49, 1  ;;  %v2542_v54 = vpop.permute.xlu1 %2541 }
 0x193   :  { %v5361_v15 = vsel %vm20492_vm4, %v5296_v23, %v4841_v7  ;;  %v7746_v12 = vsel %vm7745_vm15, %v7744_v26, %v7743_v48  ;;  %8017 = vst [vmem:[#allocation3 + $0xc] sm:$0x1] %v8016_v53  ;;  %v3435_v58 = vsel %vm2122_vm10, %v3430_v35, %v3434_v42  ;;  %vm20493_vm12 = vcmask 220160   ;;  %v4843_v61 = vpop.permute.xlu0 %4842 }
 0x194   :  { %14365 = vmatprep.mubr.msk.bf16.mxu0 %vm20493_vm12, %v5361_v15  ;;  %v13207_v47 = vcombine.low %v1784_v34, %v17616_v17  ;;  %v4456_v45 = vshll.u32 %v17611_v3, 16  ;;  %v7749_v30 = vsel %vm7748_vm14, %v7747_v59, %v7746_v12  ;;  %vm20494_vm9 = vsmask.f32 7938  ;;  %3578 = vrot.lane.b32.xlu1 %v3435_v58, %s15047_s20 }
 0x195   :  { %vm20495_vm4 = vcmask 257024   ;;  %v4910_v28 = vsel %vm4876_vm13, %v16630_v0, %v2540_v57  ;;  %v4437_v4 = vshrl.u32 %v17569_v2, 16  ;;  %v4439_v50 = vshll.u32 %v17569_v2, 16 }
 0x196   :  { %vm17647_vm0 = vmand %vm20495_vm4, %vm20494_vm9  ;;  %v7945_v39 = vpack.c.b16 %v7749_v30, %v7749_v30  ;;  %vm20498_vm12 = vcmask 1046528   ;;  %v4449_v36 = vshrl.u32 %v13207_v47, 16  ;;  %v4451_v34 = vshll.u32 %v13207_v47, 16 }
 0x197   :  { %v3763_v24 = vsel %vm20498_vm12, %v17599_v55, %v3762_v51 }
 0x198   :  { %16 = vsyncpa [#allocation7], 0  ;;  %vm20499_vm9 = vcmask 195584   ;;  %v4458_v11 = vrot.slane %v4456_v45, 1  ;;  %v4441_v37 = vrot.slane %v4439_v50, 1  ;;  %v4444_v40 = vshll.u32 %v17628_v41, 16  ;;  %v14343_v18 = vpop.f32.mrf.mxu0  ;;  %4056 = vrot.lane.b32.xlu0 %v17569_v2, %s15042_s15  ;;  %3834 = vrot.lane.b32.xlu1 %v3763_v24, %s15043_s16  ;;  %v2799_v57 = vpop.permute.xlu1 %2798 }
 0x199   :  { %v5363_v14 = vsel %vm20499_vm9, %v5298_v8, %v4843_v61  ;;  %v8013_v0 = vsel %vm17647_vm0, %v7945_v39, %v8012_v33  ;;  %vm20500_vm4 = vcmask 220160   ;;  %v4453_v55 = vrot.slane %v4451_v34, 1  ;;  %v1531_v42 = vld [vmem:[#allocation2 + $0x144] sm:$0xf]  ;;  %v17670_v7 = vld [vmem:[#allocation2 + $0x148] sm:$0xf]  ;;  %v2797_v8 = vpop.permute.xlu0 %2796 }
 0x19a   :  { %14366 = vmatmul.mubr.msk.bf16.gmra.mxu0 %vm20500_vm4, %v5363_v14  ;;  %v2412_v27 = vshrl.u32 %v17583_v22, 16  ;;  %v2414_v23 = vshll.u32 %v17583_v22, 16  ;;  %8014 = vst [vmem:[#allocation3 + $0x8] sm:$0xf] %v8013_v0  ;;  %v5549_v35 = vadd.f32 %v14343_v18, %v17475_v29  ;;  %v4442_v48 = vor.u32 %v4441_v37, %v4437_v4  ;;  %v20501_v2 = vld [vmem:[#allocation9_spill] sm:$0xff]  ;;  %v5540_v53 = vpop.f32.mrf.mxu0  ;;  %s15053_s13 = smov 96  }
 0x19b   :  { %v4446_v26 = vrot.slane %v4444_v40, 1  ;;  %v2419_v59 = vshll.u32 %v17635_v56, 16  ;;  %v4912_v33 = vsel %vm4876_vm13, %v20501_v2, %v2542_v54  ;;  %v4454_v15 = vor.u32 %v4453_v55, %v4449_v36  ;;  %v17677_v58 = vld [vmem:[#allocation2 + $0x14c] ss:$0 sps:$4 sm:$0x11]   ;;  %s15057_s22 = smov [#allocation6]  }
 0x19c   :  { %v2416_v51 = vrot.slane %v2414_v23, 1  ;;  %v4782_v12 = vrot.slane %v13270_v43, 1  ;;  %v5785_v45 = vmax.f32 %v5549_v35, 0.0  ;;  %vm20502_vm12 = vcmask 48128   ;;  %v1857_v39 = vld [vmem:[#allocation2 + $0x144] sm:$0xe]  ;;  %v14344_v24 = vpop.f32.mrf.mxu0  ;;  %4058 = vrot.lane.b32.xlu1 %v13207_v47, %s15042_s15  ;;  %v3023_v14 = vpop.permute.xlu1 %3022 }
 0x19d   :  { %v4977_v30 = vsel %vm20502_vm12, %v4912_v33, %v2799_v57  ;;  %v5541_v4 = vadd.f32 %v17475_v29, %v5540_v53  ;;  %v4447_v50 = vsel %vm2122_vm10, %v4442_v48, %v4446_v26  ;;  %vm20503_vm9 = vmmov %vm20502_vm12  ;;  %v2421_v36 = vrot.slane %v2419_v59, 1  ;;  %v3021_v0 = vpop.permute.xlu0 %3020  ;;  %v1602_v35 = vld [vmem:[#allocation2 + $0x144] sm:$0xe] }
 0x19e   :  { %v4975_v54 = vsel %vm20503_vm9, %v4910_v28, %v2797_v8  ;;  %4600 = vrot.lane.b32.xlu0 %v4447_v50, %s15048_s25  ;;  %v2417_v61 = vor.u32 %v2416_v51, %v2412_v27  ;;  %v4783_v13 = vrot.slane %v17628_v41, 1  ;;  %v4459_v43 = vsel %vm2122_vm10, %v4454_v15, %v4458_v11  ;;  %v5543_v40 = vpop.f32.mrf.mxu0  ;;  %v1657_v21 = vld [vmem:[#allocation2 + $0x144] sm:$0xf] }
 0x19f   :  { %v5783_v44 = vmax.f32 %v5541_v4, 0.0  ;;  %v5552_v34 = vadd.f32 %v14344_v24, %v17475_v29  ;;  %v17689_v37 = vcombine.low %v1531_v42, %v17670_v7  ;;  %vm20504_vm4 = vcmask 72704  }
 0x1a0   :  { %v5042_v28 = vsel %vm20504_vm4, %v4977_v30, %v3023_v14  ;;  %vm20505_vm12 = vcmask 1046528   ;;  %v2431_v55 = vshll.u32 %v17677_v58, 16  ;;  %v13271_v41 = vcombine.low %v1857_v39, %v17616_v17  ;;  %vm20506_vm9 = vmmov %vm20504_vm4  ;;  %4602 = vrot.lane.b32.xlu1 %v4459_v43, %s15048_s25  ;;  %v3567_v33 = vpop.permute.xlu1 %3566 }
 0x1a1   :  { %v4784_v18 = vsel %vm20505_vm12, %v4782_v12, %v4783_v13  ;;  %v5845_v47 = vmax.f32 %v5783_v44, %v5785_v45  ;;  %v5786_v27 = vmax.f32 %v5552_v34, 0.0  ;;  %v5544_v11 = vadd.f32 %v17475_v29, %v5543_v40  ;;  %v3565_v15 = vpop.permute.xlu0 %3564 }
 0x1a2   :  { %v2422_v23 = vsel %vm2122_vm10, %v2417_v61, %v2421_v36  ;;  %v5040_v57 = vsel %vm20506_vm9, %v4975_v54, %v3021_v0  ;;  %4856 = vrot.lane.b32.xlu0 %v4784_v18, %s15045_s18  ;;  %v2424_v48 = vshrl.u32 %v17689_v37, 16  ;;  %v2426_v26 = vshll.u32 %v17689_v37, 16 }
 0x1a3   :  { %v4785_v59 = vrot.slane %v13271_v41, 1  ;;  %v5941_v42 = vcombine.high %v5845_v47, %v5845_v47  ;;  %v5948_v2 = vrot.slane %v5845_v47, %v17372_v62  ;;  %v5784_v17 = vmax.f32 %v5544_v11, 0.0 }
 0x1a4   :  { %v4786_v53 = vrot.slane %v17611_v3, 1  ;;  %vm20507_vm4 = vcmask 97280   ;;  %v2428_v51 = vrot.slane %v2426_v26, 1  ;;  %v2433_v12 = vrot.slane %v2431_v55, 1  ;;  %2555 = vrot.lane.b32.xlu1 %v2422_v23, %s15046_s19 }
 0x1a5   :  { %v5107_v8 = vsel %vm20507_vm4, %v5042_v28, %v3567_v33  ;;  %v13081_v45 = vcombine.low %v1602_v35, %v17670_v7  ;;  %v5955_v30 = vrot.slane %v5941_v42, %v17372_v62  ;;  %v5956_v4 = vcombine.high %v5948_v2, %v5948_v2  ;;  %vm20508_vm12 = vmmov %vm20507_vm4  ;;  %v3823_v7 = vpop.permute.xlu1 %3822  ;;  %v3821_v40 = vpop.permute.xlu0 %3820 }
 0x1a6   :  { %v13323_v50 = vrot.slane %v5948_v2, 9  ;;  %v5846_v39 = vmax.f32 %v5784_v17, %v5786_v27  ;;  %v17708_v54 = vsel %vm20508_vm12, %v5040_v57, %v3565_v15  ;;  %v2429_v24 = vor.u32 %v2428_v51, %v2424_v48 }
 0x1a7   :  { %vm20509_vm9 = vcmask 1046528   ;;  %v2744_v3 = vrot.slane %v17677_v58, 1  ;;  %v5957_v36 = vcombine.high %v5955_v30, %v5955_v30  ;;  %v13324_v13 = vrot.slane %v5956_v4, 9 }
 0x1a8   :  { %v4787_v61 = vsel %vm20509_vm9, %v4785_v59, %v4786_v53  ;;  %v13325_v44 = vrot.slane %v5955_v30, 9  ;;  %v6971_v43 = vmax.f32 %v5948_v2, %v13323_v50  ;;  %v5958_v34 = vcombine.high %v5846_v39, %v5846_v39  ;;  %vm20511_vm12 = vmmov %vm20509_vm9 }
 0x1a9   :  { %4858 = vrot.lane.b32.xlu0 %v4787_v61, %s15045_s18  ;;  %v5965_v14 = vrot.slane %v5846_v39, %v17372_v62  ;;  %v2434_v28 = vsel %vm2122_vm10, %v2429_v24, %v2433_v12  ;;  %v2743_v0 = vrot.slane %v13081_v45, 1  ;;  %v13326_v18 = vrot.slane %v5957_v36, 9  ;;  %v4047_v59 = vpop.permute.xlu1 %4046  ;;  %v4045_v53 = vpop.permute.xlu0 %4044 }
 0x1aa   :  { %v6972_v55 = vmax.f32 %v5956_v4, %v13324_v13  ;;  %v6973_v41 = vmax.f32 %v5955_v30, %v13325_v44  ;;  %v13995_v58 = vpack.c.bf16 %v6971_v43, %v6971_v43  ;;  %v5972_v47 = vrot.slane %v5958_v34, %v17372_v62  ;;  %2557 = vrot.lane.b32.xlu1 %v2434_v28, %s15046_s19 }
 0x1ab   :  { %v5973_v27 = vcombine.high %v5965_v14, %v5965_v14  ;;  %v13327_v11 = vrot.slane %v5965_v14, 9  ;;  %vm20510_vm4 = vcmask 121856   ;;  %v6974_v35 = vmax.f32 %v5957_v36, %v13326_v18 }
 0x1ac   :  { %v5172_v23 = vsel %vm20510_vm4, %v5107_v8, %v3823_v7  ;;  %v13996_v57 = vpack.c.bf16 %v6972_v55, %v6972_v55  ;;  %v13997_v48 = vpack.c.bf16 %v6973_v41, %v6973_v41  ;;  %v7611_v26 = vunpack.c.l.b16 %v13995_v58 }
 0x1ad   :  { %v5974_v42 = vcombine.high %v5972_v47, %v5972_v47  ;;  %v13328_v2 = vrot.slane %v5973_v27, 9  ;;  %v13329_v17 = vrot.slane %v5972_v47, 9  ;;  %v6975_v33 = vmax.f32 %v5965_v14, %v13327_v11  ;;  %v4591_v13 = vpop.permute.xlu1 %4590  ;;  %v4589_v14 = vpop.permute.xlu0 %4588  ;;  %v599_v11 = vld [vmem:[%s20424_s0 + $0xcc] sm:$0xf] }
 0x1ae   :  { %v13998_v15 = vpack.c.bf16 %v6974_v35, %v6974_v35  ;;  %v7612_v51 = vunpack.c.l.b16 %v13996_v57  ;;  %v7613_v12 = vunpack.c.l.b16 %v13997_v48  ;;  %v7750_v45 = vrot.slane %v7611_v26, 7 }
 0x1af   :  { %v13330_v30 = vrot.slane %v5974_v42, 9  ;;  %v6976_v4 = vmax.f32 %v5973_v27, %v13328_v2  ;;  %v6977_v50 = vmax.f32 %v5972_v47, %v13329_v17  ;;  %v13999_v8 = vpack.c.bf16 %v6975_v33, %v6975_v33  ;;  %v8021_v27 = vld [vmem:[#allocation3 + $0x14] sm:$0x1] }
 0x1b0   :  { %v7614_v39 = vunpack.c.l.b16 %v13998_v15  ;;  %v7751_v24 = vrot.slane %v7612_v51, 6  ;;  %v7753_v61 = vrot.slane %v7613_v12, 5  ;;  %v2745_v36 = vsel %vm20511_vm12, %v2743_v0, %v2744_v3 }
 0x1b1   :  { %v6978_v44 = vmax.f32 %v5974_v42, %v13330_v30  ;;  %v14000_v43 = vpack.c.bf16 %v6976_v4, %v6976_v4  ;;  %v14001_v7 = vpack.c.bf16 %v6977_v50, %v6977_v50  ;;  %v7615_v34 = vunpack.c.l.b16 %v13999_v8  ;;  %2814 = vrot.lane.b32.xlu1 %v2745_v36, %s15044_s17  ;;  %v4845_v33 = vpop.permute.xlu0 %4844  ;;  %v1432_v8 = vld [vmem:[#allocation2 + $0x150] sm:$0xf] }
 0x1b2   :  { %vm20512_vm9 = vcmask 1042434   ;;  %v7755_v18 = vrot.slane %v7614_v39, 4  ;;  %v2740_v55 = vrot.slane %v13080_v16, 1  ;;  %v2741_v41 = vrot.slane %v17635_v56, 1  ;;  %v1658_v16 = vld [vmem:[#allocation2 + $0x148] sm:$0xf]  ;;  %v2544_v56 = vpop.permute.xlu1 %2543 }
 0x1b3   :  { %v7752_v28 = vsel %vm20512_vm9, %v7751_v24, %v7750_v45  ;;  %v7616_v3 = vunpack.c.l.b16 %v14000_v43  ;;  %v7617_v0 = vunpack.c.l.b16 %v14001_v7  ;;  %v7757_v47 = vrot.slane %v7615_v34, 3  ;;  %v252_v45 = vld [vmem:[#allocation2 + $0x158] sm:$0x1]  ;;  %v8018_v24 = vld [vmem:[#allocation3 + $0x10] sm:$0xf] }
 0x1b4   :  { %v7754_v58 = vsel %vm20455_vm5, %v7753_v61, %v7752_v28  ;;  %v14116_v57 = vpack.c.bf16 %v6978_v44, %v6978_v44  ;;  %v5170_v48 = vsel %vm20510_vm4, %v17708_v54, %v3821_v40  ;;  %v2742_v5 = vsel %vm20511_vm12, %v2740_v55, %v2741_v41  ;;  %v1729_v28 = vld [vmem:[#allocation2 + $0x144] sm:$0xe] }
 0x1b5   :  { %v7756_v35 = vsel %vm7739_vm11, %v7755_v18, %v7754_v58  ;;  %vm20513_vm9 = vcmask 1045509   ;;  %v7759_v42 = vrot.slane %v7616_v3, 2  ;;  %v7761_v2 = vrot.slane %v7617_v0, 1  ;;  %2812 = vrot.lane.b32.xlu0 %v2742_v5, %s15044_s17  ;;  %v4847_v18 = vpop.permute.xlu0 %4846  ;;  %v145_v0 = vld [vmem:[#allocation2 + $0x15c] sm:$0x1] }
 0x1b6   :  { %v7758_v26 = vsel %vm20513_vm9, %v7757_v47, %v7756_v35  ;;  %vm20514_vm5 = vcmask 146432   ;;  %v8022_v15 = vsel %vm17291_vm3, %v14116_v57, %v8021_v27  ;;  %v20515_v51 = vshrl.u32 %v17530_v6, 16  ;;  %v14347_v35 = vpop.f32.mrf.mxu0  ;;  %v20520_v5 = vld [vmem:[#allocation10_spill] sm:$0xff] }
 0x1b7   :  { %v5237_v17 = vsel %vm20514_vm5, %v5172_v23, %v4047_v59  ;;  %v1043_v40 = vshll.u32 %v17530_v6, 16  ;;  %v1048_v12 = vshrl.u32 %v599_v11, 16  ;;  %v7760_v30 = vsel %vm7745_vm15, %v7759_v42, %v7758_v26  ;;  %8023 = vst [vmem:[#allocation3 + $0x14] sm:$0x1] %v8022_v15  ;;  %vm20516_vm4 = vmmov %vm20514_vm5  ;;  %v2546_v6 = vpop.permute.xlu1 %2545  ;;  %v601_v42 = vld [vmem:[%s20424_s0 + $0xd4] sm:$0xf] }
 0x1b8   :  { %v1042_v54 = vrot.slane %v20515_v51, 7  ;;  %v5235_v4 = vsel %vm20516_vm4, %v5170_v48, %v4045_v53  ;;  %v1051_v50 = vshll.u32 %v599_v11, 16  ;;  %v13112_v39 = vcombine.low %v1657_v21, %v1658_v16  ;;  %v17744_v23 = vld [vmem:[#allocation2 + $0x14c] ss:$0 sps:$4 sm:$0x11]  }
 0x1b9   :  { %v7762_v59 = vsel %vm7748_vm14, %v7761_v2, %v7760_v30  ;;  %v17747_v44 = vrot.slane %v1048_v12, 7  ;;  %vm20517_vm5 = vcmask 171008   ;;  %v253_v34 = vsel %vm15155_vm7, 0, %v252_v45  ;;  %v600_v11 = vld [vmem:[%s20424_s0 + $0xd0] sm:$0xf] }
 0x1ba   :  { %v1045_v61 = vor.u32 %v1043_v40, %v1042_v54  ;;  %v1046_v36 = vrot.slane %v1042_v54, 4  ;;  %v7947_v43 = vpack.c.b16 %v7762_v59, %v7762_v59  ;;  %3036 = vrot.lane.b32.xlu0 %v13112_v39, %s15041_s14  ;;  %v5302_v7 = vsel %vm20517_vm5, %v5237_v17, %v4591_v13  ;;  %vm20518_vm12 = vmmov %vm20517_vm5  ;;  %254 = vst [vmem:[#allocation2 + $0x158] sm:$0x1] %v253_v34  ;;  %v5556_v54 = vpop.f32.mrf.mxu0  ;;  %v255_v30 = vld [vmem:[#allocation2 + $0x164] sm:$0x1] }
 0x1bb   :  { %v5300_v53 = vsel %vm20518_vm12, %v5235_v4, %v4589_v14  ;;  %v1053_v55 = vor.u32 %v1051_v50, %v17747_v44  ;;  %v3437_v58 = vshrl.u32 %v13112_v39, 16  ;;  %v3439_v3 = vshll.u32 %v13112_v39, 16  ;;  %v2803_v2 = vpop.permute.xlu1 %2802 }
 0x1bc   :  { %v1433_v41 = vsel %vm15167_vm8, %v1045_v61, %v1432_v8  ;;  %v8019_v47 = vsel %vm17647_vm0, %v7947_v43, %v8018_v24  ;;  %v1055_v13 = vrot.slane %v17747_v44, 4  ;;  %v3444_v14 = vshll.u32 %v17744_v23, 16  ;;  %v298_v43 = vld [vmem:[#allocation3 + $0x18] sm:$0x1] }
 0x1bd   :  { %1434 = vst [vmem:[#allocation2 + $0x150] sm:$0xf] %v1433_v41  ;;  %vm20519_vm9 = vcmask 195584   ;;  %8020 = vst [vmem:[#allocation3 + $0x10] sm:$0xf] %v8019_v47  ;;  %v1054_v57 = vsel %vm15144_vm6, %v1046_v36, %v1053_v55  ;;  %v3441_v48 = vrot.slane %v3439_v3, 1  ;;  %v4914_v21 = vsel %vm4876_vm13, %v20520_v5, %v2544_v56  ;;  %v2801_v56 = vpop.permute.xlu0 %2800 }
 0x1be   :  { %v5365_v27 = vsel %vm20519_vm9, %v5300_v53, %v4845_v33  ;;  %v13176_v26 = vcombine.low %v1729_v28, %v1658_v16  ;;  %vm20521_vm4 = vcmask 220160   ;;  %vm20522_vm5 = vcmask 19456   ;;  %vm20523_vm12 = vmmov %vm20519_vm9 }
 0x1bf   :  { %14369 = vmatprep.mubr.msk.bf16.mxu0 %vm20521_vm4, %v5365_v27  ;;  %1435 = vst.msk [vmem:[#allocation2 + $0x154] sm:$0xf] %vm20522_vm5, %v1054_v57  ;;  %v3446_v17 = vrot.slane %v3444_v14, 1  ;;  %v3765_v33 = vrot.slane %v17744_v23, 1  ;;  %v5367_v15 = vsel %vm20523_vm12, %v5302_v7, %v4847_v18  ;;  %v146_v51 = vsel %vm15120_vm2, 0, %v145_v0  ;;  %vm20524_vm9 = vmmov %vm20521_vm4  ;;  %v14348_v23 = vpop.f32.mrf.mxu0  ;;  %v3027_v44 = vpop.permute.xlu1 %3026 }
 0x1c0   :  { %v3442_v16 = vor.u32 %v3441_v48, %v3437_v58  ;;  %v3764_v40 = vrot.slane %v13176_v26, 1  ;;  %147 = vst [vmem:[#allocation2 + $0x15c] sm:$0x1] %v146_v51  ;;  %v1057_v12 = vshrl.u32 %v600_v11, 16  ;;  %v1060_v45 = vshll.u32 %v600_v11, 16  ;;  %14370 = vmatmul.mubr.msk.bf16.gmra.mxu0 %vm20524_vm9, %v5367_v15 }
 0x1c1   :  { %v4916_v4 = vsel %vm4876_vm13, %v16877_v9, %v2546_v6  ;;  %v1065_v50 = vshrl.u32 %v601_v42, 16  ;;  %v1068_v8 = vshll.u32 %v601_v42, 16  ;;  %v5565_v39 = vadd.f32 %v14347_v35, %v17475_v29  ;;  %v359_v7 = vld [vmem:[#allocation3 + $0x1c] sm:$0x1]  ;;  %v1436_v53 = vld [vmem:[#allocation2 + $0x158] sm:$0x1]  ;;  %v5559_v18 = vpop.f32.mrf.mxu0  ;;  %v3025_v55 = vpop.permute.xlu0 %3024 }
 0x1c2   :  { %v3447_v59 = vsel %vm2122_vm10, %v3442_v16, %v3446_v17  ;;  %v1059_v24 = vrot.slane %v1057_v12, 7  ;;  %vm20525_vm4 = vcmask 48128   ;;  %v5557_v36 = vadd.f32 %v17475_v29, %v5556_v54 }
 0x1c3   :  { %v4981_v61 = vsel %vm20525_vm4, %v4916_v4, %v2803_v2  ;;  %3580 = vrot.lane.b32.xlu0 %v3447_v59, %s15047_s20  ;;  %vm20526_vm5 = vcmask 1046528   ;;  %v17787_v6 = vrot.slane %v1065_v50, 7  ;;  %v5789_v34 = vmax.f32 %v5565_v39, 0.0  ;;  %vm20527_vm12 = vmmov %vm20525_vm4 }
 0x1c4   :  { %v3766_v9 = vsel %vm20526_vm5, %v3764_v40, %v3765_v33  ;;  %v256_v28 = vsel %vm15155_vm7, 0, %v255_v30  ;;  %v1659_v41 = vld [vmem:[#allocation2 + $0x150] sm:$0xf]  ;;  %v1437_v58 = vsel %vm15120_vm2, %v1055_v13, %v1436_v53  ;;  %v1062_v0 = vor.u32 %v1060_v45, %v1059_v24  ;;  %v17804_v33 = vpop.permute.xlu1 %3570 }
 0x1c5   :  { %v1730_v3 = vld [vmem:[#allocation2 + $0x150] sm:$0xe]  ;;  %v1063_v47 = vrot.slane %v1059_v24, 4  ;;  %v5787_v14 = vmax.f32 %v5557_v36, 0.0  ;;  %257 = vst [vmem:[#allocation2 + $0x164] sm:$0x1] %v256_v28  ;;  %v1070_v27 = vor.u32 %v1068_v8, %v17787_v6  ;;  %v4979_v57 = vsel %vm20527_vm12, %v4914_v21, %v2801_v56  ;;  %v17810_v16 = vpop.permute.xlu0 %3568 }
 0x1c6   :  { %1438 = vst [vmem:[#allocation2 + $0x158] sm:$0x1] %v1437_v58  ;;  %v1072_v11 = vrot.slane %v17787_v6, 4  ;;  %v1786_v35 = vld [vmem:[#allocation2 + $0x150] sm:$0xf]  ;;  %v5568_v48 = vadd.f32 %v14348_v23, %v17475_v29  ;;  %v299_v13 = vsel %vm17291_vm3, 0, %v298_v43  ;;  %v5560_v17 = vadd.f32 %v17475_v29, %v5559_v18 }
 0x1c7   :  { %v1660_v5 = vld [vmem:[#allocation2 + $0x154] sm:$0xf]  ;;  %v5847_v42 = vmax.f32 %v5787_v14, %v5789_v34  ;;  %v360_v2 = vsel %vm17316_vm1, 0, %v359_v7  ;;  %3836 = vrot.lane.b32.xlu0 %v3766_v9, %s15043_s16  ;;  %v1071_v21 = vsel %vm15144_vm6, %v1063_v47, %v1070_v27  ;;  %v1439_v54 = vld [vmem:[#allocation2 + $0x15c] sm:$0xf]  ;;  %vm20528_vm9 = vcmask 19456  }
 0x1c8   :  { %v17797_v26 = vld [vmem:[#allocation2 + $0x154] sm:$0xf]  ;;  %v13113_v15 = vcombine.low %v1659_v41, %v1660_v5  ;;  %v13177_v51 = vcombine.low %v1730_v3, %v1660_v5  ;;  %300 = vst [vmem:[#allocation3 + $0x18] sm:$0x1] %v299_v13  ;;  %361 = vst [vmem:[#allocation3 + $0x1c] sm:$0x1] %v360_v2  ;;  %v1440_v40 = vsel %vm15167_vm8, %v1062_v0, %v1439_v54  ;;  %v17823_v7 = vpop.permute.xlu1 %3826 }
 0x1c9   :  { %v13208_v56 = vcombine.low %v1786_v35, %v17797_v26  ;;  %1442 = vst.msk [vmem:[#allocation2 + $0x160] sm:$0xf] %vm20528_vm9, %v1071_v21  ;;  %v5975_v29 = vcombine.high %v5847_v42, %v5847_v42  ;;  %v5982_v12 = vrot.slane %v5847_v42, %v17372_v62  ;;  %vm20529_vm4 = vcmask 72704   ;;  %1441 = vst [vmem:[#allocation2 + $0x15c] sm:$0xf] %v1440_v40  ;;  %v17829_v34 = vpop.permute.xlu0 %3824 }
 0x1ca   :  { %v17817_v45 = vsel %vm20529_vm4, %v4981_v61, %v3027_v44  ;;  %3038 = vrot.lane.b32.xlu1 %v13113_v15, %s15041_s14  ;;  %v3449_v30 = vshrl.u32 %v13113_v15, 16  ;;  %v3451_v4 = vshll.u32 %v13113_v15, 16  ;;  %v3767_v50 = vrot.slane %v13177_v51, 1  ;;  %v1533_v36 = vld [vmem:[#allocation2 + $0x150] sm:$0xf]  ;;  %vm20530_vm5 = vmmov %vm20529_vm4 }
 0x1cb   :  { %v5790_v8 = vmax.f32 %v5568_v48, 0.0  ;;  %v5989_v39 = vrot.slane %v5975_v29, %v17372_v62  ;;  %v5990_v23 = vcombine.high %v5982_v12, %v5982_v12  ;;  %v13331_v59 = vrot.slane %v5982_v12, 9  ;;  %v17821_v43 = vld [vmem:[#allocation2 + $0x154] sm:$0xf]  ;;  %4060 = vrot.lane.b32.xlu0 %v13208_v56, %s15042_s15 }
 0x1cc   :  { %v4461_v24 = vshrl.u32 %v13208_v56, 16  ;;  %v3453_v53 = vrot.slane %v3451_v4, 1  ;;  %v1443_v61 = vld [vmem:[#allocation2 + $0x164] sm:$0x1]  ;;  %v4463_v44 = vshll.u32 %v13208_v56, 16  ;;  %v5788_v9 = vmax.f32 %v5560_v17, 0.0  ;;  %v17838_v42 = vpop.permute.xlu1 %4050 }
 0x1cd   :  { %v17827_v6 = vsel %vm20530_vm5, %v4979_v57, %v3025_v55  ;;  %v14683_v28 = vld [vmem:[#allocation2 + $0x158] ss:$0 sps:$4 sm:$0x11]   ;;  %v5991_v18 = vcombine.high %v5989_v39, %v5989_v39  ;;  %v13332_v41 = vrot.slane %v5990_v23, 9  ;;  %v6979_v58 = vmax.f32 %v5982_v12, %v13331_v59  ;;  %v17843_v51 = vpop.permute.xlu0 %4048 }
 0x1ce   :  { %v1444_v3 = vsel %vm15120_vm2, %v1072_v11, %v1443_v61  ;;  %v3454_v0 = vor.u32 %v3453_v53, %v3449_v30  ;;  %v13333_v47 = vrot.slane %v5989_v39, 9  ;;  %v17833_v14 = vld [vmem:[#allocation2 + $0x158] ss:$0 sps:$4 sm:$0x11]   ;;  %v5848_v27 = vmax.f32 %v5788_v9, %v5790_v8  ;;  %v1858_v53 = vld [vmem:[#allocation2 + $0x150] sm:$0xe] }
 0x1cf   :  { %1445 = vst [vmem:[#allocation2 + $0x164] sm:$0x1] %v1444_v3  ;;  %v17836_v35 = vcombine.low %v1533_v36, %v17821_v43  ;;  %v3456_v55 = vshll.u32 %v14683_v28, 16  ;;  %v3768_v57 = vrot.slane %v14683_v28, 1  ;;  %v13334_v48 = vrot.slane %v5991_v18, 9 }
 0x1d0   :  { %v6980_v5 = vmax.f32 %v5990_v23, %v13332_v41  ;;  %v17840_v13 = vld [vmem:[#allocation2 + $0x160] sm:$0xf]  ;;  %v6981_v2 = vmax.f32 %v5989_v39, %v13333_v47  ;;  %v14003_v17 = vpack.c.bf16 %v6979_v58, %v6979_v58  ;;  %v4465_v11 = vrot.slane %v4463_v44, 1  ;;  %v1788_v56 = vld [vmem:[#allocation2 + $0x15c] sm:$0xf]  ;;  %v17848_v61 = vpop.permute.xlu1 %4594 }
 0x1d1   :  { %v4468_v15 = vshll.u32 %v17833_v14, 16  ;;  %v3458_v21 = vrot.slane %v3456_v55, 1  ;;  %vm20531_vm12 = vcmask 1046528   ;;  %v6982_v40 = vmax.f32 %v5991_v18, %v13334_v48  ;;  %v17851_v18 = vld [vmem:[#allocation2 + $0x158] ss:$0 sps:$4 sm:$0x11]   ;;  %v17853_v41 = vpop.permute.xlu0 %4592 }
 0x1d2   :  { %v3769_v54 = vsel %vm20531_vm12, %v3767_v50, %v3768_v57  ;;  %v14004_v29 = vpack.c.bf16 %v6980_v5, %v6980_v5  ;;  %v13209_v12 = vcombine.low %v1788_v56, %v17840_v13  ;;  %v14005_v30 = vpack.c.bf16 %v6981_v2, %v6981_v2 }
 0x1d3   :  { %v7619_v4 = vunpack.c.l.b16 %v14003_v17  ;;  %v4466_v8 = vor.u32 %v4465_v11, %v4461_v24  ;;  %v3459_v23 = vsel %vm2122_vm10, %v3454_v0, %v3458_v21  ;;  %v14006_v39 = vpack.c.bf16 %v6982_v40, %v6982_v40 }
 0x1d4   :  { %v7620_v59 = vunpack.c.l.b16 %v14004_v29  ;;  %v4470_v36 = vrot.slane %v4468_v15, 1  ;;  %3582 = vrot.lane.b32.xlu1 %v3459_v23, %s15047_s20  ;;  %v7621_v44 = vunpack.c.l.b16 %v14005_v30  ;;  %v4473_v9 = vshrl.u32 %v13209_v12, 16  ;;  %v17864_v21 = vpop.permute.xlu1 %2547 }
 0x1d5   :  { %v7763_v50 = vrot.slane %v7619_v4, 7  ;;  %v4475_v28 = vshll.u32 %v13209_v12, 16  ;;  %v7622_v58 = vunpack.c.l.b16 %v14006_v39  ;;  %v5992_v47 = vcombine.high %v5848_v27, %v5848_v27 }
 0x1d6   :  { %v7764_v24 = vrot.slane %v7620_v59, 6  ;;  %v17855_v3 = vld [vmem:[#allocation2 + $0x164] ss:$0 sps:$4 sm:$0x11]   ;;  %v4471_v0 = vsel %vm2122_vm10, %v4466_v8, %v4470_v36  ;;  %v7766_v55 = vrot.slane %v7621_v44, 5  ;;  %v5999_v48 = vrot.slane %v5848_v27, %v17372_v62  ;;  %v17869_v27 = vpop.permute.xlu0 %4848 }
 0x1d7   :  { %v4477_v57 = vrot.slane %v4475_v28, 1  ;;  %4604 = vrot.lane.b32.xlu0 %v4471_v0, %s15048_s25  ;;  %v13272_v5 = vcombine.low %v1858_v53, %v17797_v26  ;;  %vm20532_vm9 = vcmask 1042434   ;;  %v7768_v17 = vrot.slane %v7622_v58, 4  ;;  %v1535_v58 = vld [vmem:[#allocation2 + $0x15c] sm:$0xf] }
 0x1d8   :  { %v7765_v2 = vsel %vm20532_vm9, %v7764_v24, %v7763_v50  ;;  %v4480_v11 = vshll.u32 %v17855_v3, 16  ;;  %v6006_v15 = vrot.slane %v5992_v47, %v17372_v62  ;;  %3838 = vrot.lane.b32.xlu1 %v3769_v54, %s15043_s16  ;;  %vm20533_vm4 = vcmask 1043459   ;;  %v17874_v24 = vld [vmem:[#allocation2 + $0x160] sm:$0xf]  ;;  %v17876_v0 = vpop.permute.xlu1 %2549 }
 0x1d9   :  { %v7767_v56 = vsel %vm20533_vm4, %v7766_v55, %v7765_v2  ;;  %v6007_v40 = vcombine.high %v5999_v48, %v5999_v48  ;;  %v13335_v29 = vrot.slane %v5999_v48, 9  ;;  %v2436_v30 = vshrl.u32 %v17836_v35, 16 }
 0x1da   :  { %v4478_v26 = vor.u32 %v4477_v57, %v4473_v9  ;;  %v4482_v4 = vrot.slane %v4480_v11, 1  ;;  %v6008_v8 = vcombine.high %v6006_v15, %v6006_v15  ;;  %v13337_v23 = vrot.slane %v6006_v15, 9  ;;  %v17881_v2 = vpop.permute.xlu0 %4850 }
 0x1db   :  { %v13336_v39 = vrot.slane %v6007_v40, 9  ;;  %v6983_v59 = vmax.f32 %v5999_v48, %v13335_v29  ;;  %v2438_v36 = vshll.u32 %v17836_v35, 16  ;;  %v2443_v53 = vshll.u32 %v17851_v18, 16  ;;  %v17879_v48 = vld [vmem:[#allocation2 + $0x164] ss:$0 sps:$4 sm:$0x11]  }
 0x1dc   :  { %v13338_v44 = vrot.slane %v6008_v8, 9  ;;  %v6985_v54 = vmax.f32 %v6006_v15, %v13337_v23  ;;  %v7769_v50 = vsel %vm7739_vm11, %v7768_v17, %v7767_v56  ;;  %v4788_v28 = vrot.slane %v13272_v5, 1  ;;  %4062 = vrot.lane.b32.xlu1 %v13209_v12, %s15042_s15  ;;  %v8027_v23 = vld [vmem:[#allocation3 + $0x1c] sm:$0x1] }
 0x1dd   :  { %v6984_v9 = vmax.f32 %v6007_v40, %v13336_v39  ;;  %v14007_v47 = vpack.c.bf16 %v6983_v59, %v6983_v59  ;;  %v2440_v55 = vrot.slane %v2438_v36, 1  ;;  %v2445_v57 = vrot.slane %v2443_v53, 1 }
 0x1de   :  { %v4483_v11 = vsel %vm2122_vm10, %v4478_v26, %v4482_v4  ;;  %v6986_v15 = vmax.f32 %v6008_v8, %v13338_v44  ;;  %v14009_v17 = vpack.c.bf16 %v6985_v54, %v6985_v54  ;;  %v4789_v5 = vrot.slane %v17833_v14, 1  ;;  %v1859_v26 = vld [vmem:[#allocation2 + $0x15c] sm:$0xe]  ;;  %v17892_v4 = vpop.permute.xlu1 %2806 }
 0x1df   :  { %v14008_v56 = vpack.c.bf16 %v6984_v9, %v6984_v9  ;;  %v7623_v29 = vunpack.c.l.b16 %v14007_v47  ;;  %v2441_v46 = vor.u32 %v2440_v55, %v2436_v30  ;;  %vm20534_vm5 = vcmask 97280  }
 0x1e0   :  { %v5111_v12 = vsel %vm20534_vm5, %v17817_v45, %v17804_v33  ;;  %v7625_v40 = vunpack.c.l.b16 %v14009_v17  ;;  %v14117_v39 = vpack.c.bf16 %v6986_v15, %v6986_v15  ;;  %v4790_v59 = vsel %vm20531_vm12, %v4788_v28, %v4789_v5  ;;  %4606 = vrot.lane.b32.xlu1 %v4483_v11, %s15048_s25  ;;  %v17898_v45 = vpop.permute.xlu0 %2804  ;;  %vm20537_vm4 = vmmov %vm20534_vm5 }
 0x1e1   :  { %v17890_v36 = vcombine.low %v1535_v58, %v17874_v24  ;;  %v7624_v14 = vunpack.c.l.b16 %v14008_v56  ;;  %v7770_v8 = vrot.slane %v7623_v29, 3  ;;  %v2446_v30 = vsel %vm2122_vm10, %v2441_v46, %v2445_v57  ;;  %4860 = vrot.lane.b32.xlu0 %v4790_v59, %s15045_s18  ;;  %v1604_v58 = vld [vmem:[#allocation2 + $0x15c] sm:$0xe]  ;;  %v1603_v57 = vld [vmem:[#allocation2 + $0x150] sm:$0xe] }
 0x1e2   :  { %v2455_v33 = vshll.u32 %v17879_v48, 16  ;;  %v7774_v53 = vrot.slane %v7625_v40, 1  ;;  %v8028_v44 = vsel %vm17291_vm3, %v14117_v39, %v8027_v23  ;;  %vm20536_vm9 = vcmask 1045509   ;;  %v148_v56 = vld [vmem:[#allocation2 + $0x168] sm:$0x1]  ;;  %v17912_v29 = vpop.permute.xlu1 %3030 }
 0x1e3   :  { %20535 = vst [vmem:[#allocation9_spill] sm:$0xff] %v17890_v36  ;;  %v2448_v54 = vshrl.u32 %v17890_v36, 16  ;;  %v2450_v28 = vshll.u32 %v17890_v36, 16  ;;  %v7771_v9 = vsel %vm20536_vm9, %v7770_v8, %v7769_v50  ;;  %v7772_v47 = vrot.slane %v7624_v14, 2  ;;  %8029 = vst [vmem:[#allocation3 + $0x1c] sm:$0x1] %v8028_v44 }
 0x1e4   :  { %v5109_v46 = vsel %vm20537_vm4, %v17827_v6, %v17810_v16  ;;  %v13273_v55 = vcombine.low %v1859_v26, %v17840_v13  ;;  %v2457_v15 = vrot.slane %v2455_v33, 1  ;;  %v4792_v17 = vrot.slane %v17855_v3, 1  ;;  %2559 = vrot.lane.b32.xlu1 %v2446_v30, %s15046_s19  ;;  %v602_v13 = vld [vmem:[%s20424_s0 + $0xd8] sm:$0xf]  ;;  %v17924_v3 = vpop.permute.xlu0 %3028  ;;  %v8024_v40 = vld [vmem:[#allocation3 + $0x18] sm:$0xf] }
 0x1e5   :  { %v2452_v11 = vrot.slane %v2450_v28, 1  ;;  %vm20538_vm5 = vcmask 121856   ;;  %v7773_v50 = vsel %vm7745_vm15, %v7772_v47, %v7771_v9  ;;  %v13083_v16 = vcombine.low %v1604_v58, %v17874_v24  ;;  %v258_v26 = vld [vmem:[#allocation2 + $0x170] sm:$0x1]  ;;  %v1661_v33 = vld [vmem:[#allocation2 + $0x15c] sm:$0xf]  ;;  %v17940_v58 = vpop.f32.mrf.mxu0 }
 0x1e6   :  { %v5176_v5 = vsel %vm20538_vm5, %v5111_v12, %v17823_v7  ;;  %v4791_v23 = vrot.slane %v13273_v55, 1  ;;  %v2750_v6 = vrot.slane %v17879_v48, 1  ;;  %v603_v7 = vld [vmem:[%s20424_s0 + $0xdc] sm:$0xf]  ;;  %v7775_v12 = vsel %vm7748_vm14, %v7774_v53, %v7773_v50  ;;  %vm20539_vm9 = vmmov %vm20538_vm5  ;;  %v1662_v44 = vld [vmem:[#allocation2 + $0x160] sm:$0xf]  ;;  %v17942_v9 = vpop.permute.xlu1 %3574 }
 0x1e7   :  { %v2453_v39 = vor.u32 %v2452_v11, %v2448_v54  ;;  %v13082_v59 = vcombine.low %v1603_v57, %v17821_v43  ;;  %v2747_v24 = vrot.slane %v17851_v18, 1  ;;  %v7949_v48 = vpack.c.b16 %v7775_v12, %v7775_v12  ;;  %v17938_v54 = vld [vmem:[#allocation2 + $0x164] ss:$0 sps:$4 sm:$0x11]   ;;  %vm20541_vm5 = vmmov %vm20531_vm12 }
 0x1e8   :  { %v4793_v14 = vsel %vm20531_vm12, %v4791_v23, %v4792_v17  ;;  %v5174_v8 = vsel %vm20539_vm9, %v5109_v46, %v17829_v34  ;;  %v2749_v30 = vrot.slane %v13083_v16, 1  ;;  %vm20540_vm4 = vcmask 146432   ;;  %vm20542_vm12 = vmmov %vm20541_vm5 }
 0x1e9   :  { %v2458_v28 = vsel %vm2122_vm10, %v2453_v39, %v2457_v15  ;;  %4862 = vrot.lane.b32.xlu0 %v4793_v14, %s15045_s18  ;;  %v2746_v53 = vrot.slane %v13082_v59, 1  ;;  %v5239_v43 = vsel %vm20540_vm4, %v5174_v8, %v17843_v51  ;;  %v149_v18 = vsel %vm15120_vm2, 0, %v148_v56  ;;  %v17948_v51 = vpop.permute.xlu0 %3572  ;;  %vm20543_vm9 = vmmov %vm20540_vm4  ;;  %v5572_v39 = vpop.f32.mrf.mxu0 }
 0x1ea   :  { %v8025_v34 = vsel %vm17647_vm0, %v7949_v48, %v8024_v40  ;;  %2561 = vrot.lane.b32.xlu1 %v2458_v28, %s15046_s19  ;;  %v2751_v47 = vsel %vm20541_vm5, %v2749_v30, %v2750_v6  ;;  %150 = vst [vmem:[#allocation2 + $0x168] sm:$0x1] %v149_v18  ;;  %v1074_v46 = vshrl.u32 %v602_v13, 16  ;;  %v1077_v55 = vshll.u32 %v602_v13, 16  ;;  %v17967_v48 = vpop.permute.xlu1 %3830 }
 0x1eb   :  { %8026 = vst [vmem:[#allocation3 + $0x18] sm:$0xf] %v8025_v34  ;;  %v2748_v57 = vsel %vm20542_vm12, %v2746_v53, %v2747_v24  ;;  %v1082_v11 = vshrl.u32 %v603_v7, 16  ;;  %v1085_v15 = vshll.u32 %v603_v7, 16  ;;  %v13114_v17 = vcombine.low %v1661_v33, %v1662_v44  ;;  %v1731_v7 = vld [vmem:[#allocation2 + $0x15c] sm:$0xe] }
 0x1ec   :  { %v5241_v56 = vsel %vm20543_vm9, %v5176_v5, %v17838_v42  ;;  %v1076_v50 = vrot.slane %v1074_v46, 7  ;;  %vm20544_vm4 = vcmask 171008   ;;  %v259_v16 = vsel %vm15155_vm7, 0, %v258_v26  ;;  %v151_v24 = vld [vmem:[#allocation2 + $0x174] sm:$0x1] }
 0x1ed   :  { %v5304_v23 = vsel %vm20544_vm4, %v5239_v43, %v17853_v41  ;;  %2816 = vrot.lane.b32.xlu0 %v2748_v57, %s15044_s17  ;;  %v1084_v6 = vrot.slane %v1082_v11, 7  ;;  %260 = vst [vmem:[#allocation2 + $0x170] sm:$0x1] %v259_v16  ;;  %v3461_v13 = vshrl.u32 %v13114_v17, 16  ;;  %v3463_v12 = vshll.u32 %v13114_v17, 16  ;;  %vm20545_vm5 = vmmov %vm20544_vm4  ;;  %v17969_v14 = vpop.permute.xlu0 %3828 }
 0x1ee   :  { %v3468_v40 = vshll.u32 %v17938_v54, 16  ;;  %2818 = vrot.lane.b32.xlu1 %v2751_v47, %s15044_s17  ;;  %v1079_v42 = vor.u32 %v1077_v55, %v1076_v50  ;;  %v1080_v5 = vrot.slane %v1076_v50, 4  ;;  %v5306_v41 = vsel %vm20545_vm5, %v5241_v56, %v17848_v61  ;;  %v604_v26 = vld [vmem:[%s20424_s0 + $0xe0] sm:$0xf]  ;;  %v605_v61 = vld [vmem:[%s20424_s0 + $0xe4] sm:$0xf]  ;;  %v14352_v55 = vpop.f32.mrf.mxu0 }
 0x1ef   :  { %vm20546_vm12 = vcmask 195584   ;;  %v1087_v8 = vor.u32 %v1085_v15, %v1084_v6  ;;  %v3465_v30 = vrot.slane %v3463_v12, 1  ;;  %v4918_v28 = vsel %vm4876_vm13, %v17089_v63, %v17864_v21  ;;  %v17996_v50 = vld [vmem:[%s20426_s2] ss:$0 sm:$0xff]  ;;  %v261_v16 = vld [vmem:[#allocation2 + $0x17c] sm:$0x1] }
 0x1f0   :  { %v5369_v59 = vsel %vm20546_vm12, %v5304_v23, %v17869_v27  ;;  %v3470_v33 = vrot.slane %v3468_v40, 1  ;;  %vm20547_vm9 = vcmask 220160   ;;  %v1089_v27 = vrot.slane %v1084_v6, 4  ;;  %vm20548_vm4 = vmmov %vm20546_vm12 }
 0x1f1   :  { %14373 = vmatprep.mubr.msk.bf16.mxu0 %vm20547_vm9, %v5369_v59  ;;  %v13178_v53 = vcombine.low %v1731_v7, %v1662_v44  ;;  %v3771_v43 = vrot.slane %v17938_v54, 1  ;;  %v5371_v18 = vsel %vm20548_vm4, %v5306_v41, %v17881_v2  ;;  %v1088_v34 = vsel %vm15144_vm6, %v1080_v5, %v1087_v8  ;;  %v1446_v47 = vld [vmem:[#allocation2 + $0x168] sm:$0xf]  ;;  %3040 = vrot.lane.b32.xlu0 %v13114_v17, %s15041_s14  ;;  %vm20549_vm5 = vmmov %vm20547_vm9  ;;  %v17990_v11 = vpop.permute.xlu0 %4052  ;;  %v18007_v5 = vpop.permute.xlu1 %4054 }
 0x1f2   :  { %v3466_v63 = vor.u32 %v3465_v30, %v3461_v13  ;;  %v152_v21 = vsel %vm15120_vm2, 0, %v151_v24  ;;  %v1091_v46 = vshrl.u32 %v604_v26, 16  ;;  %14374 = vmatmul.mubr.msk.bf16.gmra.mxu0 %vm20549_vm5, %v5371_v18  ;;  %v1447_v44 = vsel %vm15167_vm8, %v1079_v42, %v1446_v47  ;;  %v301_v42 = vld [vmem:[#allocation3 + $0x20] sm:$0x1]  ;;  %v5575_v8 = vpop.f32.mrf.mxu0 }
 0x1f3   :  { %vm20550_vm12 = vcmask 19456   ;;  %v3770_v2 = vrot.slane %v13178_v53, 1  ;;  %153 = vst [vmem:[#allocation2 + $0x174] sm:$0x1] %v152_v21  ;;  %v1094_v54 = vshll.u32 %v604_v26, 16  ;;  %v1099_v57 = vshrl.u32 %v605_v61, 16 }
 0x1f4   :  { %1449 = vst.msk [vmem:[#allocation2 + $0x16c] sm:$0xf] %vm20550_vm12, %v1088_v34  ;;  %1448 = vst [vmem:[#allocation2 + $0x168] sm:$0xf] %v1447_v44  ;;  %v3471_v15 = vsel %vm2122_vm10, %v3466_v63, %v3470_v33  ;;  %v1093_v17 = vrot.slane %v1091_v46, 7  ;;  %v1102_v56 = vshll.u32 %v605_v61, 16  ;;  %v5581_v23 = vadd.f32 %v17996_v50, %v17940_v58 }
 0x1f5   :  { %v1450_v6 = vld [vmem:[#allocation2 + $0x170] sm:$0x1]  ;;  %vm20551_vm9 = vcmask 1046528   ;;  %v4920_v12 = vsel %vm4876_vm13, %v17130_v32, %v17876_v0  ;;  %v18004_v40 = vrot.slane %v1099_v57, 7  ;;  %v5573_v7 = vadd.f32 %v17996_v50, %v5572_v39  ;;  %3584 = vrot.lane.b32.xlu0 %v3471_v15, %s15047_s20  ;;  %v362_v26 = vld [vmem:[#allocation3 + $0x24] sm:$0x1]  ;;  %v18016_v33 = vpop.permute.xlu0 %4596 }
 0x1f6   :  { %v3772_v13 = vsel %vm20551_vm9, %v3770_v2, %v3771_v43  ;;  %v1451_v41 = vsel %vm15120_vm2, %v1089_v27, %v1450_v6  ;;  %v1096_v58 = vor.u32 %v1094_v54, %v1093_v17  ;;  %v1097_v59 = vrot.slane %v1093_v17, 4 }
 0x1f7   :  { %vm20552_vm4 = vcmask 48128   ;;  %1452 = vst [vmem:[#allocation2 + $0x170] sm:$0x1] %v1451_v41  ;;  %v1104_v32 = vor.u32 %v1102_v56, %v18004_v40  ;;  %v1106_v0 = vrot.slane %v18004_v40, 4  ;;  %v5793_v39 = vmax.f32 %v5581_v23, 0.0  ;;  %v18049_v56 = vpop.permute.xlu1 %4598 }
 0x1f8   :  { %v4985_v24 = vsel %vm20552_vm4, %v4920_v12, %v17892_v4  ;;  %v5791_v30 = vmax.f32 %v5573_v7, 0.0  ;;  %vm20553_vm5 = vmmov %vm20552_vm4  ;;  %v262_v27 = vsel %vm15155_vm7, 0, %v261_v16  ;;  %v18023_v53 = vadd.f32 %v17996_v50, %v14352_v55 }
 0x1f9   :  { %v4983_v61 = vsel %vm20553_vm5, %v4918_v28, %v17898_v45  ;;  %v302_v4 = vsel %vm17291_vm3, 0, %v301_v42  ;;  %v1105_v43 = vsel %vm15144_vm6, %v1097_v59, %v1104_v32  ;;  %263 = vst [vmem:[#allocation2 + $0x17c] sm:$0x1] %v262_v27  ;;  %v363_v34 = vsel %vm17316_vm1, 0, %v362_v26  ;;  %3840 = vrot.lane.b32.xlu0 %v3772_v13, %s15043_s16 }
 0x1fa   :  { %v5849_v18 = vmax.f32 %v5791_v30, %v5793_v39  ;;  %303 = vst [vmem:[#allocation3 + $0x20] sm:$0x1] %v302_v4  ;;  %v18032_v45 = vadd.f32 %v17996_v50, %v5575_v8  ;;  %v1453_v47 = vld [vmem:[#allocation2 + $0x174] sm:$0xf]  ;;  %1456 = vst.msk [vmem:[#allocation2 + $0x178] sm:$0xf] %vm20550_vm12, %v1105_v43 }
 0x1fb   :  { %v1664_v28 = vld [vmem:[#allocation2 + $0x16c] sm:$0xf]  ;;  %vm20554_vm9 = vcmask 72704   ;;  %364 = vst [vmem:[#allocation3 + $0x24] sm:$0x1] %v363_v34  ;;  %v1454_v2 = vsel %vm15167_vm8, %v1096_v58, %v1453_v47  ;;  %vm20556_vm5 = vcmask 97280  }
 0x1fc   :  { %v18036_v63 = vld [vmem:[#allocation2 + $0x16c] sm:$0xf]  ;;  %v5050_v21 = vsel %vm20554_vm9, %v4985_v24, %v17912_v29  ;;  %vm20555_vm4 = vmmov %vm20554_vm9  ;;  %v1663_v55 = vld [vmem:[#allocation2 + $0x168] sm:$0xf]  ;;  %v6009_v57 = vcombine.high %v5849_v18, %v5849_v18  ;;  %v6016_v15 = vrot.slane %v5849_v18, %v17372_v62  ;;  %v18051_v29 = vpop.permute.xlu0 %4852  ;;  %1455 = vst [vmem:[#allocation2 + $0x174] sm:$0xf] %v1454_v2 }
 0x1fd   :  { %v5048_v46 = vsel %vm20555_vm4, %v4983_v61, %v17924_v3  ;;  %v1732_v44 = vld [vmem:[#allocation2 + $0x168] sm:$0xe]  ;;  %v18047_v17 = vsel %vm20556_vm5, %v5050_v21, %v17942_v9  ;;  %v13115_v23 = vcombine.low %v1663_v55, %v1664_v28  ;;  %v5794_v6 = vmax.f32 %v18023_v53, 0.0  ;;  %v18057_v12 = vld [vmem:[#allocation2 + $0x16c] sm:$0xf]  ;;  %vm20558_vm12 = vmmov %vm20556_vm5 }
 0x1fe   :  { %v1790_v54 = vld [vmem:[#allocation2 + $0x168] sm:$0xf]  ;;  %v13179_v16 = vcombine.low %v1732_v44, %v1664_v28  ;;  %v6023_v7 = vrot.slane %v6009_v57, %v17372_v62  ;;  %v6024_v42 = vcombine.high %v6016_v15, %v6016_v15  ;;  %v13339_v9 = vrot.slane %v6016_v15, 9  ;;  %v14700_v59 = vld [vmem:[#allocation2 + $0x170] ss:$0 sps:$4 sm:$0x11]  }
 0x1ff   :  { %v18054_v3 = vcombine.low %v1790_v54, %v18036_v63  ;;  %v1537_v13 = vld [vmem:[#allocation2 + $0x168] sm:$0xf]  ;;  %v5792_v41 = vmax.f32 %v18032_v45, 0.0  ;;  %3042 = vrot.lane.b32.xlu1 %v13115_v23, %s15041_s14  ;;  %v3473_v24 = vshrl.u32 %v13115_v23, 16  ;;  %v18073_v32 = vsel %vm20558_vm12, %v5048_v46, %v17948_v51  ;;  %v18083_v46 = vpop.permute.xlu1 %2551 }
 0x200   :  { %v18061_v58 = vld [vmem:[#allocation2 + $0x168] sm:$0xe]  ;;  %v18067_v26 = vcombine.low %v1537_v13, %v18057_v12  ;;  %v3475_v39 = vshll.u32 %v13115_v23, 16  ;;  %v3773_v30 = vrot.slane %v13179_v16, 1  ;;  %v6025_v61 = vcombine.high %v6023_v7, %v6023_v7  ;;  %v18075_v4 = vpop.permute.xlu0 %4854  ;;  %v1457_v28 = vld [vmem:[#allocation2 + $0x17c] sm:$0x1] }
 0x201   :  { %4064 = vrot.lane.b32.xlu0 %v18054_v3, %s15042_s15  ;;  %v13274_v8 = vcombine.low %v18061_v58, %v18036_v63  ;;  %v13340_v27 = vrot.slane %v6024_v42, 9  ;;  %v3480_v43 = vshll.u32 %v14700_v59, 16  ;;  %v3774_v18 = vrot.slane %v14700_v59, 1  ;;  %v18077_v21 = vld [vmem:[#allocation2 + $0x178] sm:$0xf] }
 0x202   :  { %20557 = vst [vmem:[#allocation10_spill] sm:$0xff] %v18067_v26  ;;  %v13341_v34 = vrot.slane %v6023_v7, 9  ;;  %v6987_v45 = vmax.f32 %v6016_v15, %v13339_v9  ;;  %v3477_v47 = vrot.slane %v3475_v39, 1  ;;  %v13342_v55 = vrot.slane %v6025_v61, 9 }
 0x203   :  { %v6988_v44 = vmax.f32 %v6024_v42, %v13340_v27  ;;  %v1458_v51 = vsel %vm15120_vm2, %v1106_v0, %v1457_v28  ;;  %v3482_v2 = vrot.slane %v3480_v43, 1  ;;  %vm20559_vm9 = vcmask 1046528   ;;  %v18086_v15 = vld [vmem:[#allocation2 + $0x170] ss:$0 sps:$4 sm:$0x11]  }
 0x204   :  { %v3775_v54 = vsel %vm20559_vm9, %v3773_v30, %v3774_v18  ;;  %v6989_v57 = vmax.f32 %v6023_v7, %v13341_v34  ;;  %v14011_v23 = vpack.c.bf16 %v6987_v45, %v6987_v45  ;;  %1459 = vst [vmem:[#allocation2 + $0x17c] sm:$0x1] %v1458_v51  ;;  %v3478_v16 = vor.u32 %v3477_v47, %v3473_v24  ;;  %v1792_v13 = vld [vmem:[#allocation2 + $0x174] sm:$0xf]  ;;  %v18089_v40 = vpop.permute.xlu0 %2808  ;;  %vm20563_vm12 = vmmov %vm20559_vm9 }
 0x205   :  { %v6990_v9 = vmax.f32 %v6025_v61, %v13342_v55  ;;  %v14012_v59 = vpack.c.bf16 %v6988_v44, %v6988_v44  ;;  %v4485_v42 = vshrl.u32 %v18054_v3, 16  ;;  %v13211_v0 = vcombine.low %v1792_v13, %v18077_v21  ;;  %v1539_v24 = vld [vmem:[#allocation2 + $0x174] sm:$0xf]  ;;  %v18096_v55 = vld [vmem:[#allocation2 + $0x178] sm:$0xf] }
 0x206   :  { %v14013_v39 = vpack.c.bf16 %v6989_v57, %v6989_v57  ;;  %v7627_v27 = vunpack.c.l.b16 %v14011_v23  ;;  %v4487_v43 = vshll.u32 %v18054_v3, 16  ;;  %v3483_v7 = vsel %vm2122_vm10, %v3478_v16, %v3482_v2  ;;  %v18098_v3 = vpop.permute.xlu1 %2553 }
 0x207   :  { %v14014_v30 = vpack.c.bf16 %v6990_v9, %v6990_v9  ;;  %v7628_v18 = vunpack.c.l.b16 %v14012_v59  ;;  %v4492_v34 = vshll.u32 %v18086_v15, 16  ;;  %3586 = vrot.lane.b32.xlu1 %v3483_v7, %s15047_s20  ;;  %v4497_v28 = vshrl.u32 %v13211_v0, 16  ;;  %v18102_v9 = vld [vmem:[#allocation2 + $0x170] ss:$0 sps:$4 sm:$0x11]  }
 0x208   :  { %v7629_v61 = vunpack.c.l.b16 %v14013_v39  ;;  %v7776_v45 = vrot.slane %v7627_v27, 7  ;;  %v4499_v47 = vshll.u32 %v13211_v0, 16  ;;  %v4489_v57 = vrot.slane %v4487_v43, 1  ;;  %v18105_v39 = vpop.permute.xlu0 %3032 }
 0x209   :  { %v7630_v44 = vunpack.c.l.b16 %v14014_v30  ;;  %v7777_v51 = vrot.slane %v7628_v18, 6  ;;  %v4494_v23 = vrot.slane %v4492_v34, 1  ;;  %v5850_v13 = vmax.f32 %v5792_v41, %v5794_v6 }
 0x20a   :  { %v7779_v2 = vrot.slane %v7629_v61, 5  ;;  %v4501_v16 = vrot.slane %v4499_v47, 1  ;;  %v2460_v59 = vshrl.u32 %v18067_v26, 16  ;;  %vm20560_vm4 = vcmask 1042434  }
 0x20b   :  { %v7778_v27 = vsel %vm20560_vm4, %v7777_v51, %v7776_v45  ;;  %v7781_v7 = vrot.slane %v7630_v44, 4  ;;  %v18108_v30 = vld [vmem:[#allocation2 + $0x17c] ss:$0 sps:$4 sm:$0x11]   ;;  %v4490_v43 = vor.u32 %v4489_v57, %v4485_v42  ;;  %v18111_v18 = vcombine.low %v1539_v24, %v18096_v55  ;;  %3842 = vrot.lane.b32.xlu1 %v3775_v54, %s15043_s16 }
 0x20c   :  { %vm20562_vm5 = vcmask 1043459   ;;  %v4502_v6 = vor.u32 %v4501_v16, %v4497_v28  ;;  %v6026_v41 = vcombine.high %v5850_v13, %v5850_v13  ;;  %v6033_v34 = vrot.slane %v5850_v13, %v17372_v62  ;;  %v18123_v28 = vld [vmem:[#allocation2 + $0x17c] ss:$0 sps:$4 sm:$0x11]   ;;  %v18129_v13 = vpop.permute.xlu1 %2810 }
 0x20d   :  { %20561 = vst [vmem:[#allocation12_spill] sm:$0xff] %v18111_v18  ;;  %v7780_v53 = vsel %vm20562_vm5, %v7779_v2, %v7778_v27  ;;  %v4504_v61 = vshll.u32 %v18108_v30, 16  ;;  %v4495_v47 = vsel %vm2122_vm10, %v4490_v43, %v4494_v23  ;;  %v2462_v44 = vshll.u32 %v18067_v26, 16  ;;  %v1861_v26 = vld [vmem:[#allocation2 + $0x174] sm:$0xe]  ;;  %vm20566_vm5 = vmmov %vm20563_vm12 }
 0x20e   :  { %v7782_v45 = vsel %vm7739_vm11, %v7781_v7, %v7780_v53  ;;  %4608 = vrot.lane.b32.xlu0 %v4495_v47, %s15048_s25  ;;  %v6040_v42 = vrot.slane %v6026_v41, %v17372_v62  ;;  %v6041_v24 = vcombine.high %v6033_v34, %v6033_v34  ;;  %v13343_v54 = vrot.slane %v6033_v34, 9  ;;  %v18132_v41 = vpop.permute.xlu0 %3576 }
 0x20f   :  { %v2467_v51 = vshll.u32 %v18102_v9, 16  ;;  %v4506_v57 = vrot.slane %v4504_v61, 1  ;;  %v2464_v2 = vrot.slane %v2462_v44, 1  ;;  %v4794_v23 = vrot.slane %v13274_v8, 1  ;;  %4066 = vrot.lane.b32.xlu1 %v13211_v0, %s15042_s15 }
 0x210   :  { %v4795_v16 = vrot.slane %v18086_v15, 1  ;;  %v6042_v27 = vcombine.high %v6040_v42, %v6040_v42  ;;  %v13344_v7 = vrot.slane %v6041_v24, 9  ;;  %v13345_v43 = vrot.slane %v6040_v42, 9 }
 0x211   :  { %v6991_v53 = vmax.f32 %v6033_v34, %v13343_v54  ;;  %v4507_v47 = vsel %vm2122_vm10, %v4502_v6, %v4506_v57  ;;  %v2465_v61 = vor.u32 %v2464_v2, %v2460_v59  ;;  %v2469_v44 = vrot.slane %v2467_v51, 1 }
 0x212   :  { %v4796_v10 = vsel %vm20563_vm12, %v4794_v23, %v4795_v16  ;;  %v13346_v63 = vrot.slane %v6042_v27, 9  ;;  %v6992_v58 = vmax.f32 %v6041_v24, %v13344_v7  ;;  %v6993_v8 = vmax.f32 %v6040_v42, %v13345_v43  ;;  %v1606_v24 = vld [vmem:[#allocation2 + $0x174] sm:$0xe]  ;;  %v8033_v42 = vld [vmem:[#allocation3 + $0x24] sm:$0x1]  ;;  %v18144_v7 = vpop.permute.xlu1 %3034 }
 0x213   :  { %v14015_v15 = vpack.c.bf16 %v6991_v53, %v6991_v53  ;;  %4864 = vrot.lane.b32.xlu0 %v4796_v10, %s15045_s18  ;;  %v2470_v0 = vsel %vm2122_vm10, %v2465_v61, %v2469_v44  ;;  %v2472_v36 = vshrl.u32 %v18111_v18, 16  ;;  %v2474_v34 = vshll.u32 %v18111_v18, 16  ;;  %4610 = vrot.lane.b32.xlu1 %v4507_v47, %s15048_s25  ;;  %v18146_v18 = vpop.permute.xlu0 %3832 }
 0x214   :  { %v2479_v54 = vshll.u32 %v18123_v28, 16  ;;  %v6994_v59 = vmax.f32 %v6042_v27, %v13346_v63  ;;  %v14016_v6 = vpack.c.bf16 %v6992_v58, %v6992_v58  ;;  %v14017_v51 = vpack.c.bf16 %v6993_v8, %v6993_v8  ;;  %v1605_v8 = vld [vmem:[#allocation2 + $0x168] sm:$0xe] }
 0x215   :  { %v7631_v57 = vunpack.c.l.b16 %v14015_v15  ;;  %v2476_v2 = vrot.slane %v2474_v34, 1  ;;  %v13275_v10 = vcombine.low %v1861_v26, %v18077_v21  ;;  %v4798_v16 = vrot.slane %v18108_v30, 1  ;;  %v154_v34 = vld [vmem:[#allocation2 + $0x180] sm:$0x1] }
 0x216   :  { %v2481_v23 = vrot.slane %v2479_v54, 1  ;;  %v7632_v43 = vunpack.c.l.b16 %v14016_v6  ;;  %v7633_v53 = vunpack.c.l.b16 %v14017_v51  ;;  %v14118_v44 = vpack.c.bf16 %v6994_v59, %v6994_v59  ;;  %v1665_v51 = vld [vmem:[#allocation2 + $0x174] sm:$0xf] }
 0x217   :  { %v7783_v61 = vrot.slane %v7631_v57, 3  ;;  %v2477_v27 = vor.u32 %v2476_v2, %v2472_v36  ;;  %v4797_v47 = vrot.slane %v13275_v10, 1  ;;  %vm20564_vm9 = vcmask 121856   ;;  %2563 = vrot.lane.b32.xlu1 %v2470_v0, %s15046_s19  ;;  %v1666_v57 = vld [vmem:[#allocation2 + $0x178] sm:$0xf] }
 0x218   :  { %v5180_v63 = vsel %vm20564_vm9, %v18047_v17, %v17967_v48  ;;  %v13085_v58 = vcombine.low %v1606_v24, %v18096_v55  ;;  %vm20565_vm4 = vcmask 1045509   ;;  %v7785_v21 = vrot.slane %v7632_v43, 2  ;;  %v606_v17 = vld [vmem:[%s20424_s0 + $0xe8] sm:$0xf]  ;;  %v607_v55 = vld [vmem:[%s20424_s0 + $0xec] sm:$0xf]  ;;  %vm20567_vm12 = vmmov %vm20564_vm9  ;;  %v18178_v43 = vpop.f32.mrf.mxu0 }
 0x219   :  { %v7784_v26 = vsel %vm20565_vm4, %v7783_v61, %v7782_v45  ;;  %v7787_v30 = vrot.slane %v7633_v53, 1  ;;  %v8034_v15 = vsel %vm17291_vm3, %v14118_v44, %v8033_v42  ;;  %v2482_v36 = vsel %vm2122_vm10, %v2477_v27, %v2481_v23  ;;  %v8030_v42 = vld [vmem:[#allocation3 + $0x20] sm:$0xf]  ;;  %vm20568_vm9 = vmmov %vm20566_vm5  ;;  %v14718_v61 = vld [vmem:[#allocation2 + $0x17c] ss:$0 sps:$4 sm:$0x11]   ;;  %v18183_v44 = vpop.permute.xlu0 %4056 }
 0x21a   :  { %8035 = vst [vmem:[#allocation3 + $0x24] sm:$0x1] %v8034_v15  ;;  %v4799_v54 = vsel %vm20566_vm5, %v4797_v47, %v4798_v16  ;;  %v2755_v59 = vrot.slane %v13085_v58, 1  ;;  %v2756_v48 = vrot.slane %v18123_v28, 1  ;;  %v7786_v45 = vsel %vm7745_vm15, %v7785_v21, %v7784_v26  ;;  %v264_v16 = vld [vmem:[#allocation2 + $0x188] sm:$0x1] }
 0x21b   :  { %4866 = vrot.lane.b32.xlu0 %v4799_v54, %s15045_s18  ;;  %v5178_v0 = vsel %vm20567_vm12, %v18073_v32, %v17969_v14  ;;  %v13084_v6 = vcombine.low %v1605_v8, %v18057_v12  ;;  %v2753_v28 = vrot.slane %v18102_v9, 1  ;;  %v7788_v24 = vsel %vm7748_vm14, %v7787_v30, %v7786_v45  ;;  %v18180_v14 = vpop.permute.xlu1 %3578  ;;  %2565 = vrot.lane.b32.xlu1 %v2482_v36, %s15046_s19  ;;  %vm20571_vm12 = vmmov %vm20568_vm9  ;;  %v1733_v36 = vld [vmem:[#allocation2 + $0x174] sm:$0xe]  ;;  %v5588_v54 = vpop.f32.mrf.mxu0 }
 0x21c   :  { %v2757_v2 = vsel %vm20568_vm9, %v2755_v59, %v2756_v48  ;;  %vm20569_vm4 = vcmask 146432   ;;  %v155_v10 = vsel %vm15120_vm2, 0, %v154_v34  ;;  %v7951_v12 = vpack.c.b16 %v7788_v24, %v7788_v24 }
 0x21d   :  { %v5245_v23 = vsel %vm20569_vm4, %v5180_v63, %v18007_v5  ;;  %v2752_v32 = vrot.slane %v13084_v6, 1  ;;  %156 = vst [vmem:[#allocation2 + $0x180] sm:$0x1] %v155_v10  ;;  %v1108_v9 = vshrl.u32 %v606_v17, 16  ;;  %v1111_v53 = vshll.u32 %v606_v17, 16  ;;  %vm20570_vm5 = vmmov %vm20569_vm4 }
 0x21e   :  { %v5243_v5 = vsel %vm20570_vm5, %v5178_v0, %v17990_v11  ;;  %v1116_v27 = vshrl.u32 %v607_v55, 16  ;;  %v1119_v47 = vshll.u32 %v607_v55, 16  ;;  %v13116_v63 = vcombine.low %v1665_v51, %v1666_v57  ;;  %v157_v55 = vld [vmem:[#allocation2 + $0x18c] sm:$0x1]  ;;  %v608_v51 = vld [vmem:[%s20424_s0 + $0xf0] sm:$0xf] }
 0x21f   :  { %v8031_v58 = vsel %vm17647_vm0, %v7951_v12, %v8030_v42  ;;  %v2754_v8 = vsel %vm20571_vm12, %v2752_v32, %v2753_v28  ;;  %v1110_v26 = vrot.slane %v1108_v9, 7  ;;  %vm20572_vm9 = vcmask 171008   ;;  %2822 = vrot.lane.b32.xlu1 %v2757_v2, %s15044_s17  ;;  %v18206_v24 = vpop.permute.xlu1 %3834  ;;  %v609_v10 = vld [vmem:[%s20424_s0 + $0xf4] sm:$0xf]  ;;  %v14356_v32 = vpop.f32.mrf.mxu0 }
 0x220   :  { %v5310_v21 = vsel %vm20572_vm9, %v5245_v23, %v18049_v56  ;;  %8032 = vst [vmem:[#allocation3 + $0x20] sm:$0xf] %v8031_v58  ;;  %2820 = vrot.lane.b32.xlu0 %v2754_v8, %s15044_s17  ;;  %v1118_v30 = vrot.slane %v1116_v27, 7  ;;  %v265_v15 = vsel %vm15155_vm7, 0, %v264_v16  ;;  %v3485_v11 = vshrl.u32 %v13116_v63, 16  ;;  %vm20573_vm4 = vmmov %vm20572_vm9 }
 0x221   :  { %v3487_v34 = vshll.u32 %v13116_v63, 16  ;;  %v1113_v59 = vor.u32 %v1111_v53, %v1110_v26  ;;  %v1114_v48 = vrot.slane %v1110_v26, 4  ;;  %v5308_v17 = vsel %vm20573_vm4, %v5243_v5, %v18016_v33  ;;  %266 = vst [vmem:[#allocation2 + $0x188] sm:$0x1] %v265_v15  ;;  %v267_v27 = vld [vmem:[#allocation2 + $0x194] sm:$0x1] }
 0x222   :  { %v3492_v56 = vshll.u32 %v14718_v61, 16  ;;  %v1121_v45 = vor.u32 %v1119_v47, %v1118_v30  ;;  %v4922_v6 = vsel %vm4876_vm13, %v17304_v38, %v18083_v46  ;;  %vm20574_vm5 = vcmask 195584   ;;  %v18212_v38 = vpop.permute.xlu0 %4600  ;;  %v304_v15 = vld [vmem:[#allocation3 + $0x28] sm:$0x1] }
 0x223   :  { %v3489_v0 = vrot.slane %v3487_v34, 1  ;;  %v5373_v28 = vsel %vm20574_vm5, %v5308_v17, %v18051_v29  ;;  %v1123_v42 = vrot.slane %v1118_v30, 4  ;;  %v13180_v2 = vcombine.low %v1733_v36, %v1666_v57  ;;  %vm20576_vm9 = vmmov %vm20574_vm5  ;;  %v5591_v17 = vpop.f32.mrf.mxu0 }
 0x224   :  { %v3494_v33 = vrot.slane %v3492_v56, 1  ;;  %v3777_v23 = vrot.slane %v14718_v61, 1  ;;  %vm20575_vm12 = vcmask 220160   ;;  %v1122_v29 = vsel %vm15144_vm6, %v1114_v48, %v1121_v45  ;;  %v1460_v46 = vld [vmem:[#allocation2 + $0x180] sm:$0xf]  ;;  %3044 = vrot.lane.b32.xlu0 %v13116_v63, %s15041_s14  ;;  %v18238_v56 = vpop.permute.xlu1 %4058 }
 0x225   :  { %14377 = vmatprep.mubr.msk.bf16.mxu0 %vm20575_vm12, %v5373_v28  ;;  %v3490_v16 = vor.u32 %v3489_v0, %v3485_v11  ;;  %v5375_v12 = vsel %vm20576_vm9, %v5310_v21, %v18075_v4  ;;  %v158_v57 = vsel %vm15120_vm2, 0, %v157_v55  ;;  %v1461_v9 = vsel %vm15167_vm8, %v1113_v59, %v1460_v46  ;;  %vm20578_vm5 = vmmov %vm20575_vm12  ;;  %v365_v11 = vld [vmem:[#allocation3 + $0x2c] sm:$0x1] }
 0x226   :  { %vm20577_vm4 = vcmask 19456   ;;  %v3776_v53 = vrot.slane %v13180_v2, 1  ;;  %159 = vst [vmem:[#allocation2 + $0x18c] sm:$0x1] %v158_v57  ;;  %v1125_v61 = vshrl.u32 %v608_v51, 16  ;;  %v1128_v5 = vshll.u32 %v608_v51, 16  ;;  %14378 = vmatmul.mubr.msk.bf16.gmra.mxu0 %vm20578_vm5, %v5375_v12  ;;  %v18242_v45 = vpop.permute.xlu0 %4856 }
 0x227   :  { %1463 = vst.msk [vmem:[#allocation2 + $0x184] sm:$0xf] %vm20577_vm4, %v1122_v29  ;;  %1462 = vst [vmem:[#allocation2 + $0x180] sm:$0xf] %v1461_v9  ;;  %v3495_v47 = vsel %vm2122_vm10, %v3490_v16, %v3494_v33  ;;  %v1133_v4 = vshrl.u32 %v609_v10, 16  ;;  %v1136_v63 = vshll.u32 %v609_v10, 16  ;;  %v5597_v58 = vadd.f32 %v17996_v50, %v18178_v43 }
 0x228   :  { %vm20579_vm12 = vcmask 1046528   ;;  %v4924_v26 = vsel %vm4876_vm13, %v17390_v52, %v18098_v3  ;;  %v1127_v21 = vrot.slane %v1125_v61, 7  ;;  %v5589_v30 = vadd.f32 %v17996_v50, %v5588_v54  ;;  %v1464_v34 = vld [vmem:[#allocation2 + $0x188] sm:$0x1]  ;;  %3588 = vrot.lane.b32.xlu0 %v3495_v47, %s15047_s20  ;;  %v18272_v47 = vpop.permute.xlu1 %4602 }
 0x229   :  { %v3778_v8 = vsel %vm20579_vm12, %v3776_v53, %v3777_v23  ;;  %v1135_v36 = vrot.slane %v1133_v4, 7  ;;  %v5797_v59 = vmax.f32 %v5597_v58, 0.0  ;;  %vm20580_vm9 = vcmask 48128  }
 0x22a   :  { %v4989_v48 = vsel %vm20580_vm9, %v4924_v26, %v18129_v13  ;;  %v268_v43 = vsel %vm15155_vm7, 0, %v267_v27  ;;  %v1465_v52 = vsel %vm15120_vm2, %v1123_v42, %v1464_v34  ;;  %v1130_v3 = vor.u32 %v1128_v5, %v1127_v21  ;;  %vm20581_vm4 = vmmov %vm20580_vm9  ;;  %v18275_v26 = vpop.permute.xlu0 %4858 }
 0x22b   :  { %v1131_v54 = vrot.slane %v1127_v21, 4  ;;  %v5795_v55 = vmax.f32 %v5589_v30, 0.0  ;;  %269 = vst [vmem:[#allocation2 + $0x194] sm:$0x1] %v268_v43  ;;  %1466 = vst [vmem:[#allocation2 + $0x188] sm:$0x1] %v1465_v52  ;;  %v1138_v0 = vor.u32 %v1136_v63, %v1135_v36  ;;  %v4987_v13 = vsel %vm20581_vm4, %v4922_v6, %v18089_v40 }
 0x22c   :  { %v1140_v28 = vrot.slane %v1135_v36, 4  ;;  %v5600_v51 = vadd.f32 %v17996_v50, %v14356_v32  ;;  %v305_v2 = vsel %vm17291_vm3, 0, %v304_v15  ;;  %v366_v42 = vsel %vm17316_vm1, 0, %v365_v11  ;;  %3844 = vrot.lane.b32.xlu0 %v3778_v8, %s15043_s16 }
 0x22d   :  { %v5851_v33 = vmax.f32 %v5795_v55, %v5797_v59  ;;  %v5592_v23 = vadd.f32 %v17996_v50, %v5591_v17  ;;  %v1139_v29 = vsel %vm15144_vm6, %v1131_v54, %v1138_v0  ;;  %v1467_v46 = vld [vmem:[#allocation2 + $0x18c] sm:$0xf]  ;;  %vm20582_vm5 = vcmask 72704   ;;  %306 = vst [vmem:[#allocation3 + $0x28] sm:$0x1] %v305_v2 }
 0x22e   :  { %v1668_v10 = vld [vmem:[#allocation2 + $0x184] sm:$0xf]  ;;  %v5054_v40 = vsel %vm20582_vm5, %v4989_v48, %v18144_v7  ;;  %367 = vst [vmem:[#allocation3 + $0x2c] sm:$0x1] %v366_v42  ;;  %vm20583_vm12 = vmmov %vm20582_vm5  ;;  %v1667_v12 = vld [vmem:[#allocation2 + $0x180] sm:$0xf]  ;;  %v1468_v57 = vsel %vm15167_vm8, %v1130_v3, %v1467_v46  ;;  %v18285_v46 = vpop.permute.xlu1 %2555 }
 0x22f   :  { %v18255_v16 = vld [vmem:[#allocation2 + $0x184] sm:$0xf]  ;;  %v18261_v6 = vsel %vm20583_vm12, %v4987_v13, %v18105_v39  ;;  %v1734_v50 = vld [vmem:[#allocation2 + $0x180] sm:$0xe]  ;;  %vm20584_vm9 = vcmask 19456   ;;  %v6043_v9 = vcombine.high %v5851_v33, %v5851_v33  ;;  %v6050_v53 = vrot.slane %v5851_v33, %v17372_v62 }
 0x230   :  { %1470 = vst.msk [vmem:[#allocation2 + $0x190] sm:$0xf] %vm20584_vm9, %v1139_v29  ;;  %v1794_v32 = vld [vmem:[#allocation2 + $0x180] sm:$0xf]  ;;  %vm20585_vm4 = vcmask 97280   ;;  %v13117_v61 = vcombine.low %v1667_v12, %v1668_v10  ;;  %v13181_v5 = vcombine.low %v1734_v50, %v1668_v10  ;;  %v5798_v27 = vmax.f32 %v5600_v51, 0.0 }
 0x231   :  { %v18269_v7 = vsel %vm20585_vm4, %v5054_v40, %v18180_v14  ;;  %1469 = vst [vmem:[#allocation2 + $0x18c] sm:$0xf] %v1468_v57  ;;  %v13212_v39 = vcombine.low %v1794_v32, %v18255_v16  ;;  %v6057_v4 = vrot.slane %v6043_v9, %v17372_v62  ;;  %v6058_v63 = vcombine.high %v6050_v53, %v6050_v53  ;;  %v18288_v32 = vpop.permute.xlu0 %2812  ;;  %vm20588_vm9 = vmmov %vm20585_vm4 }
 0x232   :  { %v13347_v58 = vrot.slane %v6050_v53, 9  ;;  %v5796_v8 = vmax.f32 %v5592_v23, 0.0  ;;  %3046 = vrot.lane.b32.xlu1 %v13117_v61, %s15041_s14  ;;  %v3497_v21 = vshrl.u32 %v13117_v61, 16  ;;  %v3499_v14 = vshll.u32 %v13117_v61, 16  ;;  %v1471_v15 = vld [vmem:[#allocation2 + $0x194] sm:$0x1] }
 0x233   :  { %v3779_v30 = vrot.slane %v13181_v5, 1  ;;  %4068 = vrot.lane.b32.xlu0 %v13212_v39, %s15042_s15  ;;  %v4509_v11 = vshrl.u32 %v13212_v39, 16  ;;  %v14717_v34 = vld [vmem:[#allocation2 + $0x188] ss:$0 sps:$4 sm:$0x11]   ;;  %v6059_v36 = vcombine.high %v6057_v4, %v6057_v4  ;;  %v13348_v59 = vrot.slane %v6058_v63, 9 }
 0x234   :  { %v6995_v48 = vmax.f32 %v6050_v53, %v13347_v58  ;;  %v1472_v43 = vsel %vm15120_vm2, %v1140_v28, %v1471_v15  ;;  %v3501_v17 = vrot.slane %v3499_v14, 1  ;;  %v13349_v52 = vrot.slane %v6057_v4, 9  ;;  %v18281_v33 = vld [vmem:[#allocation2 + $0x188] ss:$0 sps:$4 sm:$0x11]  }
 0x235   :  { %1473 = vst [vmem:[#allocation2 + $0x194] sm:$0x1] %v1472_v43  ;;  %v4511_v3 = vshll.u32 %v13212_v39, 16  ;;  %v5852_v54 = vmax.f32 %v5796_v8, %v5798_v27  ;;  %v3504_v55 = vshll.u32 %v14717_v34, 16  ;;  %v3780_v0 = vrot.slane %v14717_v34, 1 }
 0x236   :  { %v13350_v13 = vrot.slane %v6059_v36, 9  ;;  %v6996_v51 = vmax.f32 %v6058_v63, %v13348_v59  ;;  %v3502_v2 = vor.u32 %v3501_v17, %v3497_v21  ;;  %v6997_v23 = vmax.f32 %v6057_v4, %v13349_v52  ;;  %v1541_v58 = vld [vmem:[#allocation2 + $0x180] sm:$0xf]  ;;  %v18293_v8 = vld [vmem:[#allocation2 + $0x184] sm:$0xf] }
 0x237   :  { %v18283_v42 = vld [vmem:[#allocation2 + $0x190] sm:$0xf]  ;;  %v14019_v10 = vpack.c.bf16 %v6995_v48, %v6995_v48  ;;  %v4513_v29 = vrot.slane %v4511_v3, 1  ;;  %v3506_v28 = vrot.slane %v3504_v55, 1  ;;  %vm20586_vm5 = vcmask 1046528   ;;  %v18304_v55 = vpop.permute.xlu1 %2557 }
 0x238   :  { %v3781_v40 = vsel %vm20586_vm5, %v3779_v30, %v3780_v0  ;;  %v1796_v12 = vld [vmem:[#allocation2 + $0x18c] sm:$0xf]  ;;  %v6998_v50 = vmax.f32 %v6059_v36, %v13350_v13  ;;  %v14020_v57 = vpack.c.bf16 %v6996_v51, %v6996_v51  ;;  %v14021_v53 = vpack.c.bf16 %v6997_v23, %v6997_v23 }
 0x239   :  { %v13213_v9 = vcombine.low %v1796_v12, %v18283_v42  ;;  %v7635_v61 = vunpack.c.l.b16 %v14019_v10  ;;  %v4514_v5 = vor.u32 %v4513_v29, %v4509_v11  ;;  %v3507_v39 = vsel %vm2122_vm10, %v3502_v2, %v3506_v28  ;;  %v18319_v12 = vld [vmem:[#allocation2 + $0x188] ss:$0 sps:$4 sm:$0x11]  }
 0x23a   :  { %v14022_v27 = vpack.c.bf16 %v6998_v50, %v6998_v50  ;;  %v7636_v4 = vunpack.c.l.b16 %v14020_v57  ;;  %v4516_v63 = vshll.u32 %v18281_v33, 16  ;;  %3590 = vrot.lane.b32.xlu1 %v3507_v39, %s15047_s20  ;;  %v7637_v21 = vunpack.c.l.b16 %v14021_v53  ;;  %v1862_v50 = vld [vmem:[#allocation2 + $0x180] sm:$0xe] }
 0x23b   :  { %v7789_v14 = vrot.slane %v7635_v61, 7  ;;  %v4521_v30 = vshrl.u32 %v13213_v9, 16  ;;  %v4523_v15 = vshll.u32 %v13213_v9, 16  ;;  %v6060_v11 = vcombine.high %v5852_v54, %v5852_v54 }
 0x23c   :  { %v18296_v34 = vunpack.c.l.b16 %v14022_v27  ;;  %v7790_v36 = vrot.slane %v7636_v4, 6  ;;  %v18298_v59 = vld [vmem:[#allocation2 + $0x194] ss:$0 sps:$4 sm:$0x11]   ;;  %v6067_v48 = vrot.slane %v5852_v54, %v17372_v62  ;;  %v7792_v43 = vrot.slane %v7637_v21, 5  ;;  %v18314_v54 = vpop.permute.xlu0 %3036 }
 0x23d   :  { %v4525_v17 = vrot.slane %v4523_v15, 1  ;;  %v4518_v52 = vrot.slane %v4516_v63, 1  ;;  %v18302_v3 = vcombine.low %v1541_v58, %v18293_v8  ;;  %vm20587_vm12 = vcmask 1042434   ;;  %v1543_v21 = vld [vmem:[#allocation2 + $0x18c] sm:$0xf] }
 0x23e   :  { %v7791_v0 = vsel %vm20587_vm12, %v7790_v36, %v7789_v14  ;;  %v4528_v13 = vshll.u32 %v18298_v59, 16  ;;  %v6074_v51 = vrot.slane %v6060_v11, %v17372_v62  ;;  %v18312_v2 = vsel %vm20588_vm9, %v18261_v6, %v18132_v41  ;;  %3846 = vrot.lane.b32.xlu1 %v3781_v40, %s15043_s16  ;;  %v18326_v14 = vld [vmem:[#allocation2 + $0x190] sm:$0xf]  ;;  %v18331_v11 = vld [vmem:[#allocation2 + $0x194] ss:$0 sps:$4 sm:$0x11]  }
 0x23f   :  { %v7794_v23 = vrot.slane %v18296_v34, 4  ;;  %v4526_v10 = vor.u32 %v4525_v17, %v4521_v30  ;;  %v4519_v29 = vsel %vm2122_vm10, %v4514_v5, %v4518_v52  ;;  %v6075_v28 = vcombine.high %v6067_v48, %v6067_v48 }
 0x240   :  { %v4530_v57 = vrot.slane %v4528_v13, 1  ;;  %4612 = vrot.lane.b32.xlu0 %v4519_v29, %s15048_s25  ;;  %v6076_v53 = vcombine.high %v6074_v51, %v6074_v51  ;;  %v13351_v61 = vrot.slane %v6067_v48, 9  ;;  %v13353_v41 = vrot.slane %v6074_v51, 9  ;;  %v18336_v13 = vpop.permute.xlu0 %3580 }
 0x241   :  { %vm20589_vm4 = vcmask 1043459   ;;  %v13352_v39 = vrot.slane %v6075_v28, 9  ;;  %v2484_v40 = vshrl.u32 %v18302_v3, 16  ;;  %v2486_v27 = vshll.u32 %v18302_v3, 16 }
 0x242   :  { %v7793_v6 = vsel %vm20589_vm4, %v7792_v43, %v7791_v0  ;;  %v4531_v4 = vsel %vm2122_vm10, %v4526_v10, %v4530_v57  ;;  %v13354_v5 = vrot.slane %v6076_v53, 9  ;;  %v6999_v63 = vmax.f32 %v6067_v48, %v13351_v61  ;;  %4070 = vrot.lane.b32.xlu1 %v13213_v9, %s15042_s15  ;;  %v18333_v43 = vpop.permute.xlu1 %2814  ;;  %v8039_v10 = vld [vmem:[#allocation3 + $0x2c] sm:$0x1]  ;;  %vm20592_vm4 = vmmov %vm20586_vm5 }
 0x243   :  { %v7001_v58 = vmax.f32 %v6074_v51, %v13353_v41  ;;  %v7000_v30 = vmax.f32 %v6075_v28, %v13352_v39  ;;  %v2488_v15 = vrot.slane %v2486_v27, 1  ;;  %v2491_v34 = vshll.u32 %v18319_v12, 16 }
 0x244   :  { %v13276_v36 = vcombine.low %v1862_v50, %v18255_v16  ;;  %v7002_v17 = vmax.f32 %v6076_v53, %v13354_v5  ;;  %v14023_v52 = vpack.c.bf16 %v6999_v63, %v6999_v63  ;;  %v4801_v48 = vrot.slane %v18281_v33, 1  ;;  %v1863_v50 = vld [vmem:[#allocation2 + $0x18c] sm:$0xe] }
 0x245   :  { %v14025_v0 = vpack.c.bf16 %v7001_v58, %v7001_v58  ;;  %v14024_v51 = vpack.c.bf16 %v7000_v30, %v7000_v30  ;;  %v2489_v9 = vor.u32 %v2488_v15, %v2484_v40  ;;  %v2493_v29 = vrot.slane %v2491_v34, 1  ;;  %v1607_v15 = vld [vmem:[#allocation2 + $0x180] sm:$0xe] }
 0x246   :  { %v4800_v28 = vrot.slane %v13276_v36, 1  ;;  %v7639_v57 = vunpack.c.l.b16 %v14023_v52  ;;  %v14119_v41 = vpack.c.bf16 %v7002_v17, %v7002_v17  ;;  %v18339_v16 = vcombine.low %v1543_v21, %v18326_v14  ;;  %4614 = vrot.lane.b32.xlu1 %v4531_v4, %s15048_s25  ;;  %v1608_v21 = vld [vmem:[#allocation2 + $0x18c] sm:$0xe]  ;;  %v18352_v34 = vpop.permute.xlu1 %3038 }
 0x247   :  { %v7641_v61 = vunpack.c.l.b16 %v14025_v0  ;;  %v7640_v53 = vunpack.c.l.b16 %v14024_v51  ;;  %v7795_v39 = vsel %vm7739_vm11, %v7794_v23, %v7793_v6  ;;  %v2503_v27 = vshll.u32 %v18331_v11, 16 }
 0x248   :  { %v4802_v33 = vsel %vm20586_vm5, %v4800_v28, %v4801_v48  ;;  %v7796_v5 = vrot.slane %v7639_v57, 3  ;;  %v8040_v63 = vsel %vm17291_vm3, %v14119_v41, %v8039_v10  ;;  %v2494_v58 = vsel %vm2122_vm10, %v2489_v9, %v2493_v29  ;;  %v18359_v48 = vpop.permute.xlu0 %3836  ;;  %v160_v29 = vld [vmem:[#allocation2 + $0x198] sm:$0x1] }
 0x249   :  { %v7800_v40 = vrot.slane %v7641_v61, 1  ;;  %4868 = vrot.lane.b32.xlu0 %v4802_v33, %s15045_s18  ;;  %v7798_v30 = vrot.slane %v7640_v53, 2  ;;  %8041 = vst [vmem:[#allocation3 + $0x2c] sm:$0x1] %v8040_v63  ;;  %v2496_v4 = vshrl.u32 %v18339_v16, 16  ;;  %v2498_v23 = vshll.u32 %v18339_v16, 16 }
 0x24a   :  { %v13277_v6 = vcombine.low %v1863_v50, %v18283_v42  ;;  %vm20590_vm12 = vcmask 1045509   ;;  %v2505_v17 = vrot.slane %v2503_v27, 1  ;;  %v4804_v52 = vrot.slane %v18298_v59, 1  ;;  %2567 = vrot.lane.b32.xlu1 %v2494_v58, %s15046_s19  ;;  %v610_v28 = vld [vmem:[%s20424_s0 + $0xf8] sm:$0xf]  ;;  %v18367_v59 = vpop.f32.mrf.mxu0 }
 0x24b   :  { %v7797_v36 = vsel %vm20590_vm12, %v7796_v5, %v7795_v39  ;;  %vm20591_vm9 = vcmask 121856   ;;  %v2500_v10 = vrot.slane %v2498_v23, 1  ;;  %v13087_v9 = vcombine.low %v1608_v21, %v18326_v14  ;;  %v611_v14 = vld [vmem:[%s20424_s0 + $0xfc] sm:$0xf]  ;;  %v1669_v27 = vld [vmem:[#allocation2 + $0x18c] sm:$0xf]  ;;  %v18394_v23 = vpop.permute.xlu1 %3582 }
 0x24c   :  { %v5184_v0 = vsel %vm20591_vm9, %v18269_v7, %v18206_v24  ;;  %v7799_v51 = vsel %vm7745_vm15, %v7798_v30, %v7797_v36  ;;  %v4803_v42 = vrot.slane %v13277_v6, 1  ;;  %v8036_v24 = vld [vmem:[#allocation3 + $0x28] sm:$0xf]  ;;  %v2762_v7 = vrot.slane %v18331_v11, 1  ;;  %v18377_v5 = vld [vmem:[#allocation2 + $0x190] sm:$0xf]  ;;  %vm20593_vm5 = vmmov %vm20591_vm9 }
 0x24d   :  { %v7801_v57 = vsel %vm7748_vm14, %v7800_v40, %v7799_v51  ;;  %v13086_v61 = vcombine.low %v1607_v15, %v18293_v8  ;;  %v2759_v41 = vrot.slane %v18319_v12, 1  ;;  %v2501_v53 = vor.u32 %v2500_v10, %v2496_v4  ;;  %v18387_v63 = vld [vmem:[#allocation2 + $0x194] ss:$0 sps:$4 sm:$0x11]   ;;  %v1735_v10 = vld [vmem:[#allocation2 + $0x18c] sm:$0xe] }
 0x24e   :  { %v7953_v50 = vpack.c.b16 %v7801_v57, %v7801_v57  ;;  %v4805_v39 = vsel %vm20592_vm4, %v4803_v42, %v4804_v52  ;;  %v2761_v33 = vrot.slane %v13087_v9, 1  ;;  %v5182_v8 = vsel %vm20593_vm5, %v18312_v2, %v18146_v18  ;;  %v270_v18 = vld [vmem:[#allocation2 + $0x1a0] sm:$0x1]  ;;  %v5604_v2 = vpop.f32.mrf.mxu0  ;;  %v18398_v52 = vpop.permute.xlu0 %4060  ;;  %vm20596_vm5 = vmmov %vm20592_vm4  ;;  %s15051_s0 = smov 32  }
 0x24f   :  { %4870 = vrot.lane.b32.xlu0 %v4805_v39, %s15045_s18  ;;  %v2758_v11 = vrot.slane %v13086_v61, 1  ;;  %vm20594_vm12 = vcmask 146432   ;;  %v161_v40 = vsel %vm15120_vm2, 0, %v160_v29  ;;  %v2506_v21 = vsel %vm2122_vm10, %v2501_v53, %v2505_v17  ;;  %v273_v39 = vld [vmem:[#allocation2 + $0x1ac] sm:$0x1] }
 0x250   :  { %v5249_v12 = vsel %vm20594_vm12, %v5184_v0, %v18238_v56  ;;  %v8037_v58 = vsel %vm17647_vm0, %v7953_v50, %v8036_v24  ;;  %vm20595_vm9 = vmmov %vm20594_vm12  ;;  %162 = vst [vmem:[#allocation2 + $0x198] sm:$0x1] %v161_v40  ;;  %v1142_v4 = vshrl.u32 %v610_v28, 16  ;;  %2569 = vrot.lane.b32.xlu1 %v2506_v21, %s15046_s19  ;;  %v1145_v6 = vshll.u32 %v610_v28, 16  ;;  %v1865_v40 = vld [vmem:[#allocation2 + $0x1a4] sm:$0xe] }
 0x251   :  { %v5247_v30 = vsel %vm20595_vm9, %v5182_v8, %v18183_v44  ;;  %8038 = vst [vmem:[#allocation3 + $0x28] sm:$0xf] %v8037_v58  ;;  %v2760_v56 = vsel %vm20592_vm4, %v2758_v11, %v2759_v41  ;;  %v1150_v15 = vshrl.u32 %v611_v14, 16  ;;  %v1153_v36 = vshll.u32 %v611_v14, 16  ;;  %v14360_v41 = vpop.f32.mrf.mxu0 }
 0x252   :  { %v2763_v17 = vsel %vm20596_vm5, %v2761_v33, %v2762_v7  ;;  %v1144_v0 = vrot.slane %v1142_v4, 7  ;;  %v13118_v44 = vcombine.low %v1669_v27, %v18377_v5  ;;  %vm20597_vm12 = vcmask 171008   ;;  %v18415_v33 = vpop.permute.xlu1 %3838  ;;  %v18433_v20 = vpop.permute.xlu0 %4604 }
 0x253   :  { %v5312_v51 = vsel %vm20597_vm12, %v5247_v30, %v18212_v38  ;;  %2824 = vrot.lane.b32.xlu0 %v2760_v56, %s15044_s17  ;;  %v1152_v42 = vrot.slane %v1150_v15, 7  ;;  %v271_v9 = vsel %vm15155_vm7, 0, %v270_v18  ;;  %v3516_v29 = vshll.u32 %v18387_v63, 16  ;;  %v163_v38 = vld [vmem:[#allocation2 + $0x1a4] sm:$0x1]  ;;  %vm20600_vm5 = vmmov %vm20597_vm12 }
 0x254   :  { %vm20598_vm9 = vcmask 195584   ;;  %v1147_v57 = vor.u32 %v1145_v6, %v1144_v0  ;;  %v1148_v24 = vrot.slane %v1144_v0, 4  ;;  %272 = vst [vmem:[#allocation2 + $0x1a0] sm:$0x1] %v271_v9  ;;  %v3509_v7 = vshrl.u32 %v13118_v44, 16  ;;  %2826 = vrot.lane.b32.xlu1 %v2763_v17, %s15044_s17 }
 0x255   :  { %v5377_v28 = vsel %vm20598_vm9, %v5312_v51, %v18242_v45  ;;  %v3511_v61 = vshll.u32 %v13118_v44, 16  ;;  %vm20599_vm4 = vcmask 220160   ;;  %v1155_v14 = vor.u32 %v1153_v36, %v1152_v42  ;;  %vm20601_vm12 = vmmov %vm20598_vm9  ;;  %v18428_v30 = vld [vmem:[%s20426_s2] ss:$0 sm:$0xff]  ;;  %v368_v15 = vld [vmem:[#allocation3 + $0x34] sm:$0x1]  ;;  %v5607_v36 = vpop.f32.mrf.mxu0 }
 0x256   :  { %14381 = vmatprep.mubr.msk.bf16.mxu0 %vm20599_vm4, %v5377_v28  ;;  %v5314_v50 = vsel %vm20600_vm5, %v5249_v12, %v18272_v47  ;;  %v13182_v53 = vcombine.low %v1735_v10, %v18377_v5  ;;  %v1157_v45 = vrot.slane %v1152_v42, 4  ;;  %v3518_v8 = vrot.slane %v3516_v29, 1  ;;  %v1801_v12 = vld [vmem:[#allocation2 + $0x1a8] sm:$0xf]  ;;  %vm20602_vm9 = vmmov %vm20599_vm4  ;;  %v307_v6 = vld [vmem:[#allocation3 + $0x30] sm:$0x1]  ;;  %v18455_v9 = vpop.permute.xlu1 %4062  ;;  %v18468_v1 = vpop.permute.xlu0 %4860 }
 0x257   :  { %v3513_v27 = vrot.slane %v3511_v61, 1  ;;  %v5379_v11 = vsel %vm20601_vm12, %v5314_v50, %v18275_v26  ;;  %v1156_v58 = vsel %vm15144_vm6, %v1148_v24, %v1155_v14  ;;  %v1474_v21 = vld [vmem:[#allocation2 + $0x198] sm:$0xf]  ;;  %3048 = vrot.lane.b32.xlu0 %v13118_v44, %s15041_s14  ;;  %v3783_v47 = vrot.slane %v18387_v63, 1  ;;  %v18473_v50 = vld [vmem:[#allocation3 + $0x14] sm:$0x1] }
 0x258   :  { %v164_v5 = vsel %vm15120_vm2, 0, %v163_v38  ;;  %v5613_v26 = vadd.f32 %v18428_v30, %v18367_v59  ;;  %14382 = vmatmul.mubr.msk.bf16.gmra.mxu0 %vm20602_vm9, %v5379_v11  ;;  %v1475_v4 = vsel %vm15167_vm8, %v1147_v57, %v1474_v21  ;;  %vm20603_vm6 = vcmask 19456  }
 0x259   :  { %1477 = vst.msk [vmem:[#allocation2 + $0x19c] sm:$0xf] %vm20603_vm6, %v1156_v58  ;;  %v3514_v63 = vor.u32 %v3513_v27, %v3509_v7  ;;  %v3782_v18 = vrot.slane %v13182_v53, 1  ;;  %165 = vst [vmem:[#allocation2 + $0x1a4] sm:$0x1] %v164_v5  ;;  %v5605_v56 = vadd.f32 %v18428_v30, %v5604_v2  ;;  %v4926_v59 = vsel %vm4876_vm13, %v17583_v22, %v18285_v46 }
 0x25a   :  { %1476 = vst [vmem:[#allocation2 + $0x198] sm:$0xf] %v1475_v4  ;;  %v274_v17 = vsel %vm15155_vm7, 0, %v273_v39  ;;  %v13279_v31 = vcombine.low %v1865_v40, %v1801_v12  ;;  %v5801_v44 = vmax.f32 %v5613_v26, 0.0  ;;  %v5616_v10 = vadd.f32 %v18428_v30, %v14360_v41 }
 0x25b   :  { %v3519_v0 = vsel %vm2122_vm10, %v3514_v63, %v3518_v8  ;;  %v5799_v51 = vmax.f32 %v5605_v56, 0.0  ;;  %275 = vst [vmem:[#allocation2 + $0x1ac] sm:$0x1] %v274_v17  ;;  %v1478_v2 = vld [vmem:[#allocation2 + $0x1a0] sm:$0x1]  ;;  %v4928_v42 = vsel %vm4876_vm13, %v17689_v37, %v18304_v55  ;;  %v308_v22 = vsel %vm17291_vm3, 0, %v307_v6 }
 0x25c   :  { %3592 = vrot.lane.b32.xlu0 %v3519_v0, %s15047_s20  ;;  %v369_v25 = vsel %vm17316_vm1, 0, %v368_v15  ;;  %v5608_v46 = vadd.f32 %v18428_v30, %v5607_v36  ;;  %v1479_v29 = vsel %vm15120_vm2, %v1157_v45, %v1478_v2  ;;  %vm20604_vm7 = vcmask 1046528   ;;  %309 = vst [vmem:[#allocation3 + $0x30] sm:$0x1] %v308_v22  ;;  %v18462_v37 = vld [vmem:[#allocation3 + $0x10] sm:$0xe]  ;;  %v18500_v0 = vpop.permute.xlu0 %4862 }
 0x25d   :  { %v3784_v28 = vsel %vm20604_vm7, %v3782_v18, %v3783_v47  ;;  %vm20605_vm8 = vcmask 48128   ;;  %v5853_v24 = vmax.f32 %v5799_v51, %v5801_v44  ;;  %370 = vst [vmem:[#allocation3 + $0x34] sm:$0x1] %v369_v25  ;;  %1480 = vst [vmem:[#allocation2 + $0x1a0] sm:$0x1] %v1479_v29  ;;  %vm20607_vm5 = vcmask 72704  }
 0x25e   :  { %v4993_v57 = vsel %vm20605_vm8, %v4928_v42, %v18333_v43  ;;  %vm20606_vm4 = vmmov %vm20605_vm8  ;;  %v5800_v61 = vmax.f32 %v5608_v46, 0.0  ;;  %v5802_v14 = vmax.f32 %v5616_v10, 0.0  ;;  %v18471_v43 = vrot.slane %v13279_v31, 1 }
 0x25f   :  { %v4991_v55 = vsel %vm20606_vm4, %v4926_v59, %v18288_v32  ;;  %v5058_v7 = vsel %vm20607_vm5, %v4993_v57, %v18352_v34  ;;  %v6077_v38 = vcombine.high %v5853_v24, %v5853_v24  ;;  %v6084_v41 = vrot.slane %v5853_v24, %v17372_v62  ;;  %vm20608_vm2 = vmmov %vm20607_vm5 }
 0x260   :  { %v1672_v53 = vld [vmem:[#allocation2 + $0x19c] sm:$0xf]  ;;  %3848 = vrot.lane.b32.xlu0 %v3784_v28, %s15043_s16  ;;  %v1800_v39 = vld [vmem:[#allocation2 + $0x1a4] sm:$0xf]  ;;  %v5056_v32 = vsel %vm20608_vm2, %v4991_v55, %v18314_v54  ;;  %vm20609_vm12 = vcmask 97280   ;;  %v13652_v27 = vcombine.low %v18462_v37, %v18473_v50  ;;  %v18487_v5 = vmax.f32 %v5800_v61, %v5802_v14 }
 0x261   :  { %v18476_v45 = vld [vmem:[#allocation2 + $0x19c] sm:$0xf]  ;;  %v5123_v34 = vsel %vm20609_vm12, %v5058_v7, %v18394_v23  ;;  %v1671_v8 = vld [vmem:[#allocation2 + $0x198] sm:$0xf]  ;;  %v18484_v40 = vcombine.low %v1800_v39, %v1801_v12  ;;  %v6091_v21 = vrot.slane %v6077_v38, %v17372_v62  ;;  %v6092_v47 = vcombine.high %v6084_v41, %v6084_v41  ;;  %v18492_v23 = vpop.permute.xlu1 %4606  ;;  %vm20610_vm9 = vmmov %vm20609_vm12 }
 0x262   :  { %v1736_v11 = vld [vmem:[#allocation2 + $0x198] sm:$0xe]  ;;  %v13119_v26 = vcombine.low %v1671_v8, %v1672_v53  ;;  %v13355_v63 = vrot.slane %v6084_v41, 9  ;;  %v18494_v15 = vld [vmem:[#allocation2 + $0x1ac] ss:$0 sps:$4 sm:$0x11]   ;;  %v18504_v42 = vsel %vm20610_vm9, %v5056_v32, %v18336_v13  ;;  %v6094_v29 = vcombine.high %v18487_v5, %v18487_v5  ;;  %v18519_v32 = vpop.permute.xlu0 %2816  ;;  %vm20617_vm12 = vmmov %vm20604_vm7 }
 0x263   :  { %v1798_v58 = vld [vmem:[#allocation2 + $0x198] sm:$0xf]  ;;  %v13183_v4 = vcombine.low %v1736_v11, %v1672_v53  ;;  %v6093_v18 = vcombine.high %v6091_v21, %v6091_v21  ;;  %v13356_v56 = vrot.slane %v6092_v47, 9  ;;  %v13357_v6 = vrot.slane %v6091_v21, 9 }
 0x264   :  { %v18490_v54 = vcombine.low %v1798_v58, %v18476_v45  ;;  %v4545_v12 = vshrl.u32 %v18484_v40, 16  ;;  %3050 = vrot.lane.b32.xlu1 %v13119_v26, %s15041_s14  ;;  %v3521_v36 = vshrl.u32 %v13119_v26, 16  ;;  %v3523_v59 = vshll.u32 %v13119_v26, 16  ;;  %v14734_v44 = vld [vmem:[#allocation2 + $0x1a0] ss:$0 sps:$4 sm:$0x11]  }
 0x265   :  { %v3785_v17 = vrot.slane %v13183_v4, 1  ;;  %v7003_v31 = vmax.f32 %v6084_v41, %v13355_v63  ;;  %v13358_v51 = vrot.slane %v6093_v18, 9  ;;  %v7004_v10 = vmax.f32 %v6092_v47, %v13356_v56  ;;  %v18510_v7 = vld [vmem:[#allocation3 + $0x8] sm:$0xe]  ;;  %v18517_v39 = vpop.permute.xlu1 %2559  ;;  %v18521_v47 = vld [vmem:[#allocation3 + $0xc] sm:$0x1] }
 0x266   :  { %4072 = vrot.lane.b32.xlu0 %v18490_v54, %s15042_s15  ;;  %v7005_v2 = vmax.f32 %v6091_v21, %v13357_v6  ;;  %v3525_v22 = vrot.slane %v3523_v59, 1  ;;  %v4547_v46 = vshll.u32 %v18484_v40, 16  ;;  %v3528_v28 = vshll.u32 %v14734_v44, 16  ;;  %v14796_v61 = vld [vmem:[%s20427_s3 + $0x78] sm:$0xff]  }
 0x267   :  { %v14027_v25 = vpack.c.bf16 %v7003_v31, %v7003_v31  ;;  %v7006_v57 = vmax.f32 %v6093_v18, %v13358_v51  ;;  %v14028_v24 = vpack.c.bf16 %v7004_v10, %v7004_v10  ;;  %v4552_v55 = vshll.u32 %v18494_v15, 16  ;;  %v18515_v53 = vld [vmem:[#allocation2 + $0x1a0] ss:$0 sps:$4 sm:$0x11]   ;;  %14197 = vmatprep.subr.bf16.mxu1 %v14796_v61  ;;  %v8109_v56 = vld [vmem:[#allocation3 + $0x8] sm:$0xf] }
 0x268   :  { %v3526_v13 = vor.u32 %v3525_v22, %v3521_v36  ;;  %v14029_v38 = vpack.c.bf16 %v7005_v2, %v7005_v2  ;;  %v4549_v14 = vrot.slane %v4547_v46, 1  ;;  %v3530_v8 = vrot.slane %v3528_v28, 1  ;;  %v14801_v51 = vld [vmem:[%s20427_s3 + $0x70] sm:$0xff]   ;;  %v1864_v28 = vld [vmem:[#allocation2 + $0x198] sm:$0xe] }
 0x269   :  { %v7643_v41 = vunpack.c.l.b16 %v14027_v25  ;;  %v3786_v11 = vrot.slane %v14734_v44, 1  ;;  %v14030_v58 = vpack.c.bf16 %v7006_v57, %v7006_v57  ;;  %v7644_v21 = vunpack.c.l.b16 %v14028_v24  ;;  %v14799_v44 = vld [vmem:[%s20427_s3 + $0x38] sm:$0xff]  }
 0x26a   :  { %v7645_v26 = vunpack.c.l.b16 %v14029_v38  ;;  %v13651_v63 = vcombine.low %v18510_v7, %v18521_v47  ;;  %vm20611_vm6 = vcmask 121856   ;;  %v3531_v6 = vsel %vm2122_vm10, %v3526_v13, %v3530_v8  ;;  %14198 = vmatpush3.bf16.msra.mxu1 %v14799_v44  ;;  %v18552_v13 = vpop.permute.xlu1 %2561  ;;  %v18554_v38 = vpop.permute.xlu0 %3040  ;;  %v289_v44 = vld [vmem:[#allocation3] sm:$0x1] }
 0x26b   :  { %v7802_v4 = vrot.slane %v7643_v41, 7  ;;  %v18527_v18 = vsel %vm20611_vm6, %v5123_v34, %v18415_v33  ;;  %v7803_v36 = vrot.slane %v7644_v21, 6  ;;  %v4550_v59 = vor.u32 %v4549_v14, %v4545_v12  ;;  %3594 = vrot.lane.b32.xlu1 %v3531_v6, %s15047_s20  ;;  %v18542_v12 = vld [vmem:[#allocation3 + $0xc] sm:$0x1]  ;;  %14199 = vmatprep.subr.bf16.mxu1 %v14801_v51  ;;  %vm20615_vm5 = vmmov %vm20611_vm6 }
 0x26c   :  { %v4554_v31 = vrot.slane %v4552_v55, 1  ;;  %v18537_v10 = vunpack.c.l.b16 %v14030_v58  ;;  %v4533_v33 = vshrl.u32 %v18490_v54, 16  ;;  %v4535_v34 = vshll.u32 %v18490_v54, 16 }
 0x26d   :  { %v4540_v2 = vshll.u32 %v18515_v53, 16  ;;  %v3787_v22 = vsel %vm20604_vm7, %v3785_v17, %v3786_v11  ;;  %v6101_v25 = vrot.slane %v18487_v5, %v17372_v62  ;;  %v6108_v46 = vrot.slane %v6094_v29, %v17372_v62  ;;  %v14802_v29 = vld [vmem:[%s20427_s3 + $0x30] sm:$0xff]  }
 0x26e   :  { %v18549_v57 = vcombine.low %v8109_v56, %v18542_v12  ;;  %vm20612_vm8 = vcmask 1042434   ;;  %v7805_v55 = vrot.slane %v7645_v26, 5  ;;  %v4537_v54 = vrot.slane %v4535_v34, 1  ;;  %v14803_v26 = vld [vmem:[%s20427_s3 + $0x68] sm:$0xff]   ;;  %14200 = vmatpush3.bf16.msra.mxu1 %v14802_v29 }
 0x26f   :  { %v7804_v24 = vsel %vm20612_vm8, %v7803_v36, %v7802_v4  ;;  %v4542_v61 = vrot.slane %v4540_v2, 1  ;;  %v6109_v17 = vcombine.high %v6101_v25, %v6101_v25  ;;  %v6110_v41 = vcombine.high %v6108_v46, %v6108_v46  ;;  %3850 = vrot.lane.b32.xlu1 %v3787_v22, %s15043_s16  ;;  %14201 = vmatprep.subr.bf16.mxu1 %v14803_v26  ;;  %s15052_s16 = smov 64  }
 0x270   :  { %v13359_v5 = vrot.slane %v6101_v25, 9  ;;  %v13361_v14 = vrot.slane %v6108_v46, 9  ;;  %v7807_v8 = vrot.slane %v18537_v10, 4  ;;  %v4555_v11 = vsel %vm2122_vm10, %v4550_v59, %v4554_v31  ;;  %v350_v31 = vld [vmem:[#allocation3 + $0x4] sm:$0x1] }
 0x271   :  { %v4538_v58 = vor.u32 %v4537_v54, %v4533_v33  ;;  %v13278_v21 = vcombine.low %v1864_v28, %v18476_v45  ;;  %v13360_v4 = vrot.slane %v6109_v17, 9  ;;  %v13362_v56 = vrot.slane %v6110_v41, 9  ;;  %v18570_v28 = vld [vmem:[#allocation3 + $0x18] sm:$0xf] }
 0x272   :  { %v7007_v6 = vmax.f32 %v6101_v25, %v13359_v5  ;;  %v7009_v36 = vmax.f32 %v6108_v46, %v13361_v14  ;;  %vm20613_vm4 = vcmask 1043459   ;;  %v4807_v59 = vrot.slane %v18515_v53, 1  ;;  %v14804_v25 = vld [vmem:[%s20427_s3 + $0x28] sm:$0xff]   ;;  %v14807_v46 = vld [vmem:[%s20427_s3 + $0x60] sm:$0xff]  }
 0x273   :  { %v7806_v51 = vsel %vm20613_vm4, %v7805_v55, %v7804_v24  ;;  %v4543_v34 = vsel %vm2122_vm10, %v4538_v58, %v4542_v61  ;;  %v4806_v10 = vrot.slane %v13278_v21, 1  ;;  %v7008_v45 = vmax.f32 %v6109_v17, %v13360_v4  ;;  %4074 = vrot.lane.b32.xlu1 %v18484_v40, %s15042_s15  ;;  %v8045_v53 = vld [vmem:[#allocation3 + $0x34] sm:$0x1]  ;;  %vm20614_vm10 = vmmov %vm20604_vm7  ;;  %v18585_v17 = vpop.permute.xlu1 %2818  ;;  %v8222_v40 = vld [vmem:[#allocation3 + $0x1c] sm:$0x1]  ;;  %14202 = vmatpush3.bf16.msra.mxu1 %v14804_v25 }
 0x274   :  { %4616 = vrot.lane.b32.xlu0 %v4543_v34, %s15048_s25  ;;  %v7010_v33 = vmax.f32 %v6110_v41, %v13362_v56  ;;  %v14031_v2 = vpack.c.bf16 %v7007_v6, %v7007_v6  ;;  %v14033_v22 = vpack.c.bf16 %v7009_v36, %v7009_v36  ;;  %v4810_v24 = vrot.slane %v18494_v15, 1  ;;  %v18587_v41 = vpop.permute.xlu0 %3584  ;;  %v18589_v21 = vld [vmem:[#allocation3 + $0x10] sm:$0xf]  ;;  %v14363_v15 = vpop.f32.mrf.mxu0  ;;  %14203 = vmatprep.subr.bf16.mxu1 %v14807_v46 }
 0x275   :  { %v4808_v55 = vsel %vm20614_vm10, %v4806_v10, %v4807_v59  ;;  %v8343_v54 = vshll.u32 %v18549_v57, 16  ;;  %v290_v61 = vsel %vm17291_vm3, 0, %v289_v44  ;;  %v14032_v5 = vpack.c.bf16 %v7008_v45, %v7008_v45  ;;  %v14808_v25 = vld [vmem:[%s20427_s3 + $0x20] sm:$0xff]  }
 0x276   :  { %v7647_v14 = vunpack.c.l.b16 %v14031_v2  ;;  %v7649_v29 = vunpack.c.l.b16 %v14033_v22  ;;  %v14120_v58 = vpack.c.bf16 %v7010_v33, %v7010_v33  ;;  %291 = vst [vmem:[#allocation3] sm:$0x1] %v290_v61  ;;  %v7808_v26 = vsel %vm7739_vm11, %v7807_v8, %v7806_v51  ;;  %v8221_v51 = vld [vmem:[#allocation3 + $0x14] sm:$0x1] }
 0x277   :  { %v5186_v4 = vsel %vm20615_vm5, %v18504_v42, %v18359_v48  ;;  %v351_v56 = vsel %vm17316_vm1, 0, %v350_v31  ;;  %v18598_v6 = vcombine.low %v18570_v28, %v8222_v40  ;;  %v7648_v36 = vunpack.c.l.b16 %v14032_v5  ;;  %4618 = vrot.lane.b32.xlu1 %v4555_v11, %s15048_s25  ;;  %v5620_v11 = vpop.f32.mrf.mxu0  ;;  %14204 = vmatpush3.bf16.msra.mxu1 %v14808_v25  ;;  %v18651_v40 = vld [vmem:[#allocation3 + $0x10] sm:$0xf]  ;;  %v8191_v25 = vld [vmem:[#allocation3 + $0x20] sm:$0xe] }
 0x278   :  { %v7809_v44 = vrot.slane %v7647_v14, 3  ;;  %v8046_v34 = vsel %vm17291_vm3, %v14120_v58, %v8045_v53  ;;  %4872 = vrot.lane.b32.xlu0 %v4808_v55, %s15045_s18  ;;  %352 = vst [vmem:[#allocation3 + $0x4] sm:$0x1] %v351_v56  ;;  %vm20616_vm2 = vcmask 146432   ;;  %v7813_v48 = vrot.slane %v7649_v29, 1  ;;  %v18625_v22 = vpop.permute.xlu0 %3840  ;;  %v14810_v56 = vld [vmem:[%s20427_s3 + $0x18] sm:$0xff]  }
 0x279   :  { %v5251_v8 = vsel %vm20616_vm2, %v5186_v4, %v18398_v52  ;;  %8047 = vst [vmem:[#allocation3 + $0x34] sm:$0x1] %v8046_v34  ;;  %v4811_v42 = vsel %vm20617_vm12, %v18471_v43, %v4810_v24  ;;  %v8861_v10 = vrot.slane %v13651_v63, 1  ;;  %v18612_v59 = vcombine.low %v18589_v21, %v8221_v51  ;;  %vm20620_vm7 = vmmov %vm20616_vm2  ;;  %v18623_v63 = vpop.permute.xlu1 %3042  ;;  %v18639_v53 = vld [vmem:[#allocation3 + $0x8] sm:$0xf] }
 0x27a   :  { %vm20618_vm9 = vcmask 1045509   ;;  %v7811_v45 = vrot.slane %v7648_v36, 2  ;;  %v8345_v33 = vrot.slane %v8343_v54, 1  ;;  %vm20619_vm6 = vcmask 171008   ;;  %v8042_v55 = vld [vmem:[#allocation3 + $0x30] sm:$0xf] }
 0x27b   :  { %v7810_v31 = vsel %vm20618_vm9, %v7809_v44, %v7808_v26  ;;  %v5316_v52 = vsel %vm20619_vm6, %v5251_v8, %v18433_v20  ;;  %v5253_v2 = vsel %vm20620_vm7, %v18527_v18, %v18455_v9  ;;  %vm20621_vm8 = vcmask 195584   ;;  %v14809_v20 = vld [vmem:[%s20427_s3 + $0x58] sm:$0xff]   ;;  %vm20622_vm4 = vmmov %vm20619_vm6  ;;  %4874 = vrot.lane.b32.xlu1 %v4811_v42, %s15045_s18  ;;  %v14364_v26 = vpop.f32.mrf.mxu0  ;;  %v14811_v36 = vld [vmem:[%s20427_s3 + $0x50] sm:$0xff]   ;;  %s12984_s18 = sshll.u32 %s15057_s22, 4  ;;  %s12985_s18 = int_to_ptr.vmem [resolvable:$true] %s12984_s18 }
 0x27c   :  { %v5381_v43 = vsel %vm20621_vm8, %v5316_v52, %v18468_v1  ;;  %v9047_v7 = vshll.u32 %v18598_v6, 16  ;;  %v7812_v46 = vsel %vm7745_vm15, %v7811_v45, %v7810_v31  ;;  %8877 = vrot.lane.b32.xlu0 %v8861_v10, %s15051_s0  ;;  %v8341_v9 = vshrl.u32 %v18549_v57, 16  ;;  %v8141_v18 = vld [vmem:[#allocation3 + $0x8] sm:$0xe]  ;;  %vm20624_vm5 = vmmov %vm20621_vm8  ;;  %14205 = vmatprep.subr.bf16.mxu1 %v14809_v20  ;;  %v310_v31 = vld [vmem:[#allocation3 + $0x38] sm:$0x1]  ;;  %v18685_v52 = vpop.permute.xlu0 %4064  ;;  %p15023_p1 = scmp.lt.s32.totalorder %s12985_s18, %s12985_s18 }
 0x27d   :  { %v5318_v1 = vsel %vm20622_vm4, %v5253_v2, %v18492_v23  ;;  %vm20623_vm10 = vcmask 220160   ;;  %v7814_v24 = vsel %vm7748_vm14, %v7813_v48, %v7812_v46  ;;  %v8862_v54 = vrot.slane %v13652_v27, 1  ;;  %v8108_v61 = vld [vmem:[#allocation3] sm:$0xf]  ;;  %v371_v45 = vld [vmem:[#allocation3 + $0x3c] sm:$0x1]  ;;  %14206 = vmatpush3.bf16.msra.mxu1 %v14810_v56 }
 0x27e   :  { %14385 = vmatprep.mubr.msk.bf16.mxu0 %vm20623_vm10, %v5381_v43  ;;  %v9040_v57 = vshll.u32 %v18612_v59, 16  ;;  %v5383_v23 = vsel %vm20624_vm5, %v5318_v1, %v18500_v0  ;;  %v7955_v5 = vpack.c.b16 %v7814_v24, %v7814_v24  ;;  %v8346_v14 = vor.u32 %v8345_v33, %v8341_v9  ;;  %vm20625_vm2 = vmmov %vm20623_vm10  ;;  %v20626_v48 = vld [vmem:[#allocation9_spill] sm:$0xff]  ;;  %v18683_v33 = vpop.permute.xlu1 %3586  ;;  %v8190_v2 = vld [vmem:[#allocation3 + $0x18] sm:$0xe]  ;;  %v5623_v43 = vpop.f32.mrf.mxu0  ;;  %14207 = vmatprep.subr.bf16.mxu1 %v14811_v36  ;;  %s15018_s17 = scalar_lea.vmem %s12985_s18, 32 }
 0x27f   :  { %v13668_v29 = vcombine.low %v18570_v28, %v18570_v28  ;;  %v9049_v58 = vrot.slane %v9047_v7, 1  ;;  %14386 = vmatmul.mubr.msk.bf16.gmra.mxu0 %vm20625_vm2, %v5383_v23  ;;  %v18654_v37 = vld [vmem:[#allocation3 + $0x4] sm:$0x1]  ;;  %v13667_v50 = vcombine.low %v18589_v21, %v18589_v21  ;;  %v13604_v27 = vcombine.low %v8141_v18, %v18542_v12  ;;  %v8140_v12 = vld [vmem:[#allocation3] sm:$0xe]  ;;  %8879 = vrot.lane.b32.xlu1 %v8862_v54, %s15051_s0  ;;  %v14814_v9 = vld [vmem:[%s20427_s3 + $0x48] sm:$0xff]   ;;  %p15019_p0 = scmp.ne.s32.totalorder %s12985_s18, %s15018_s17  ;;  %p15024_p2 = scmp.lt.s32.totalorder %s15018_s17, %s15018_s17 }
 0x280   :  { %v5629_v0 = vadd.f32 %v18428_v30, %v14363_v15  ;;  %v18662_v4 = vcombine.low %v18639_v53, %v18521_v47  ;;  %v8043_v44 = vsel %vm17647_vm0, %v7955_v5, %v8042_v55  ;;  %v13587_v34 = vcombine.low %v8108_v61, %v18654_v37  ;;  %v14812_v46 = vld [vmem:[%s20427_s3 + $0x10] sm:$0xff]   ;;  %v18701_v24 = vld [vmem:[#allocation3 + $0x1c] sm:$0x1] }
 0x281   :  { %v4930_v15 = vsel %vm4876_vm13, %v17836_v35, %v18517_v39  ;;  %v9045_v47 = vshrl.u32 %v18598_v6, 16  ;;  %8044 = vst [vmem:[#allocation3 + $0x30] sm:$0xf] %v8043_v44  ;;  %v9038_v8 = vshrl.u32 %v18612_v59, 16  ;;  %v9042_v51 = vrot.slane %v9040_v57, 1  ;;  %14208 = vmatpush3.bf16.msra.mxu1 %v14812_v46  ;;  %v14815_v36 = vld [vmem:[%s20427_s3 + $0x8] sm:$0xff]   ;;  %p15025_p3 = por %p15024_p2, %p15023_p1 }
 0x282   :  { %v4932_v42 = vsel %vm4876_vm13, %v20626_v48, %v18552_v13  ;;  %v5621_v10 = vadd.f32 %v18428_v30, %v5620_v11  ;;  %v8334_v35 = vshrl.u32 %v13587_v34, 16  ;;  %v8336_v39 = vshll.u32 %v13587_v34, 16  ;;  %v18710_v5 = vld [vmem:[#allocation3 + $0x24] sm:$0x1]  ;;  %14209 = vmatprep.subr.bf16.mxu1 %v14814_v9  ;;  %v14816_v44 = vld [vmem:[%s20427_s3 + $0x40] sm:$0xff]   ;;  %v18728_v48 = vpop.permute.xlu0 %4608 }
 0x283   :  { %v18687_v6 = vor.u32 %v9049_v58, %v9045_v47  ;;  %v13620_v59 = vcombine.low %v18651_v40, %v18651_v40  ;;  %v5805_v13 = vmax.f32 %v5629_v0, 0.0  ;;  %v13619_v11 = vcombine.low %v18639_v53, %v18639_v53  ;;  %8447 = vrot.lane.b32.xlu1 %v8346_v14, %s15051_s0  ;;  %p15026_p4 = pnand %p15025_p3, %p15019_p0 }
 0x284   :  { %v5803_v7 = vmax.f32 %v5621_v10, 0.0  ;;  %v5632_v20 = vadd.f32 %v18428_v30, %v14364_v26  ;;  %v8338_v1 = vrot.slane %v8336_v39, 1  ;;  %v13603_v18 = vcombine.low %v8140_v12, %v18654_v37  ;;  %v8111_v26 = vld [vmem:[#allocation3 + $0x18] sm:$0xf] }
 0x285   :  { %v311_v55 = vsel %vm17291_vm3, 0, %v310_v31  ;;  %v372_v54 = vsel %vm17316_vm1, 0, %v371_v45  ;;  %v8526_v61 = vrot.slane %v13604_v27, 1  ;;  %v18708_v57 = vor.u32 %v9042_v51, %v9038_v8  ;;  %v18717_v27 = vpop.permute.xlu1 %3842  ;;  %v18726_v8 = vld [vmem:[#allocation3 + $0x1c] sm:$0x1]  ;;  %14210 = vmatpush3.bf16.msra.mxu1 %v14815_v36 }
 0x286   :  { %v5855_v23 = vmax.f32 %v5803_v7, %v5805_v13  ;;  %312 = vst [vmem:[#allocation3 + $0x38] sm:$0x1] %v311_v55  ;;  %373 = vst [vmem:[#allocation3 + $0x3c] sm:$0x1] %v372_v54  ;;  %v5624_v58 = vadd.f32 %v18428_v30, %v5623_v43  ;;  %v8339_v37 = vor.u32 %v8338_v1, %v8334_v35  ;;  %vm20627_vm12 = vcmask 48128   ;;  %14211 = vmatprep.subr.bf16.mxu1 %v14816_v44  ;;  %v14817_v55 = vld [vmem:[%s20427_s3] sm:$0xff]  }
 0x287   :  { %v4997_v0 = vsel %vm20627_vm12, %v4932_v42, %v18585_v17  ;;  %v13654_v56 = vcombine.low %v8191_v25, %v18710_v5  ;;  %v13653_v14 = vcombine.low %v8190_v2, %v18701_v24  ;;  %v5806_v47 = vmax.f32 %v5632_v20, 0.0  ;;  %v8110_v51 = vld [vmem:[#allocation3 + $0x10] sm:$0xf]  ;;  %vm20628_vm9 = vmmov %vm20627_vm12  ;;  %8959 = vrot.lane.b32.xlu1 %v13668_v29, %s15052_s16  ;;  %v18743_v13 = vld [vmem:[#allocation3 + $0x14] sm:$0x1] }
 0x288   :  { %v6111_v34 = vcombine.high %v5855_v23, %v5855_v23  ;;  %v6118_v12 = vrot.slane %v5855_v23, %v17372_v62  ;;  %v5804_v17 = vmax.f32 %v5624_v58, 0.0  ;;  %8445 = vrot.lane.b32.xlu0 %v8339_v37, %s15051_s0  ;;  %v8525_v42 = vrot.slane %v13603_v18, 1  ;;  %v18772_v58 = vpop.permute.xlu0 %4864 }
 0x289   :  { %v4995_v10 = vsel %vm20628_vm9, %v4930_v15, %v18519_v32  ;;  %vm20629_vm6 = vcmask 72704   ;;  %v18736_v45 = vcombine.low %v8111_v26, %v18726_v8  ;;  %v18745_v32 = vrot.slane %v13654_v56, 1  ;;  %v18766_v18 = vpop.permute.xlu1 %4066  ;;  %14212 = vmatpush3.bf16.msra.mxu1 %v14817_v55 }
 0x28a   :  { %v5062_v31 = vsel %vm20629_vm6, %v4997_v0, %v18623_v63  ;;  %v6125_v35 = vrot.slane %v6111_v34, %v17372_v62  ;;  %v6126_v39 = vcombine.high %v6118_v12, %v6118_v12  ;;  %v13363_v2 = vrot.slane %v6118_v12, 9  ;;  %vm20630_vm7 = vmmov %vm20629_vm6 }
 0x28b   :  { %v5856_v43 = vmax.f32 %v5804_v17, %v5806_v47  ;;  %v18747_v63 = vrot.slane %v13653_v14, 1  ;;  %v18751_v15 = vsel %vm20630_vm7, %v4995_v10, %v18554_v38  ;;  %v18754_v7 = vcombine.low %v8110_v51, %v18743_v13  ;;  %8543 = vrot.lane.b32.xlu1 %v8526_v61, %s15052_s16  ;;  %v8240_v17 = vld [vmem:[#allocation3 + $0x28] sm:$0xe] }
 0x28c   :  { %v6127_v28 = vcombine.high %v6125_v35, %v6125_v35  ;;  %v13364_v29 = vrot.slane %v6126_v39, 9  ;;  %v13365_v25 = vrot.slane %v6125_v35, 9  ;;  %v7011_v20 = vmax.f32 %v6118_v12, %v13363_v2  ;;  %8957 = vrot.lane.b32.xlu0 %v13667_v50, %s15052_s16 }
 0x28d   :  { %v6128_v46 = vcombine.high %v5856_v43, %v5856_v43  ;;  %v6135_v9 = vrot.slane %v5856_v43, %v17372_v62  ;;  %v8357_v1 = vshll.u32 %v18736_v45, 16  ;;  %vm20631_vm8 = vcmask 97280   ;;  %v18781_v55 = vpop.permute.xlu0 %4866 }
 0x28e   :  { %v18764_v38 = vsel %vm20631_vm8, %v5062_v31, %v18683_v33  ;;  %v13366_v54 = vrot.slane %v6127_v28, 9  ;;  %v7012_v21 = vmax.f32 %v6126_v39, %v13364_v29  ;;  %v7013_v50 = vmax.f32 %v6125_v35, %v13365_v25  ;;  %v8224_v29 = vld [vmem:[#allocation3 + $0x2c] sm:$0x1]  ;;  %v18779_v25 = vpop.permute.xlu1 %4610  ;;  %vm20635_vm2 = vmmov %vm20631_vm8 }
 0x28f   :  { %v14035_v23 = vpack.c.bf16 %v7011_v20, %v7011_v20  ;;  %v6142_v26 = vrot.slane %v6128_v46, %v17372_v62  ;;  %v6143_v37 = vcombine.high %v6135_v9, %v6135_v9  ;;  %v13367_v0 = vrot.slane %v6135_v9, 9  ;;  %9151 = vrot.lane.b32.xlu1 %v18687_v6, %s15053_s13 }
 0x290   :  { %v8350_v33 = vshll.u32 %v18754_v7, 16  ;;  %v7014_v56 = vmax.f32 %v6127_v28, %v13366_v54  ;;  %v14036_v14 = vpack.c.bf16 %v7012_v21, %v7012_v21  ;;  %v14037_v36 = vpack.c.bf16 %v7013_v50, %v7013_v50  ;;  %8541 = vrot.lane.b32.xlu0 %v8525_v42, %s15052_s16 }
 0x291   :  { %v7651_v44 = vunpack.c.l.b16 %v14035_v23  ;;  %v6144_v61 = vcombine.high %v6142_v26, %v6142_v26  ;;  %v13368_v34 = vrot.slane %v6143_v37, 9  ;;  %v13369_v12 = vrot.slane %v6142_v26, 9  ;;  %v8223_v23 = vld [vmem:[#allocation3 + $0x24] sm:$0x1] }
 0x292   :  { %v7015_v47 = vmax.f32 %v6135_v9, %v13367_v0  ;;  %v14038_v51 = vpack.c.bf16 %v7014_v56, %v7014_v56  ;;  %v7652_v10 = vunpack.c.l.b16 %v14036_v14  ;;  %v7653_v31 = vunpack.c.l.b16 %v14037_v36  ;;  %v18790_v36 = vld [vmem:[#allocation3 + $0x28] sm:$0xf] }
 0x293   :  { %v7815_v35 = vrot.slane %v7651_v44, 7  ;;  %v13370_v39 = vrot.slane %v6144_v61, 9  ;;  %v7016_v2 = vmax.f32 %v6143_v37, %v13368_v34  ;;  %v7017_v43 = vmax.f32 %v6142_v26, %v13369_v12  ;;  %v8239_v37 = vld [vmem:[#allocation3 + $0x20] sm:$0xe]  ;;  %8623 = vrot.lane.b32.xlu1 %v13620_v59, %s15053_s13  ;;  %v8051_v12 = vld [vmem:[#allocation3 + $0x3c] sm:$0x1] }
 0x294   :  { %v14039_v28 = vpack.c.bf16 %v7015_v47, %v7015_v47  ;;  %v7654_v42 = vunpack.c.l.b16 %v14038_v51  ;;  %v7816_v20 = vrot.slane %v7652_v10, 6  ;;  %v7818_v46 = vrot.slane %v7653_v31, 5  ;;  %9149 = vrot.lane.b32.xlu0 %v18708_v57, %s15053_s13  ;;  %v18793_v47 = vld [vmem:[#allocation3 + $0x20] sm:$0xf]  ;;  %v18798_v10 = vpop.f32.mrf.mxu0 }
 0x295   :  { %v13702_v9 = vcombine.low %v8240_v17, %v8224_v29  ;;  %v7018_v6 = vmax.f32 %v6144_v61, %v13370_v39  ;;  %v14040_v54 = vpack.c.bf16 %v7016_v2, %v7016_v2  ;;  %v14041_v21 = vpack.c.bf16 %v7017_v43, %v7017_v43  ;;  %v8143_v39 = vld [vmem:[#allocation3 + $0x18] sm:$0xe]  ;;  %v18808_v2 = vpop.permute.xlu1 %2563 }
 0x296   :  { %v7655_v50 = vunpack.c.l.b16 %v14039_v28  ;;  %vm20632_vm4 = vcmask 1042434   ;;  %v7820_v0 = vrot.slane %v7654_v42, 4  ;;  %v8359_v56 = vrot.slane %v8357_v1, 1  ;;  %v18820_v42 = vpop.permute.xlu0 %2820 }
 0x297   :  { %v7817_v26 = vsel %vm20632_vm4, %v7816_v20, %v7815_v35  ;;  %v8352_v14 = vrot.slane %v8350_v33, 1  ;;  %vm20633_vm10 = vcmask 1043459   ;;  %v7656_v44 = vunpack.c.l.b16 %v14040_v54  ;;  %8883 = vrot.lane.b32.xlu1 %v18745_v32, %s15051_s0 }
 0x298   :  { %v7819_v57 = vsel %vm20633_vm10, %v7818_v46, %v7817_v26  ;;  %v7657_v61 = vunpack.c.l.b16 %v14041_v21  ;;  %v7822_v34 = vrot.slane %v7655_v50, 3  ;;  %v14121_v51 = vpack.c.bf16 %v7018_v6, %v7018_v6  ;;  %8621 = vrot.lane.b32.xlu0 %v13619_v11, %s15053_s13  ;;  %v8048_v6 = vld [vmem:[#allocation3 + $0x38] sm:$0xf] }
 0x299   :  { %v7821_v17 = vsel %vm7739_vm11, %v7820_v0, %v7819_v57  ;;  %v18796_v40 = vrot.slane %v13702_v9, 1  ;;  %v13701_v59 = vcombine.low %v8239_v37, %v8223_v23  ;;  %vm20634_vm5 = vcmask 1045509   ;;  %v18840_v0 = vld [vmem:[#allocation3 + $0x18] sm:$0xf] }
 0x29a   :  { %v7823_v1 = vsel %vm20634_vm5, %v7822_v34, %v7821_v17  ;;  %v7824_v33 = vrot.slane %v7656_v44, 2  ;;  %v7826_v31 = vrot.slane %v7657_v61, 1  ;;  %v18806_v35 = vcombine.low %v18790_v36, %v8224_v29  ;;  %v8113_v34 = vld [vmem:[#allocation3 + $0x28] sm:$0xf] }
 0x29b   :  { %v8052_v43 = vsel %vm17291_vm3, %v14121_v51, %v8051_v12  ;;  %v8355_v28 = vshrl.u32 %v18736_v45, 16  ;;  %v18816_v53 = vcombine.low %v18793_v47, %v8223_v23  ;;  %v18818_v11 = vrot.slane %v13701_v59, 1  ;;  %v8142_v45 = vld [vmem:[#allocation3 + $0x10] sm:$0xe]  ;;  %v18833_v23 = vld [vmem:[#allocation3 + $0x20] sm:$0xf]  ;;  %v18870_v51 = vpop.permute.xlu0 %3044 }
 0x29c   :  { %v7825_v29 = vsel %vm7745_vm15, %v7824_v33, %v7823_v1  ;;  %8053 = vst [vmem:[#allocation3 + $0x3c] sm:$0x1] %v8052_v43  ;;  %v8348_v20 = vshrl.u32 %v18754_v7, 16  ;;  %v5125_v32 = vsel %vm20635_vm2, %v18751_v15, %v18587_v41  ;;  %v13670_v46 = vcombine.low %v18790_v36, %v18790_v36  ;;  %v5636_v7 = vpop.f32.mrf.mxu0  ;;  %8881 = vrot.lane.b32.xlu0 %v18747_v63, %s15051_s0  ;;  %v8193_v33 = vld [vmem:[#allocation3 + $0x30] sm:$0xe] }
 0x29d   :  { %v7827_v9 = vsel %vm7748_vm14, %v7826_v31, %v7825_v29  ;;  %v8360_v54 = vor.u32 %v8359_v56, %v8355_v28  ;;  %v13721_v21 = vcombine.low %v18818_v11, %v18796_v40  ;;  %v13606_v50 = vcombine.low %v8143_v39, %v18726_v8  ;;  %v18888_v29 = vld [vmem:[#allocation3 + $0x34] sm:$0x1] }
 0x29e   :  { %v7957_v41 = vpack.c.b16 %v7827_v9, %v7827_v9  ;;  %v8353_v15 = vor.u32 %v8352_v14, %v8348_v20  ;;  %vm20636_vm12 = vcmask 121856   ;;  %v9061_v26 = vshll.u32 %v18806_v35, 16  ;;  %v313_v14 = vld [vmem:[#allocation3 + $0x40] sm:$0x1]  ;;  %v18890_v20 = vld [vmem:[#allocation3 + $0x2c] sm:$0x1] }
 0x29f   :  { %v5190_v37 = vsel %vm20636_vm12, %v5125_v32, %v18625_v22  ;;  %8451 = vrot.lane.b32.xlu1 %v8360_v54, %s15051_s0  ;;  %v13669_v8 = vcombine.low %v18793_v47, %v18793_v47  ;;  %v13605_v56 = vcombine.low %v8142_v45, %v18743_v13  ;;  %vm20637_vm9 = vcmask 146432   ;;  %vm20638_vm6 = vmmov %vm20636_vm12  ;;  %v2566_v13 = vpop.permute.xlu1 %2565 }
 0x2a0   :  { %v5255_v36 = vsel %vm20637_vm9, %v5190_v37, %v18685_v52  ;;  %v9054_v63 = vshll.u32 %v18816_v53, 16  ;;  %v8049_v22 = vsel %vm17647_vm0, %v7957_v41, %v8048_v6  ;;  %v5192_v57 = vsel %vm20638_vm6, %v18764_v38, %v18717_v27  ;;  %v8112_v52 = vld [vmem:[#allocation3 + $0x20] sm:$0xf]  ;;  %vm20640_vm8 = vmmov %vm20637_vm9  ;;  %v18868_v38 = vld [vmem:[#allocation3 + $0x2c] sm:$0x1]  ;;  %8449 = vrot.lane.b32.xlu0 %v8353_v15, %s15051_s0 }
 0x2a1   :  { %vm20639_vm7 = vcmask 171008   ;;  %v18858_v61 = vcombine.low %v18833_v23, %v18710_v5  ;;  %8050 = vst [vmem:[#allocation3 + $0x38] sm:$0xf] %v8049_v22  ;;  %v8528_v12 = vrot.slane %v13606_v50, 1  ;;  %v5257_v47 = vsel %vm20640_vm8, %v5192_v57, %v18766_v18  ;;  %v14368_v5 = vpop.f32.mrf.mxu0  ;;  %v374_v6 = vld [vmem:[#allocation3 + $0x44] sm:$0x1] }
 0x2a2   :  { %v5320_v44 = vsel %vm20639_vm7, %v5255_v36, %v18728_v48  ;;  %v18864_v17 = vcombine.low %v18840_v0, %v18701_v24  ;;  %vm20641_vm4 = vcmask 195584   ;;  %v8192_v48 = vld [vmem:[#allocation3 + $0x28] sm:$0xe]  ;;  %v9059_v59 = vshrl.u32 %v18806_v35, 16  ;;  %vm20642_vm10 = vmmov %vm20639_vm7  ;;  %v18883_v35 = vld [vmem:[#allocation3 + $0x24] sm:$0x1] }
 0x2a3   :  { %v5385_v27 = vsel %vm20641_vm4, %v5320_v44, %v18772_v58  ;;  %v9063_v1 = vrot.slane %v9061_v26, 1  ;;  %v5322_v18 = vsel %vm20642_vm10, %v5257_v47, %v18779_v25  ;;  %vm20643_vm5 = vcmask 220160   ;;  %8963 = vrot.lane.b32.xlu1 %v13670_v46, %s15052_s16  ;;  %vm20644_vm2 = vmmov %vm20641_vm4  ;;  %v5639_v54 = vpop.f32.mrf.mxu0  ;;  %v2823_v37 = vpop.permute.xlu1 %2822 }
 0x2a4   :  { %14389 = vmatprep.mubr.msk.bf16.mxu0 %vm20643_vm5, %v5385_v27  ;;  %v314_v24 = vsel %vm17291_vm3, 0, %v313_v14  ;;  %v8527_v58 = vrot.slane %v13605_v56, 1  ;;  %v9056_v31 = vrot.slane %v9054_v63, 1  ;;  %v5387_v39 = vsel %vm20644_vm2, %v5322_v18, %v18781_v55  ;;  %vm20645_vm12 = vmmov %vm20643_vm5  ;;  %8961 = vrot.lane.b32.xlu0 %v13669_v8, %s15052_s16  ;;  %v18907_v63 = vpop.permute.xlu0 %3588  ;;  %v20647_v8 = vld [vmem:[#allocation12_spill] sm:$0xff]  ;;  %v8225_v18 = vld [vmem:[#allocation3 + $0x34] sm:$0x1] }
 0x2a5   :  { %v13592_v43 = vcombine.low %v8113_v34, %v18868_v38  ;;  %315 = vst [vmem:[#allocation3 + $0x40] sm:$0x1] %v314_v24  ;;  %v9052_v25 = vshrl.u32 %v18816_v53, 16  ;;  %v13622_v28 = vcombine.low %v18833_v23, %v18833_v23  ;;  %v5645_v32 = vadd.f32 %v18428_v30, %v18798_v10  ;;  %14390 = vmatmul.mubr.msk.bf16.gmra.mxu0 %vm20645_vm12, %v5387_v39  ;;  %v20646_v10 = vld [vmem:[#allocation10_spill] sm:$0xff] }
 0x2a6   :  { %v13591_v46 = vcombine.low %v8112_v52, %v18883_v35  ;;  %v13656_v55 = vcombine.low %v8193_v33, %v18888_v29  ;;  %v13655_v45 = vcombine.low %v8192_v48, %v18890_v20  ;;  %v5637_v53 = vadd.f32 %v18428_v30, %v5636_v7  ;;  %v18926_v33 = vld [vmem:[#allocation3 + $0x20] sm:$0xe] }
 0x2a7   :  { %v8371_v9 = vshll.u32 %v13592_v43, 16  ;;  %v9064_v50 = vor.u32 %v9063_v1, %v9059_v59  ;;  %v13621_v23 = vcombine.low %v18840_v0, %v18840_v0  ;;  %v4934_v41 = vsel %vm4876_vm13, %v20646_v10, %v18808_v2  ;;  %8547 = vrot.lane.b32.xlu1 %v8528_v12, %s15052_s16  ;;  %v18916_v12 = vld [vmem:[#allocation3 + $0x30] sm:$0xf]  ;;  %v18933_v39 = vpop.permute.xlu1 %3046 }
 0x2a8   :  { %v8364_v15 = vshll.u32 %v13591_v46, 16  ;;  %v9057_v26 = vor.u32 %v9056_v31, %v9052_v25  ;;  %v5809_v56 = vmax.f32 %v5645_v32, 0.0  ;;  %v5807_v36 = vmax.f32 %v5637_v53, 0.0  ;;  %8545 = vrot.lane.b32.xlu0 %v8527_v58, %s15052_s16 }
 0x2a9   :  { %v5648_v7 = vadd.f32 %v18428_v30, %v14368_v5  ;;  %v4936_v14 = vsel %vm4876_vm13, %v20647_v8, %v2566_v13  ;;  %v8373_v22 = vrot.slane %v8371_v9, 1  ;;  %v375_v0 = vsel %vm17316_vm1, 0, %v374_v6 }
 0x2aa   :  { %v5640_v2 = vadd.f32 %v18428_v30, %v5639_v54  ;;  %v8866_v57 = vrot.slane %v13656_v55, 1  ;;  %v18914_v44 = vrot.slane %v13655_v45, 1  ;;  %v8369_v34 = vshrl.u32 %v13592_v43, 16  ;;  %376 = vst [vmem:[#allocation3 + $0x44] sm:$0x1] %v375_v0  ;;  %v18942_v45 = vpop.permute.xlu0 %3844 }
 0x2ab   :  { %v5857_v52 = vmax.f32 %v5807_v36, %v5809_v56  ;;  %v8366_v47 = vrot.slane %v8364_v15, 1  ;;  %vm20648_vm9 = vcmask 48128   ;;  %v5810_v13 = vmax.f32 %v5648_v7, 0.0  ;;  %9155 = vrot.lane.b32.xlu1 %v9064_v50, %s15053_s13  ;;  %v18940_v55 = vld [vmem:[#allocation3 + $0x38] sm:$0xf] }
 0x2ac   :  { %v18920_v27 = vsel %vm20648_vm9, %v4936_v14, %v2823_v37  ;;  %v5808_v48 = vmax.f32 %v5640_v2, 0.0  ;;  %v8362_v5 = vshrl.u32 %v13591_v46, 16  ;;  %vm20649_vm6 = vmmov %vm20648_vm9  ;;  %v8374_v24 = vor.u32 %v8373_v22, %v8369_v34  ;;  %9153 = vrot.lane.b32.xlu0 %v9057_v26, %s15053_s13  ;;  %v18953_v34 = vpop.permute.xlu1 %3590 }
 0x2ad   :  { %v6145_v30 = vcombine.high %v5857_v52, %v5857_v52  ;;  %v6152_v59 = vrot.slane %v5857_v52, %v17372_v62  ;;  %v4999_v1 = vsel %vm20649_vm6, %v4934_v41, %v18820_v42  ;;  %v13671_v58 = vcombine.low %v18916_v12, %v18916_v12 }
 0x2ae   :  { %v18931_v31 = vcombine.low %v18916_v12, %v8225_v18  ;;  %v5858_v43 = vmax.f32 %v5808_v48, %v5810_v13  ;;  %vm20650_vm7 = vcmask 72704   ;;  %v8367_v9 = vor.u32 %v8366_v47, %v8362_v5  ;;  %v18956_v5 = vpop.permute.xlu0 %4068 }
 0x2af   :  { %v6159_v25 = vrot.slane %v6145_v30, %v17372_v62  ;;  %v6160_v32 = vcombine.high %v6152_v59, %v6152_v59  ;;  %v13371_v46 = vrot.slane %v6152_v59, 9  ;;  %v18938_v42 = vsel %vm20650_vm7, %v4999_v1, %v18870_v51  ;;  %8627 = vrot.lane.b32.xlu1 %v13622_v28, %s15053_s13  ;;  %vm20653_vm10 = vmmov %vm20650_vm7 }
 0x2b0   :  { %v6162_v53 = vcombine.high %v5858_v43, %v5858_v43  ;;  %v6169_v6 = vrot.slane %v5858_v43, %v17372_v62  ;;  %v13607_v54 = vcombine.low %v18926_v33, %v18883_v35  ;;  %v13672_v26 = vcombine.low %v18940_v55, %v18940_v55  ;;  %8625 = vrot.lane.b32.xlu0 %v13621_v23, %s15053_s13  ;;  %v8226_v43 = vld [vmem:[#allocation3 + $0x3c] sm:$0x1]  ;;  %v18958_v23 = vpop.f32.mrf.mxu0 }
 0x2b1   :  { %v6161_v50 = vcombine.high %v6159_v25, %v6159_v25  ;;  %v13372_v10 = vrot.slane %v6160_v32, 9  ;;  %v13373_v41 = vrot.slane %v6159_v25, 9  ;;  %v7019_v51 = vmax.f32 %v6152_v59, %v13371_v46 }
 0x2b2   :  { %v6176_v15 = vrot.slane %v6162_v53, %v17372_v62  ;;  %v6177_v37 = vcombine.high %v6169_v6, %v6169_v6  ;;  %v13375_v56 = vrot.slane %v6169_v6, 9  ;;  %v18961_v53 = vcombine.low %v18940_v55, %v8226_v43  ;;  %v18989_v43 = vld [vmem:[#allocation3 + $0x30] sm:$0xf] }
 0x2b3   :  { %v13374_v36 = vrot.slane %v6161_v50, 9  ;;  %v7020_v7 = vmax.f32 %v6160_v32, %v13372_v10  ;;  %v7021_v8 = vmax.f32 %v6159_v25, %v13373_v41  ;;  %v14043_v14 = vpack.c.bf16 %v7019_v51, %v7019_v51  ;;  %8887 = vrot.lane.b32.xlu1 %v8866_v57, %s15051_s0  ;;  %v18965_v41 = vpop.permute.xlu1 %3846  ;;  %v8145_v51 = vld [vmem:[#allocation3 + $0x28] sm:$0xe] }
 0x2b4   :  { %v6178_v22 = vcombine.high %v6176_v15, %v6176_v15  ;;  %v13376_v0 = vrot.slane %v6177_v37, 9  ;;  %v13377_v28 = vrot.slane %v6176_v15, 9  ;;  %v7023_v2 = vmax.f32 %v6169_v6, %v13375_v56  ;;  %8885 = vrot.lane.b32.xlu0 %v18914_v44, %s15051_s0  ;;  %v5652_v44 = vpop.f32.mrf.mxu0 }
 0x2b5   :  { %v7022_v52 = vmax.f32 %v6161_v50, %v13374_v36  ;;  %v14044_v47 = vpack.c.bf16 %v7020_v7, %v7020_v7  ;;  %v14045_v13 = vpack.c.bf16 %v7021_v8, %v7021_v8  ;;  %v7659_v48 = vunpack.c.l.b16 %v14043_v14  ;;  %v8057_v7 = vld [vmem:[#allocation3 + $0x44] sm:$0x1] }
 0x2b6   :  { %v13378_v30 = vrot.slane %v6178_v22, 9  ;;  %v7024_v59 = vmax.f32 %v6177_v37, %v13376_v0  ;;  %v7025_v1 = vmax.f32 %v6176_v15, %v13377_v28  ;;  %v14047_v18 = vpack.c.bf16 %v7023_v2, %v7023_v2  ;;  %v18968_v28 = vld [vmem:[#allocation3 + $0x28] sm:$0xf]  ;;  %v14372_v33 = vpop.f32.mrf.mxu0 }
 0x2b7   :  { %v14046_v25 = vpack.c.bf16 %v7022_v52, %v7022_v52  ;;  %v7660_v32 = vunpack.c.l.b16 %v14044_v47  ;;  %v7661_v46 = vunpack.c.l.b16 %v14045_v13  ;;  %8455 = vrot.lane.b32.xlu1 %v8374_v24, %s15051_s0  ;;  %v7828_v37 = vrot.slane %v7659_v48, 7  ;;  %v4613_v24 = vpop.permute.xlu0 %4612 }
 0x2b8   :  { %v7026_v57 = vmax.f32 %v6178_v22, %v13378_v30  ;;  %v14048_v6 = vpack.c.bf16 %v7024_v59, %v7024_v59  ;;  %v14049_v50 = vpack.c.bf16 %v7025_v1, %v7025_v1  ;;  %v7663_v10 = vunpack.c.l.b16 %v14047_v18  ;;  %8453 = vrot.lane.b32.xlu0 %v8367_v9, %s15051_s0 }
 0x2b9   :  { %v7662_v15 = vunpack.c.l.b16 %v14046_v25  ;;  %v7829_v56 = vrot.slane %v7660_v32, 6  ;;  %v7831_v36 = vrot.slane %v7661_v46, 5  ;;  %vm20651_vm8 = vcmask 1042434   ;;  %v4071_v32 = vpop.permute.xlu1 %4070 }
 0x2ba   :  { %v7664_v8 = vunpack.c.l.b16 %v14048_v6  ;;  %v7665_v55 = vunpack.c.l.b16 %v14049_v50  ;;  %v7835_v14 = vrot.slane %v7663_v10, 3  ;;  %v14122_v0 = vpack.c.bf16 %v7026_v57, %v7026_v57  ;;  %v8114_v57 = vld [vmem:[#allocation3 + $0x30] sm:$0xf]  ;;  %v322_v10 = vld [vmem:[#allocation3 + $0x58] sm:$0x1] }
 0x2bb   :  { %v7830_v22 = vsel %vm20651_vm8, %v7829_v56, %v7828_v37  ;;  %v7833_v2 = vrot.slane %v7662_v15, 4  ;;  %v9068_v52 = vshll.u32 %v18931_v31, 16  ;;  %v13608_v47 = vcombine.low %v8145_v51, %v18868_v38  ;;  %8967 = vrot.lane.b32.xlu1 %v13672_v26, %s15052_s16  ;;  %v19016_v15 = vld [vmem:[#allocation3 + $0x34] sm:$0x1]  ;;  %v4869_v37 = vpop.permute.xlu0 %4868  ;;  %v383_v56 = vld [vmem:[#allocation3 + $0x5c] sm:$0x1] }
 0x2bc   :  { %vm20652_vm4 = vcmask 1043459   ;;  %v7837_v48 = vrot.slane %v7664_v8, 2  ;;  %v7839_v30 = vrot.slane %v7665_v55, 1  ;;  %v8058_v59 = vsel %vm17291_vm3, %v14122_v0, %v8057_v7  ;;  %8965 = vrot.lane.b32.xlu0 %v13671_v58, %s15052_s16  ;;  %v5655_v8 = vpop.f32.mrf.mxu0 }
 0x2bd   :  { %v7832_v13 = vsel %vm20652_vm4, %v7831_v36, %v7830_v22  ;;  %v5066_v1 = vsel %vm20653_vm10, %v18920_v27, %v18933_v39  ;;  %8059 = vst [vmem:[#allocation3 + $0x44] sm:$0x1] %v8058_v59  ;;  %v8529_v38 = vrot.slane %v13607_v54, 1  ;;  %v18987_v9 = vcombine.low %v18968_v28, %v18890_v20 }
 0x2be   :  { %v7834_v18 = vsel %vm7739_vm11, %v7833_v2, %v7832_v13  ;;  %vm20654_vm5 = vcmask 1045509   ;;  %vm20655_vm2 = vcmask 97280   ;;  %v9066_v39 = vshrl.u32 %v18931_v31, 16  ;;  %v8054_v31 = vld [vmem:[#allocation3 + $0x40] sm:$0xf] }
 0x2bf   :  { %v7836_v25 = vsel %vm20654_vm5, %v7835_v14, %v7834_v18  ;;  %v5129_v27 = vsel %vm20655_vm2, %v18938_v42, %v18907_v63  ;;  %v9075_v35 = vshll.u32 %v18961_v53, 16  ;;  %v9070_v26 = vrot.slane %v9068_v52, 1  ;;  %vm20658_vm6 = vmmov %vm20655_vm2  ;;  %v316_v2 = vld [vmem:[#allocation3 + $0x48] sm:$0x1]  ;;  %v377_v52 = vld [vmem:[#allocation3 + $0x4c] sm:$0x1] }
 0x2c0   :  { %v7838_v54 = vsel %vm7745_vm15, %v7837_v48, %v7836_v25  ;;  %v8530_v46 = vrot.slane %v13608_v47, 1  ;;  %vm20656_vm12 = vcmask 121856   ;;  %vm20657_vm9 = vcmask 146432   ;;  %8549 = vrot.lane.b32.xlu0 %v8529_v38, %s15052_s16  ;;  %v4615_v47 = vpop.permute.xlu1 %4614 }
 0x2c1   :  { %v5194_v20 = vsel %vm20656_vm12, %v5129_v27, %v18942_v45  ;;  %v7840_v63 = vsel %vm7748_vm14, %v7839_v30, %v7838_v54  ;;  %v9077_v42 = vrot.slane %v9075_v35, 1  ;;  %v19009_v50 = vcombine.low %v18989_v43, %v18888_v29  ;;  %vm20661_vm4 = vmmov %vm20656_vm12  ;;  %v19049_v35 = vld [vmem:[#allocation3 + $0x38] sm:$0xf] }
 0x2c2   :  { %v5259_v6 = vsel %vm20657_vm9, %v5194_v20, %v18956_v5  ;;  %v7959_v51 = vpack.c.b16 %v7840_v63, %v7840_v63  ;;  %v5131_v45 = vsel %vm20658_vm6, %v5066_v1, %v18953_v34  ;;  %8551 = vrot.lane.b32.xlu1 %v8530_v46, %s15052_s16  ;;  %v9073_v12 = vshrl.u32 %v18961_v53, 16  ;;  %v8194_v5 = vld [vmem:[#allocation3 + $0x38] sm:$0xe]  ;;  %v19025_v34 = vld [vmem:[%s20426_s2] ss:$0 sm:$0xff]  ;;  %vm20663_vm5 = vmmov %vm20657_vm9 }
 0x2c3   :  { %vm20659_vm7 = vcmask 171008   ;;  %v19019_v36 = vcombine.low %v8114_v57, %v19016_v15  ;;  %vm20660_vm8 = vcmask 195584   ;;  %v5661_v53 = vadd.f32 %v19025_v34, %v18958_v23  ;;  %v8178_v23 = vld [vmem:[#allocation3 + $0x3c] sm:$0x1]  ;;  %v19057_v57 = vld [vmem:[#allocation3 + $0x30] sm:$0xe] }
 0x2c4   :  { %v5324_v58 = vsel %vm20659_vm7, %v5259_v6, %v4613_v24  ;;  %v5653_v7 = vadd.f32 %v19025_v34, %v5652_v44  ;;  %v8055_v55 = vsel %vm17647_vm0, %v7959_v51, %v8054_v31  ;;  %v5196_v14 = vsel %vm20661_vm4, %v5131_v45, %v18965_v41  ;;  %vm20664_vm2 = vmmov %vm20659_vm7 }
 0x2c5   :  { %v5389_v29 = vsel %vm20660_vm8, %v5324_v58, %v4869_v37  ;;  %v9078_v0 = vor.u32 %v9077_v42, %v9073_v12  ;;  %vm20662_vm10 = vcmask 220160   ;;  %v5664_v22 = vadd.f32 %v19025_v34, %v14372_v33  ;;  %8056 = vst [vmem:[#allocation3 + $0x40] sm:$0xf] %v8055_v55  ;;  %vm20665_vm12 = vmmov %vm20660_vm8  ;;  %v8115_v58 = vld [vmem:[#allocation3 + $0x38] sm:$0xf] }
 0x2c6   :  { %14393 = vmatprep.mubr.msk.bf16.mxu0 %vm20662_vm10, %v5389_v29  ;;  %v5813_v44 = vmax.f32 %v5661_v53, 0.0  ;;  %v5811_v24 = vmax.f32 %v5653_v7, 0.0  ;;  %v323_v13 = vsel %vm17291_vm3, 0, %v322_v10  ;;  %v384_v41 = vsel %vm17316_vm1, 0, %v383_v56  ;;  %vm20666_vm9 = vmmov %vm20662_vm10  ;;  %v19068_v56 = vpop.permute.xlu1 %2567 }
 0x2c7   :  { %v9071_v48 = vor.u32 %v9070_v26, %v9066_v39  ;;  %v5261_v30 = vsel %vm20663_vm5, %v5196_v14, %v4071_v32  ;;  %9159 = vrot.lane.b32.xlu1 %v9078_v0, %s15053_s13  ;;  %v13657_v59 = vcombine.low %v8194_v5, %v8178_v23  ;;  %324 = vst [vmem:[#allocation3 + $0x58] sm:$0x1] %v323_v13  ;;  %385 = vst [vmem:[#allocation3 + $0x5c] sm:$0x1] %v384_v41  ;;  %v4871_v32 = vpop.permute.xlu0 %4870  ;;  %v19076_v0 = vld [vmem:[#allocation3 + $0x3c] sm:$0x1] }
 0x2c8   :  { %v5656_v1 = vadd.f32 %v19025_v34, %v5655_v8  ;;  %v13624_v18 = vcombine.low %v18989_v43, %v18989_v43  ;;  %v8378_v38 = vshll.u32 %v19019_v36, 16  ;;  %v5859_v25 = vmax.f32 %v5811_v24, %v5813_v44 }
 0x2c9   :  { %v317_v27 = vsel %vm17291_vm3, 0, %v316_v2  ;;  %v5326_v39 = vsel %vm20664_vm2, %v5261_v30, %v4615_v47  ;;  %v5814_v33 = vmax.f32 %v5664_v22, 0.0  ;;  %v378_v26 = vsel %vm17316_vm1, 0, %v377_v52  ;;  %9157 = vrot.lane.b32.xlu0 %v9071_v48, %s15053_s13 }
 0x2ca   :  { %v5812_v54 = vmax.f32 %v5656_v1, 0.0  ;;  %318 = vst [vmem:[#allocation3 + $0x48] sm:$0x1] %v317_v27  ;;  %v5391_v43 = vsel %vm20665_vm12, %v5326_v39, %v4871_v32  ;;  %v6179_v46 = vcombine.high %v5859_v25, %v5859_v25  ;;  %v6186_v20 = vrot.slane %v5859_v25, %v17372_v62  ;;  %379 = vst [vmem:[#allocation3 + $0x4c] sm:$0x1] %v378_v26  ;;  %v19085_v27 = vpop.permute.xlu1 %2569 }
 0x2cb   :  { %v13623_v63 = vcombine.low %v18968_v28, %v18968_v28  ;;  %v8867_v31 = vrot.slane %v13657_v59, 1  ;;  %8631 = vrot.lane.b32.xlu1 %v13624_v18, %s15053_s13  ;;  %14394 = vmatmul.mubr.msk.bf16.gmra.mxu0 %vm20666_vm9, %v5391_v43  ;;  %v19064_v6 = vcombine.low %v19049_v35, %v8178_v23  ;;  %v8380_v10 = vrot.slane %v8378_v38, 1  ;;  %v19070_v28 = vpop.permute.xlu0 %2824 }
 0x2cc   :  { %v5860_v42 = vmax.f32 %v5812_v54, %v5814_v33  ;;  %v6193_v51 = vrot.slane %v6179_v46, %v17372_v62  ;;  %v6194_v45 = vcombine.high %v6186_v20, %v6186_v20  ;;  %v13379_v12 = vrot.slane %v6186_v20, 9 }
 0x2cd   :  { %v8376_v37 = vshrl.u32 %v19019_v36, 16  ;;  %v13609_v53 = vcombine.low %v19057_v57, %v19016_v15  ;;  %8629 = vrot.lane.b32.xlu0 %v13623_v63, %s15053_s13  ;;  %v19080_v52 = vcombine.low %v8115_v58, %v19076_v0  ;;  %vm20667_vm6 = vcmask 1042434  }
 0x2ce   :  { %v6196_v5 = vcombine.high %v5860_v42, %v5860_v42  ;;  %v6203_v29 = vrot.slane %v5860_v42, %v17372_v62  ;;  %v6195_v7 = vcombine.high %v6193_v51, %v6193_v51  ;;  %v13380_v8 = vrot.slane %v6194_v45, 9 }
 0x2cf   :  { %v13381_v55 = vrot.slane %v6193_v51, 9  ;;  %v7027_v14 = vmax.f32 %v6186_v20, %v13379_v12  ;;  %v8381_v23 = vor.u32 %v8380_v10, %v8376_v37  ;;  %v19082_v59 = vpop.permute.xlu0 %3048  ;;  %vm20668_vm7 = vcmask 1043459  }
 0x2d0   :  { %v6210_v36 = vrot.slane %v6196_v5, %v17372_v62  ;;  %v6211_v22 = vcombine.high %v6203_v29, %v6203_v29  ;;  %v13383_v2 = vrot.slane %v6203_v29, 9  ;;  %v13382_v47 = vrot.slane %v6195_v7, 9  ;;  %v8063_v5 = vld [vmem:[#allocation3 + $0x5c] sm:$0x1] }
 0x2d1   :  { %v7028_v44 = vmax.f32 %v6194_v45, %v13380_v8  ;;  %v7029_v24 = vmax.f32 %v6193_v51, %v13381_v55  ;;  %v14051_v13 = vpack.c.bf16 %v7027_v14, %v7027_v14  ;;  %8889 = vrot.lane.b32.xlu0 %v8867_v31, %s15051_s0  ;;  %v8211_v45 = vld [vmem:[#allocation3 + $0x40] sm:$0xf]  ;;  %vm20669_vm8 = vcmask 1045509  }
 0x2d2   :  { %v6212_v41 = vcombine.high %v6210_v36, %v6210_v36  ;;  %v13384_v48 = vrot.slane %v6211_v22, 9  ;;  %v13385_v30 = vrot.slane %v6210_v36, 9  ;;  %v7030_v1 = vmax.f32 %v6195_v7, %v13382_v47  ;;  %v19088_v7 = vpop.f32.mrf.mxu0 }
 0x2d3   :  { %v14052_v18 = vpack.c.bf16 %v7028_v44, %v7028_v44  ;;  %v14053_v38 = vpack.c.bf16 %v7029_v24, %v7029_v24  ;;  %v7031_v25 = vmax.f32 %v6203_v29, %v13383_v2  ;;  %v7667_v39 = vunpack.c.l.b16 %v14051_v13  ;;  %v3593_v29 = vpop.permute.xlu0 %3592 }
 0x2d4   :  { %v13386_v32 = vrot.slane %v6212_v41, 9  ;;  %v7032_v33 = vmax.f32 %v6211_v22, %v13384_v48  ;;  %v7033_v54 = vmax.f32 %v6210_v36, %v13385_v30  ;;  %v14054_v26 = vpack.c.bf16 %v7030_v1, %v7030_v1  ;;  %v8195_v36 = vld [vmem:[#allocation3 + $0x40] sm:$0xe]  ;;  %v8227_v1 = vld [vmem:[#allocation3 + $0x44] sm:$0x1] }
 0x2d5   :  { %v7668_v43 = vunpack.c.l.b16 %v14052_v18  ;;  %v7669_v46 = vunpack.c.l.b16 %v14053_v38  ;;  %v14055_v20 = vpack.c.bf16 %v7031_v25, %v7031_v25  ;;  %v7841_v63 = vrot.slane %v7667_v39, 7  ;;  %8457 = vrot.lane.b32.xlu0 %v8381_v23, %s15051_s0  ;;  %v2827_v23 = vpop.permute.xlu1 %2826  ;;  %v8179_v18 = vld [vmem:[#allocation3 + $0x44] sm:$0x1] }
 0x2d6   :  { %v7034_v42 = vmax.f32 %v6212_v41, %v13386_v32  ;;  %v14056_v10 = vpack.c.bf16 %v7032_v33, %v7032_v33  ;;  %v14057_v51 = vpack.c.bf16 %v7033_v54, %v7033_v54  ;;  %v7670_v31 = vunpack.c.l.b16 %v14054_v26  ;;  %v5668_v32 = vpop.f32.mrf.mxu0 }
 0x2d7   :  { %v7842_v12 = vrot.slane %v7668_v43, 6  ;;  %v7844_v58 = vrot.slane %v7669_v46, 5  ;;  %v7671_v37 = vunpack.c.l.b16 %v14055_v20  ;;  %v8385_v22 = vshll.u32 %v19080_v52, 16  ;;  %v3849_v20 = vpop.permute.xlu0 %3848 }
 0x2d8   :  { %v7672_v8 = vunpack.c.l.b16 %v14056_v10  ;;  %v7673_v55 = vunpack.c.l.b16 %v14057_v51  ;;  %v14123_v14 = vpack.c.bf16 %v7034_v42, %v7034_v42  ;;  %v7846_v47 = vrot.slane %v7670_v31, 4  ;;  %v8147_v10 = vld [vmem:[#allocation3 + $0x38] sm:$0xe] }
 0x2d9   :  { %v7843_v2 = vsel %vm20667_vm6, %v7842_v12, %v7841_v63  ;;  %v7848_v44 = vrot.slane %v7671_v37, 3  ;;  %v13673_v24 = vcombine.low %v8211_v45, %v8211_v45  ;;  %v13689_v25 = vcombine.low %v8211_v45, %v8227_v1  ;;  %v8060_v31 = vld [vmem:[#allocation3 + $0x58] sm:$0xf]  ;;  %v8212_v12 = vld [vmem:[#allocation3 + $0x48] sm:$0xf] }
 0x2da   :  { %v7845_v13 = vsel %vm20668_vm7, %v7844_v58, %v7843_v2  ;;  %v7850_v41 = vrot.slane %v7672_v8, 2  ;;  %v7852_v48 = vrot.slane %v7673_v55, 1  ;;  %v8064_v30 = vsel %vm17291_vm3, %v14123_v14, %v8063_v5  ;;  %v8228_v58 = vld [vmem:[#allocation3 + $0x4c] sm:$0x1]  ;;  %v19111_v37 = vld [vmem:[#allocation3 + $0x40] sm:$0xf]  ;;  %v14376_v5 = vpop.f32.mrf.mxu0 }
 0x2db   :  { %v7847_v38 = vsel %vm7739_vm11, %v7846_v47, %v7845_v13  ;;  %8065 = vst [vmem:[#allocation3 + $0x5c] sm:$0x1] %v8064_v30  ;;  %8969 = vrot.lane.b32.xlu0 %v13673_v24, %s15052_s16  ;;  %v13658_v39 = vcombine.low %v8195_v36, %v8179_v18  ;;  %v8531_v54 = vrot.slane %v13609_v53, 1  ;;  %v8383_v26 = vshrl.u32 %v19080_v52, 16  ;;  %v14992_v8 = vld [vmem:[#allocation3 + $0x14] sm:$0x1]  ;;  %v3051_v36 = vpop.permute.xlu1 %3050 }
 0x2dc   :  { %v7849_v33 = vsel %vm20669_vm8, %v7848_v44, %v7847_v38  ;;  %v8387_v63 = vrot.slane %v8385_v22, 1  ;;  %v9082_v42 = vshll.u32 %v13689_v25, 16  ;;  %v4938_v51 = vsel %vm4876_vm13, %v18302_v3, %v19068_v56  ;;  %v14993_v55 = vld [vmem:[#allocation3 + $0x10] sm:$0xf]  ;;  %v325_v13 = vld [vmem:[#allocation3 + $0x60] sm:$0x1]  ;;  %v5671_v1 = vpop.f32.mrf.mxu0 }
 0x2dd   :  { %v7851_v43 = vsel %vm7745_vm15, %v7850_v41, %v7849_v33  ;;  %v8868_v46 = vrot.slane %v13658_v39, 1  ;;  %v9080_v57 = vshrl.u32 %v13689_v25, 16  ;;  %v19109_v52 = vcombine.low %v8212_v12, %v8228_v58  ;;  %v328_v39 = vld [vmem:[#allocation3 + $0x68] sm:$0x1]  ;;  %v380_v58 = vld [vmem:[#allocation3 + $0x54] sm:$0x1] }
 0x2de   :  { %v7853_v45 = vsel %vm7748_vm14, %v7852_v48, %v7851_v43  ;;  %v9084_v53 = vrot.slane %v9082_v42, 1  ;;  %v19113_v3 = vcombine.low %v14993_v55, %v14992_v8  ;;  %v4940_v56 = vsel %vm4876_vm13, %v18339_v16, %v19085_v27 }
 0x2df   :  { %v7961_v15 = vpack.c.b16 %v7853_v45, %v7853_v45  ;;  %8891 = vrot.lane.b32.xlu1 %v8868_v46, %s15051_s0  ;;  %8553 = vrot.lane.b32.xlu0 %v8531_v54, %s15052_s16  ;;  %vm20670_vm4 = vcmask 48128   ;;  %v13610_v22 = vcombine.low %v8147_v10, %v19076_v0  ;;  %vm20671_vm10 = vcmask 72704   ;;  %v4073_v0 = vpop.permute.xlu0 %4072  ;;  %v319_v10 = vld [vmem:[#allocation3 + $0x50] sm:$0x1] }
 0x2e0   :  { %v5003_v14 = vsel %vm20670_vm4, %v4938_v51, %v19070_v28  ;;  %v8388_v44 = vor.u32 %v8387_v63, %v8383_v26  ;;  %v9085_v24 = vor.u32 %v9084_v53, %v9080_v57  ;;  %vm20672_vm5 = vmmov %vm20670_vm4  ;;  %vm20673_vm2 = vcmask 97280  }
 0x2e1   :  { %v8061_v2 = vsel %vm17647_vm0, %v7961_v15, %v8060_v31  ;;  %v5068_v47 = vsel %vm20671_vm10, %v5003_v14, %v19082_v59  ;;  %v5005_v41 = vsel %vm20672_vm5, %v4940_v56, %v2827_v23  ;;  %v13625_v28 = vcombine.low %v19049_v35, %v19049_v35  ;;  %vm20675_vm12 = vmmov %vm20671_vm10 }
 0x2e2   :  { %8062 = vst [vmem:[#allocation3 + $0x58] sm:$0xf] %v8061_v2  ;;  %v5133_v16 = vsel %vm20673_vm2, %v5068_v47, %v3593_v29  ;;  %v19130_v27 = vcombine.low %v19111_v37, %v8179_v18  ;;  %v13674_v59 = vcombine.low %v8212_v12, %v8212_v12  ;;  %v9089_v48 = vshll.u32 %v19109_v52, 16  ;;  %v386_v29 = vld [vmem:[#allocation3 + $0x64] sm:$0x1]  ;;  %vm20677_vm6 = vmmov %vm20673_vm2 }
 0x2e3   :  { %8459 = vrot.lane.b32.xlu1 %v8388_v44, %s15051_s0  ;;  %9161 = vrot.lane.b32.xlu0 %v9085_v24, %s15053_s13  ;;  %v5677_v23 = vadd.f32 %v19025_v34, %v19088_v7  ;;  %v5669_v30 = vadd.f32 %v19025_v34, %v5668_v32  ;;  %vm20674_vm13 = vcmask 121856   ;;  %v8532_v38 = vrot.slane %v13610_v22, 1  ;;  %v389_v7 = vld [vmem:[#allocation3 + $0x6c] sm:$0x1]  ;;  %v3595_v32 = vpop.permute.xlu1 %3594  ;;  %v19160_v56 = vld [vmem:[#allocation3 + $0x5c] sm:$0x1] }
 0x2e4   :  { %v5198_v35 = vsel %vm20674_vm13, %v5133_v16, %v3849_v20  ;;  %v5680_v18 = vadd.f32 %v19025_v34, %v14376_v5  ;;  %v326_v25 = vsel %vm17291_vm3, 0, %v325_v13  ;;  %v5070_v33 = vsel %vm20675_vm12, %v5005_v41, %v3051_v36  ;;  %vm20678_vm7 = vmmov %vm20674_vm13 }
 0x2e5   :  { %v8711_v54 = vshll.u32 %v19113_v3, 16  ;;  %v5817_v26 = vmax.f32 %v5677_v23, 0.0  ;;  %v5815_v43 = vmax.f32 %v5669_v30, 0.0  ;;  %327 = vst [vmem:[#allocation3 + $0x60] sm:$0x1] %v326_v25  ;;  %vm20676_vm9 = vcmask 146432  }
 0x2e6   :  { %v5263_v46 = vsel %vm20676_vm9, %v5198_v35, %v4073_v0  ;;  %v9087_v20 = vshrl.u32 %v19109_v52, 16  ;;  %v387_v63 = vsel %vm17316_vm1, 0, %v386_v29  ;;  %v5672_v42 = vadd.f32 %v19025_v34, %v5671_v1  ;;  %v4617_v23 = vpop.permute.xlu0 %4616  ;;  %vm20681_vm10 = vmmov %vm20676_vm9 }
 0x2e7   :  { %8971 = vrot.lane.b32.xlu1 %v13674_v59, %s15052_s16  ;;  %8633 = vrot.lane.b32.xlu0 %v13625_v28, %s15053_s13  ;;  %v9091_v51 = vrot.slane %v9089_v48, 1  ;;  %v8709_v45 = vshrl.u32 %v19113_v3, 16  ;;  %v8704_v31 = vshll.u32 %v18662_v4, 16  ;;  %v5861_v12 = vmax.f32 %v5815_v43, %v5817_v26  ;;  %388 = vst [vmem:[#allocation3 + $0x64] sm:$0x1] %v387_v63  ;;  %v3851_v22 = vpop.permute.xlu1 %3850 }
 0x2e8   :  { %v5818_v15 = vmax.f32 %v5680_v18, 0.0  ;;  %v5816_v57 = vmax.f32 %v5672_v42, 0.0  ;;  %v329_v53 = vsel %vm17291_vm3, 0, %v328_v39  ;;  %v390_v52 = vsel %vm17316_vm1, 0, %v389_v7 }
 0x2e9   :  { %v19157_v5 = vrot.slane %v8711_v54, 1  ;;  %v6213_v8 = vcombine.high %v5861_v12, %v5861_v12  ;;  %v6220_v55 = vrot.slane %v5861_v12, %v17372_v62  ;;  %v8196_v14 = vld [vmem:[#allocation3 + $0x58] sm:$0xe]  ;;  %330 = vst [vmem:[#allocation3 + $0x68] sm:$0x1] %v329_v53  ;;  %v320_v36 = vsel %vm17291_vm3, 0, %v319_v10 }
 0x2ea   :  { %391 = vst [vmem:[#allocation3 + $0x6c] sm:$0x1] %v390_v52  ;;  %v13626_v2 = vcombine.low %v19111_v37, %v19111_v37  ;;  %v5862_v47 = vmax.f32 %v5816_v57, %v5818_v15  ;;  %v13659_v44 = vcombine.low %v8196_v14, %v19160_v56  ;;  %321 = vst [vmem:[#allocation3 + $0x50] sm:$0x1] %v320_v36  ;;  %v381_v24 = vsel %vm17316_vm1, 0, %v380_v58  ;;  %v4873_v10 = vpop.permute.xlu0 %4872 }
 0x2eb   :  { %8555 = vrot.lane.b32.xlu1 %v8532_v38, %s15052_s16  ;;  %v9092_v13 = vor.u32 %v9091_v51, %v9087_v20  ;;  %v6227_v41 = vrot.slane %v6213_v8, %v17372_v62  ;;  %v6228_v16 = vcombine.high %v6220_v55, %v6220_v55  ;;  %v13387_v28 = vrot.slane %v6220_v55, 9  ;;  %382 = vst [vmem:[#allocation3 + $0x54] sm:$0x1] %v381_v24  ;;  %v4075_v38 = vpop.permute.xlu1 %4074 }
 0x2ec   :  { %v5135_v0 = vsel %vm20677_vm6, %v5070_v33, %v3595_v32  ;;  %v6230_v59 = vcombine.high %v5862_v47, %v5862_v47  ;;  %v6237_v37 = vrot.slane %v5862_v47, %v17372_v62  ;;  %v8869_v48 = vrot.slane %v13659_v44, 1 }
 0x2ed   :  { %v6229_v30 = vcombine.high %v6227_v41, %v6227_v41  ;;  %v13388_v29 = vrot.slane %v6228_v16, 9  ;;  %v13389_v1 = vrot.slane %v6227_v41, 9  ;;  %v7035_v35 = vmax.f32 %v6220_v55, %v13387_v28  ;;  %v14379_v55 = vpop.f32.mrf.mxu0 }
 0x2ee   :  { %v5200_v18 = vsel %vm20678_vm7, %v5135_v0, %v3851_v22  ;;  %v6244_v25 = vrot.slane %v6230_v59, %v17372_v62  ;;  %v6245_v39 = vcombine.high %v6237_v37, %v6237_v37  ;;  %v13391_v54 = vrot.slane %v6237_v37, 9  ;;  %8893 = vrot.lane.b32.xlu0 %v8869_v48, %s15051_s0  ;;  %v8069_v48 = vld [vmem:[#allocation3 + $0x64] sm:$0x1] }
 0x2ef   :  { %vm20679_vm8 = vcmask 171008   ;;  %9163 = vrot.lane.b32.xlu1 %v9092_v13, %s15053_s13  ;;  %v13390_v26 = vrot.slane %v6229_v30, 9  ;;  %v7036_v43 = vmax.f32 %v6228_v16, %v13388_v29  ;;  %v7037_v7 = vmax.f32 %v6227_v41, %v13389_v1  ;;  %v4619_v57 = vpop.permute.xlu1 %4618  ;;  %v5684_v16 = vpop.f32.mrf.mxu0 }
 0x2f0   :  { %v5328_v33 = vsel %vm20679_vm8, %v5263_v46, %v4617_v23  ;;  %v14059_v32 = vpack.c.bf16 %v7035_v35, %v7035_v35  ;;  %v6246_v20 = vcombine.high %v6244_v25, %v6244_v25  ;;  %v13392_v63 = vrot.slane %v6245_v39, 9  ;;  %vm20683_vm13 = vmmov %vm20679_vm8 }
 0x2f1   :  { %v13393_v42 = vrot.slane %v6244_v25, 9  ;;  %v7038_v51 = vmax.f32 %v6229_v30, %v13390_v26  ;;  %v14060_v12 = vpack.c.bf16 %v7036_v43, %v7036_v43  ;;  %v14061_v58 = vpack.c.bf16 %v7037_v7, %v7037_v7  ;;  %v14380_v35 = vpop.f32.mrf.mxu0 }
 0x2f2   :  { %v7039_v15 = vmax.f32 %v6237_v37, %v13391_v54  ;;  %vm20680_vm4 = vcmask 195584   ;;  %v7675_v52 = vunpack.c.l.b16 %v14059_v32  ;;  %v13394_v8 = vrot.slane %v6246_v20, 9 }
 0x2f3   :  { %v5393_v53 = vsel %vm20680_vm4, %v5328_v33, %v4873_v10  ;;  %v7040_v46 = vmax.f32 %v6245_v39, %v13392_v63  ;;  %v5265_v14 = vsel %vm20681_vm10, %v5200_v18, %v4075_v38  ;;  %vm20682_vm5 = vcmask 220160   ;;  %8635 = vrot.lane.b32.xlu1 %v13626_v2, %s15053_s13  ;;  %v4875_v30 = vpop.permute.xlu1 %4874  ;;  %vm20684_vm12 = vmmov %vm20680_vm4  ;;  %v5687_v7 = vpop.f32.mrf.mxu0  ;;  %v8116_v10 = vld [vmem:[#allocation3 + $0x50] sm:$0xf] }
 0x2f4   :  { %14397 = vmatprep.mubr.msk.bf16.mxu0 %vm20682_vm5, %v5393_v53  ;;  %v14062_v36 = vpack.c.bf16 %v7038_v51, %v7038_v51  ;;  %v7676_v22 = vunpack.c.l.b16 %v14060_v12  ;;  %v7677_v47 = vunpack.c.l.b16 %v14061_v58  ;;  %vm9245_vm2 = vcmask 261120   ;;  %vm20686_vm6 = vmmov %vm20682_vm5  ;;  %v19193_v51 = vld [vmem:[#allocation3 + $0x54] sm:$0x1] }
 0x2f5   :  { %v7854_v44 = vrot.slane %v7675_v52, 7  ;;  %v7041_v24 = vmax.f32 %v6244_v25, %v13393_v42  ;;  %v7042_v13 = vmax.f32 %v6246_v20, %v13394_v8  ;;  %v14063_v41 = vpack.c.bf16 %v7039_v15, %v7039_v15  ;;  %v8878_v8 = vpop.permute.xlu0 %8877 }
 0x2f6   :  { %v7678_v28 = vunpack.c.l.b16 %v14062_v36  ;;  %v7855_v0 = vrot.slane %v7676_v22, 6  ;;  %v7857_v59 = vrot.slane %v7677_v47, 5  ;;  %v14064_v37 = vpack.c.bf16 %v7040_v46, %v7040_v46  ;;  %v8066_v36 = vld [vmem:[#allocation3 + $0x60] sm:$0xf] }
 0x2f7   :  { %v5330_v23 = vsel %vm20683_vm13, %v5265_v14, %v4619_v57  ;;  %v14065_v29 = vpack.c.bf16 %v7041_v24, %v7041_v24  ;;  %v7679_v1 = vunpack.c.l.b16 %v14063_v41  ;;  %v14124_v2 = vpack.c.bf16 %v7042_v13, %v7042_v13  ;;  %v8880_v12 = vpop.permute.xlu1 %8879 }
 0x2f8   :  { %v5395_v18 = vsel %vm20684_vm12, %v5330_v23, %v4875_v30  ;;  %vm20685_vm9 = vcmask 1042434   ;;  %v7859_v25 = vrot.slane %v7678_v28, 4  ;;  %v7680_v39 = vunpack.c.l.b16 %v14064_v37 }
 0x2f9   :  { %v7856_v38 = vsel %vm20685_vm9, %v7855_v0, %v7854_v44  ;;  %14398 = vmatmul.mubr.msk.bf16.gmra.mxu0 %vm20686_vm6, %v5395_v18  ;;  %vm20687_vm7 = vcmask 1043459   ;;  %v7681_v33 = vunpack.c.l.b16 %v14065_v29  ;;  %v7861_v26 = vrot.slane %v7679_v1, 3  ;;  %v14994_v1 = vld [vmem:[#allocation3 + $0x8] sm:$0xf]  ;;  %vm20689_vm5 = vmmov %vm20685_vm9 }
 0x2fa   :  { %v7858_v54 = vsel %vm20687_vm7, %v7857_v59, %v7856_v38  ;;  %v8070_v43 = vsel %vm17291_vm3, %v14124_v2, %v8069_v48  ;;  %v8706_v32 = vrot.slane %v8704_v31, 1  ;;  %v7863_v63 = vrot.slane %v7680_v39, 2  ;;  %v14995_v39 = vld [vmem:[#allocation3] sm:$0xf]  ;;  %vm20690_vm13 = vmmov %vm20687_vm7 }
 0x2fb   :  { %v7860_v20 = vsel %vm7739_vm11, %v7859_v25, %v7858_v54  ;;  %8071 = vst [vmem:[#allocation3 + $0x64] sm:$0x1] %v8070_v43  ;;  %v5693_v42 = vadd.f32 %v19025_v34, %v14379_v55  ;;  %vm20688_vm8 = vcmask 1045509   ;;  %v7865_v15 = vrot.slane %v7681_v33, 1  ;;  %vm20692_vm9 = vmmov %vm20689_vm5 }
 0x2fc   :  { %v7862_v58 = vsel %vm20688_vm8, %v7861_v26, %v7860_v20  ;;  %v5685_v57 = vadd.f32 %v19025_v34, %v5684_v16  ;;  %v5696_v53 = vadd.f32 %v19025_v34, %v14380_v35  ;;  %v8714_v31 = vor.u32 %v19157_v5, %v8709_v45  ;;  %v19208_v45 = vld [vmem:[#allocation3 + $0x50] sm:$0xe]  ;;  %v8446_v35 = vpop.permute.xlu0 %8445  ;;  %vm20691_vm12 = vmmov %vm20688_vm8 }
 0x2fd   :  { %v8702_v52 = vshrl.u32 %v18662_v4, 16  ;;  %v7864_v46 = vsel %vm7745_vm15, %v7863_v63, %v7862_v58  ;;  %v5688_v55 = vadd.f32 %v19025_v34, %v5687_v7  ;;  %v5821_v22 = vmax.f32 %v5693_v42, 0.0  ;;  %v8448_v4 = vpop.permute.xlu1 %8447  ;;  %vm20693_vm6 = vmmov %vm20687_vm7 }
 0x2fe   :  { %v7866_v14 = vsel %vm7748_vm14, %v7865_v15, %v7864_v46  ;;  %v5819_v47 = vmax.f32 %v5685_v57, 0.0  ;;  %v19206_v44 = vcombine.low %v8116_v10, %v19193_v51  ;;  %v5822_v3 = vmax.f32 %v5696_v53, 0.0  ;;  %vm20694_vm7 = vmmov %vm20688_vm8 }
 0x2ff   :  { %v8707_v24 = vor.u32 %v8706_v32, %v8702_v52  ;;  %v7963_v13 = vpack.c.b16 %v7866_v14, %v7866_v14  ;;  %v5820_v41 = vmax.f32 %v5688_v55, 0.0  ;;  %vm9294_vm4 = vcmask 523264   ;;  %vm20695_vm8 = vmmov %vm20689_vm5 }
 0x300   :  { %v5863_v5 = vmax.f32 %v5819_v47, %v5821_v22  ;;  %v8392_v16 = vshll.u32 %v19206_v44, 16  ;;  %v9365_v28 = vsel %vm9245_vm2, %v8714_v31, %v8880_v12  ;;  %vm9327_vm10 = vcmask 785408   ;;  %v8958_v57 = vpop.permute.xlu0 %8957 }
 0x301   :  { %v9362_v0 = vsel %vm9245_vm2, %v8707_v24, %v8878_v8  ;;  %v8067_v59 = vsel %vm17647_vm0, %v7963_v13, %v8066_v36  ;;  %v5864_v37 = vmax.f32 %v5820_v41, %v5822_v3  ;;  %v8390_v30 = vshrl.u32 %v19206_v44, 16  ;;  %v8960_v33 = vpop.permute.xlu1 %8959 }
 0x302   :  { %8068 = vst [vmem:[#allocation3 + $0x60] sm:$0xf] %v8067_v59  ;;  %v6247_v48 = vcombine.high %v5863_v5, %v5863_v5  ;;  %v6254_v23 = vrot.slane %v5863_v5, %v17372_v62  ;;  %v13611_v29 = vcombine.low %v19208_v45, %v19193_v51  ;;  %v9251_v2 = vsel %vm9245_vm2, %v14994_v1, %v8448_v4  ;;  %v8229_v44 = vld [vmem:[#allocation3 + $0x64] sm:$0x1] }
 0x303   :  { %v6264_v18 = vcombine.high %v5864_v37, %v5864_v37  ;;  %v6271_v38 = vrot.slane %v5864_v37, %v17372_v62  ;;  %v8394_v25 = vrot.slane %v8392_v16, 1  ;;  %v9248_v54 = vsel %vm9245_vm2, %v14995_v39, %v8446_v35 }
 0x304   :  { %v6261_v26 = vrot.slane %v6247_v48, %v17372_v62  ;;  %v6262_v43 = vcombine.high %v6254_v23, %v6254_v23  ;;  %v13395_v7 = vrot.slane %v6254_v23, 9  ;;  %v9411_v32 = vsel %vm9294_vm4, %v9365_v28, %v8960_v33  ;;  %v8542_v28 = vpop.permute.xlu0 %8541 }
 0x305   :  { %v6278_v20 = vrot.slane %v6264_v18, %v17372_v62  ;;  %v6279_v63 = vcombine.high %v6271_v38, %v6271_v38  ;;  %v13399_v42 = vrot.slane %v6271_v38, 9  ;;  %v9409_v46 = vsel %vm9294_vm4, %v9362_v0, %v8958_v57  ;;  %v8544_v55 = vpop.permute.xlu1 %8543 }
 0x306   :  { %v6263_v10 = vcombine.high %v6261_v26, %v6261_v26  ;;  %v13396_v12 = vrot.slane %v6262_v43, 9  ;;  %v13397_v58 = vrot.slane %v6261_v26, 9  ;;  %v7043_v15 = vmax.f32 %v6254_v23, %v13395_v7 }
 0x307   :  { %v6280_v53 = vcombine.high %v6278_v20, %v6278_v20  ;;  %v13400_v31 = vrot.slane %v6279_v63, 9  ;;  %v13401_v52 = vrot.slane %v6278_v20, 9  ;;  %v7047_v8 = vmax.f32 %v6271_v38, %v13399_v42 }
 0x308   :  { %v13398_v14 = vrot.slane %v6263_v10, 9  ;;  %v7044_v36 = vmax.f32 %v6262_v43, %v13396_v12  ;;  %v7045_v22 = vmax.f32 %v6261_v26, %v13397_v58  ;;  %v9298_v47 = vsel %vm9294_vm4, %v9251_v2, %v8544_v55  ;;  %v9150_v42 = vpop.permute.xlu0 %9149 }
 0x309   :  { %v14067_v24 = vpack.c.bf16 %v7043_v15, %v7043_v15  ;;  %v13402_v13 = vrot.slane %v6280_v53, 9  ;;  %v7048_v3 = vmax.f32 %v6279_v63, %v13400_v31  ;;  %v7049_v16 = vmax.f32 %v6278_v20, %v13401_v52  ;;  %v9152_v1 = vpop.permute.xlu1 %9151  ;;  %v8075_v15 = vld [vmem:[#allocation3 + $0x6c] sm:$0x1]  ;;  %v8213_v57 = vld [vmem:[#allocation3 + $0x60] sm:$0xf] }
 0x30a   :  { %v7046_v41 = vmax.f32 %v6263_v10, %v13398_v14  ;;  %v14068_v4 = vpack.c.bf16 %v7044_v36, %v7044_v36  ;;  %v14069_v5 = vpack.c.bf16 %v7045_v22, %v7045_v22  ;;  %v14071_v48 = vpack.c.bf16 %v7047_v8, %v7047_v8  ;;  %v8197_v55 = vld [vmem:[#allocation3 + $0x60] sm:$0xe]  ;;  %v8117_v14 = vld [vmem:[#allocation3 + $0x58] sm:$0xf] }
 0x30b   :  { %v7683_v59 = vunpack.c.l.b16 %v14067_v24  ;;  %v7050_v37 = vmax.f32 %v6280_v53, %v13402_v13  ;;  %v14072_v23 = vpack.c.bf16 %v7048_v3, %v7048_v3  ;;  %v9296_v0 = vsel %vm9294_vm4, %v9248_v54, %v8542_v28 }
 0x30c   :  { %v14070_v35 = vpack.c.bf16 %v7046_v41, %v7046_v41  ;;  %v7684_v18 = vunpack.c.l.b16 %v14068_v4  ;;  %v7685_v38 = vunpack.c.l.b16 %v14069_v5  ;;  %v9443_v2 = vsel %vm9327_vm10, %v9411_v32, %v9152_v1  ;;  %v8181_v41 = vld [vmem:[#allocation3 + $0x64] sm:$0x1]  ;;  %v19239_v4 = vld [vmem:[#allocation3 + $0x5c] sm:$0x1]  ;;  %v8622_v5 = vpop.permute.xlu0 %8621  ;;  %v19247_v1 = vld [vmem:[#allocation3 + $0x58] sm:$0xf] }
 0x30d   :  { %v7867_v39 = vrot.slane %v7683_v59, 7  ;;  %v14073_v33 = vpack.c.bf16 %v7049_v16, %v7049_v16  ;;  %v7687_v26 = vunpack.c.l.b16 %v14071_v48  ;;  %v7688_v20 = vunpack.c.l.b16 %v14072_v23  ;;  %v8624_v53 = vpop.permute.xlu1 %8623 }
 0x30e   :  { %v7686_v43 = vunpack.c.l.b16 %v14070_v35  ;;  %v7868_v7 = vrot.slane %v7684_v18, 6  ;;  %v7870_v63 = vrot.slane %v7685_v38, 5  ;;  %v14125_v58 = vpack.c.bf16 %v7050_v37, %v7050_v37  ;;  %v331_v35 = vld [vmem:[#allocation3 + $0x70] sm:$0x1] }
 0x30f   :  { %v7689_v10 = vunpack.c.l.b16 %v14073_v33  ;;  %v7874_v12 = vrot.slane %v7687_v26, 3  ;;  %v8395_v54 = vor.u32 %v8394_v25, %v8390_v30  ;;  %v9441_v31 = vsel %vm9327_vm10, %v9409_v46, %v9150_v42 }
 0x310   :  { %v7869_v32 = vsel %vm20689_vm5, %v7868_v7, %v7867_v39  ;;  %v7872_v52 = vrot.slane %v7686_v43, 4  ;;  %v7876_v8 = vrot.slane %v7688_v20, 2  ;;  %v9331_v36 = vsel %vm9327_vm10, %v9298_v47, %v8624_v53  ;;  %v392_v43 = vld [vmem:[#allocation3 + $0x74] sm:$0x1]  ;;  %v19254_v7 = vpop.permute.xlu0 %8881  ;;  %vm20696_vm5 = vmmov %vm20693_vm6 }
 0x311   :  { %v13717_v22 = vcombine.low %v9441_v31, %v9443_v2  ;;  %v7871_v24 = vsel %vm20690_vm13, %v7870_v63, %v7869_v32  ;;  %v7878_v13 = vrot.slane %v7689_v10, 1  ;;  %8461 = vrot.lane.b32.xlu0 %v8395_v54, %s15051_s0  ;;  %v8076_v25 = vsel %vm17291_vm3, %v14125_v58, %v8075_v15  ;;  %v19244_v37 = vpop.permute.xlu1 %8883  ;;  %v8072_v2 = vld [vmem:[#allocation3 + $0x68] sm:$0xf]  ;;  %v19267_v58 = vld [vmem:[#allocation3 + $0x60] sm:$0xf]  ;;  %vm20697_vm13 = vmmov %vm20694_vm7 }
 0x312   :  { %v7873_v30 = vsel %vm7739_vm11, %v7872_v52, %v7871_v24  ;;  %v13675_v46 = vcombine.low %v8213_v57, %v8213_v57  ;;  %v13691_v3 = vcombine.low %v8213_v57, %v8229_v44  ;;  %8077 = vst [vmem:[#allocation3 + $0x6c] sm:$0x1] %v8076_v25  ;;  %v13660_v16 = vcombine.low %v8197_v55, %v8181_v41  ;;  %v19274_v31 = vld [vmem:[#allocation3 + $0x64] sm:$0x1]  ;;  %v334_v32 = vld [vmem:[#allocation3 + $0x78] sm:$0x1] }
 0x313   :  { %9799 = vmatprep.mubr.bf16.mxu1 %v13717_v22  ;;  %v7875_v47 = vsel %vm20691_vm12, %v7874_v12, %v7873_v30  ;;  %v13596_v28 = vcombine.low %v8117_v14, %v19239_v4  ;;  %v9329_v59 = vsel %vm9327_vm10, %v9296_v0, %v8622_v5  ;;  %v8533_v33 = vrot.slane %v13611_v29, 1  ;;  %v8118_v12 = vld [vmem:[#allocation3 + $0x60] sm:$0xf]  ;;  %v398_v30 = vld [vmem:[#allocation3 + $0x84] sm:$0x1]  ;;  %vm20699_vm12 = vmmov %vm20696_vm5 }
 0x314   :  { %v7877_v48 = vsel %vm7745_vm15, %v7876_v8, %v7875_v47  ;;  %v9096_v23 = vshll.u32 %v13691_v3, 16  ;;  %v13716_v18 = vcombine.low %v9329_v59, %v9331_v36  ;;  %v8870_v39 = vrot.slane %v13660_v16, 1  ;;  %v19276_v52 = vpop.permute.xlu0 %8449  ;;  %v395_v36 = vld [vmem:[#allocation3 + $0x7c] sm:$0x1]  ;;  %v337_v24 = vld [vmem:[#allocation3 + $0x80] sm:$0x1] }
 0x315   :  { %v7879_v38 = vsel %vm7748_vm14, %v7878_v13, %v7877_v48  ;;  %8973 = vrot.lane.b32.xlu0 %v13675_v46, %s15052_s16  ;;  %v8399_v26 = vshll.u32 %v13596_v28, 16  ;;  %v19259_v20 = vcombine.low %v19247_v1, %v19160_v56  ;;  %v332_v42 = vsel %vm17291_vm3, 0, %v331_v35  ;;  %v19263_v10 = vpop.permute.xlu1 %8451  ;;  %v8149_v13 = vld [vmem:[#allocation3 + $0x58] sm:$0xe] }
 0x316   :  { %v7965_v0 = vpack.c.b16 %v7879_v38, %v7879_v38  ;;  %9800 = vmatmul.mubr.bf16.vlgmr.msra.gmra.mxu1 %v13716_v18  ;;  %8895 = vrot.lane.b32.xlu1 %v8870_v39, %s15051_s0  ;;  %v9098_v63 = vrot.slane %v9096_v23, 1  ;;  %v8397_v45 = vshrl.u32 %v13596_v28, 16  ;;  %333 = vst [vmem:[#allocation3 + $0x70] sm:$0x1] %v332_v42  ;;  %v9094_v15 = vshrl.u32 %v13691_v3, 16 }
 0x317   :  { %v8401_v29 = vrot.slane %v8399_v26, 1  ;;  %v393_v56 = vsel %vm17316_vm1, 0, %v392_v43  ;;  %v8725_v54 = vshll.u32 %v18858_v61, 16  ;;  %v8718_v57 = vshll.u32 %v18864_v17, 16 }
 0x318   :  { %v8073_v51 = vsel %vm17647_vm0, %v7965_v0, %v8072_v2  ;;  %394 = vst [vmem:[#allocation3 + $0x74] sm:$0x1] %v393_v56  ;;  %v9099_v8 = vor.u32 %v9098_v63, %v9094_v15  ;;  %v19279_v55 = vcombine.low %v8118_v12, %v19274_v31  ;;  %v19282_v14 = vcombine.low %v19267_v58, %v8181_v41  ;;  %v8962_v5 = vpop.permute.xlu0 %8961 }
 0x319   :  { %8074 = vst [vmem:[#allocation3 + $0x68] sm:$0xf] %v8073_v51  ;;  %8557 = vrot.lane.b32.xlu0 %v8533_v33, %s15052_s16  ;;  %v8402_v53 = vor.u32 %v8401_v29, %v8397_v45  ;;  %v8964_v22 = vpop.permute.xlu1 %8963  ;;  %v335_v44 = vsel %vm17291_vm3, 0, %v334_v32  ;;  %v8723_v25 = vshrl.u32 %v18858_v61, 16  ;;  %v8727_v46 = vrot.slane %v8725_v54, 1 }
 0x31a   :  { %v8720_v3 = vrot.slane %v8718_v57, 1  ;;  %336 = vst [vmem:[#allocation3 + $0x78] sm:$0x1] %v335_v44  ;;  %v396_v41 = vsel %vm17316_vm1, 0, %v395_v36  ;;  %v13627_v47 = vcombine.low %v19247_v1, %v19247_v1  ;;  %v8230_v16 = vld [vmem:[#allocation3 + $0x6c] sm:$0x1]  ;;  %v13612_v38 = vcombine.low %v8149_v13, %v19239_v4 }
 0x31b   :  { %8463 = vrot.lane.b32.xlu1 %v8402_v53, %s15051_s0  ;;  %v8182_v28 = vld [vmem:[#allocation3 + $0x6c] sm:$0x1]  ;;  %v8406_v59 = vshll.u32 %v19279_v55, 16  ;;  %397 = vst [vmem:[#allocation3 + $0x7c] sm:$0x1] %v396_v41  ;;  %v338_v48 = vsel %vm17291_vm3, 0, %v337_v24  ;;  %v8728_v26 = vor.u32 %v8727_v46, %v8723_v25 }
 0x31c   :  { %v8716_v61 = vshrl.u32 %v18864_v17, 16  ;;  %339 = vst [vmem:[#allocation3 + $0x80] sm:$0x1] %v338_v48  ;;  %v399_v2 = vsel %vm17316_vm1, 0, %v398_v30  ;;  %v14383_v17 = vpop.f32.mrf.mxu0  ;;  %v8546_v42 = vpop.permute.xlu0 %8545  ;;  %v8534_v57 = vrot.slane %v13612_v38, 1 }
 0x31d   :  { %9165 = vrot.lane.b32.xlu0 %v9099_v8, %s15053_s13  ;;  %v8548_v23 = vpop.permute.xlu1 %8547  ;;  %400 = vst [vmem:[#allocation3 + $0x84] sm:$0x1] %v399_v2  ;;  %v5709_v4 = vadd.f32 %v19025_v34, %v14383_v17  ;;  %v8408_v45 = vrot.slane %v8406_v59, 1  ;;  %v9371_v12 = vsel %vm9245_vm2, %v8728_v26, %v19244_v37  ;;  %v8404_v8 = vshrl.u32 %v19279_v55, 16  ;;  %v340_v44 = vld [vmem:[#allocation3 + $0x88] sm:$0x1] }
 0x31e   :  { %v8721_v43 = vor.u32 %v8720_v3, %v8716_v61  ;;  %v5700_v54 = vpop.f32.mrf.mxu0  ;;  %v9415_v53 = vsel %vm9294_vm4, %v9371_v12, %v8964_v22  ;;  %v401_v3 = vld [vmem:[#allocation3 + $0x8c] sm:$0x1]  ;;  %v341_v59 = vsel %vm17291_vm3, 0, %v340_v44 }
 0x31f   :  { %v5701_v32 = vadd.f32 %v19025_v34, %v5700_v54  ;;  %v8409_v46 = vor.u32 %v8408_v45, %v8404_v8  ;;  %v14996_v34 = vld [vmem:[#allocation3 + $0x18] sm:$0xf]  ;;  %342 = vst [vmem:[#allocation3 + $0x88] sm:$0x1] %v341_v59  ;;  %v8739_v8 = vshll.u32 %v19009_v50, 16 }
 0x320   :  { %v8214_v35 = vld [vmem:[#allocation3 + $0x68] sm:$0xf]  ;;  %v9368_v15 = vsel %vm9245_vm2, %v8721_v43, %v19254_v7  ;;  %v14384_v37 = vpop.f32.mrf.mxu0  ;;  %v9154_v30 = vpop.permute.xlu0 %9153  ;;  %v5825_v7 = vmax.f32 %v5709_v4, 0.0  ;;  %v9257_v41 = vsel %vm9245_vm2, %v14996_v34, %v19263_v10  ;;  %v8737_v34 = vshrl.u32 %v19009_v50, 16 }
 0x321   :  { %v8198_v18 = vld [vmem:[#allocation3 + $0x68] sm:$0xe]  ;;  %8637 = vrot.lane.b32.xlu0 %v13627_v47, %s15053_s13  ;;  %v13676_v1 = vcombine.low %v8214_v35, %v8214_v35  ;;  %v13692_v39 = vcombine.low %v8214_v35, %v8230_v16  ;;  %v9156_v56 = vpop.permute.xlu1 %9155  ;;  %v9413_v24 = vsel %vm9294_vm4, %v9368_v15, %v8962_v5  ;;  %v5823_v25 = vmax.f32 %v5701_v32, 0.0  ;;  %v19325_v5 = vld [vmem:[%s20426_s2] ss:$0 sm:$0xff] }
 0x322   :  { %v13661_v33 = vcombine.low %v8198_v18, %v8182_v28  ;;  %v19301_v0 = vld [vmem:[#allocation3 + $0x68] sm:$0xf]  ;;  %v9447_v13 = vsel %vm9327_vm10, %v9415_v53, %v9156_v56  ;;  %v9445_v55 = vsel %vm9327_vm10, %v9413_v24, %v9154_v30  ;;  %v5712_v16 = vadd.f32 %v19325_v5, %v14384_v37  ;;  %v14998_v18 = vld [vmem:[#allocation3 + $0x10] sm:$0xf] }
 0x323   :  { %v19304_v63 = vcombine.low %v19301_v0, %v8182_v28  ;;  %8975 = vrot.lane.b32.xlu1 %v13676_v1, %s15052_s16  ;;  %v9103_v29 = vshll.u32 %v13692_v39, 16  ;;  %v9101_v22 = vshrl.u32 %v13692_v39, 16  ;;  %v5703_v28 = vpop.f32.mrf.mxu0  ;;  %v9302_v48 = vsel %vm9294_vm4, %v9257_v41, %v8548_v23 }
 0x324   :  { %v8871_v51 = vrot.slane %v13661_v33, 1  ;;  %v13720_v61 = vcombine.low %v9445_v55, %v9447_v13  ;;  %v5865_v35 = vmax.f32 %v5823_v25, %v5825_v7  ;;  %v9254_v38 = vsel %vm9245_vm2, %v14998_v18, %v19276_v52  ;;  %v8626_v23 = vpop.permute.xlu0 %8625 }
 0x325   :  { %v9105_v36 = vrot.slane %v9103_v29, 1  ;;  %v8628_v47 = vpop.permute.xlu1 %8627  ;;  %v5704_v1 = vadd.f32 %v19325_v5, %v5703_v28  ;;  %v402_v39 = vsel %vm17316_vm1, 0, %v401_v3  ;;  %v9300_v33 = vsel %vm9294_vm4, %v9254_v38, %v8546_v42 }
 0x326   :  { %8897 = vrot.lane.b32.xlu0 %v8871_v51, %s15051_s0  ;;  %v9335_v2 = vsel %vm9327_vm10, %v9302_v48, %v8628_v47  ;;  %9807 = vmatprep.mubr.bf16.mxu1 %v13720_v61  ;;  %v6281_v26 = vcombine.high %v5865_v35, %v5865_v35  ;;  %v6288_v43 = vrot.slane %v5865_v35, %v17372_v62  ;;  %v5826_v4 = vmax.f32 %v5712_v16, 0.0 }
 0x327   :  { %8559 = vrot.lane.b32.xlu1 %v8534_v57, %s15052_s16  ;;  %v9106_v10 = vor.u32 %v9105_v36, %v9101_v22  ;;  %403 = vst [vmem:[#allocation3 + $0x8c] sm:$0x1] %v402_v39  ;;  %v9333_v17 = vsel %vm9327_vm10, %v9300_v33, %v8626_v23  ;;  %v5824_v51 = vmax.f32 %v5704_v1, 0.0  ;;  %v13628_v42 = vcombine.low %v19267_v58, %v19267_v58 }
 0x328   :  { %v13719_v45 = vcombine.low %v9333_v17, %v9335_v2  ;;  %v6295_v29 = vrot.slane %v6281_v26, %v17372_v62  ;;  %v6296_v12 = vcombine.high %v6288_v43, %v6288_v43  ;;  %v13403_v15 = vrot.slane %v6288_v43, 9  ;;  %v19347_v54 = vpop.permute.xlu0 %8885 }
 0x329   :  { %v19342_v52 = vpop.permute.xlu1 %8887  ;;  %v5866_v56 = vmax.f32 %v5824_v51, %v5826_v4  ;;  %v8732_v58 = vshll.u32 %v18987_v9, 16  ;;  %v8741_v28 = vrot.slane %v8739_v8, 1 }
 0x32a   :  { %8465 = vrot.lane.b32.xlu0 %v8409_v46, %s15051_s0  ;;  %9808 = vmatmul.mubr.bf16.gmra.mxu1 %v13719_v45  ;;  %v6297_v57 = vcombine.high %v6295_v29, %v6295_v29  ;;  %v13404_v53 = vrot.slane %v6296_v12, 9  ;;  %v13405_v32 = vrot.slane %v6295_v29, 9  ;;  %v7051_v24 = vmax.f32 %v6288_v43, %v13403_v15 }
 0x32b   :  { %9167 = vrot.lane.b32.xlu1 %v9106_v10, %s15053_s13  ;;  %v6298_v13 = vcombine.high %v5866_v56, %v5866_v56  ;;  %v6305_v37 = vrot.slane %v5866_v56, %v17372_v62  ;;  %v8734_v10 = vrot.slane %v8732_v58, 1  ;;  %v8742_v51 = vor.u32 %v8741_v28, %v8737_v34 }
 0x32c   :  { %v13406_v44 = vrot.slane %v6297_v57, 9  ;;  %v7052_v30 = vmax.f32 %v6296_v12, %v13404_v53  ;;  %v7053_v7 = vmax.f32 %v6295_v29, %v13405_v32  ;;  %v14075_v25 = vpack.c.bf16 %v7051_v24, %v7051_v24  ;;  %v19357_v41 = vpop.permute.xlu0 %8453  ;;  %v8081_v32 = vld [vmem:[#allocation3 + $0x74] sm:$0x1] }
 0x32d   :  { %v19351_v36 = vpop.permute.xlu1 %8455  ;;  %v6312_v46 = vrot.slane %v6298_v13, %v17372_v62  ;;  %v6313_v22 = vcombine.high %v6305_v37, %v6305_v37  ;;  %v13407_v3 = vrot.slane %v6305_v37, 9  ;;  %v8730_v15 = vshrl.u32 %v18987_v9, 16 }
 0x32e   :  { %v7054_v55 = vmax.f32 %v6297_v57, %v13406_v44  ;;  %v14076_v47 = vpack.c.bf16 %v7052_v30, %v7052_v30  ;;  %v14077_v16 = vpack.c.bf16 %v7053_v7, %v7053_v7  ;;  %v7691_v48 = vunpack.c.l.b16 %v14075_v25 }
 0x32f   :  { %8639 = vrot.lane.b32.xlu1 %v13628_v42, %s15053_s13  ;;  %v6314_v61 = vcombine.high %v6312_v46, %v6312_v46  ;;  %v13408_v35 = vrot.slane %v6313_v22, 9  ;;  %v13409_v39 = vrot.slane %v6312_v46, 9  ;;  %v7055_v23 = vmax.f32 %v6305_v37, %v13407_v3 }
 0x330   :  { %v14078_v18 = vpack.c.bf16 %v7054_v55, %v7054_v55  ;;  %v7692_v38 = vunpack.c.l.b16 %v14076_v47  ;;  %v7693_v2 = vunpack.c.l.b16 %v14077_v16  ;;  %v7880_v1 = vrot.slane %v7691_v48, 7  ;;  %v8966_v26 = vpop.permute.xlu0 %8965 }
 0x331   :  { %v8968_v59 = vpop.permute.xlu1 %8967  ;;  %v13410_v33 = vrot.slane %v6314_v61, 9  ;;  %v7056_v4 = vmax.f32 %v6313_v22, %v13408_v35  ;;  %v7057_v29 = vmax.f32 %v6312_v46, %v13409_v39  ;;  %v14079_v42 = vpack.c.bf16 %v7055_v23, %v7055_v23  ;;  %v15000_v23 = vld [vmem:[#allocation3 + $0x20] sm:$0xf] }
 0x332   :  { %v7694_v50 = vunpack.c.l.b16 %v14078_v18  ;;  %v7881_v43 = vrot.slane %v7692_v38, 6  ;;  %v7883_v17 = vrot.slane %v7693_v2, 5  ;;  %v8735_v58 = vor.u32 %v8734_v10, %v8730_v15  ;;  %v14999_v10 = vld [vmem:[#allocation3 + $0x28] sm:$0xf]  ;;  %v8078_v2 = vld [vmem:[#allocation3 + $0x70] sm:$0xf] }
 0x333   :  { %v7058_v12 = vmax.f32 %v6314_v61, %v13410_v33  ;;  %v14080_v53 = vpack.c.bf16 %v7056_v4, %v7056_v4  ;;  %v14081_v24 = vpack.c.bf16 %v7057_v29, %v7057_v29  ;;  %v7695_v13 = vunpack.c.l.b16 %v14079_v42  ;;  %v8119_v4 = vld [vmem:[#allocation3 + $0x68] sm:$0xf]  ;;  %v19386_v29 = vld [vmem:[#allocation3 + $0x6c] sm:$0x1]  ;;  %v8150_v15 = vld [vmem:[#allocation3 + $0x60] sm:$0xe] }
 0x334   :  { %v7882_v56 = vsel %vm20692_vm9, %v7881_v43, %v7880_v1  ;;  %v7885_v57 = vrot.slane %v7694_v50, 4  ;;  %v8550_v44 = vpop.permute.xlu0 %8549  ;;  %v9377_v25 = vsel %vm9245_vm2, %v8742_v51, %v19342_v52  ;;  %v9374_v47 = vsel %vm9245_vm2, %v8735_v58, %v19347_v54  ;;  %vm20700_vm9 = vmmov %vm20694_vm7 }
 0x335   :  { %v8552_v45 = vpop.permute.xlu1 %8551  ;;  %v7884_v8 = vsel %vm20693_vm6, %v7883_v17, %v7882_v56  ;;  %v14126_v37 = vpack.c.bf16 %v7058_v12, %v7058_v12  ;;  %v7696_v30 = vunpack.c.l.b16 %v14080_v53  ;;  %v7697_v9 = vunpack.c.l.b16 %v14081_v24 }
 0x336   :  { %v7886_v7 = vsel %vm7739_vm11, %v7885_v57, %v7884_v8  ;;  %v7887_v22 = vrot.slane %v7695_v13, 3  ;;  %v9419_v34 = vsel %vm9294_vm4, %v9377_v25, %v8968_v59  ;;  %v9417_v52 = vsel %vm9294_vm4, %v9374_v47, %v8966_v26 }
 0x337   :  { %v8082_v3 = vsel %vm17291_vm3, %v14126_v37, %v8081_v32  ;;  %v7889_v55 = vrot.slane %v7696_v30, 2  ;;  %v7891_v48 = vrot.slane %v7697_v9, 1  ;;  %v9263_v18 = vsel %vm9245_vm2, %v14999_v10, %v19351_v36 }
 0x338   :  { %8083 = vst [vmem:[#allocation3 + $0x74] sm:$0x1] %v8082_v3  ;;  %v7888_v28 = vsel %vm20694_vm7, %v7887_v22, %v7886_v7  ;;  %v9306_v1 = vsel %vm9294_vm4, %v9263_v18, %v8552_v45  ;;  %v9260_v26 = vsel %vm9245_vm2, %v15000_v23, %v19357_v41  ;;  %v13598_v12 = vcombine.low %v8119_v4, %v19386_v29  ;;  %vm20702_vm7 = vmmov %vm20696_vm5 }
 0x339   :  { %v9160_v46 = vpop.permute.xlu1 %9159  ;;  %v7890_v35 = vsel %vm7745_vm15, %v7889_v55, %v7888_v28  ;;  %v9304_v43 = vsel %vm9294_vm4, %v9260_v26, %v8550_v44  ;;  %v13613_v58 = vcombine.low %v8150_v15, %v19274_v31  ;;  %v343_v26 = vld [vmem:[#allocation3 + $0x90] sm:$0x1] }
 0x33a   :  { %v9451_v16 = vsel %vm9327_vm10, %v9419_v34, %v9160_v46  ;;  %v7892_v38 = vsel %vm7748_vm14, %v7891_v48, %v7890_v35  ;;  %v8413_v32 = vshll.u32 %v13598_v12, 16  ;;  %v344_v4 = vsel %vm17291_vm3, 0, %v343_v26 }
 0x33b   :  { %v9158_v61 = vpop.permute.xlu0 %9157  ;;  %v7967_v33 = vpack.c.b16 %v7892_v38, %v7892_v38  ;;  %v8535_v48 = vrot.slane %v13613_v58, 1  ;;  %v8411_v38 = vshrl.u32 %v13598_v12, 16  ;;  %345 = vst [vmem:[#allocation3 + $0x90] sm:$0x1] %v344_v4 }
 0x33c   :  { %v9449_v59 = vsel %vm9327_vm10, %v9417_v52, %v9158_v61  ;;  %v8415_v52 = vrot.slane %v8413_v32, 1 }
 0x33d   :  { %v8632_v54 = vpop.permute.xlu1 %8631  ;;  %v13723_v39 = vcombine.low %v9449_v59, %v9451_v16  ;;  %v8079_v36 = vsel %vm17647_vm0, %v7967_v33, %v8078_v2 }
 0x33e   :  { %v9339_v50 = vsel %vm9327_vm10, %v9306_v1, %v8632_v54  ;;  %8080 = vst [vmem:[#allocation3 + $0x70] sm:$0xf] %v8079_v36  ;;  %v8416_v36 = vor.u32 %v8415_v52, %v8411_v38 }
 0x33f   :  { %v8630_v17 = vpop.permute.xlu0 %8629  ;;  %9815 = vmatprep.mubr.bf16.mxu1 %v13723_v39  ;;  %v14387_v41 = vpop.f32.mrf.mxu0  ;;  %v8231_v13 = vld [vmem:[#allocation3 + $0x74] sm:$0x1] }
 0x340   :  { %v9337_v51 = vsel %vm9327_vm10, %v9304_v43, %v8630_v17  ;;  %v5725_v42 = vadd.f32 %v19325_v5, %v14387_v41  ;;  %v8183_v46 = vld [vmem:[#allocation3 + $0x74] sm:$0x1] }
 0x341   :  { %v13722_v45 = vcombine.low %v9337_v51, %v9339_v50  ;;  %v5716_v57 = vpop.f32.mrf.mxu0  ;;  %v8744_v50 = vshrl.u32 %v19064_v6, 16  ;;  %v404_v51 = vld [vmem:[#allocation3 + $0x94] sm:$0x1] }
 0x342   :  { %v5717_v53 = vadd.f32 %v19325_v5, %v5716_v57  ;;  %v5829_v44 = vmax.f32 %v5725_v42, 0.0  ;;  %v15017_v11 = vld [vmem:[#allocation3 + $0x74] sm:$0x1] }
 0x343   :  { %9816 = vmatmul.mubr.bf16.gmra.mxu1 %v13722_v45  ;;  %v19390_v56 = vpop.permute.xlu0 %8889  ;;  %v14388_v8 = vpop.f32.mrf.mxu0  ;;  %v8746_v45 = vshll.u32 %v19064_v6, 16 }
 0x344   :  { %v5827_v30 = vmax.f32 %v5717_v53, 0.0  ;;  %v5728_v7 = vadd.f32 %v19325_v5, %v14388_v8  ;;  %v8753_v8 = vshll.u32 %v19130_v27, 16 }
 0x345   :  { %v8215_v24 = vld [vmem:[#allocation3 + $0x70] sm:$0xf]  ;;  %v5719_v22 = vpop.f32.mrf.mxu0 }
 0x346   :  { %v8199_v37 = vld [vmem:[#allocation3 + $0x70] sm:$0xe]  ;;  %v13677_v25 = vcombine.low %v8215_v24, %v8215_v24  ;;  %v13693_v3 = vcombine.low %v8215_v24, %v8231_v13  ;;  %v5867_v55 = vmax.f32 %v5827_v30, %v5829_v44  ;;  %v5720_v47 = vadd.f32 %v19325_v5, %v5719_v22 }
 0x347   :  { %v19395_v9 = vld [vmem:[#allocation3 + $0x70] sm:$0xf]  ;;  %v13662_v34 = vcombine.low %v8199_v37, %v8183_v46  ;;  %v19402_v31 = vpop.permute.xlu0 %8457  ;;  %v5830_v18 = vmax.f32 %v5728_v7, 0.0  ;;  %v405_v37 = vsel %vm17316_vm1, 0, %v404_v51 }
 0x348   :  { %8977 = vrot.lane.b32.xlu0 %v13677_v25, %s15052_s16  ;;  %v19400_v16 = vcombine.low %v19395_v9, %v8183_v46  ;;  %v9110_v61 = vshll.u32 %v13693_v3, 16  ;;  %v6315_v35 = vcombine.high %v5867_v55, %v5867_v55  ;;  %v6322_v10 = vrot.slane %v5867_v55, %v17372_v62  ;;  %406 = vst [vmem:[#allocation3 + $0x94] sm:$0x1] %v405_v37 }
 0x349   :  { %v8872_v28 = vrot.slane %v13662_v34, 1  ;;  %v5828_v59 = vmax.f32 %v5720_v47, 0.0  ;;  %v9108_v2 = vshrl.u32 %v13693_v3, 16  ;;  %v8748_v46 = vrot.slane %v8746_v45, 1 }
 0x34a   :  { %v9112_v54 = vrot.slane %v9110_v61, 1  ;;  %v6329_v1 = vrot.slane %v6315_v35, %v17372_v62  ;;  %v6330_v39 = vcombine.high %v6322_v10, %v6322_v10  ;;  %v13411_v33 = vrot.slane %v6322_v10, 9 }
 0x34b   :  { %8899 = vrot.lane.b32.xlu1 %v8872_v28, %s15051_s0  ;;  %v5868_v23 = vmax.f32 %v5828_v59, %v5830_v18  ;;  %v13629_v34 = vcombine.low %v19301_v0, %v19301_v0  ;;  %v8755_v59 = vrot.slane %v8753_v8, 1  ;;  %v8751_v45 = vshrl.u32 %v19130_v27, 16 }
 0x34c   :  { %8561 = vrot.lane.b32.xlu0 %v8535_v48, %s15052_s16  ;;  %v6331_v12 = vcombine.high %v6329_v1, %v6329_v1  ;;  %v13412_v41 = vrot.slane %v6330_v39, 9  ;;  %v9113_v42 = vor.u32 %v9112_v54, %v9108_v2  ;;  %v13413_v15 = vrot.slane %v6329_v1, 9 }
 0x34d   :  { %v19409_v43 = vpop.permute.xlu0 %8969  ;;  %v7059_v57 = vmax.f32 %v6322_v10, %v13411_v33  ;;  %v6332_v53 = vcombine.high %v5868_v23, %v5868_v23  ;;  %v6339_v32 = vrot.slane %v5868_v23, %v17372_v62  ;;  %v8749_v37 = vor.u32 %v8748_v46, %v8744_v50 }
 0x34e   :  { %v13414_v24 = vrot.slane %v6331_v12, 9  ;;  %v7060_v13 = vmax.f32 %v6330_v39, %v13412_v41  ;;  %v7061_v44 = vmax.f32 %v6329_v1, %v13413_v15  ;;  %v8087_v15 = vld [vmem:[#allocation3 + $0x7c] sm:$0x1]  ;;  %v8781_v49 = vshll.u32 %v19400_v16, 16 }
 0x34f   :  { %8467 = vrot.lane.b32.xlu1 %v8416_v36, %s15051_s0  ;;  %v14083_v30 = vpack.c.bf16 %v7059_v57, %v7059_v57  ;;  %v6346_v7 = vrot.slane %v6332_v53, %v17372_v62  ;;  %v6347_v25 = vcombine.high %v6339_v32, %v6339_v32  ;;  %v13415_v52 = vrot.slane %v6339_v32, 9 }
 0x350   :  { %9169 = vrot.lane.b32.xlu0 %v9113_v42, %s15053_s13  ;;  %v7062_v22 = vmax.f32 %v6331_v12, %v13414_v24  ;;  %v14084_v3 = vpack.c.bf16 %v7060_v13, %v7060_v13  ;;  %v14085_v47 = vpack.c.bf16 %v7061_v44, %v7061_v44  ;;  %v8756_v44 = vor.u32 %v8755_v59, %v8751_v45  ;;  %v15001_v59 = vld [vmem:[#allocation3 + $0x30] sm:$0xf] }
 0x351   :  { %v19411_v17 = vpop.permute.xlu1 %8891  ;;  %v19427_v55 = vpop.permute.xlu0 %8553  ;;  %v7699_v28 = vunpack.c.l.b16 %v14083_v30  ;;  %v6348_v48 = vcombine.high %v6346_v7, %v6346_v7  ;;  %v13416_v10 = vrot.slane %v6347_v25, 9  ;;  %v13417_v18 = vrot.slane %v6346_v7, 9 }
 0x352   :  { %v14086_v61 = vpack.c.bf16 %v7062_v22, %v7062_v22  ;;  %v7700_v35 = vunpack.c.l.b16 %v14084_v3  ;;  %v7701_v38 = vunpack.c.l.b16 %v14085_v47  ;;  %v7063_v1 = vmax.f32 %v6339_v32, %v13415_v52 }
 0x353   :  { %v13418_v54 = vrot.slane %v6348_v48, 9  ;;  %v7893_v33 = vrot.slane %v7699_v28, 7  ;;  %v7064_v23 = vmax.f32 %v6347_v25, %v13416_v10  ;;  %v7065_v36 = vmax.f32 %v6346_v7, %v13417_v18 }
 0x354   :  { %8641 = vrot.lane.b32.xlu0 %v13629_v34, %s15053_s13  ;;  %v7702_v39 = vunpack.c.l.b16 %v14086_v61  ;;  %v7894_v0 = vrot.slane %v7700_v35, 6  ;;  %v7896_v26 = vrot.slane %v7701_v38, 5  ;;  %v14087_v51 = vpack.c.bf16 %v7063_v1, %v7063_v1  ;;  %v15002_v38 = vld [vmem:[#allocation3 + $0x38] sm:$0xf] }
 0x355   :  { %v19422_v58 = vpop.permute.xlu1 %8459  ;;  %v7066_v4 = vmax.f32 %v6348_v48, %v13418_v54  ;;  %v14088_v42 = vpack.c.bf16 %v7064_v23, %v7064_v23  ;;  %v9162_v53 = vpop.permute.xlu0 %9161  ;;  %v14089_v8 = vpack.c.bf16 %v7065_v36, %v7065_v36  ;;  %v9380_v3 = vsel %vm9245_vm2, %v8749_v37, %v19390_v56 }
 0x356   :  { %v7895_v12 = vsel %vm20695_vm8, %v7894_v0, %v7893_v33  ;;  %v7898_v41 = vrot.slane %v7702_v39, 4  ;;  %v7703_v32 = vunpack.c.l.b16 %v14087_v51  ;;  %v9383_v34 = vsel %vm9245_vm2, %v8756_v44, %v19411_v17  ;;  %v8084_v17 = vld [vmem:[#allocation3 + $0x78] sm:$0xf] }
 0x357   :  { %v7897_v57 = vsel %vm20696_vm5, %v7896_v26, %v7895_v12  ;;  %v14127_v24 = vpack.c.bf16 %v7066_v4, %v7066_v4  ;;  %v7704_v30 = vunpack.c.l.b16 %v14088_v42  ;;  %v7705_v27 = vunpack.c.l.b16 %v14089_v8 }
 0x358   :  { %v7899_v7 = vsel %vm7739_vm11, %v7898_v41, %v7897_v57  ;;  %v7900_v25 = vrot.slane %v7703_v32, 3  ;;  %v9421_v6 = vsel %vm9294_vm4, %v9380_v3, %v19409_v43  ;;  %v9266_v43 = vsel %vm9245_vm2, %v15001_v59, %v19402_v31  ;;  %v19461_v31 = vld [vmem:[#allocation3 + $0x70] sm:$0xf]  ;;  %v8151_v41 = vld [vmem:[#allocation3 + $0x68] sm:$0xe] }
 0x359   :  { %v8972_v2 = vpop.permute.xlu1 %8971  ;;  %v8088_v22 = vsel %vm17291_vm3, %v14127_v24, %v8087_v15  ;;  %v7902_v47 = vrot.slane %v7704_v30, 2  ;;  %v7904_v28 = vrot.slane %v7705_v27, 1  ;;  %v9453_v52 = vsel %vm9327_vm10, %v9421_v6, %v9162_v53  ;;  %v8634_v10 = vpop.permute.xlu0 %8633 }
 0x35a   :  { %8089 = vst [vmem:[#allocation3 + $0x7c] sm:$0x1] %v8088_v22  ;;  %v9423_v50 = vsel %vm9294_vm4, %v9383_v34, %v8972_v2  ;;  %v7901_v46 = vsel %vm20697_vm13, %v7900_v25, %v7899_v7  ;;  %v9269_v2 = vsel %vm9245_vm2, %v15002_v38, %v19422_v58  ;;  %v9308_v1 = vsel %vm9294_vm4, %v9266_v43, %v19427_v55  ;;  %v19463_v58 = vld [vmem:[#allocation3 + $0x74] sm:$0x1]  ;;  %v407_v38 = vld [vmem:[#allocation3 + $0x9c] sm:$0x1]  ;;  %vm20705_vm13 = vmmov %vm20702_vm7 }
 0x35b   :  { %v7903_v61 = vsel %vm7745_vm15, %v7902_v47, %v7901_v46  ;;  %v9341_v23 = vsel %vm9327_vm10, %v9308_v1, %v8634_v10  ;;  %v13599_v55 = vcombine.low %v19461_v31, %v19463_v58  ;;  %v13614_v25 = vcombine.low %v8151_v41, %v19386_v29 }
 0x35c   :  { %v7905_v35 = vsel %vm7748_vm14, %v7904_v28, %v7903_v61  ;;  %v346_v61 = vld [vmem:[#allocation3 + $0x98] sm:$0x1] }
 0x35d   :  { %v8556_v13 = vpop.permute.xlu1 %8555  ;;  %v7969_v54 = vpack.c.b16 %v7905_v35, %v7905_v35  ;;  %v8420_v53 = vshll.u32 %v13599_v55, 16  ;;  %v8418_v29 = vshrl.u32 %v13599_v55, 16  ;;  %v347_v1 = vsel %vm17291_vm3, 0, %v346_v61 }
 0x35e   :  { %v9310_v39 = vsel %vm9294_vm4, %v9269_v2, %v8556_v13  ;;  %348 = vst [vmem:[#allocation3 + $0x98] sm:$0x1] %v347_v1  ;;  %v408_v55 = vsel %vm17316_vm1, 0, %v407_v38  ;;  %vm20698_vm1 = vmmov %vm20695_vm8 }
 0x35f   :  { %v8085_v0 = vsel %vm17647_vm0, %v7969_v54, %v8084_v17  ;;  %v8422_v6 = vrot.slane %v8420_v53, 1  ;;  %409 = vst [vmem:[#allocation3 + $0x9c] sm:$0x1] %v408_v55  ;;  %v13630_v53 = vcombine.low %v19395_v9, %v19395_v9  ;;  %vm20701_vm6 = vmmov %vm20698_vm1 }
 0x360   :  { %8086 = vst [vmem:[#allocation3 + $0x78] sm:$0xf] %v8085_v0  ;;  %vm20703_vm8 = vmmov %vm20700_vm9 }
 0x361   :  { %v9164_v48 = vpop.permute.xlu1 %9163  ;;  %v8232_v15 = vld [vmem:[#allocation3 + $0x7c] sm:$0x1]  ;;  %v8423_v2 = vor.u32 %v8422_v6, %v8418_v29  ;;  %vm20704_vm5 = vmmov %vm20698_vm1 }
 0x362   :  { %v9455_v56 = vsel %vm9327_vm10, %v9423_v50, %v9164_v48  ;;  %v8184_v57 = vld [vmem:[#allocation3 + $0x7c] sm:$0x1] }
 0x363   :  { %v13726_v18 = vcombine.low %v9453_v52, %v9455_v56  ;;  %v8536_v56 = vrot.slane %v13614_v25, 1 }
 0x365   :  { %v8636_v33 = vpop.permute.xlu1 %8635  ;;  %9823 = vmatprep.mubr.bf16.mxu1 %v13726_v18  ;;  %v14391_v4 = vpop.f32.mrf.mxu0 }
 0x366   :  { %v9343_v26 = vsel %vm9327_vm10, %v9310_v39, %v8636_v33  ;;  %v5741_v51 = vadd.f32 %v19325_v5, %v14391_v4 }
 0x367   :  { %v13725_v36 = vcombine.low %v9341_v23, %v9343_v26  ;;  %v5732_v45 = vpop.f32.mrf.mxu0  ;;  %v8216_v13 = vld [vmem:[#allocation3 + $0x78] sm:$0xf] }
 0x368   :  { %v5733_v12 = vadd.f32 %v19325_v5, %v5732_v45  ;;  %v5833_v8 = vmax.f32 %v5741_v51, 0.0  ;;  %v8200_v37 = vld [vmem:[#allocation3 + $0x78] sm:$0xe]  ;;  %v13678_v30 = vcombine.low %v8216_v13, %v8216_v13  ;;  %v13694_v7 = vcombine.low %v8216_v13, %v8232_v15 }
 0x369   :  { %9824 = vmatmul.mubr.bf16.gmra.mxu1 %v13725_v36  ;;  %v14392_v42 = vpop.f32.mrf.mxu0  ;;  %v13663_v27 = vcombine.low %v8200_v37, %v8184_v57  ;;  %v19472_v34 = vld [vmem:[#allocation3 + $0x78] sm:$0xf] }
 0x36a   :  { %v5831_v32 = vmax.f32 %v5733_v12, 0.0  ;;  %v5744_v24 = vadd.f32 %v19325_v5, %v14392_v42  ;;  %8979 = vrot.lane.b32.xlu1 %v13678_v30, %s15052_s16  ;;  %v9117_v50 = vshll.u32 %v13694_v7, 16  ;;  %v19478_v17 = vcombine.low %v19472_v34, %v8184_v57 }
 0x36b   :  { %v5735_v44 = vpop.f32.mrf.mxu0  ;;  %v8873_v47 = vrot.slane %v13663_v27, 1  ;;  %v9115_v54 = vshrl.u32 %v13694_v7, 16 }
 0x36c   :  { %v5869_v22 = vmax.f32 %v5831_v32, %v5833_v8  ;;  %v5736_v3 = vadd.f32 %v19325_v5, %v5735_v44  ;;  %v5834_v48 = vmax.f32 %v5744_v24, 0.0  ;;  %v9119_v35 = vrot.slane %v9117_v50, 1 }
 0x36d   :  { %8901 = vrot.lane.b32.xlu0 %v8873_v47, %s15051_s0 }
 0x36e   :  { %v6349_v46 = vcombine.high %v5869_v22, %v5869_v22  ;;  %v6356_v28 = vrot.slane %v5869_v22, %v17372_v62  ;;  %v5832_v52 = vmax.f32 %v5736_v3, 0.0  ;;  %8563 = vrot.lane.b32.xlu1 %v8536_v56, %s15052_s16  ;;  %v9120_v4 = vor.u32 %v9119_v35, %v9115_v54 }
 0x370   :  { %v6363_v10 = vrot.slane %v6349_v46, %v17372_v62  ;;  %v6364_v18 = vcombine.high %v6356_v28, %v6356_v28  ;;  %v13419_v59 = vrot.slane %v6356_v28, 9  ;;  %v5870_v43 = vmax.f32 %v5832_v52, %v5834_v48  ;;  %v8894_v48 = vpop.permute.xlu0 %8893 }
 0x371   :  { %8469 = vrot.lane.b32.xlu0 %v8423_v2, %s15051_s0  ;;  %v8093_v2 = vld [vmem:[#allocation3 + $0x84] sm:$0x1] }
 0x372   :  { %v6365_v39 = vcombine.high %v6363_v10, %v6363_v10  ;;  %v13420_v33 = vrot.slane %v6364_v18, 9  ;;  %v13421_v0 = vrot.slane %v6363_v10, 9  ;;  %v7067_v23 = vmax.f32 %v6356_v28, %v13419_v59  ;;  %9171 = vrot.lane.b32.xlu1 %v9120_v4, %s15053_s13  ;;  %v19500_v4 = vld [vmem:[#allocation3 + $0x78] sm:$0xf] }
 0x373   :  { %v6366_v26 = vcombine.high %v5870_v43, %v5870_v43  ;;  %v6373_v36 = vrot.slane %v5870_v43, %v17372_v62 }
 0x374   :  { %v13422_v51 = vrot.slane %v6365_v39, 9  ;;  %v7068_v45 = vmax.f32 %v6364_v18, %v13420_v33  ;;  %v7069_v12 = vmax.f32 %v6363_v10, %v13421_v0  ;;  %v14091_v41 = vpack.c.bf16 %v7067_v23, %v7067_v23 }
 0x375   :  { %v6380_v42 = vrot.slane %v6366_v26, %v17372_v62  ;;  %v6381_v15 = vcombine.high %v6373_v36, %v6373_v36  ;;  %v13423_v57 = vrot.slane %v6373_v36, 9 }
 0x376   :  { %v7070_v8 = vmax.f32 %v6365_v39, %v13422_v51  ;;  %v14092_v32 = vpack.c.bf16 %v7068_v45, %v7068_v45  ;;  %v14093_v24 = vpack.c.bf16 %v7069_v12, %v7069_v12  ;;  %v7707_v13 = vunpack.c.l.b16 %v14091_v41  ;;  %8643 = vrot.lane.b32.xlu1 %v13630_v53, %s15053_s13  ;;  %v8090_v51 = vld [vmem:[#allocation3 + $0x80] sm:$0xf]  ;;  %v19504_v41 = vld [vmem:[#allocation3 + $0x7c] sm:$0x1] }
 0x377   :  { %v6382_v19 = vcombine.high %v6380_v42, %v6380_v42  ;;  %v13424_v37 = vrot.slane %v6381_v15, 9  ;;  %v13425_v44 = vrot.slane %v6380_v42, 9  ;;  %v7071_v30 = vmax.f32 %v6373_v36, %v13423_v57 }
 0x378   :  { %v14094_v7 = vpack.c.bf16 %v7070_v8, %v7070_v8  ;;  %v7708_v27 = vunpack.c.l.b16 %v14092_v32  ;;  %v7709_v25 = vunpack.c.l.b16 %v14093_v24  ;;  %v7906_v46 = vrot.slane %v7707_v13, 7  ;;  %v8152_v32 = vld [vmem:[#allocation3 + $0x70] sm:$0xe] }
 0x379   :  { %v13426_v22 = vrot.slane %v6382_v19, 9  ;;  %v7072_v3 = vmax.f32 %v6381_v15, %v13424_v37  ;;  %v7073_v47 = vmax.f32 %v6380_v42, %v13425_v44  ;;  %v14095_v6 = vpack.c.bf16 %v7071_v30, %v7071_v30 }
 0x37a   :  { %v7710_v50 = vunpack.c.l.b16 %v14094_v7  ;;  %v7907_v9 = vrot.slane %v7708_v27, 6  ;;  %v7909_v28 = vrot.slane %v7709_v25, 5  ;;  %v8760_v45 = vshll.u32 %v19259_v20, 16 }
 0x37b   :  { %v7074_v52 = vmax.f32 %v6382_v19, %v13426_v22  ;;  %v14096_v61 = vpack.c.bf16 %v7072_v3, %v7072_v3  ;;  %v14097_v56 = vpack.c.bf16 %v7073_v47, %v7073_v47  ;;  %v7711_v29 = vunpack.c.l.b16 %v14095_v6 }
 0x37c   :  { %v7908_v35 = vsel %vm20698_vm1, %v7907_v9, %v7906_v46  ;;  %v7911_v10 = vrot.slane %v7710_v50, 4  ;;  %v8767_v42 = vshll.u32 %v19282_v14, 16  ;;  %v13600_v15 = vcombine.low %v19500_v4, %v19504_v41  ;;  %vm20706_vm1 = vmmov %vm20703_vm8 }
 0x37d   :  { %v7910_v18 = vsel %vm20699_vm12, %v7909_v28, %v7908_v35  ;;  %v7712_v59 = vunpack.c.l.b16 %v14096_v61  ;;  %v7713_v43 = vunpack.c.l.b16 %v14097_v56  ;;  %v7913_v38 = vrot.slane %v7711_v29, 3 }
 0x37e   :  { %v7912_v54 = vsel %vm7739_vm11, %v7911_v10, %v7910_v18  ;;  %v14128_v1 = vpack.c.bf16 %v7074_v52, %v7074_v52  ;;  %v8762_v24 = vrot.slane %v8760_v45, 1  ;;  %v8769_v13 = vrot.slane %v8767_v42, 1 }
 0x37f   :  { %v7914_v39 = vsel %vm20700_vm9, %v7913_v38, %v7912_v54  ;;  %v7915_v33 = vrot.slane %v7712_v59, 2  ;;  %v7917_v0 = vrot.slane %v7713_v43, 1  ;;  %v13615_v37 = vcombine.low %v8152_v32, %v19463_v58  ;;  %v15004_v32 = vld [vmem:[#allocation3 + $0x58] sm:$0xf] }
 0x380   :  { %v8094_v26 = vsel %vm17291_vm3, %v14128_v1, %v8093_v2  ;;  %v8427_v44 = vshll.u32 %v13600_v15, 16  ;;  %v8758_v30 = vshrl.u32 %v19259_v20, 16  ;;  %v8765_v27 = vshrl.u32 %v19282_v14, 16  ;;  %v15003_v2 = vld [vmem:[#allocation3 + $0x50] sm:$0xf] }
 0x381   :  { %v7916_v36 = vsel %vm7745_vm15, %v7915_v33, %v7914_v39  ;;  %8095 = vst [vmem:[#allocation3 + $0x84] sm:$0x1] %v8094_v26  ;;  %v8537_v52 = vrot.slane %v13615_v37, 1  ;;  %v8425_v38 = vshrl.u32 %v13600_v15, 16  ;;  %vm10523_vm9 = vsmask.f32 2306 }
 0x382   :  { %v7918_v55 = vsel %vm7748_vm14, %v7917_v0, %v7916_v36  ;;  %v8763_v22 = vor.u32 %v8762_v24, %v8758_v30  ;;  %v8770_v50 = vor.u32 %v8769_v13, %v8765_v27  ;;  %v8429_v58 = vrot.slane %v8427_v44, 1 }
 0x383   :  { %v8462_v23 = vpop.permute.xlu0 %8461  ;;  %v7971_v12 = vpack.c.b16 %v7918_v55, %v7918_v55 }
 0x384   :  { %v9386_v61 = vsel %vm9245_vm2, %v8763_v22, %v8894_v48  ;;  %v9272_v54 = vsel %vm9245_vm2, %v15003_v2, %v8462_v23  ;;  %v13631_v48 = vcombine.low %v19472_v34, %v19472_v34  ;;  %v8430_v36 = vor.u32 %v8429_v58, %v8425_v38 }
 0x385   :  { %v8091_v57 = vsel %vm17647_vm0, %v7971_v12, %v8090_v51 }
 0x386   :  { %8092 = vst [vmem:[#allocation3 + $0x80] sm:$0xf] %v8091_v57 }
 0x387   :  { %v8974_v53 = vpop.permute.xlu0 %8973 }
 0x388   :  { %v8896_v8 = vpop.permute.xlu1 %8895  ;;  %v19516_v9 = vld [vmem:[#allocation3 + $0x84] sm:$0x1]  ;;  %v9425_v0 = vsel %vm9294_vm4, %v9386_v61, %v8974_v53 }
 0x389   :  { %v8185_v28 = vld [vmem:[#allocation3 + $0x84] sm:$0x1] }
 0x38b   :  { %v14395_v19 = vpop.f32.mrf.mxu0  ;;  %v8558_v3 = vpop.permute.xlu0 %8557 }
 0x38c   :  { %v5757_v7 = vadd.f32 %v19325_v5, %v14395_v19  ;;  %v19532_v57 = vsel %vm9294_vm4, %v9272_v54, %v8558_v3 }
 0x38d   :  { %v5748_v25 = vpop.f32.mrf.mxu0  ;;  %v8464_v47 = vpop.permute.xlu1 %8463  ;;  %v8217_v14 = vld [vmem:[#allocation3 + $0x80] sm:$0xf] }
 0x38e   :  { %v5749_v6 = vadd.f32 %v19325_v5, %v5748_v25  ;;  %v5837_v20 = vmax.f32 %v5757_v7, 0.0  ;;  %v8201_v35 = vld [vmem:[#allocation3 + $0x80] sm:$0xe]  ;;  %v13679_v18 = vcombine.low %v8217_v14, %v8217_v14  ;;  %v13695_v59 = vcombine.low %v8217_v14, %v19516_v9 }
 0x38f   :  { %v14396_v46 = vpop.f32.mrf.mxu0  ;;  %v13664_v43 = vcombine.low %v8201_v35, %v8185_v28  ;;  %v9166_v42 = vpop.permute.xlu0 %9165  ;;  %v19528_v15 = vld [vmem:[#allocation3 + $0x80] sm:$0xf]  ;;  %v9275_v53 = vsel %vm9245_vm2, %v15004_v32, %v8464_v47 }
 0x390   :  { %v5835_v56 = vmax.f32 %v5749_v6, 0.0  ;;  %v5760_v29 = vadd.f32 %v19325_v5, %v14396_v46  ;;  %8981 = vrot.lane.b32.xlu0 %v13679_v18, %s15052_s16  ;;  %v9124_v55 = vshll.u32 %v13695_v59, 16  ;;  %v9457_v7 = vsel %vm9327_vm10, %v9425_v0, %v9166_v42 }
 0x391   :  { %v5751_v10 = vpop.f32.mrf.mxu0  ;;  %v8874_v26 = vrot.slane %v13664_v43, 1  ;;  %v19541_v25 = vcombine.low %v19528_v15, %v8185_v28 }
 0x392   :  { %v5871_v1 = vmax.f32 %v5835_v56, %v5837_v20  ;;  %v5752_v39 = vadd.f32 %v19325_v5, %v5751_v10  ;;  %v5838_v12 = vmax.f32 %v5760_v29, 0.0  ;;  %v9389_v5 = vsel %vm9245_vm2, %v8770_v50, %v8896_v8 }
 0x393   :  { %8903 = vrot.lane.b32.xlu1 %v8874_v26, %s15051_s0  ;;  %v9126_v24 = vrot.slane %v9124_v55, 1  ;;  %v9122_v8 = vshrl.u32 %v13695_v59, 16 }
 0x394   :  { %v6383_v51 = vcombine.high %v5871_v1, %v5871_v1  ;;  %v6390_v45 = vrot.slane %v5871_v1, %v17372_v62  ;;  %v5836_v23 = vmax.f32 %v5752_v39, 0.0  ;;  %8565 = vrot.lane.b32.xlu0 %v8537_v52, %s15052_s16 }
 0x395   :  { %v8976_v33 = vpop.permute.xlu1 %8975  ;;  %v9127_v58 = vor.u32 %v9126_v24, %v9122_v8 }
 0x396   :  { %v6397_v13 = vrot.slane %v6383_v51, %v17372_v62  ;;  %v6398_v19 = vcombine.high %v6390_v45, %v6390_v45  ;;  %v13427_v37 = vrot.slane %v6390_v45, 9  ;;  %v5872_v44 = vmax.f32 %v5836_v23, %v5838_v12  ;;  %v8638_v23 = vpop.permute.xlu0 %8637 }
 0x397   :  { %v9427_v27 = vsel %vm9294_vm4, %v9389_v5, %v8976_v33  ;;  %8471 = vrot.lane.b32.xlu1 %v8430_v36, %s15051_s0 }
 0x398   :  { %v6399_v22 = vcombine.high %v6397_v13, %v6397_v13  ;;  %v13428_v3 = vrot.slane %v6398_v19, 9  ;;  %v13429_v47 = vrot.slane %v6397_v13, 9  ;;  %v7075_v6 = vmax.f32 %v6390_v45, %v13427_v37  ;;  %9173 = vrot.lane.b32.xlu0 %v9127_v58, %s15053_s13 }
 0x399   :  { %v8560_v30 = vpop.permute.xlu1 %8559  ;;  %v6400_v50 = vcombine.high %v5872_v44, %v5872_v44  ;;  %v6407_v46 = vrot.slane %v5872_v44, %v17372_v62 }
 0x39a   :  { %v9314_v61 = vsel %vm9294_vm4, %v9275_v53, %v8560_v30  ;;  %v13430_v20 = vrot.slane %v6399_v22, 9  ;;  %v7076_v52 = vmax.f32 %v6398_v19, %v13428_v3  ;;  %v7077_v56 = vmax.f32 %v6397_v13, %v13429_v47 }
 0x39b   :  { %v14099_v29 = vpack.c.bf16 %v7075_v6, %v7075_v6  ;;  %v6414_v28 = vrot.slane %v6400_v50, %v17372_v62  ;;  %v6415_v35 = vcombine.high %v6407_v46, %v6407_v46  ;;  %v13431_v10 = vrot.slane %v6407_v46, 9  ;;  %v8099_v50 = vld [vmem:[#allocation3 + $0x8c] sm:$0x1] }
 0x39c   :  { %v7078_v59 = vmax.f32 %v6399_v22, %v13430_v20  ;;  %v14100_v43 = vpack.c.bf16 %v7076_v52, %v7076_v52  ;;  %v14101_v38 = vpack.c.bf16 %v7077_v56, %v7077_v56  ;;  %8645 = vrot.lane.b32.xlu0 %v13631_v48, %s15053_s13  ;;  %v9345_v22 = vsel %vm9327_vm10, %v19532_v57, %v8638_v23 }
 0x39d   :  { %v9168_v14 = vpop.permute.xlu1 %9167  ;;  %v7715_v2 = vunpack.c.l.b16 %v14099_v29  ;;  %v6416_v54 = vcombine.high %v6414_v28, %v6414_v28  ;;  %v13432_v1 = vrot.slane %v6415_v35, 9  ;;  %v13433_v39 = vrot.slane %v6414_v28, 9 }
 0x39e   :  { %v9459_v18 = vsel %vm9327_vm10, %v9427_v27, %v9168_v14  ;;  %v7079_v33 = vmax.f32 %v6407_v46, %v13431_v10  ;;  %v14102_v0 = vpack.c.bf16 %v7078_v59, %v7078_v59  ;;  %v7716_v26 = vunpack.c.l.b16 %v14100_v43  ;;  %v8096_v14 = vld [vmem:[#allocation3 + $0x88] sm:$0xf]  ;;  %v19566_v10 = vld [vmem:[#allocation3 + $0x80] sm:$0xf]  ;;  %v19571_v59 = vld [vmem:[#allocation3 + $0x84] sm:$0x1] }
 0x39f   :  { %v7717_v36 = vunpack.c.l.b16 %v14101_v38  ;;  %v7919_v55 = vrot.slane %v7715_v2, 7  ;;  %v13434_v51 = vrot.slane %v6416_v54, 9  ;;  %v7080_v45 = vmax.f32 %v6415_v35, %v13432_v1  ;;  %v8153_v38 = vld [vmem:[#allocation3 + $0x78] sm:$0xe] }
 0x3a0   :  { %v7081_v12 = vmax.f32 %v6414_v28, %v13433_v39  ;;  %v14103_v42 = vpack.c.bf16 %v7079_v33, %v7079_v33  ;;  %v7718_v32 = vunpack.c.l.b16 %v14102_v0  ;;  %v7920_v53 = vrot.slane %v7716_v26, 6 }
 0x3a1   :  { %v8640_v5 = vpop.permute.xlu1 %8639  ;;  %v7922_v24 = vrot.slane %v7717_v36, 5  ;;  %v13729_v13 = vcombine.low %v9457_v7, %v9459_v18  ;;  %v7082_v19 = vmax.f32 %v6416_v54, %v13434_v51  ;;  %v14104_v37 = vpack.c.bf16 %v7080_v45, %v7080_v45  ;;  %v14873_v18 = vld [vmem:[%s20427_s3 + $0x88] sm:$0xff]  }
 0x3a2   :  { %v14105_v44 = vpack.c.bf16 %v7081_v12, %v7081_v12  ;;  %v7719_v30 = vunpack.c.l.b16 %v14103_v42  ;;  %v7921_v8 = vsel %vm20701_vm6, %v7920_v53, %v7919_v55  ;;  %v7924_v27 = vrot.slane %v7718_v32, 4  ;;  %14401 = vmatprep.subr.bf16.mxu1 %v14873_v18  ;;  %v15005_v32 = vld [vmem:[%s20426_s2] ss:$0 sm:$0xff]  ;;  %vm20710_vm6 = vmmov %vm20704_vm5 }
 0x3a3   :  { %v9347_v3 = vsel %vm9327_vm10, %v9314_v61, %v8640_v5  ;;  %9831 = vmatprep.mubr.bf16.mxu1 %v13729_v13  ;;  %v7923_v34 = vsel %vm20702_vm7, %v7922_v24, %v7921_v8  ;;  %v7720_v48 = vunpack.c.l.b16 %v14104_v37  ;;  %v14129_v46 = vpack.c.bf16 %v7082_v19, %v7082_v19  ;;  %14402 = vmatpush3.bf16.msra.mxu1 %v14873_v18 }
 0x3a4   :  { %v7721_v47 = vunpack.c.l.b16 %v14105_v44  ;;  %v7926_v6 = vrot.slane %v7719_v30, 3  ;;  %v7925_v7 = vsel %vm7739_vm11, %v7924_v27, %v7923_v34  ;;  %v13728_v58 = vcombine.low %v9345_v22, %v9347_v3 }
 0x3a5   :  { %v7928_v52 = vrot.slane %v7720_v48, 2  ;;  %v8100_v57 = vsel %vm17291_vm3, %v14129_v46, %v8099_v50  ;;  %v13601_v43 = vcombine.low %v19566_v10, %v19571_v59  ;;  %v13616_v55 = vcombine.low %v8153_v38, %v19504_v41 }
 0x3a6   :  { %v7927_v20 = vsel %vm20703_vm8, %v7926_v6, %v7925_v7  ;;  %v7930_v56 = vrot.slane %v7721_v47, 1  ;;  %9832 = vmatmul.mubr.bf16.gmra.mxu1 %v13728_v58  ;;  %8101 = vst [vmem:[#allocation3 + $0x8c] sm:$0x1] %v8100_v57  ;;  %v13632_v50 = vcombine.low %v19528_v15, %v19528_v15 }
 0x3a7   :  { %v7929_v61 = vsel %vm7745_vm15, %v7928_v52, %v7927_v20  ;;  %v8434_v54 = vshll.u32 %v13601_v43, 16  ;;  %v8538_v24 = vrot.slane %v13616_v55, 1  ;;  %v8432_v41 = vshrl.u32 %v13601_v43, 16 }
 0x3a8   :  { %v7931_v29 = vsel %vm7748_vm14, %v7930_v56, %v7929_v61 }
 0x3a9   :  { %v7973_v28 = vpack.c.b16 %v7931_v29, %v7931_v29  ;;  %v8436_v42 = vrot.slane %v8434_v54, 1 }
 0x3ab   :  { %v8097_v35 = vsel %vm17647_vm0, %v7973_v28, %v8096_v14  ;;  %v8437_v44 = vor.u32 %v8436_v42, %v8432_v41 }
 0x3ac   :  { %8098 = vst [vmem:[#allocation3 + $0x88] sm:$0xf] %v8097_v35 }
 0x3ad   :  { %v19575_v2 = vld [vmem:[#allocation3 + $0x8c] sm:$0x1] }
 0x3ae   :  { %v8186_v39 = vld [vmem:[#allocation3 + $0x8c] sm:$0x1] }
 0x3b3   :  { %v8218_v1 = vld [vmem:[#allocation3 + $0x88] sm:$0xf] }
 0x3b4   :  { %v8202_v33 = vld [vmem:[#allocation3 + $0x88] sm:$0xe]  ;;  %v13680_v0 = vcombine.low %v8218_v1, %v8218_v1  ;;  %v13696_v26 = vcombine.low %v8218_v1, %v19575_v2 }
 0x3b5   :  { %v13665_v36 = vcombine.low %v8202_v33, %v8186_v39  ;;  %v19579_v51 = vld [vmem:[#allocation3 + $0x88] sm:$0xf] }
 0x3b6   :  { %v19582_v45 = vcombine.low %v19579_v51, %v8186_v39  ;;  %8983 = vrot.lane.b32.xlu1 %v13680_v0, %s15052_s16  ;;  %v9131_v23 = vshll.u32 %v13696_v26, 16  ;;  %v9129_v30 = vshrl.u32 %v13696_v26, 16 }
 0x3b7   :  { %v8875_v12 = vrot.slane %v13665_v36, 1 }
 0x3b8   :  { %v9133_v13 = vrot.slane %v9131_v23, 1 }
 0x3b9   :  { %v14399_v5 = vpop.f32.mrf.mxu0  ;;  %8905 = vrot.lane.b32.xlu0 %v8875_v12, %s15051_s0 }
 0x3ba   :  { %v5773_v53 = vadd.f32 %v15005_v32, %v14399_v5  ;;  %8567 = vrot.lane.b32.xlu1 %v8538_v24, %s15052_s16  ;;  %v9134_v34 = vor.u32 %v9133_v13, %v9129_v30 }
 0x3bb   :  { %v5764_v19 = vpop.f32.mrf.mxu0 }
 0x3bc   :  { %v5765_v37 = vadd.f32 %v15005_v32, %v5764_v19  ;;  %v5841_v27 = vmax.f32 %v5773_v53, 0.0 }
 0x3bd   :  { %v14400_v8 = vpop.f32.mrf.mxu0  ;;  %8473 = vrot.lane.b32.xlu0 %v8437_v44, %s15051_s0 }
 0x3be   :  { %v5839_v22 = vmax.f32 %v5765_v37, 0.0  ;;  %v5776_v3 = vadd.f32 %v15005_v32, %v14400_v8  ;;  %9175 = vrot.lane.b32.xlu1 %v9134_v34, %s15053_s13 }
 0x3bf   :  { %v5767_v48 = vpop.f32.mrf.mxu0 }
 0x3c0   :  { %v5873_v47 = vmax.f32 %v5839_v22, %v5841_v27  ;;  %v5768_v6 = vadd.f32 %v15005_v32, %v5767_v48  ;;  %v5842_v58 = vmax.f32 %v5776_v3, 0.0 }
 0x3c2   :  { %v6417_v7 = vcombine.high %v5873_v47, %v5873_v47  ;;  %v6424_v46 = vrot.slane %v5873_v47, %v17372_v62  ;;  %v5840_v20 = vmax.f32 %v5768_v6, 0.0  ;;  %8647 = vrot.lane.b32.xlu1 %v13632_v50, %s15053_s13 }
 0x3c4   :  { %v6431_v52 = vrot.slane %v6417_v7, %v17372_v62  ;;  %v6432_v56 = vcombine.high %v6424_v46, %v6424_v46  ;;  %v13435_v57 = vrot.slane %v6424_v46, 9  ;;  %v5874_v61 = vmax.f32 %v5840_v20, %v5842_v58 }
 0x3c6   :  { %v6433_v29 = vcombine.high %v6431_v52, %v6431_v52  ;;  %v13436_v14 = vrot.slane %v6432_v56, 9  ;;  %v13437_v28 = vrot.slane %v6431_v52, 9  ;;  %v7083_v35 = vmax.f32 %v6424_v46, %v13435_v57 }
 0x3c7   :  { %v6434_v18 = vcombine.high %v5874_v61, %v5874_v61  ;;  %v6441_v43 = vrot.slane %v5874_v61, %v17372_v62 }
 0x3c8   :  { %v13438_v15 = vrot.slane %v6433_v29, 9  ;;  %v7084_v38 = vmax.f32 %v6432_v56, %v13436_v14  ;;  %v7085_v54 = vmax.f32 %v6431_v52, %v13437_v28  ;;  %v14107_v1 = vpack.c.bf16 %v7083_v35, %v7083_v35  ;;  %v8105_v52 = vld [vmem:[#allocation3 + $0x94] sm:$0x1]  ;;  %v19601_v56 = vpop.permute.xlu0 %8897 }
 0x3c9   :  { %v6448_v39 = vrot.slane %v6434_v18, %v17372_v62  ;;  %v6449_v33 = vcombine.high %v6441_v43, %v6441_v43  ;;  %v13439_v0 = vrot.slane %v6441_v43, 9 }
 0x3ca   :  { %v7086_v26 = vmax.f32 %v6433_v29, %v13438_v15  ;;  %v14108_v36 = vpack.c.bf16 %v7084_v38, %v7084_v38  ;;  %v14109_v55 = vpack.c.bf16 %v7085_v54, %v7085_v54  ;;  %v7723_v12 = vunpack.c.l.b16 %v14107_v1  ;;  %v8102_v15 = vld [vmem:[#allocation3 + $0x90] sm:$0xf] }
 0x3cb   :  { %v6450_v42 = vcombine.high %v6448_v39, %v6448_v39  ;;  %v13440_v23 = vrot.slane %v6449_v33, 9  ;;  %v13441_v5 = vrot.slane %v6448_v39, 9  ;;  %v7087_v32 = vmax.f32 %v6441_v43, %v13439_v0  ;;  %v14874_v1 = vld [vmem:[%s20427_s3 + $0x80] sm:$0xff]  }
 0x3cc   :  { %v14110_v53 = vpack.c.bf16 %v7086_v26, %v7086_v26  ;;  %v7724_v24 = vunpack.c.l.b16 %v14108_v36  ;;  %v7725_v41 = vunpack.c.l.b16 %v14109_v55  ;;  %v7932_v8 = vrot.slane %v7723_v12, 7  ;;  %v19618_v36 = vld [vmem:[#allocation3 + $0x88] sm:$0xf]  ;;  %14403 = vmatprep.subr.bf16.mxu1 %v14874_v1  ;;  %v8900_v55 = vpop.permute.xlu1 %8899  ;;  %v19620_v12 = vld [vmem:[#allocation3 + $0x8c] sm:$0x1] }
 0x3cd   :  { %v13442_v13 = vrot.slane %v6450_v42, 9  ;;  %v7088_v19 = vmax.f32 %v6449_v33, %v13440_v23  ;;  %v7089_v37 = vmax.f32 %v6448_v39, %v13441_v5  ;;  %v14111_v44 = vpack.c.bf16 %v7087_v32, %v7087_v32  ;;  %v19612_v39 = vpop.permute.xlu0 %8465  ;;  %14404 = vmatpush3.bf16.msra.mxu1 %v14874_v1  ;;  %v8154_v32 = vld [vmem:[#allocation3 + $0x80] sm:$0xe] }
 0x3ce   :  { %v7726_v30 = vunpack.c.l.b16 %v14110_v53  ;;  %v7933_v27 = vrot.slane %v7724_v24, 6  ;;  %v7935_v22 = vrot.slane %v7725_v41, 5  ;;  %v13602_v23 = vcombine.low %v19618_v36, %v19620_v12 }
 0x3cf   :  { %v7090_v3 = vmax.f32 %v6450_v42, %v13442_v13  ;;  %v14112_v34 = vpack.c.bf16 %v7088_v19, %v7088_v19  ;;  %v14113_v48 = vpack.c.bf16 %v7089_v37, %v7089_v37  ;;  %v7727_v47 = vunpack.c.l.b16 %v14111_v44 }
 0x3d0   :  { %v7934_v6 = vsel %vm20704_vm5, %v7933_v27, %v7932_v8  ;;  %v7937_v50 = vrot.slane %v7726_v30, 4  ;;  %v8774_v5 = vshll.u32 %v19304_v63, 16  ;;  %v8468_v53 = vpop.permute.xlu1 %8467  ;;  %v8441_v13 = vshll.u32 %v13602_v23, 16 }
 0x3d1   :  { %v7936_v7 = vsel %vm20705_vm13, %v7935_v22, %v7934_v6  ;;  %v7728_v46 = vunpack.c.l.b16 %v14112_v34  ;;  %v7729_v58 = vunpack.c.l.b16 %v14113_v48  ;;  %v7939_v20 = vrot.slane %v7727_v47, 3  ;;  %v8978_v42 = vpop.permute.xlu0 %8977  ;;  %vm20713_vm13 = vmmov %vm20702_vm7 }
 0x3d2   :  { %v7938_v57 = vsel %vm7739_vm11, %v7937_v50, %v7936_v7  ;;  %v14130_v61 = vpack.c.bf16 %v7090_v3, %v7090_v3  ;;  %v13617_v3 = vcombine.low %v8154_v32, %v19571_v59  ;;  %v8443_v47 = vrot.slane %v8441_v13, 1 }
 0x3d3   :  { %v7940_v29 = vsel %vm20706_vm1, %v7939_v20, %v7938_v57  ;;  %v7941_v14 = vrot.slane %v7728_v46, 2  ;;  %v7943_v28 = vrot.slane %v7729_v58, 1  ;;  %v8776_v7 = vrot.slane %v8774_v5, 1  ;;  %v8220_v58 = vld [vmem:[#allocation3 + $0x98] sm:$0xf]  ;;  %vm20714_vm1 = vmmov %vm20704_vm5 }
 0x3d4   :  { %v8106_v35 = vsel %vm17291_vm3, %v14130_v61, %v8105_v52  ;;  %v8783_v46 = vrot.slane %v8781_v49, 1  ;;  %v19636_v20 = vld [vmem:[#allocation3 + $0x9c] sm:$0x1]  ;;  %v8539_v52 = vrot.slane %v13617_v3, 1  ;;  %v8439_v57 = vshrl.u32 %v13602_v23, 16 }
 0x3d5   :  { %v7942_v18 = vsel %vm7745_vm15, %v7941_v14, %v7940_v29  ;;  %8107 = vst [vmem:[#allocation3 + $0x94] sm:$0x1] %v8106_v35  ;;  %v8562_v30 = vpop.permute.xlu0 %8561  ;;  %v13698_v59 = vcombine.low %v8220_v58, %v19636_v20  ;;  %v8772_v29 = vshrl.u32 %v19304_v63, 16  ;;  %v8779_v14 = vshrl.u32 %v19400_v16, 16 }
 0x3d6   :  { %v7944_v43 = vsel %vm7748_vm14, %v7943_v28, %v7942_v18  ;;  %v14213_v38 = vpop.f32.mrf.mxu1  ;;  %v8444_v35 = vor.u32 %v8443_v47, %v8439_v57  ;;  %vm410_vm14 = vcmask 256000   ;;  %vm452_vm15 = vcmask 256002  }
 0x3d7   :  { %v7975_v54 = vpack.c.b16 %v7944_v43, %v7944_v43  ;;  %vm19894_vm8 = vmand %vm410_vm14, %vm10523_vm9 }
 0x3d8   :  { %v14214_v33 = vpop.f32.mrf.mxu1 }
 0x3d9   :  { %v8103_v0 = vsel %vm17647_vm0, %v7975_v54, %v8102_v15  ;;  %v19616_v26 = vadd.f32 %v14214_v33, %v14213_v38  ;;  %v9170_v28 = vpop.permute.xlu0 %9169  ;;  %v8777_v15 = vor.u32 %v8776_v7, %v8772_v29  ;;  %v8784_v38 = vor.u32 %v8783_v46, %v8779_v14  ;;  %v8155_v54 = vld [vmem:[#allocation3 + $0x88] sm:$0xe] }
 0x3da   :  { %8104 = vst [vmem:[#allocation3 + $0x90] sm:$0xf] %v8103_v0  ;;  %v13682_v33 = vcombine.low %v8220_v58, %v8220_v58  ;;  %v9145_v0 = vshll.u32 %v13698_v59, 16  ;;  %v13618_v5 = vcombine.low %v8155_v54, %v19620_v12  ;;  %v19664_v7 = vpop.f32.mrf.mxu1  ;;  %vm453_vm0 = vsmask.f32 7946 }
 0x3db   :  { %v9392_v23 = vsel %vm9245_vm2, %v8777_v15, %v19601_v56  ;;  %v9395_v63 = vsel %vm9245_vm2, %v8784_v38, %v8900_v55  ;;  %v13633_v56 = vcombine.low %v19579_v51, %v19579_v51  ;;  %v9143_v55 = vshrl.u32 %v13698_v59, 16  ;;  %vm19748_vm12 = vmand %vm452_vm15, %vm453_vm0 }
 0x3dc   :  { %v19626_v24 = vld [vmem:[#allocation3 + $0x94] sm:$0x1]  ;;  %v8980_v50 = vpop.permute.xlu1 %8979  ;;  %v9429_v16 = vsel %vm9294_vm4, %v9392_v23, %v8978_v42  ;;  %vm20716_vm15 = vmmov %vm20714_vm1 }
 0x3dd   :  { %v8187_v41 = vld [vmem:[#allocation3 + $0x94] sm:$0x1]  ;;  %v9431_v32 = vsel %vm9294_vm4, %v9395_v63, %v8980_v50  ;;  %vm20717_vm0 = vmmov %vm20702_vm7 }
 0x3de   :  { %vm20719_vm9 = vmmov %vm20717_vm0 }
 0x3e0   :  { %v8564_v43 = vpop.permute.xlu1 %8563 }
 0x3e1   :  { %v8219_v19 = vld [vmem:[#allocation3 + $0x90] sm:$0xf] }
 0x3e2   :  { %v8203_v37 = vld [vmem:[#allocation3 + $0x90] sm:$0xe]  ;;  %v13681_v8 = vcombine.low %v8219_v19, %v8219_v19  ;;  %v13697_v27 = vcombine.low %v8219_v19, %v19626_v24  ;;  %v8642_v19 = vpop.permute.xlu0 %8641 }
 0x3e3   :  { %v19628_v44 = vld [vmem:[#allocation3 + $0x90] sm:$0xf]  ;;  %v13666_v22 = vcombine.low %v8203_v37, %v8187_v41  ;;  %v9147_v37 = vrot.slane %v9145_v0, 1 }
 0x3e4   :  { %v19633_v34 = vcombine.low %v19628_v44, %v8187_v41  ;;  %8985 = vrot.lane.b32.xlu0 %v13681_v8, %s15052_s16  ;;  %v9138_v6 = vshll.u32 %v13697_v27, 16  ;;  %v9136_v18 = vshrl.u32 %v13697_v27, 16  ;;  %v9172_v49 = vpop.permute.xlu1 %9171  ;;  %v9461_v41 = vsel %vm9327_vm10, %v9429_v16, %v9170_v28  ;;  %v15006_v8 = vld [vmem:[#allocation3 + $0x60] sm:$0xf]  ;;  %v15007_v27 = vld [vmem:[#allocation3 + $0x68] sm:$0xf] }
 0x3e5   :  { %v8876_v48 = vrot.slane %v13666_v22, 1  ;;  %v9463_v13 = vsel %vm9327_vm10, %v9431_v32, %v9172_v49  ;;  %v9278_v12 = vsel %vm9245_vm2, %v15006_v8, %v19612_v39  ;;  %v9281_v22 = vsel %vm9245_vm2, %v15007_v27, %v8468_v53  ;;  %v19667_v53 = vpop.f32.mrf.mxu1 }
 0x3e6   :  { %v9140_v61 = vrot.slane %v9138_v6, 1  ;;  %v13732_v42 = vcombine.low %v9461_v41, %v9463_v13  ;;  %v9316_v3 = vsel %vm9294_vm4, %v9278_v12, %v8562_v30  ;;  %v9318_v47 = vsel %vm9294_vm4, %v9281_v22, %v8564_v43  ;;  %v8902_v43 = vpop.permute.xlu0 %8901 }
 0x3e7   :  { %8907 = vrot.lane.b32.xlu1 %v8876_v48, %s15051_s0  ;;  %v8540_v48 = vrot.slane %v13618_v5, 1  ;;  %v9349_v51 = vsel %vm9327_vm10, %v9316_v3, %v8642_v19  ;;  %v9148_v39 = vor.u32 %v9147_v37, %v9143_v55  ;;  %v13634_v58 = vcombine.low %v19628_v44, %v19628_v44 }
 0x3e8   :  { %8569 = vrot.lane.b32.xlu0 %v8539_v52, %s15052_s16  ;;  %v9141_v1 = vor.u32 %v9140_v61, %v9136_v18  ;;  %v8644_v6 = vpop.permute.xlu1 %8643  ;;  %9839 = vmatprep.mubr.bf16.mxu1 %v13732_v42  ;;  %v8786_v5 = vshrl.u32 %v19478_v17, 16  ;;  %v8793_v32 = vshrl.u32 %v19541_v25, 16 }
 0x3e9   :  { %v9351_v50 = vsel %vm9327_vm10, %v9318_v47, %v8644_v6 }
 0x3ea   :  { %v13731_v46 = vcombine.low %v9349_v51, %v9351_v50  ;;  %v19670_v30 = vpop.f32.mrf.mxu1  ;;  %v8470_v15 = vpop.permute.xlu0 %8469 }
 0x3eb   :  { %8475 = vrot.lane.b32.xlu1 %v8444_v35, %s15051_s0 }
 0x3ec   :  { %9177 = vrot.lane.b32.xlu0 %v9141_v1, %s15053_s13  ;;  %9840 = vmatmul.mubr.bf16.gmra.mxu1 %v13731_v46  ;;  %v19675_v52 = vpop.f32.mrf.mxu1  ;;  %v8788_v1 = vshll.u32 %v19478_v17, 16 }
 0x3ee   :  { %v19677_v57 = vpop.f32.mrf.mxu1  ;;  %v8790_v63 = vrot.slane %v8788_v1, 1 }
 0x3ef   :  { %8987 = vrot.lane.b32.xlu1 %v13682_v33, %s15052_s16  ;;  %v8795_v33 = vshll.u32 %v19541_v25, 16  ;;  %v9284_v25 = vsel %vm9245_vm2, %v19461_v31, %v8470_v15 }
 0x3f0   :  { %8649 = vrot.lane.b32.xlu0 %v13633_v56, %s15053_s13  ;;  %v19679_v61 = vpop.f32.mrf.mxu1  ;;  %v8791_v13 = vor.u32 %v8790_v63, %v8786_v5 }
 0x3f1   :  { %v8797_v16 = vrot.slane %v8795_v33, 1  ;;  %v8800_v33 = vshrl.u32 %v19582_v45, 16 }
 0x3f2   :  { %v9398_v56 = vsel %vm9245_vm2, %v8791_v13, %v8902_v43 }
 0x3f3   :  { %8571 = vrot.lane.b32.xlu1 %v8540_v48, %s15052_s16  ;;  %v8798_v19 = vor.u32 %v8797_v16, %v8793_v32  ;;  %v8238_v16 = vld [vmem:[#allocation3 + $0x18] sm:$0xe] }
 0x3f7   :  { %9179 = vrot.lane.b32.xlu1 %v9148_v39, %s15053_s13 }
 0x3fb   :  { %8651 = vrot.lane.b32.xlu1 %v13634_v58, %s15053_s13 }
 0x402   :  { %v8982_v44 = vpop.permute.xlu0 %8981 }
 0x403   :  { %v14225_v59 = vpop.f32.mrf.mxu1  ;;  %v9433_v37 = vsel %vm9294_vm4, %v9398_v56, %v8982_v44  ;;  %v15008_v56 = vld [vmem:[#allocation3 + $0x1c] sm:$0x1] }
 0x405   :  { %v14226_v29 = vpop.f32.mrf.mxu1  ;;  %v8904_v38 = vpop.permute.xlu1 %8903 }
 0x406   :  { %v19681_v14 = vadd.f32 %v14226_v29, %v14225_v59  ;;  %v8566_v0 = vpop.permute.xlu0 %8565  ;;  %v9401_v55 = vsel %vm9245_vm2, %v8798_v19, %v8904_v38 }
 0x407   :  { %v14228_v28 = vpop.f32.mrf.mxu1  ;;  %v9320_v48 = vsel %vm9294_vm4, %v9284_v25, %v8566_v0  ;;  %v8807_v0 = vshrl.u32 %v19633_v34, 16 }
 0x409   :  { %v14229_v35 = vpop.f32.mrf.mxu1  ;;  %v8472_v54 = vpop.permute.xlu1 %8471 }
 0x40a   :  { %v19683_v18 = vadd.f32 %v14229_v35, %v14228_v28  ;;  %v9174_v49 = vpop.permute.xlu0 %9173  ;;  %v9287_v3 = vsel %vm9245_vm2, %v19500_v4, %v8472_v54  ;;  %v8802_v4 = vshll.u32 %v19582_v45, 16  ;;  %v8809_v35 = vshll.u32 %v19633_v34, 16 }
 0x40b   :  { %v9465_v12 = vsel %vm9327_vm10, %v9433_v37, %v9174_v49 }
 0x40c   :  { %v8804_v44 = vrot.slane %v8802_v4, 1  ;;  %v8811_v54 = vrot.slane %v8809_v35, 1 }
 0x40e   :  { %v8646_v17 = vpop.permute.xlu0 %8645  ;;  %v8805_v5 = vor.u32 %v8804_v44, %v8800_v33  ;;  %v8812_v32 = vor.u32 %v8811_v54, %v8807_v0  ;;  %v15010_v44 = vld [vmem:[#allocation3 + $0x3c] sm:$0x1]  ;;  %v8243_v33 = vld [vmem:[#allocation3 + $0x40] sm:$0xe]  ;;  %v8244_v0 = vld [vmem:[#allocation3 + $0x48] sm:$0xe] }
 0x40f   :  { %v9353_v51 = vsel %vm9327_vm10, %v9320_v48, %v8646_v17 }
 0x428   :  { %v8984_v23 = vpop.permute.xlu1 %8983 }
 0x429   :  { %v9435_v42 = vsel %vm9294_vm4, %v9401_v55, %v8984_v23  ;;  %v19703_v31 = vpop.f32.mrf.mxu1  ;;  %v13700_v55 = vcombine.low %v8238_v16, %v15008_v56  ;;  %v15012_v16 = vld [vmem:[#allocation3 + $0x44] sm:$0x1]  ;;  %v15014_v56 = vld [vmem:[#allocation3 + $0x6c] sm:$0x1] }
 0x42b   :  { %v8906_v46 = vpop.permute.xlu0 %8905  ;;  %v19707_v43 = vpop.f32.mrf.mxu1 }
 0x42c   :  { %v8568_v41 = vpop.permute.xlu1 %8567  ;;  %v9404_v13 = vsel %vm9245_vm2, %v8805_v5, %v8906_v46  ;;  %v13705_v5 = vcombine.low %v8243_v33, %v15012_v16 }
 0x42d   :  { %v9322_v47 = vsel %vm9294_vm4, %v9287_v3, %v8568_v41  ;;  %v19709_v1 = vpop.f32.mrf.mxu1  ;;  %v8237_v41 = vld [vmem:[#allocation3 + $0x10] sm:$0xe] }
 0x42f   :  { %v8474_v58 = vpop.permute.xlu0 %8473  ;;  %v19713_v49 = vpop.f32.mrf.mxu1 }
 0x430   :  { %v9176_v8 = vpop.permute.xlu1 %9175  ;;  %v9290_v48 = vsel %vm9245_vm2, %v19566_v10, %v8474_v58  ;;  %v8241_v10 = vld [vmem:[#allocation3 + $0x30] sm:$0xe] }
 0x431   :  { %v9467_v27 = vsel %vm9327_vm10, %v9435_v42, %v9176_v8 }
 0x432   :  { %v13735_v22 = vcombine.low %v9465_v12, %v9467_v27  ;;  %v15009_v27 = vld [vmem:[#allocation3 + $0x14] sm:$0x1] }
 0x433   :  { %v13699_v17 = vcombine.low %v8237_v41, %v15009_v27  ;;  %v8250_v27 = vld [vmem:[#allocation3 + $0x88] sm:$0xe] }
 0x434   :  { %v8648_v6 = vpop.permute.xlu1 %8647  ;;  %9847 = vmatprep.mubr.bf16.mxu1 %v13735_v22  ;;  %v13712_v40 = vcombine.low %v8250_v27, %v19575_v2 }
 0x435   :  { %v9355_v50 = vsel %vm9327_vm10, %v9322_v47, %v8648_v6  ;;  %v9230_v6 = vrot.slane %v13700_v55, 1  ;;  %v9229_v35 = vrot.slane %v13699_v17, 1 }
 0x436   :  { %v13734_v39 = vcombine.low %v9353_v51, %v9355_v50 }
 0x437   :  { %v13718_v58 = vcombine.low %v9229_v35, %v9230_v6 }
 0x438   :  { %9848 = vmatmul.mubr.bf16.gmra.mxu1 %v13734_v39 }
 0x456   :  { %v8986_v59 = vpop.permute.xlu0 %8985 }
 0x457   :  { %v9437_v37 = vsel %vm9294_vm4, %v9404_v13, %v8986_v59  ;;  %v8242_v59 = vld [vmem:[#allocation3 + $0x38] sm:$0xe]  ;;  %v8245_v13 = vld [vmem:[#allocation3 + $0x60] sm:$0xe] }
 0x459   :  { %v8908_v29 = vpop.permute.xlu1 %8907 }
 0x45a   :  { %v8570_v15 = vpop.permute.xlu0 %8569  ;;  %v9407_v19 = vsel %vm9245_vm2, %v8812_v32, %v8908_v29  ;;  %v15013_v32 = vld [vmem:[#allocation3 + $0x4c] sm:$0x1] }
 0x45b   :  { %v9324_v50 = vsel %vm9294_vm4, %v9290_v48, %v8570_v15  ;;  %v13706_v41 = vcombine.low %v8244_v0, %v15013_v32  ;;  %v419_v0 = vld [vmem:[#allocation4 + $0x4] sm:$0x1]  ;;  %v467_v32 = vld [vmem:[#allocation4 + $0x10] sm:$0x4] }
 0x45d   :  { %v8476_v28 = vpop.permute.xlu1 %8475 }
 0x45e   :  { %v9178_v23 = vpop.permute.xlu0 %9177  ;;  %v9293_v47 = vsel %vm9245_vm2, %v19618_v36, %v8476_v28  ;;  %v13704_v36 = vcombine.low %v8242_v59, %v15010_v44  ;;  %v15011_v28 = vld [vmem:[#allocation3 + $0x34] sm:$0x1]  ;;  %v8251_v59 = vld [vmem:[#allocation3 + $0x90] sm:$0xe] }
 0x45f   :  { %v9469_v8 = vsel %vm9327_vm10, %v9437_v37, %v9178_v23  ;;  %v13703_v15 = vcombine.low %v8241_v10, %v15011_v28  ;;  %v8246_v23 = vld [vmem:[#allocation3 + $0x68] sm:$0xe]  ;;  %v15015_v37 = vld [vmem:[#allocation3 + $0x64] sm:$0x1]  ;;  %v13713_v10 = vcombine.low %v8251_v59, %v19626_v24 }
 0x460   :  { %v9234_v54 = vrot.slane %v13704_v36, 1  ;;  %v13708_v55 = vcombine.low %v8246_v23, %v15014_v56  ;;  %v458_v23 = vld [vmem:[#allocation4 + $0x4] sm:$0x4]  ;;  %v464_v56 = vld [vmem:[#allocation4 + $0xc] sm:$0x4] }
 0x461   :  { %v8988_v38 = vpop.permute.xlu1 %8987  ;;  %v9243_v44 = vrot.slane %v13713_v10, 1  ;;  %v459_v16 = vsel %vm19748_vm12, 0, %v458_v23 }
 0x462   :  { %v9439_v45 = vsel %vm9294_vm4, %v9407_v19, %v8988_v38  ;;  %v8650_v22 = vpop.permute.xlu0 %8649  ;;  %460 = vst [vmem:[#allocation4 + $0x4] sm:$0x4] %v459_v16  ;;  %v482_v16 = vld [vmem:[#allocation4 + $0x24] sm:$0x4] }
 0x463   :  { %v9357_v29 = vsel %vm9327_vm10, %v9324_v50, %v8650_v22  ;;  %v8247_v22 = vld [vmem:[#allocation3 + $0x70] sm:$0xe] }
 0x465   :  { %v8572_v63 = vpop.permute.xlu1 %8571 }
 0x466   :  { %v14237_v34 = vpop.f32.mrf.mxu1  ;;  %v9326_v39 = vsel %vm9294_vm4, %v9293_v47, %v8572_v63  ;;  %v9233_v63 = vrot.slane %v13703_v15, 1  ;;  %v8249_v47 = vld [vmem:[#allocation3 + $0x80] sm:$0xe] }
 0x467   :  { %v13711_v50 = vcombine.low %v8249_v47, %v19516_v9  ;;  %v422_v9 = vld [vmem:[#allocation4 + $0x8] sm:$0x1] }
 0x468   :  { %v14238_v3 = vpop.f32.mrf.mxu1  ;;  %v13724_v19 = vcombine.low %v9233_v63, %v9234_v54  ;;  %v423_v15 = vsel %vm17291_vm3, 0, %v422_v9  ;;  %v20709_v54 = vmov 0   ;;  %v420_v63 = vsel %vm17291_vm3, 0, %v419_v0 }
 0x469   :  { %v9180_v42 = vpop.permute.xlu1 %9179  ;;  %v19725_v51 = vadd.f32 %v14238_v3, %v14237_v34  ;;  %v9236_v34 = vrot.slane %v13706_v41, 1  ;;  %v15016_v3 = vld [vmem:[#allocation3 + $0x7c] sm:$0x1]  ;;  %v9241_v35 = vrot.slane %v13711_v50, 1  ;;  %411 = vst.msk [vmem:[#allocation4] sm:$0x7] %vm410_vm14, %v20709_v54 }
 0x46a   :  { %v9471_v12 = vsel %vm9327_vm10, %v9439_v45, %v9180_v42  ;;  %v13707_v45 = vcombine.low %v8245_v13, %v15015_v37  ;;  %v9235_v42 = vrot.slane %v13705_v5, 1  ;;  %412 = vst.msk [vmem:[#allocation4 + $0x18] sm:$0x7] %vm410_vm14, %v20709_v54  ;;  %414 = vst.msk [vmem:[#allocation4 + $0x14] sm:$0x7] %vm410_vm14, %v20709_v54  ;;  %v468_v13 = vsel %vm19748_vm12, 0, %v467_v32 }
 0x46b   :  { %v13738_v25 = vcombine.low %v9469_v8, %v9471_v12  ;;  %v9238_v8 = vrot.slane %v13708_v55, 1  ;;  %v8248_v12 = vld [vmem:[#allocation3 + $0x78] sm:$0xe]  ;;  %415 = vst.msk [vmem:[#allocation4 + $0x2c] sm:$0x7] %vm410_vm14, %v20709_v54  ;;  %v19770_v55 = vpop.f32.mrf.mxu1  ;;  %vm20715_vm14 = vmmov %vm20702_vm7 }
 0x46c   :  { %v9237_v17 = vrot.slane %v13707_v45, 1  ;;  %v13710_v48 = vcombine.low %v8248_v12, %v15016_v3  ;;  %424 = vst [vmem:[#allocation4 + $0x8] sm:$0x1] %v423_v15  ;;  %421 = vst [vmem:[#allocation4 + $0x4] sm:$0x1] %v420_v63  ;;  %v465_v45 = vsel %vm19748_vm12, 0, %v464_v56 }
 0x46d   :  { %v8652_v46 = vpop.permute.xlu1 %8651  ;;  %9855 = vmatprep.mubr.bf16.mxu1 %v13738_v25  ;;  %v13727_v25 = vcombine.low %v9235_v42, %v9236_v34  ;;  %v428_v5 = vld [vmem:[#allocation4 + $0x10] sm:$0x1]  ;;  %469 = vst [vmem:[#allocation4 + $0x10] sm:$0x4] %v468_v13  ;;  %466 = vst [vmem:[#allocation4 + $0xc] sm:$0x4] %v465_v45  ;;  %v19776_v42 = vpop.f32.mrf.mxu1 }
 0x46e   :  { %v9359_v4 = vsel %vm9327_vm10, %v9326_v39, %v8652_v46  ;;  %v13730_v6 = vcombine.low %v9237_v17, %v9238_v8  ;;  %v9240_v39 = vrot.slane %v13710_v48, 1  ;;  %v9242_v46 = vrot.slane %v13712_v40, 1  ;;  %v440_v8 = vld [vmem:[#allocation4 + $0x20] sm:$0x1]  ;;  %v479_v12 = vld [vmem:[#allocation4 + $0x20] sm:$0x4] }
 0x46f   :  { %v13737_v38 = vcombine.low %v9357_v29, %v9359_v4  ;;  %v8252_v29 = vld [vmem:[#allocation3 + $0x98] sm:$0xe]  ;;  %v429_v41 = vsel %vm17291_vm3, 0, %v428_v5  ;;  %v441_v27 = vsel %vm17291_vm3, 0, %v440_v8  ;;  %v480_v17 = vsel %vm19748_vm12, 0, %v479_v12 }
 0x470   :  { %v13736_v2 = vcombine.low %v9241_v35, %v9242_v46  ;;  %430 = vst [vmem:[#allocation4 + $0x10] sm:$0x1] %v429_v41  ;;  %442 = vst [vmem:[#allocation4 + $0x20] sm:$0x1] %v441_v27  ;;  %v437_v3 = vld [vmem:[#allocation4 + $0x1c] sm:$0x1] }
 0x471   :  { %9856 = vmatmul.mubr.bf16.gmra.mxu1 %v13737_v38  ;;  %481 = vst [vmem:[#allocation4 + $0x20] sm:$0x4] %v480_v17  ;;  %v476_v48 = vld [vmem:[#allocation4 + $0x1c] sm:$0x4]  ;;  %v416_v50 = vld [vmem:[#allocation4] sm:$0x1] }
 0x472   :  { %14405 = vmatprep.mubr.msk.bf16.mxu1 %vm9245_vm2, %v13718_v58  ;;  %v13714_v58 = vcombine.low %v8252_v29, %v19636_v20  ;;  %v461_v20 = vld [vmem:[#allocation4 + $0x8] sm:$0x4]  ;;  %v477_v40 = vsel %vm19748_vm12, 0, %v476_v48  ;;  %v446_v46 = vld [vmem:[#allocation4 + $0x28] sm:$0x1]  ;;  %v417_v29 = vsel %vm17291_vm3, 0, %v416_v50 }
 0x473   :  { %v462_v33 = vsel %vm19748_vm12, 0, %v461_v20  ;;  %478 = vst [vmem:[#allocation4 + $0x1c] sm:$0x4] %v477_v40  ;;  %v447_v35 = vsel %vm17291_vm3, 0, %v446_v46  ;;  %418 = vst [vmem:[#allocation4] sm:$0x1] %v417_v29 }
 0x474   :  { %v9244_v36 = vrot.slane %v13714_v58, 1  ;;  %463 = vst [vmem:[#allocation4 + $0x8] sm:$0x4] %v462_v33  ;;  %448 = vst [vmem:[#allocation4 + $0x28] sm:$0x1] %v447_v35  ;;  %v483_v41 = vsel %vm19748_vm12, 0, %v482_v16 }
 0x475   :  { %v431_v33 = vld [vmem:[#allocation4 + $0x14] sm:$0x1]  ;;  %v14891_v0 = vld [vmem:[#allocation4] ss:$0 sps:$4 sm:$0x66]   ;;  %v14914_v48 = vld [vmem:[%s20429_s5 + $0x88] sm:$0xff]  }
 0x476   :  { %v13739_v28 = vcombine.low %v9243_v44, %v9244_v36  ;;  %v432_v23 = vsel %vm17291_vm3, 0, %v431_v33  ;;  %v443_v63 = vld [vmem:[#allocation4 + $0x24] sm:$0x1]  ;;  %v10742_v5 = vrot.slane %v14891_v0, 1  ;;  %v470_v13 = vld [vmem:[#allocation4 + $0x14] sm:$0x4]  ;;  %14421 = vmatprep.subr.bf16.mxu0 %v14914_v48  ;;  %v14224_v33 = vadd.f32 %v19679_v61, %v19677_v57 }
 0x477   :  { %433 = vst [vmem:[#allocation4 + $0x14] sm:$0x1] %v432_v23  ;;  %v444_v32 = vsel %vm17291_vm3, 0, %v443_v63  ;;  %484 = vst [vmem:[#allocation4 + $0x24] sm:$0x4] %v483_v41  ;;  %14422 = vmatpush3.bf16.msra.mxu0 %v14914_v48  ;;  %v14917_v40 = vld [vmem:[%s20429_s5 + $0x80] sm:$0xff]   ;;  %v14218_v63 = vadd.f32 %v19667_v53, %v19664_v7  ;;  %v14242_v7 = vadd.f32 %v19776_v42, %v19770_v55 }
 0x478   :  { %445 = vst [vmem:[#allocation4 + $0x24] sm:$0x1] %v444_v32  ;;  %v434_v56 = vld [vmem:[#allocation4 + $0x18] sm:$0x1]  ;;  %v449_v12 = vld [vmem:[#allocation4 + $0x2c] sm:$0x1]  ;;  %14423 = vmatprep.subr.bf16.mxu0 %v14917_v40 }
 0x479   :  { %14406 = vmatmul.mubr.msk.bf16.vlgmr.msra.gmra.mxu1 %vm9245_vm2, %v13721_v21  ;;  %v13709_v21 = vcombine.low %v8247_v22, %v15017_v11  ;;  %v435_v45 = vsel %vm17291_vm3, 0, %v434_v56  ;;  %v488_v27 = vld [vmem:[#allocation4 + $0x2c] sm:$0x4]  ;;  %v450_v17 = vsel %vm17291_vm3, 0, %v449_v12  ;;  %v13715_v0 = vld [vmem:[%s20428_s4] ss:$0 sm:$0xff] }
 0x47a   :  { %14409 = vmatprep.mubr.msk.bf16.mxu1 %vm9245_vm2, %v13724_v19  ;;  %v425_v19 = vld [vmem:[#allocation4 + $0xc] sm:$0x1]  ;;  %v14889_v36 = vld [vmem:[#allocation4] ss:$0 sps:$4 sm:$0x77]   ;;  %v9802_v41 = vadd.f32 %v19616_v26, %v13715_v0  ;;  %v9813_v57 = vadd.f32 %v14224_v33, %v13715_v0  ;;  %v19857_v26 = vadd.f32 %v19683_v18, %v13715_v0 }
 0x47b   :  { %v9239_v4 = vrot.slane %v13709_v21, 1  ;;  %v426_v37 = vsel %vm17291_vm3, 0, %v425_v19  ;;  %v10649_v9 = vshll.u32 %v14889_v36, 16  ;;  %v471_v19 = vsel %vm19748_vm12, 0, %v470_v13  ;;  %436 = vst [vmem:[#allocation4 + $0x18] sm:$0x1] %v435_v45  ;;  %14424 = vmatpush3.bf16.msra.mxu0 %v14917_v40 }
 0x47c   :  { %427 = vst [vmem:[#allocation4 + $0xc] sm:$0x1] %v426_v37  ;;  %v473_v37 = vld [vmem:[#allocation4 + $0x18] sm:$0x4]  ;;  %472 = vst [vmem:[#allocation4 + $0x14] sm:$0x4] %v471_v19  ;;  %v19866_v40 = vadd.f32 %v14242_v7, %v13715_v0 }
 0x47d   :  { %v13733_v38 = vcombine.low %v9239_v4, %v9240_v39  ;;  %v455_v39 = vld [vmem:[#allocation4] sm:$0x4]  ;;  %v10651_v15 = vrot.slane %v10649_v9, 1  ;;  %v474_v8 = vsel %vm19748_vm12, 0, %v473_v37  ;;  %451 = vst [vmem:[#allocation4 + $0x2c] sm:$0x1] %v450_v17  ;;  %v9805_v37 = vadd.f32 %v14218_v63, %v13715_v0 }
 0x47e   :  { %v456_v4 = vsel %vm19748_vm12, 0, %v455_v39  ;;  %475 = vst [vmem:[#allocation4 + $0x18] sm:$0x4] %v474_v8  ;;  %v14895_v35 = vld [vmem:[#allocation4 + $0x18] ss:$0 sps:$4 sm:$0x66]  }
 0x47f   :  { %457 = vst [vmem:[#allocation4] sm:$0x4] %v456_v4  ;;  %v14909_v19 = vld [vmem:[#allocation4 + $0x14] ss:$0 sps:$4 sm:$0x66]  }
 0x480   :  { %v11097_v17 = vrot.slane %v14909_v19, 1 }
 0x481   :  { %14410 = vmatmul.mubr.msk.bf16.gmra.mxu1 %vm9245_vm2, %v13727_v25 }
 0x482   :  { %14413 = vmatprep.mubr.msk.bf16.mxu1 %vm9245_vm2, %v13730_v6  ;;  %v438_v6 = vsel %vm17291_vm3, 0, %v437_v3  ;;  %v489_v3 = vsel %vm19748_vm12, 0, %v488_v27 }
 0x483   :  { %439 = vst [vmem:[#allocation4 + $0x1c] sm:$0x1] %v438_v6  ;;  %490 = vst [vmem:[#allocation4 + $0x2c] sm:$0x4] %v489_v3 }
 0x484   :  { %v14890_v6 = vld [vmem:[#allocation4 + $0x14] ss:$0 sps:$4 sm:$0x33]  }
 0x485   :  { %10964 = vrot.lane.b32.xlu1 %v14890_v6, %s15052_s16 }
 0x489   :  { %14414 = vmatmul.mubr.msk.bf16.gmra.mxu1 %vm9245_vm2, %v13733_v38  ;;  %v485_v38 = vld [vmem:[#allocation4 + $0x28] sm:$0x4] }
 0x48a   :  { %14417 = vmatprep.mubr.msk.bf16.mxu1 %vm9245_vm2, %v13736_v2  ;;  %v486_v58 = vsel %vm19748_vm12, 0, %v485_v38  ;;  %vm20718_vm12 = vmmov %vm20714_vm1 }
 0x48b   :  { %487 = vst [vmem:[#allocation4 + $0x28] sm:$0x4] %v486_v58  ;;  %v14894_v58 = vld [vmem:[#allocation4 + $0x2c] ss:$0 sps:$4 sm:$0x33]  }
 0x491   :  { %14418 = vmatmul.mubr.msk.bf16.gmra.mxu1 %vm9245_vm2, %v13739_v28  ;;  %v10647_v28 = vshrl.u32 %v14889_v36, 16 }
 0x493   :  { %v10652_v20 = vor.u32 %v10651_v15, %v10647_v28  ;;  %v14221_v15 = vadd.f32 %v19675_v52, %v19670_v30  ;;  %v14236_v30 = vadd.f32 %v19713_v49, %v19709_v1  ;;  %v9818_v49 = vadd.f32 %v19681_v14, %v13715_v0 }
 0x495   :  { %10702 = vrot.lane.b32.xlu0 %v10652_v20, %s15051_s0  ;;  %v9810_v16 = vadd.f32 %v14221_v15, %v13715_v0  ;;  %v9829_v8 = vadd.f32 %v14236_v30, %v13715_v0 }
 0x499   :  { %10750 = vrot.lane.b32.xlu0 %v10742_v5, %s15052_s16  ;;  %v14233_v5 = vadd.f32 %v19707_v43, %v19703_v31 }
 0x49b   :  { %v9826_v1 = vadd.f32 %v14233_v5, %v13715_v0 }
 0x4ac   :  { %v19778_v34 = vpop.f32.mrf.mxu1 }
 0x4ae   :  { %v19784_v22 = vpop.f32.mrf.mxu1 }
 0x4af   :  { %v14245_v61 = vadd.f32 %v19784_v22, %v19778_v34 }
 0x4b0   :  { %v19786_v25 = vpop.f32.mrf.mxu1 }
 0x4b1   :  { %v19859_v42 = vadd.f32 %v14245_v61, %v13715_v0 }
 0x4b2   :  { %v19788_v47 = vpop.f32.mrf.mxu1 }
 0x4b3   :  { %v14248_v31 = vadd.f32 %v19788_v47, %v19786_v25  ;;  %v19862_v47 = vadd.f32 %v19725_v51, %v13715_v0 }
 0x4b5   :  { %v19864_v18 = vadd.f32 %v14248_v31, %v13715_v0 }
 0x4f8   :  { %v14249_v11 = vpop.f32.mrf.mxu1 }
 0x4fa   :  { %v14250_v21 = vpop.f32.mrf.mxu1 }
 0x4fb   :  { %v19794_v59 = vadd.f32 %v14250_v21, %v14249_v11  ;;  %v14892_v11 = vld [vmem:[#allocation4 + $0x14] ss:$0 sps:$4 sm:$0x77]   ;;  %v14893_v21 = vld [vmem:[#allocation4 + $0x18] ss:$0 sps:$4 sm:$0x77]  }
 0x4fc   :  { %v14252_v10 = vpop.f32.mrf.mxu1  ;;  %v11020_v24 = vshrl.u32 %v14892_v11, 16  ;;  %v11022_v50 = vshll.u32 %v14892_v11, 16  ;;  %v10675_v39 = vshrl.u32 %v14893_v21, 16  ;;  %v10677_v46 = vshll.u32 %v14893_v21, 16 }
 0x4fd   :  { %v19869_v11 = vadd.f32 %v19794_v59, %v13715_v0 }
 0x4fe   :  { %v14253_v2 = vpop.f32.mrf.mxu1  ;;  %v11024_v29 = vrot.slane %v11022_v50, 1  ;;  %v10679_v4 = vrot.slane %v10677_v46, 1 }
 0x4ff   :  { %v19804_v44 = vadd.f32 %v14253_v2, %v14252_v10  ;;  %v10746_v2 = vrot.slane %v14895_v35, 1  ;;  %v19882_v35 = vrot.slane %v11097_v17, %v17372_v62 }
 0x500   :  { %v11025_v38 = vor.u32 %v11024_v29, %v11020_v24  ;;  %v10680_v10 = vor.u32 %v10679_v4, %v10675_v39 }
 0x501   :  { %v19873_v39 = vadd.f32 %v19804_v44, %v13715_v0 }
 0x502   :  { %11060 = vrot.lane.b32.xlu1 %v11025_v38, %s15053_s13  ;;  %10710 = vrot.lane.b32.xlu0 %v10680_v10, %s15051_s0 }
 0x506   :  { %10972 = vrot.lane.b32.xlu1 %v14894_v58, %s15052_s16  ;;  %10758 = vrot.lane.b32.xlu0 %v10746_v2, %s15052_s16 }
 0x531   :  { %v14255_v36 = vpop.f32.mrf.mxu1 }
 0x533   :  { %v14256_v28 = vpop.f32.mrf.mxu1 }
 0x534   :  { %v14257_v12 = vadd.f32 %v14256_v28, %v14255_v36 }
 0x535   :  { %v14258_v9 = vpop.f32.mrf.mxu1 }
 0x536   :  { %v19877_v29 = vadd.f32 %v14257_v12, %v13715_v0 }
 0x537   :  { %v14259_v20 = vpop.f32.mrf.mxu1 }
 0x538   :  { %v14260_v27 = vadd.f32 %v14259_v20, %v14258_v9 }
 0x539   :  { %v14407_v23 = vpop.f32.mrf.mxu1 }
 0x53a   :  { %v9907_v52 = vadd.f32 %v14407_v23, %v9810_v16  ;;  %v19879_v4 = vadd.f32 %v14260_v27, %v13715_v0 }
 0x53b   :  { %v9898_v32 = vpop.f32.mrf.mxu1 }
 0x53c   :  { %v9899_v53 = vadd.f32 %v9898_v32, %v9802_v41  ;;  %v9963_v45 = vmax.f32 %v9907_v52, 0.0 }
 0x53d   :  { %v14408_v13 = vpop.f32.mrf.mxu1 }
 0x53e   :  { %v9910_v56 = vadd.f32 %v14408_v13, %v9813_v57  ;;  %v9961_v3 = vmax.f32 %v9899_v53, 0.0 }
 0x53f   :  { %v9901_v43 = vpop.f32.mrf.mxu1 }
 0x540   :  { %v9964_v34 = vmax.f32 %v9910_v56, 0.0  ;;  %v9902_v22 = vadd.f32 %v9901_v43, %v9805_v37 }
 0x541   :  { %v14411_v55 = vpop.f32.mrf.mxu1 }
 0x542   :  { %v9978_v48 = vmax.f32 %v9963_v45, %v9964_v34  ;;  %v9962_v25 = vmax.f32 %v9902_v22, 0.0  ;;  %v9923_v14 = vadd.f32 %v14411_v55, %v9826_v1 }
 0x543   :  { %v9914_v6 = vpop.f32.mrf.mxu1 }
 0x544   :  { %v10010_v21 = vcombine.high %v9978_v48, %v9978_v48  ;;  %v10017_v24 = vrot.slane %v9978_v48, %v17372_v62  ;;  %v9977_v50 = vmax.f32 %v9961_v3, %v9962_v25  ;;  %v19875_v46 = vadd.f32 %v9914_v6, %v9818_v49 }
 0x545   :  { %v14412_v51 = vpop.f32.mrf.mxu1  ;;  %v9967_v36 = vmax.f32 %v9923_v14, 0.0 }
 0x546   :  { %v10024_v59 = vrot.slane %v10010_v21, %v17372_v62  ;;  %v10025_v38 = vcombine.high %v10017_v24, %v10017_v24  ;;  %v13770_v10 = vrot.slane %v10017_v24, 9  ;;  %v9993_v58 = vcombine.high %v9977_v50, %v9977_v50 }
 0x547   :  { %v10000_v2 = vrot.slane %v9977_v50, %v17372_v62  ;;  %v9965_v44 = vmax.f32 %v19875_v46, 0.0  ;;  %v9926_v28 = vadd.f32 %v14412_v51, %v9829_v8  ;;  %v9917_v49 = vpop.f32.mrf.mxu1 }
 0x548   :  { %v10026_v9 = vcombine.high %v10024_v59, %v10024_v59  ;;  %v13771_v15 = vrot.slane %v10025_v38, 9  ;;  %v13772_v20 = vrot.slane %v10024_v59, 9  ;;  %v10261_v33 = vmax.f32 %v10017_v24, %v13770_v10 }
 0x549   :  { %v10007_v0 = vrot.slane %v9993_v58, %v17372_v62  ;;  %v10008_v23 = vcombine.high %v10000_v2, %v10000_v2  ;;  %v13766_v63 = vrot.slane %v10000_v2, 9  ;;  %v9968_v16 = vmax.f32 %v9926_v28, 0.0  ;;  %v14415_v51 = vpop.f32.mrf.mxu1 }
 0x54a   :  { %v13773_v5 = vrot.slane %v10026_v9, 9  ;;  %v10262_v32 = vmax.f32 %v10025_v38, %v13771_v15  ;;  %v10263_v30 = vmax.f32 %v10024_v59, %v13772_v20  ;;  %v14135_v52 = vpack.c.bf16 %v10261_v33, %v10261_v33  ;;  %v10528_v33 = vld [vmem:[#allocation4 + $0x8] sm:$0x7] }
 0x54b   :  { %v10009_v41 = vcombine.high %v10007_v0, %v10007_v0  ;;  %v13767_v57 = vrot.slane %v10008_v23, 9  ;;  %v13768_v61 = vrot.slane %v10007_v0, 9  ;;  %v10257_v13 = vmax.f32 %v10000_v2, %v13766_v63 }
 0x54c   :  { %v10264_v19 = vmax.f32 %v10026_v9, %v13773_v5  ;;  %v14136_v7 = vpack.c.bf16 %v10262_v32, %v10262_v32  ;;  %v14137_v53 = vpack.c.bf16 %v10263_v30, %v10263_v30  ;;  %v10421_v56 = vunpack.c.l.b16 %v14135_v52  ;;  %v9930_v52 = vpop.f32.mrf.mxu1 }
 0x54d   :  { %v13769_v37 = vrot.slane %v10009_v41, 9  ;;  %v10258_v31 = vmax.f32 %v10008_v23, %v13767_v57  ;;  %v10259_v43 = vmax.f32 %v10007_v0, %v13768_v61  ;;  %v14131_v1 = vpack.c.bf16 %v10257_v13, %v10257_v13 }
 0x54e   :  { %v14138_v45 = vpack.c.bf16 %v10264_v19, %v10264_v19  ;;  %v10422_v34 = vunpack.c.l.b16 %v14136_v7  ;;  %v10423_v22 = vunpack.c.l.b16 %v14137_v53  ;;  %v10456_v8 = vrot.slane %v10421_v56, 7  ;;  %v10525_v53 = vld [vmem:[#allocation4 + $0x4] sm:$0x7] }
 0x54f   :  { %v10260_v12 = vmax.f32 %v10009_v41, %v13769_v37  ;;  %v14132_v27 = vpack.c.bf16 %v10258_v31, %v10258_v31  ;;  %v14133_v55 = vpack.c.bf16 %v10259_v43, %v10259_v43  ;;  %v10417_v17 = vunpack.c.l.b16 %v14131_v1 }
 0x550   :  { %v10424_v3 = vunpack.c.l.b16 %v14138_v45  ;;  %v10457_v48 = vrot.slane %v10422_v34, 6  ;;  %v10459_v25 = vrot.slane %v10423_v22, 5  ;;  %v9980_v14 = vmax.f32 %v9967_v36, %v9968_v16  ;;  %v14959_v36 = vld [vmem:[%s20429_s5 + $0x58] sm:$0xff]  }
 0x551   :  { %v14134_v6 = vpack.c.bf16 %v10260_v12, %v10260_v12  ;;  %v10418_v21 = vunpack.c.l.b16 %v14132_v27  ;;  %v10419_v24 = vunpack.c.l.b16 %v14133_v55  ;;  %v10449_v50 = vrot.slane %v10417_v17, 7 }
 0x552   :  { %v10458_v59 = vsel %vm20710_vm6, %v10457_v48, %v10456_v8  ;;  %v10461_v38 = vrot.slane %v10424_v3, 4  ;;  %v10044_v10 = vcombine.high %v9980_v14, %v9980_v14  ;;  %v10051_v58 = vrot.slane %v9980_v14, %v17372_v62  ;;  %v14416_v8 = vpop.f32.mrf.mxu1  ;;  %vm20720_vm6 = vmmov %vm20714_vm1 }
 0x553   :  { %v10460_v2 = vsel %vm20702_vm7, %v10459_v25, %v10458_v59  ;;  %v10420_v28 = vunpack.c.l.b16 %v14134_v6  ;;  %v10450_v9 = vrot.slane %v10418_v21, 6  ;;  %v10452_v15 = vrot.slane %v10419_v24, 5  ;;  %vm20721_vm7 = vmmov %vm20717_vm0 }
 0x554   :  { %v10462_v20 = vsel %vm7739_vm11, %v10461_v38, %v10460_v2  ;;  %v10058_v0 = vrot.slane %v10044_v10, %v17372_v62  ;;  %v10059_v23 = vcombine.high %v10051_v58, %v10051_v58  ;;  %v13778_v63 = vrot.slane %v10051_v58, 9 }
 0x555   :  { %v10506_v16 = vpack.c.b16 %v10462_v20, %v10462_v20  ;;  %v10451_v5 = vsel %vm20704_vm5, %v10450_v9, %v10449_v50  ;;  %v10454_v32 = vrot.slane %v10420_v28, 4  ;;  %v9918_v30 = vadd.f32 %v9917_v49, %v19857_v26  ;;  %vm20722_vm5 = vmmov %vm20714_vm1 }
 0x556   :  { %v10453_v41 = vsel %vm20713_vm13, %v10452_v15, %v10451_v5  ;;  %v10060_v57 = vcombine.high %v10058_v0, %v10058_v0  ;;  %v13779_v61 = vrot.slane %v10059_v23, 9  ;;  %v13780_v13 = vrot.slane %v10058_v0, 9  ;;  %vm20723_vm13 = vmmov %vm20717_vm0 }
 0x557   :  { %v10529_v19 = vsel %vm19894_vm8, %v10506_v16, %v10528_v33  ;;  %v10455_v7 = vsel %vm7739_vm11, %v10454_v32, %v10453_v41  ;;  %v10269_v56 = vmax.f32 %v10051_v58, %v13778_v63  ;;  %v9966_v37 = vmax.f32 %v9918_v30, 0.0 }
 0x558   :  { %10530 = vst [vmem:[#allocation4 + $0x8] sm:$0x7] %v10529_v19  ;;  %v10505_v31 = vpack.c.b16 %v10455_v7, %v10455_v7  ;;  %v13781_v43 = vrot.slane %v10060_v57, 9  ;;  %v10270_v1 = vmax.f32 %v10059_v23, %v13779_v61  ;;  %v10271_v45 = vmax.f32 %v10058_v0, %v13780_v13 }
 0x559   :  { %v14143_v26 = vpack.c.bf16 %v10269_v56, %v10269_v56  ;;  %v9979_v49 = vmax.f32 %v9965_v44, %v9966_v37  ;;  %v9939_v34 = vadd.f32 %v14415_v51, %v19859_v42  ;;  %v9931_v22 = vadd.f32 %v9930_v52, %v19862_v47  ;;  %v9933_v51 = vpop.f32.mrf.mxu1 }
 0x55a   :  { %v10526_v12 = vsel %vm19894_vm8, %v10505_v31, %v10525_v53  ;;  %v10272_v27 = vmax.f32 %v10060_v57, %v13781_v43  ;;  %v14144_v55 = vpack.c.bf16 %v10270_v1, %v10270_v1  ;;  %v14145_v17 = vpack.c.bf16 %v10271_v45, %v10271_v45 }
 0x55b   :  { %10527 = vst [vmem:[#allocation4 + $0x4] sm:$0x7] %v10526_v12  ;;  %v10429_v3 = vunpack.c.l.b16 %v14143_v26  ;;  %v10027_v48 = vcombine.high %v9979_v49, %v9979_v49  ;;  %v10034_v25 = vrot.slane %v9979_v49, %v17372_v62  ;;  %v9971_v14 = vmax.f32 %v9939_v34, 0.0 }
 0x55c   :  { %v14146_v6 = vpack.c.bf16 %v10272_v27, %v10272_v27  ;;  %v10430_v46 = vunpack.c.l.b16 %v14144_v55  ;;  %v10431_v44 = vunpack.c.l.b16 %v14145_v17  ;;  %v9969_v21 = vmax.f32 %v9931_v22, 0.0 }
 0x55d   :  { %v10470_v42 = vrot.slane %v10429_v3, 7  ;;  %v10041_v47 = vrot.slane %v10027_v48, %v17372_v62  ;;  %v10042_v24 = vcombine.high %v10034_v25, %v10034_v25  ;;  %v13774_v50 = vrot.slane %v10034_v25, 9  ;;  %v14419_v48 = vpop.f32.mrf.mxu1 }
 0x55e   :  { %v10432_v59 = vunpack.c.l.b16 %v14146_v6  ;;  %v10471_v38 = vrot.slane %v10430_v46, 6  ;;  %v10473_v10 = vrot.slane %v10431_v44, 5  ;;  %v9942_v58 = vadd.f32 %v14416_v8, %v19864_v18  ;;  %v10534_v18 = vld [vmem:[#allocation4 + $0x10] sm:$0x7] }
 0x55f   :  { %v10043_v2 = vcombine.high %v10041_v47, %v10041_v47  ;;  %v13775_v28 = vrot.slane %v10042_v24, 9  ;;  %v13776_v9 = vrot.slane %v10041_v47, 9  ;;  %v10265_v15 = vmax.f32 %v10034_v25, %v13774_v50  ;;  %v14896_v63 = vld [vmem:[#allocation4 + $0x8] ss:$0 sps:$4 sm:$0x33]  }
 0x560   :  { %v10472_v20 = vsel %vm20714_vm1, %v10471_v38, %v10470_v42  ;;  %v10475_v33 = vrot.slane %v10432_v59, 4  ;;  %v9972_v0 = vmax.f32 %v9942_v58, 0.0  ;;  %v9934_v23 = vadd.f32 %v9933_v51, %v19866_v40  ;;  %v14897_v52 = vld [vmem:[#allocation4 + $0x8] ss:$0 sps:$4 sm:$0x33]   ;;  %10958 = vrot.lane.b32.xlu0 %v14896_v63, %s15052_s16 }
 0x561   :  { %v10474_v16 = vsel %vm20715_vm14, %v10473_v10, %v10472_v20  ;;  %v13777_v5 = vrot.slane %v10043_v2, 9  ;;  %v10266_v32 = vmax.f32 %v10042_v24, %v13775_v28  ;;  %v10267_v30 = vmax.f32 %v10041_v47, %v13776_v9  ;;  %10792 = vrot.lane.b32.xlu1 %v14897_v52, %s15053_s13  ;;  %v10531_v10 = vld [vmem:[#allocation4 + $0xc] sm:$0x7]  ;;  %v9946_v9 = vpop.f32.mrf.mxu1  ;;  %vm20724_vm14 = vmmov %vm20717_vm0 }
 0x562   :  { %v10476_v41 = vsel %vm7739_vm11, %v10475_v33, %v10474_v16  ;;  %v14139_v57 = vpack.c.bf16 %v10265_v15, %v10265_v15  ;;  %v9982_v61 = vmax.f32 %v9971_v14, %v9972_v0  ;;  %v9970_v13 = vmax.f32 %v9934_v23, 0.0 }
 0x563   :  { %v10508_v19 = vpack.c.b16 %v10476_v41, %v10476_v41  ;;  %v10268_v7 = vmax.f32 %v10043_v2, %v13777_v5  ;;  %v14140_v53 = vpack.c.bf16 %v10266_v32, %v10266_v32  ;;  %v14141_v56 = vpack.c.bf16 %v10267_v30, %v10267_v30 }
 0x564   :  { %v10425_v40 = vunpack.c.l.b16 %v14139_v57  ;;  %v10078_v37 = vcombine.high %v9982_v61, %v9982_v61  ;;  %v10085_v31 = vrot.slane %v9982_v61, %v17372_v62  ;;  %v9981_v43 = vmax.f32 %v9969_v21, %v9970_v13 }
 0x565   :  { %v10535_v1 = vsel %vm19894_vm8, %v10508_v19, %v10534_v18  ;;  %v14142_v45 = vpack.c.bf16 %v10268_v7, %v10268_v7  ;;  %v10426_v26 = vunpack.c.l.b16 %v14140_v53  ;;  %v10427_v49 = vunpack.c.l.b16 %v14141_v56  ;;  %v14420_v19 = vpop.f32.mrf.mxu1 }
 0x566   :  { %10536 = vst [vmem:[#allocation4 + $0x10] sm:$0x7] %v10535_v1  ;;  %v10463_v34 = vrot.slane %v10425_v40, 7  ;;  %v10092_v22 = vrot.slane %v10078_v37, %v17372_v62  ;;  %v10093_v8 = vcombine.high %v10085_v31, %v10085_v31  ;;  %v13786_v12 = vrot.slane %v10085_v31, 9 }
 0x567   :  { %v10428_v27 = vunpack.c.l.b16 %v14142_v45  ;;  %v10464_v55 = vrot.slane %v10426_v26, 6  ;;  %v10466_v17 = vrot.slane %v10427_v49, 5  ;;  %v10061_v3 = vcombine.high %v9981_v43, %v9981_v43  ;;  %v14898_v45 = vld [vmem:[#allocation4 + $0x8] ss:$0 sps:$4 sm:$0x66]  }
 0x568   :  { %v10094_v25 = vcombine.high %v10092_v22, %v10092_v22  ;;  %v13787_v14 = vrot.slane %v10093_v8, 9  ;;  %v13788_v6 = vrot.slane %v10092_v22, 9  ;;  %v10277_v46 = vmax.f32 %v10085_v31, %v13786_v12  ;;  %v14899_v26 = vld [vmem:[#allocation4 + $0x8] ss:$0 sps:$4 sm:$0x66]  }
 0x569   :  { %v10465_v44 = vsel %vm20716_vm15, %v10464_v55, %v10463_v34  ;;  %v10468_v21 = vrot.slane %v10428_v27, 4  ;;  %v10068_v42 = vrot.slane %v9981_v43, %v17372_v62  ;;  %v10075_v47 = vrot.slane %v10061_v3, %v17372_v62  ;;  %v14901_v27 = vld [vmem:[#allocation4 + $0x4] ss:$0 sps:$4 sm:$0x66]  }
 0x56a   :  { %v10467_v24 = vsel %vm20717_vm0, %v10466_v17, %v10465_v44  ;;  %v13789_v50 = vrot.slane %v10094_v25, 9  ;;  %v10278_v51 = vmax.f32 %v10093_v8, %v13787_v14  ;;  %v10279_v59 = vmax.f32 %v10092_v22, %v13788_v6  ;;  %v10540_v22 = vld [vmem:[#allocation4 + $0x20] sm:$0x7]  ;;  %v9949_v14 = vpop.f32.mrf.mxu1  ;;  %v19935_v6 = vld [vmem:[#allocation4 + $0x4] ss:$0 sps:$4 sm:$0x66]  }
 0x56b   :  { %v10469_v38 = vsel %vm7739_vm11, %v10468_v21, %v10467_v24  ;;  %v14151_v58 = vpack.c.bf16 %v10277_v46, %v10277_v46  ;;  %v10076_v2 = vcombine.high %v10068_v42, %v10068_v42  ;;  %v10077_v28 = vcombine.high %v10075_v47, %v10075_v47  ;;  %v14903_v46 = vld [vmem:[#allocation4 + $0x4] ss:$0 sps:$4 sm:$0x77]  }
 0x56c   :  { %v10507_v15 = vpack.c.b16 %v10469_v38, %v10469_v38  ;;  %v10280_v20 = vmax.f32 %v10094_v25, %v13789_v50  ;;  %v14152_v33 = vpack.c.bf16 %v10278_v51, %v10278_v51  ;;  %v14153_v0 = vpack.c.bf16 %v10279_v59, %v10279_v59  ;;  %v14906_v51 = vld [vmem:[#allocation4 + $0x8] ss:$0 sps:$4 sm:$0x66]  }
 0x56d   :  { %v10437_v23 = vunpack.c.l.b16 %v14151_v58  ;;  %v13782_v63 = vrot.slane %v10068_v42, 9  ;;  %v13783_v16 = vrot.slane %v10076_v2, 9  ;;  %v13784_v5 = vrot.slane %v10075_v47, 9 }
 0x56e   :  { %v10532_v32 = vsel %vm19894_vm8, %v10507_v15, %v10531_v10  ;;  %v14154_v30 = vpack.c.bf16 %v10280_v20, %v10280_v20  ;;  %v10438_v52 = vunpack.c.l.b16 %v14152_v33  ;;  %v10439_v41 = vunpack.c.l.b16 %v14153_v0  ;;  %v10537_v15 = vld [vmem:[#allocation4 + $0x1c] sm:$0x7] }
 0x56f   :  { %10533 = vst [vmem:[#allocation4 + $0xc] sm:$0x7] %v10532_v32  ;;  %v10484_v18 = vrot.slane %v10437_v23, 7  ;;  %v13785_v57 = vrot.slane %v10077_v28, 9  ;;  %v10273_v61 = vmax.f32 %v10068_v42, %v13782_v63  ;;  %v10274_v13 = vmax.f32 %v10076_v2, %v13783_v16 }
 0x570   :  { %v10440_v7 = vunpack.c.l.b16 %v14154_v30  ;;  %v10485_v53 = vrot.slane %v10438_v52, 6  ;;  %v10487_v56 = vrot.slane %v10439_v41, 5  ;;  %v10275_v40 = vmax.f32 %v10075_v47, %v13784_v5  ;;  %v14904_v42 = vld [vmem:[#allocation4 + $0x8] ss:$0 sps:$4 sm:$0x77]  }
 0x571   :  { %v10276_v37 = vmax.f32 %v10077_v28, %v13785_v57  ;;  %v14147_v31 = vpack.c.bf16 %v10273_v61, %v10273_v61  ;;  %v14148_v43 = vpack.c.bf16 %v10274_v13, %v10274_v13  ;;  %v9955_v1 = vadd.f32 %v14419_v48, %v19877_v29  ;;  %v14949_v52 = vld [vmem:[%s20429_s5 + $0x78] sm:$0xff]   ;;  %v14900_v61 = vld [vmem:[#allocation4 + $0x4] ss:$0 sps:$4 sm:$0x33]  }
 0x572   :  { %v10486_v49 = vsel %vm20718_vm12, %v10485_v53, %v10484_v18  ;;  %v10489_v34 = vrot.slane %v10440_v7, 4  ;;  %v14149_v8 = vpack.c.bf16 %v10275_v40, %v10275_v40  ;;  %v9947_v12 = vadd.f32 %v9946_v9, %v19869_v11  ;;  %14271 = vmatprep.subr.bf16.mxu1 %v14949_v52  ;;  %vm20727_vm12 = vmmov %vm20714_vm1 }
 0x573   :  { %v10488_v55 = vsel %vm20719_vm9, %v10487_v56, %v10486_v49  ;;  %v14150_v17 = vpack.c.bf16 %v10276_v37, %v10276_v37  ;;  %v10433_v3 = vunpack.c.l.b16 %v14147_v31  ;;  %v10434_v25 = vunpack.c.l.b16 %v14148_v43 }
 0x574   :  { %v10490_v29 = vsel %vm7739_vm11, %v10489_v34, %v10488_v55  ;;  %v10435_v48 = vunpack.c.l.b16 %v14149_v8  ;;  %v9975_v44 = vmax.f32 %v9955_v1, 0.0  ;;  %v9973_v21 = vmax.f32 %v9947_v12, 0.0 }
 0x575   :  { %v10510_v47 = vpack.c.b16 %v10490_v29, %v10490_v29  ;;  %v10436_v24 = vunpack.c.l.b16 %v14150_v17  ;;  %v10477_v50 = vrot.slane %v10433_v3, 7  ;;  %v10478_v11 = vrot.slane %v10434_v25, 6  ;;  %v14950_v29 = vld [vmem:[%s20429_s5 + $0x38] sm:$0xff]  }
 0x576   :  { %v10480_v59 = vrot.slane %v10435_v48, 5  ;;  %v9958_v38 = vadd.f32 %v14420_v19, %v19879_v4  ;;  %v9950_v10 = vadd.f32 %v9949_v14, %v19873_v39  ;;  %v10911_v58 = vrot.slane %v14898_v45, 1  ;;  %v19943_v33 = vld [vmem:[#allocation4 + $0xc] ss:$0 sps:$4 sm:$0x66]   ;;  %14272 = vmatpush3.bf16.msra.mxu1 %v14950_v29 }
 0x577   :  { %v10541_v2 = vsel %vm19894_vm8, %v10510_v47, %v10540_v22  ;;  %v10479_v28 = vsel %vm20720_vm6, %v10478_v11, %v10477_v50  ;;  %v10482_v9 = vrot.slane %v10436_v24, 4  ;;  %v10744_v20 = vrot.slane %v14899_v26, 1  ;;  %v19947_v39 = vld [vmem:[#allocation4 + $0x10] ss:$0 sps:$4 sm:$0x66]   ;;  %vm20730_vm6 = vmmov %vm20714_vm1 }
 0x578   :  { %10542 = vst [vmem:[#allocation4 + $0x20] sm:$0x7] %v10541_v2  ;;  %v10481_v0 = vsel %vm20721_vm7, %v10480_v59, %v10479_v28  ;;  %v9976_v23 = vmax.f32 %v9958_v38, 0.0  ;;  %v9974_v63 = vmax.f32 %v9950_v10, 0.0  ;;  %10920 = vrot.lane.b32.xlu1 %v10911_v58, %s15051_s0  ;;  %v10743_v4 = vrot.slane %v14901_v27, 1  ;;  %vm20731_vm7 = vmmov %vm20714_vm1 }
 0x579   :  { %v10483_v16 = vsel %vm7739_vm11, %v10482_v9, %v10481_v0  ;;  %10754 = vrot.lane.b32.xlu0 %v10744_v20, %s15052_s16  ;;  %v10910_v5 = vrot.slane %v19935_v6, 1  ;;  %v10654_v32 = vshrl.u32 %v14903_v46, 16  ;;  %v10656_v30 = vshll.u32 %v14903_v46, 16 }
 0x57a   :  { %v10509_v41 = vpack.c.b16 %v10483_v16, %v10483_v16  ;;  %v9984_v18 = vmax.f32 %v9975_v44, %v9976_v23  ;;  %v9983_v57 = vmax.f32 %v9973_v21, %v9974_v63  ;;  %v10661_v13 = vshrl.u32 %v14904_v42, 16 }
 0x57b   :  { %v10658_v19 = vrot.slane %v10656_v30, 1  ;;  %v10663_v7 = vshll.u32 %v14904_v42, 16  ;;  %v11094_v53 = vrot.slane %v14906_v51, 1  ;;  %v11095_v56 = vrot.slane %v19943_v33, 1  ;;  %v14953_v33 = vld [vmem:[%s20429_s5 + $0x30] sm:$0xff]  }
 0x57c   :  { %v10538_v40 = vsel %vm19894_vm8, %v10509_v41, %v10537_v15  ;;  %v10112_v37 = vcombine.high %v9984_v18, %v9984_v18  ;;  %v10119_v31 = vrot.slane %v9984_v18, %v17372_v62  ;;  %v10095_v43 = vcombine.high %v9983_v57, %v9983_v57  ;;  %10752 = vrot.lane.b32.xlu1 %v10743_v4, %s15052_s16  ;;  %v14905_v51 = vld [vmem:[#allocation4 + $0x10] ss:$0 sps:$4 sm:$0x33]   ;;  %v14910_v18 = vld [vmem:[#allocation4 + $0x8] ss:$0 sps:$4 sm:$0x77]  }
 0x57d   :  { %10539 = vst [vmem:[#allocation4 + $0x1c] sm:$0x7] %v10538_v40  ;;  %v10102_v1 = vrot.slane %v9983_v57, %v17372_v62  ;;  %10790 = vrot.lane.b32.xlu0 %v14900_v61, %s15053_s13  ;;  %v10659_v45 = vor.u32 %v10658_v19, %v10654_v32  ;;  %v10665_v26 = vrot.slane %v10663_v7, 1  ;;  %v11096_v49 = vrot.slane %v19947_v39, 1 }
 0x57e   :  { %v10126_v34 = vrot.slane %v10112_v37, %v17372_v62  ;;  %v10127_v22 = vcombine.high %v10119_v31, %v10119_v31  ;;  %v13794_v8 = vrot.slane %v10119_v31, 9  ;;  %v10109_v12 = vrot.slane %v10095_v43, %v17372_v62  ;;  %v14952_v43 = vld [vmem:[%s20429_s5 + $0x70] sm:$0xff]  }
 0x57f   :  { %v10110_v27 = vcombine.high %v10102_v1, %v10102_v1  ;;  %v13790_v55 = vrot.slane %v10102_v1, 9  ;;  %v10666_v17 = vor.u32 %v10665_v26, %v10661_v13  ;;  %v19966_v3 = vrot.slane %v11094_v53, %v17372_v62  ;;  %14273 = vmatprep.subr.bf16.mxu1 %v14952_v43 }
 0x580   :  { %v10128_v25 = vcombine.high %v10126_v34, %v10126_v34  ;;  %v13795_v14 = vrot.slane %v10127_v22, 9  ;;  %v13796_v6 = vrot.slane %v10126_v34, 9  ;;  %v10285_v46 = vmax.f32 %v10119_v31, %v13794_v8  ;;  %10704 = vrot.lane.b32.xlu1 %v10659_v45, %s15051_s0  ;;  %v14911_v31 = vld [vmem:[#allocation4 + $0x10] ss:$0 sps:$4 sm:$0x66]   ;;  %14274 = vmatpush3.bf16.msra.mxu1 %v14953_v33 }
 0x581   :  { %v10111_v48 = vcombine.high %v10109_v12, %v10109_v12  ;;  %v13791_v44 = vrot.slane %v10110_v27, 9  ;;  %v13792_v21 = vrot.slane %v10109_v12, 9  ;;  %v10281_v42 = vmax.f32 %v10102_v1, %v13790_v55  ;;  %10918 = vrot.lane.b32.xlu0 %v10910_v5, %s15051_s0 }
 0x582   :  { %v13797_v47 = vrot.slane %v10128_v25, 9  ;;  %v10286_v24 = vmax.f32 %v10127_v22, %v13795_v14  ;;  %v10287_v50 = vmax.f32 %v10126_v34, %v13796_v6  ;;  %v14159_v11 = vpack.c.bf16 %v10285_v46, %v10285_v46  ;;  %v19984_v34 = vpop.permute.xlu0 %10702  ;;  %v10546_v22 = vld [vmem:[#allocation4 + $0x28] sm:$0x7]  ;;  %v14954_v14 = vld [vmem:[%s20429_s5 + $0x68] sm:$0xff]  }
 0x583   :  { %v13793_v59 = vrot.slane %v10111_v48, 9  ;;  %v10282_v38 = vmax.f32 %v10110_v27, %v13791_v44  ;;  %v10283_v10 = vmax.f32 %v10109_v12, %v13792_v21  ;;  %v14155_v58 = vpack.c.bf16 %v10281_v42, %v10281_v42  ;;  %v14955_v6 = vld [vmem:[%s20429_s5 + $0x28] sm:$0xff]   ;;  %v14919_v44 = vld [vmem:[#allocation4 + $0xc] ss:$0 sps:$4 sm:$0x77]   ;;  %v14956_v21 = vld [vmem:[%s20429_s5 + $0x60] sm:$0xff]   ;;  %14275 = vmatprep.subr.bf16.mxu1 %v14954_v14 }
 0x584   :  { %v10288_v2 = vmax.f32 %v10128_v25, %v13797_v47  ;;  %v14160_v28 = vpack.c.bf16 %v10286_v24, %v10286_v24  ;;  %v14161_v9 = vpack.c.bf16 %v10287_v50, %v10287_v50  ;;  %v10445_v15 = vunpack.c.l.b16 %v14159_v11  ;;  %10796 = vrot.lane.b32.xlu1 %v14905_v51, %s15053_s13  ;;  %v14913_v51 = vld [vmem:[#allocation4 + $0xc] ss:$0 sps:$4 sm:$0x33]   ;;  %14276 = vmatpush3.bf16.msra.mxu1 %v14955_v6 }
 0x585   :  { %v10284_v20 = vmax.f32 %v10111_v48, %v13793_v59  ;;  %v14156_v0 = vpack.c.bf16 %v10282_v38, %v10282_v38  ;;  %v14157_v23 = vpack.c.bf16 %v10283_v10, %v10283_v10  ;;  %v10441_v63 = vunpack.c.l.b16 %v14155_v58  ;;  %10706 = vrot.lane.b32.xlu0 %v10666_v17, %s15051_s0  ;;  %v10543_v17 = vld [vmem:[#allocation4 + $0x24] sm:$0x7]  ;;  %v14925_v59 = vld [vmem:[#allocation4 + $0x2c] ss:$0 sps:$4 sm:$0x66]   ;;  %14277 = vmatprep.subr.bf16.mxu1 %v14956_v21 }
 0x586   :  { %v14162_v4 = vpack.c.bf16 %v10288_v2, %v10288_v2  ;;  %v10446_v39 = vunpack.c.l.b16 %v14160_v28  ;;  %v10447_v16 = vunpack.c.l.b16 %v14161_v9  ;;  %v10498_v5 = vrot.slane %v10445_v15, 7  ;;  %v14916_v58 = vld [vmem:[#allocation4 + $0xc] ss:$0 sps:$4 sm:$0x66]   ;;  %v20011_v2 = vpop.permute.xlu0 %10750  ;;  %v14957_v28 = vld [vmem:[%s20429_s5 + $0x20] sm:$0xff]  }
 0x587   :  { %v14158_v32 = vpack.c.bf16 %v10284_v20, %v10284_v20  ;;  %v10442_v30 = vunpack.c.l.b16 %v14156_v0  ;;  %v10443_v52 = vunpack.c.l.b16 %v14157_v23  ;;  %v10491_v41 = vrot.slane %v10441_v63, 7  ;;  %v14921_v15 = vld [vmem:[#allocation4 + $0xc] ss:$0 sps:$4 sm:$0x77]  }
 0x588   :  { %v10448_v57 = vunpack.c.l.b16 %v14162_v4  ;;  %v10499_v61 = vrot.slane %v10446_v39, 6  ;;  %v10501_v13 = vrot.slane %v10447_v16, 5  ;;  %v11260_v19 = vrot.slane %v11095_v56, %v17372_v62  ;;  %v14912_v20 = vld [vmem:[#allocation4 + $0x10] ss:$0 sps:$4 sm:$0x33]   ;;  %14278 = vmatpush3.bf16.msra.mxu1 %v14957_v28  ;;  %v14960_v63 = vld [vmem:[%s20429_s5 + $0x18] sm:$0xff]  }
 0x589   :  { %v10444_v7 = vunpack.c.l.b16 %v14158_v32  ;;  %v10492_v53 = vrot.slane %v10442_v30, 6  ;;  %v10494_v40 = vrot.slane %v10443_v52, 5  ;;  %v11276_v37 = vrot.slane %v11096_v49, %v17372_v62  ;;  %v14920_v0 = vld [vmem:[#allocation4 + $0x10] ss:$0 sps:$4 sm:$0x77]   ;;  %14279 = vmatprep.subr.bf16.mxu1 %v14959_v36 }
 0x58a   :  { %v10500_v1 = vsel %vm20722_vm5, %v10499_v61, %v10498_v5  ;;  %v10503_v45 = vrot.slane %v10448_v57, 4  ;;  %v13896_v26 = vcombine.low %v19966_v3, %v11260_v19  ;;  %v11001_v25 = vshll.u32 %v14910_v18, 16  ;;  %v14922_v23 = vld [vmem:[#allocation4 + $0x20] ss:$0 sps:$4 sm:$0x66]   ;;  %vm20732_vm5 = vmmov %vm20714_vm1 }
 0x58b   :  { %v10502_v56 = vsel %vm20723_vm13, %v10501_v13, %v10500_v1  ;;  %v10493_v49 = vsel %vm20714_vm1, %v10492_v53, %v10491_v41  ;;  %v10496_v8 = vrot.slane %v10444_v7, 4  ;;  %v13898_v12 = vcombine.low %v11276_v37, %v19882_v35  ;;  %v10553_v32 = vld [vmem:[#allocation4 + $0x18] sm:$0x3]  ;;  %v14915_v30 = vld [vmem:[#allocation4 + $0xc] ss:$0 sps:$4 sm:$0x33]  }
 0x58c   :  { %v10504_v27 = vsel %vm7739_vm11, %v10503_v45, %v10502_v56  ;;  %v10495_v55 = vsel %vm20724_vm14, %v10494_v40, %v10493_v49  ;;  %v11418_v3 = vrot.slane %v13896_v26, %v17372_v62  ;;  %v10913_v48 = vrot.slane %v14911_v31, 1  ;;  %v14918_v52 = vld [vmem:[#allocation4 + $0xc] ss:$0 sps:$4 sm:$0x66]   ;;  %14280 = vmatpush3.bf16.msra.mxu1 %v14960_v63 }
 0x58d   :  { %v10512_v46 = vpack.c.b16 %v10504_v27, %v10504_v27  ;;  %v10497_v35 = vsel %vm7739_vm11, %v10496_v8, %v10495_v55  ;;  %v11432_v29 = vrot.slane %v13898_v12, %v17372_v62  ;;  %v10999_v47 = vshrl.u32 %v14910_v18, 16  ;;  %v10711_v18 = vpop.permute.xlu0 %10710  ;;  %v14928_v21 = vld [vmem:[#allocation4 + $0x20] ss:$0 sps:$4 sm:$0x66]  }
 0x58e   :  { %v10511_v42 = vpack.c.b16 %v10497_v35, %v10497_v35  ;;  %v11003_v24 = vrot.slane %v11001_v25, 1  ;;  %10924 = vrot.lane.b32.xlu1 %v10913_v48, %s15051_s0  ;;  %v10670_v9 = vshll.u32 %v14919_v44, 16  ;;  %v10745_v4 = vrot.slane %v14916_v58, 1  ;;  %v14933_v35 = vld [vmem:[#allocation4 + $0x1c] ss:$0 sps:$4 sm:$0x77]  }
 0x58f   :  { %v10547_v50 = vsel %vm19894_vm8, %v10512_v46, %v10546_v22  ;;  %v11435_v11 = vcombine.low %v11418_v3, %v11432_v29  ;;  %v11008_v16 = vshll.u32 %v14921_v15, 16  ;;  %v11101_v5 = vrot.slane %v14925_v59, 1  ;;  %v14927_v3 = vld [vmem:[#allocation4 + $0x20] ss:$0 sps:$4 sm:$0x33]   ;;  %v14966_v59 = vld [vmem:[%s20429_s5 + $0x40] sm:$0xff]  }
 0x590   :  { %10548 = vst [vmem:[#allocation4 + $0x28] sm:$0x7] %v10547_v50  ;;  %v10544_v38 = vsel %vm19894_vm8, %v10511_v42, %v10543_v17  ;;  %v11004_v10 = vor.u32 %v11003_v24, %v10999_v47  ;;  %v10672_v39 = vrot.slane %v10670_v9, 1  ;;  %v10668_v41 = vshrl.u32 %v14919_v44, 16  ;;  %v14961_v48 = vld [vmem:[%s20429_s5 + $0x50] sm:$0xff]   ;;  %v14963_v47 = vld [vmem:[%s20429_s5 + $0x48] sm:$0xff]  }
 0x591   :  { %10545 = vst [vmem:[#allocation4 + $0x24] sm:$0x7] %v10544_v38  ;;  %14425 = vmatprep.mubr.msk.bf16.mxu0 %vm9245_vm2, %v11435_v11  ;;  %v11015_v57 = vshll.u32 %v14920_v0, 16  ;;  %v11098_v19 = vrot.slane %v14922_v23, 1  ;;  %v11116_v7 = vsel %vm9245_vm2, %v10553_v32, %v10711_v18  ;;  %v11010_v40 = vrot.slane %v11008_v16, 1  ;;  %v10759_v1 = vpop.permute.xlu0 %10758  ;;  %14281 = vmatprep.subr.bf16.mxu1 %v14961_v48  ;;  %v14962_v42 = vld [vmem:[%s20429_s5 + $0x10] sm:$0xff]  }
 0x592   :  { %11054 = vrot.lane.b32.xlu0 %v11004_v10, %s15053_s13  ;;  %10960 = vrot.lane.b32.xlu1 %v14913_v51, %s15052_s16  ;;  %v10673_v53 = vor.u32 %v10672_v39, %v10668_v41  ;;  %v11356_v31 = vrot.slane %v11101_v5, %v17372_v62  ;;  %v11006_v45 = vshrl.u32 %v14921_v15, 16  ;;  %v20033_v33 = vsel %vm9294_vm4, %v11116_v7, %v10759_v1  ;;  %v14929_v46 = vld [vmem:[#allocation4 + $0x20] ss:$0 sps:$4 sm:$0x66]   ;;  %v14964_v51 = vld [vmem:[%s20429_s5 + $0x8] sm:$0xff]   ;;  %v14967_v15 = vld [vmem:[%s20429_s5] sm:$0xff]  }
 0x593   :  { %v10912_v56 = vrot.slane %v14918_v52, 1  ;;  %v11017_v22 = vrot.slane %v11015_v57, 1  ;;  %v11308_v49 = vrot.slane %v11098_v19, %v17372_v62  ;;  %v11013_v55 = vshrl.u32 %v14920_v0, 16  ;;  %v14926_v44 = vld [vmem:[#allocation4 + $0x20] ss:$0 sps:$4 sm:$0x33]   ;;  %14282 = vmatpush3.bf16.msra.mxu1 %v14962_v42 }
 0x594   :  { %v11011_v12 = vor.u32 %v11010_v40, %v11006_v45  ;;  %v10915_v24 = vrot.slane %v14929_v46, 1  ;;  %v14931_v50 = vld [vmem:[#allocation4 + $0x1c] ss:$0 sps:$4 sm:$0x66]   ;;  %v10684_v11 = vshll.u32 %v14933_v35, 16  ;;  %14283 = vmatprep.subr.bf16.mxu1 %v14963_v47  ;;  %v10748_v38 = vrot.slane %v14928_v21, 1 }
 0x595   :  { %v11018_v25 = vor.u32 %v11017_v22, %v11013_v55  ;;  %v14934_v10 = vld [vmem:[#allocation4 + $0x20] ss:$0 sps:$4 sm:$0x77]   ;;  %v10747_v58 = vrot.slane %v14931_v50, 1  ;;  %vm491_vm11 = vcmask 254976   ;;  %vm521_vm8 = vcmask 254977  }
 0x596   :  { %10962 = vrot.lane.b32.xlu0 %v14912_v20, %s15052_s16  ;;  %10756 = vrot.lane.b32.xlu1 %v10745_v4, %s15052_s16  ;;  %v10686_v28 = vrot.slane %v10684_v11, 1  ;;  %v14930_v9 = vld [vmem:[#allocation4 + $0x1c] ss:$0 sps:$4 sm:$0x33]   ;;  %v10682_v20 = vshrl.u32 %v14933_v35, 16  ;;  %v10691_v0 = vshll.u32 %v14934_v10, 16 }
 0x597   :  { %v14924_v61 = vld [vmem:[#allocation4 + $0x28] ss:$0 sps:$4 sm:$0x66]   ;;  %14284 = vmatpush3.bf16.msra.mxu1 %v14964_v51  ;;  %v14932_v36 = vld [vmem:[#allocation4 + $0x1c] ss:$0 sps:$4 sm:$0x66]  }
 0x598   :  { %v14923_v13 = vld [vmem:[#allocation4 + $0x24] ss:$0 sps:$4 sm:$0x66]   ;;  %v11100_v37 = vrot.slane %v14924_v61, 1  ;;  %14285 = vmatprep.subr.bf16.mxu1 %v14966_v59  ;;  %v10687_v63 = vor.u32 %v10686_v28, %v10682_v20  ;;  %v10914_v4 = vrot.slane %v14932_v36, 1  ;;  %v10693_v39 = vrot.slane %v10691_v0, 1 }
 0x599   :  { %v11099_v43 = vrot.slane %v14923_v13, 1  ;;  %v14936_v23 = vld [vmem:[#allocation4 + $0x20] ss:$0 sps:$4 sm:$0x77]   ;;  %vm522_vm15 = vsmask.f32 7942 }
 0x59a   :  { %10794 = vrot.lane.b32.xlu0 %v14915_v30, %s15053_s13  ;;  %10708 = vrot.lane.b32.xlu1 %v10673_v53, %s15051_s0  ;;  %v11340_v26 = vrot.slane %v11100_v37, %v17372_v62  ;;  %v11029_v16 = vshll.u32 %v14936_v23, 16  ;;  %v14935_v5 = vld [vmem:[#allocation4 + $0x28] ss:$0 sps:$4 sm:$0x33]   ;;  %v10689_v30 = vshrl.u32 %v14934_v10, 16  ;;  %v11027_v61 = vshrl.u32 %v14936_v23, 16  ;;  %vm20157_vm0 = vmand %vm521_vm8, %vm522_vm15 }
 0x59b   :  { %v11324_v8 = vrot.slane %v11099_v43, %v17372_v62  ;;  %14286 = vmatpush3.bf16.msra.mxu1 %v14967_v15  ;;  %v14937_v32 = vld [vmem:[#allocation4 + $0x28] ss:$0 sps:$4 sm:$0x66]   ;;  %v14943_v57 = vld [vmem:[#allocation4 + $0x24] ss:$0 sps:$4 sm:$0x77]  }
 0x59c   :  { %v13902_v27 = vcombine.low %v11340_v26, %v11356_v31  ;;  %v10694_v52 = vor.u32 %v10693_v39, %v10689_v30  ;;  %v11031_v41 = vrot.slane %v11029_v16, 1  ;;  %v10917_v18 = vrot.slane %v14937_v32, 1  ;;  %v14939_v19 = vld [vmem:[#allocation4 + $0x24] ss:$0 sps:$4 sm:$0x33]  }
 0x59d   :  { %v13900_v17 = vcombine.low %v11308_v49, %v11324_v8  ;;  %v14941_v7 = vld [vmem:[#allocation4 + $0x24] ss:$0 sps:$4 sm:$0x66]   ;;  %v10698_v53 = vshll.u32 %v14943_v57, 16  ;;  %v10696_v22 = vshrl.u32 %v14943_v57, 16  ;;  %vm15055_vm13 = vmmov 0  }
 0x59e   :  { %10922 = vrot.lane.b32.xlu0 %v10912_v56, %s15051_s0  ;;  %11056 = vrot.lane.b32.xlu1 %v11011_v12, %s15053_s13  ;;  %v11467_v6 = vrot.slane %v13902_v27, %v17372_v62  ;;  %v11032_v13 = vor.u32 %v11031_v41, %v11027_v61  ;;  %v14945_v40 = vld [vmem:[#allocation4 + $0x24] ss:$0 sps:$4 sm:$0x77]   ;;  %v14946_v37 = vld [vmem:[#allocation4 + $0x2c] ss:$0 sps:$4 sm:$0x77]  }
 0x59f   :  { %v11453_v14 = vrot.slane %v13900_v17, %v17372_v62  ;;  %v14938_v31 = vld [vmem:[#allocation4 + $0x28] ss:$0 sps:$4 sm:$0x33]   ;;  %v10749_v1 = vrot.slane %v14941_v7, 1  ;;  %v10700_v45 = vrot.slane %v10698_v53, 1  ;;  %v11036_v26 = vshll.u32 %v14945_v40, 16 }
 0x5a0   :  { %v14944_v43 = vld [vmem:[#allocation4 + $0x28] ss:$0 sps:$4 sm:$0x77]   ;;  %v14940_v56 = vld [vmem:[#allocation4 + $0x24] ss:$0 sps:$4 sm:$0x33]  }
 0x5a1   :  { %v11470_v29 = vcombine.low %v11453_v14, %v11467_v6  ;;  %v11050_v49 = vshll.u32 %v14946_v37, 16  ;;  %v14942_v8 = vld [vmem:[#allocation4 + $0x24] ss:$0 sps:$4 sm:$0x66]   ;;  %v11043_v12 = vshll.u32 %v14944_v43, 16  ;;  %v10701_v27 = vor.u32 %v10700_v45, %v10696_v22 }
 0x5a2   :  { %11058 = vrot.lane.b32.xlu0 %v11018_v25, %s15053_s13  ;;  %10800 = vrot.lane.b32.xlu1 %v14927_v3, %s15053_s13  ;;  %v11038_v55 = vrot.slane %v11036_v26, 1  ;;  %v11034_v17 = vshrl.u32 %v14945_v40, 16  ;;  %v11048_v3 = vshrl.u32 %v14946_v37, 16  ;;  %v10916_v14 = vrot.slane %v14942_v8, 1  ;;  %v10549_v57 = vld [vmem:[#allocation4] sm:$0x3] }
 0x5a3   :  { %14426 = vmatmul.mubr.msk.bf16.vlgmr.msra.gmra.mxu0 %vm9245_vm2, %v11470_v29  ;;  %v11052_v25 = vrot.slane %v11050_v49, 1  ;;  %v11045_v6 = vrot.slane %v11043_v12, 1  ;;  %v11041_v35 = vshrl.u32 %v14944_v43, 16  ;;  %v14948_v28 = vld [vmem:[#allocation4 + $0x4] ss:$0 sps:$4 sm:$0x77]  }
 0x5a4   :  { %v11039_v46 = vor.u32 %v11038_v55, %v11034_v17  ;;  %v14951_v15 = vld [vmem:[#allocation4 + $0x10] ss:$0 sps:$4 sm:$0x77]   ;;  %v10833_v36 = vshll.u32 %v14948_v28, 16  ;;  %v10831_v32 = vshrl.u32 %v14948_v28, 16 }
 0x5a5   :  { %v11053_v29 = vor.u32 %v11052_v25, %v11048_v3  ;;  %v11046_v48 = vor.u32 %v11045_v6, %v11041_v35  ;;  %v14947_v0 = vld [vmem:[#allocation4 + $0x8] ss:$0 sps:$4 sm:$0x77]   ;;  %v10854_v23 = vshll.u32 %v14951_v15, 16  ;;  %v10852_v61 = vshrl.u32 %v14951_v15, 16 }
 0x5a6   :  { %10966 = vrot.lane.b32.xlu0 %v14926_v44, %s15052_s16  ;;  %10928 = vrot.lane.b32.xlu1 %v10915_v24, %s15051_s0  ;;  %v10965_v44 = vpop.permute.xlu1 %10964  ;;  %v10550_v53 = vld [vmem:[#allocation4 + $0x4] sm:$0x3]  ;;  %v10838_v43 = vshrl.u32 %v14947_v0, 16  ;;  %v10552_v22 = vld [vmem:[#allocation4 + $0xc] sm:$0x3] }
 0x5a7   :  { %v10856_v30 = vrot.slane %v10854_v23, 1  ;;  %v10551_v3 = vld [vmem:[#allocation4 + $0x8] sm:$0x3]  ;;  %492 = vst.msk [vmem:[#allocation5] sm:$0x3] %vm491_vm11, %v20709_v54 }
 0x5a8   :  { %493 = vst.msk [vmem:[#allocation5 + $0x8] sm:$0x3] %vm491_vm11, %v20709_v54  ;;  %495 = vst.msk [vmem:[#allocation5 + $0x6] sm:$0x3] %vm491_vm11, %v20709_v54 }
 0x5a9   :  { %v10857_v40 = vor.u32 %v10856_v30, %v10852_v61  ;;  %496 = vst.msk [vmem:[#allocation5 + $0xe] sm:$0x3] %vm491_vm11, %v20709_v54 }
 0x5aa   :  { %10762 = vrot.lane.b32.xlu0 %v10748_v38, %s15052_s16  ;;  %10760 = vrot.lane.b32.xlu1 %v10747_v58, %s15052_s16  ;;  %v20082_v21 = vpop.permute.xlu1 %11060 }
 0x5ae   :  { %10798 = vrot.lane.b32.xlu0 %v14930_v9, %s15053_s13  ;;  %10712 = vrot.lane.b32.xlu1 %v10687_v63, %s15051_s0  ;;  %v20084_v42 = vpop.permute.xlu1 %10972  ;;  %v14958_v63 = vld [vmem:[#allocation4 + $0xc] ss:$0 sps:$4 sm:$0x77]  }
 0x5af   :  { %v10845_v8 = vshrl.u32 %v14958_v63, 16 }
 0x5b2   :  { %10926 = vrot.lane.b32.xlu0 %v10914_v4, %s15051_s0  ;;  %10804 = vrot.lane.b32.xlu1 %v14935_v5, %s15053_s13  ;;  %v10835_v4 = vrot.slane %v10833_v36, 1  ;;  %v10840_v5 = vshll.u32 %v14947_v0, 16 }
 0x5b4   :  { %v10836_v41 = vor.u32 %v10835_v4, %v10831_v32 }
 0x5b6   :  { %10714 = vrot.lane.b32.xlu0 %v10694_v52, %s15051_s0  ;;  %10932 = vrot.lane.b32.xlu1 %v10917_v18, %s15051_s0  ;;  %v10847_v52 = vshll.u32 %v14958_v63, 16 }
 0x5b8   :  { %v10849_v37 = vrot.slane %v10847_v52, 1 }
 0x5ba   :  { %11062 = vrot.lane.b32.xlu0 %v11032_v13, %s15053_s13  ;;  %10968 = vrot.lane.b32.xlu1 %v14939_v19, %s15052_s16  ;;  %v10842_v19 = vrot.slane %v10840_v5, 1 }
 0x5bc   :  { %v10843_v12 = vor.u32 %v10842_v19, %v10838_v43  ;;  %v14965_v43 = vld [vmem:[#allocation4 + $0x20] ss:$0 sps:$4 sm:$0x77]  }
 0x5be   :  { %10970 = vrot.lane.b32.xlu0 %v14938_v31, %s15052_s16  ;;  %10764 = vrot.lane.b32.xlu1 %v10749_v1, %s15052_s16  ;;  %v11104_v31 = vsel %vm9245_vm2, %v10549_v57, %v19984_v34 }
 0x5bf   :  { %v11127_v17 = vsel %vm9294_vm4, %v11104_v31, %v20011_v2 }
 0x5c2   :  { %10802 = vrot.lane.b32.xlu0 %v14940_v56, %s15053_s13  ;;  %10716 = vrot.lane.b32.xlu1 %v10701_v27, %s15051_s0 }
 0x5c6   :  { %10930 = vrot.lane.b32.xlu0 %v10916_v14, %s15051_s0  ;;  %11064 = vrot.lane.b32.xlu1 %v11039_v46, %s15053_s13  ;;  %v10850_v14 = vor.u32 %v10849_v37, %v10845_v8 }
 0x5ca   :  { %11066 = vrot.lane.b32.xlu0 %v11046_v48, %s15053_s13  ;;  %11068 = vrot.lane.b32.xlu1 %v11053_v29, %s15053_s13 }
 0x5d2   :  { %v10959_v24 = vpop.permute.xlu0 %10958 }
 0x5d3   :  { %v10793_v47 = vpop.permute.xlu1 %10792 }
 0x5ea   :  { %v10921_v50 = vpop.permute.xlu1 %10920 }
 0x5eb   :  { %v20086_v11 = vpop.permute.xlu0 %10754  ;;  %v11163_v6 = vsel %vm9245_vm2, %v10843_v12, %v10921_v50 }
 0x5ee   :  { %v10753_v51 = vpop.permute.xlu1 %10752 }
 0x5ef   :  { %v10791_v59 = vpop.permute.xlu0 %10790 }
 0x5f0   :  { %v11143_v46 = vsel %vm9327_vm10, %v11127_v17, %v10791_v59 }
 0x5f2   :  { %v10705_v38 = vpop.permute.xlu1 %10704 }
 0x5f3   :  { %v10919_v10 = vpop.permute.xlu0 %10918  ;;  %v11107_v1 = vsel %vm9245_vm2, %v10550_v53, %v10705_v38 }
 0x5f4   :  { %v11160_v7 = vsel %vm9245_vm2, %v10836_v41, %v10919_v10  ;;  %v11129_v34 = vsel %vm9294_vm4, %v11107_v1, %v10753_v51 }
 0x5f5   :  { %v11183_v56 = vsel %vm9294_vm4, %v11160_v7, %v10959_v24  ;;  %v11145_v28 = vsel %vm9327_vm10, %v11129_v34, %v10793_v47 }
 0x5f6   :  { %v10797_v58 = vpop.permute.xlu1 %10796 }
 0x5f7   :  { %v10707_v9 = vpop.permute.xlu0 %10706 }
 0x5f8   :  { %v11110_v35 = vsel %vm9245_vm2, %v10551_v3, %v10707_v9 }
 0x600   :  { %v10925_v20 = vpop.permute.xlu1 %10924 }
 0x601   :  { %v11169_v26 = vsel %vm9245_vm2, %v10857_v40, %v10925_v20  ;;  %v14968_v40 = vld [vmem:[#allocation4 + $0x1c] ss:$0 sps:$4 sm:$0x77]  }
 0x602   :  { %v11189_v29 = vsel %vm9294_vm4, %v11169_v26, %v10965_v44  ;;  %v11131_v44 = vsel %vm9294_vm4, %v11110_v35, %v20086_v11  ;;  %v10861_v1 = vshll.u32 %v14968_v40, 16  ;;  %v14969_v26 = vld [vmem:[#allocation4 + $0x28] ss:$0 sps:$4 sm:$0x77]  }
 0x603   :  { %v11205_v50 = vsel %vm9327_vm10, %v11189_v29, %v20082_v21 }
 0x604   :  { %v11055_v39 = vpop.permute.xlu0 %11054  ;;  %v10961_v16 = vpop.permute.xlu1 %10960  ;;  %v10863_v8 = vrot.slane %v10861_v1, 1 }
 0x605   :  { %v11199_v27 = vsel %vm9327_vm10, %v11183_v56, %v11055_v39  ;;  %v11185_v38 = vsel %vm9294_vm4, %v11163_v6, %v10961_v16 }
 0x606   :  { %v11230_v24 = vcombine.low %v11143_v46, %v11199_v27  ;;  %v10859_v27 = vshrl.u32 %v14968_v40, 16  ;;  %v10866_v46 = vshrl.u32 %v14965_v43, 16 }
 0x608   :  { %v10963_v18 = vpop.permute.xlu0 %10962  ;;  %v10757_v13 = vpop.permute.xlu1 %10756 }
 0x60c   :  { %v10795_v45 = vpop.permute.xlu0 %10794  ;;  %v10709_v49 = vpop.permute.xlu1 %10708 }
 0x60d   :  { %v11113_v55 = vsel %vm9245_vm2, %v10552_v22, %v10709_v49  ;;  %v11147_v0 = vsel %vm9327_vm10, %v11131_v44, %v10795_v45  ;;  %v14970_v45 = vld [vmem:[#allocation4 + $0x24] ss:$0 sps:$4 sm:$0x77]   ;;  %v10868_v49 = vshll.u32 %v14965_v43, 16 }
 0x60e   :  { %v11133_v25 = vsel %vm9294_vm4, %v11113_v55, %v10757_v13  ;;  %v10875_v12 = vshll.u32 %v14970_v45, 16  ;;  %v10882_v55 = vshll.u32 %v14969_v26, 16 }
 0x60f   :  { %v11149_v2 = vsel %vm9327_vm10, %v11133_v25, %v10797_v58  ;;  %v11237_v58 = vrot.slane %v11230_v24, %v17372_v62  ;;  %v10870_v3 = vrot.slane %v10868_v49, 1  ;;  %v10864_v25 = vor.u32 %v10863_v8, %v10859_v27 }
 0x610   :  { %v10923_v48 = vpop.permute.xlu0 %10922  ;;  %v11057_v10 = vpop.permute.xlu1 %11056  ;;  %v11278_v9 = vcombine.low %v11149_v2, %v11205_v50  ;;  %v10877_v6 = vrot.slane %v10875_v12, 1  ;;  %v10873_v2 = vshrl.u32 %v14970_v45, 16  ;;  %v10556_v50 = vld [vmem:[#allocation4 + $0x24] sm:$0x3] }
 0x611   :  { %v11166_v51 = vsel %vm9245_vm2, %v10850_v14, %v10923_v48  ;;  %v11201_v15 = vsel %vm9327_vm10, %v11185_v38, %v11057_v10  ;;  %v10554_v14 = vld [vmem:[#allocation4 + $0x1c] sm:$0x3]  ;;  %v10884_v48 = vrot.slane %v10882_v55, 1  ;;  %v10880_v10 = vshrl.u32 %v14969_v26, 16  ;;  %v527_v55 = vld [vmem:[#allocation5 + $0x2] sm:$0x2] }
 0x612   :  { %v11246_v59 = vcombine.low %v11145_v28, %v11201_v15  ;;  %v11187_v36 = vsel %vm9294_vm4, %v11166_v51, %v10963_v18  ;;  %v11285_v39 = vrot.slane %v11278_v9, %v17372_v62  ;;  %v10871_v51 = vor.u32 %v10870_v3, %v10866_v46  ;;  %v10555_v9 = vld [vmem:[#allocation4 + $0x20] sm:$0x3]  ;;  %v530_v3 = vld [vmem:[#allocation5 + $0x4] sm:$0x2]  ;;  %v524_v46 = vld [vmem:[#allocation5] sm:$0x2] }
 0x614   :  { %v11059_v20 = vpop.permute.xlu0 %11058  ;;  %v11253_v23 = vrot.slane %v11246_v59, %v17372_v62  ;;  %v20118_v63 = vpop.permute.xlu1 %10800  ;;  %v10878_v59 = vor.u32 %v10877_v6, %v10873_v2  ;;  %v497_v6 = vld [vmem:[#allocation5] sm:$0x1]  ;;  %v506_v2 = vld [vmem:[#allocation5 + $0x6] sm:$0x1] }
 0x615   :  { %v11203_v47 = vsel %vm9327_vm10, %v11187_v36, %v11059_v20  ;;  %v10885_v36 = vor.u32 %v10884_v48, %v10880_v10  ;;  %v498_v54 = vsel %vm17291_vm3, 0, %v497_v6  ;;  %v507_v10 = vsel %vm17291_vm3, 0, %v506_v2 }
 0x616   :  { %v11262_v4 = vcombine.low %v11147_v0, %v11203_v47  ;;  %v13895_v21 = vcombine.low %v11237_v58, %v11253_v23  ;;  %499 = vst [vmem:[#allocation5] sm:$0x1] %v498_v54  ;;  %508 = vst [vmem:[#allocation5 + $0x6] sm:$0x1] %v507_v10 }
 0x618   :  { %v11269_v11 = vrot.slane %v11262_v4, %v17372_v62  ;;  %v10967_v16 = vpop.permute.xlu0 %10966  ;;  %v10929_v5 = vpop.permute.xlu1 %10928  ;;  %v11411_v30 = vrot.slane %v13895_v21, %v17372_v62 }
 0x619   :  { %v11175_v44 = vsel %vm9245_vm2, %v10871_v51, %v10929_v5  ;;  %v518_v51 = vld [vmem:[#allocation5 + $0xe] sm:$0x1] }
 0x61a   :  { %v13897_v32 = vcombine.low %v11269_v11, %v11285_v39 }
 0x61c   :  { %v10763_v52 = vpop.permute.xlu0 %10762  ;;  %v11425_v41 = vrot.slane %v13897_v32, %v17372_v62  ;;  %v10761_v18 = vpop.permute.xlu1 %10760 }
 0x61e   :  { %v11433_v57 = vcombine.low %v11411_v30, %v11425_v41  ;;  %v11434_v61 = vcombine.high %v11411_v30, %v11425_v41 }
 0x620   :  { %11621 = vmatprep.mubr.bf16.mxu1 %v11434_v61  ;;  %v10799_v13 = vpop.permute.xlu0 %10798  ;;  %v10713_v19 = vpop.permute.xlu1 %10712 }
 0x621   :  { %11622 = vmatmul.mubr.bf16.vlgmr.msra.gmra.mxu1 %v11433_v57  ;;  %v11119_v35 = vsel %vm9245_vm2, %v10554_v14, %v10713_v19  ;;  %v11151_v39 = vsel %vm9327_vm10, %v20033_v33, %v10799_v13  ;;  %v531_v14 = vsel %vm20157_vm0, 0, %v530_v3 }
 0x622   :  { %v11137_v28 = vsel %vm9294_vm4, %v11119_v35, %v10761_v18  ;;  %532 = vst [vmem:[#allocation5 + $0x4] sm:$0x2] %v531_v14  ;;  %v509_v35 = vld [vmem:[#allocation5 + $0x8] sm:$0x1] }
 0x623   :  { %v510_v48 = vsel %vm17291_vm3, 0, %v509_v35 }
 0x624   :  { %v10927_v7 = vpop.permute.xlu0 %10926  ;;  %v10805_v53 = vpop.permute.xlu1 %10804  ;;  %511 = vst [vmem:[#allocation5 + $0x8] sm:$0x1] %v510_v48 }
 0x625   :  { %v11172_v29 = vsel %vm9245_vm2, %v10864_v25, %v10927_v7 }
 0x626   :  { %v11191_v15 = vsel %vm9294_vm4, %v11172_v29, %v10967_v16  ;;  %v11153_v16 = vsel %vm9327_vm10, %v11137_v28, %v20118_v63  ;;  %v525_v29 = vsel %vm20157_vm0, 0, %v524_v46  ;;  %v519_v28 = vsel %vm17291_vm3, 0, %v518_v51 }
 0x627   :  { %526 = vst [vmem:[#allocation5] sm:$0x2] %v525_v29  ;;  %520 = vst [vmem:[#allocation5 + $0xe] sm:$0x1] %v519_v28 }
 0x628   :  { %v10715_v37 = vpop.permute.xlu0 %10714  ;;  %v10933_v31 = vpop.permute.xlu1 %10932 }
 0x629   :  { %v11122_v23 = vsel %vm9245_vm2, %v10555_v9, %v10715_v37  ;;  %v11181_v11 = vsel %vm9245_vm2, %v10885_v36, %v10933_v31  ;;  %v539_v9 = vld [vmem:[#allocation5 + $0xa] sm:$0x2] }
 0x62a   :  { %v11139_v18 = vsel %vm9294_vm4, %v11122_v23, %v10763_v52  ;;  %v11197_v63 = vsel %vm9294_vm4, %v11181_v11, %v20084_v42  ;;  %v540_v36 = vsel %vm20157_vm0, 0, %v539_v9 }
 0x62b   :  { %541 = vst [vmem:[#allocation5 + $0xa] sm:$0x2] %v540_v36 }
 0x62c   :  { %v11063_v56 = vpop.permute.xlu0 %11062  ;;  %v10969_v22 = vpop.permute.xlu1 %10968 }
 0x62d   :  { %v11207_v20 = vsel %vm9327_vm10, %v11191_v15, %v11063_v56  ;;  %v11193_v47 = vsel %vm9294_vm4, %v11175_v44, %v10969_v22  ;;  %v533_v15 = vld [vmem:[#allocation5 + $0x6] sm:$0x2] }
 0x62e   :  { %v11294_v32 = vcombine.low %v11151_v39, %v11207_v20  ;;  %v13931_v20 = vld.sshfl [vmem:[#allocation5] sm:$0x3 pattern:$0x76325410] }
 0x630   :  { %v10971_v17 = vpop.permute.xlu0 %10970  ;;  %v10765_v34 = vpop.permute.xlu1 %10764  ;;  %v11301_v52 = vrot.slane %v11294_v32, %v17372_v62 }
 0x634   :  { %v10803_v24 = vpop.permute.xlu0 %10802  ;;  %v10717_v38 = vpop.permute.xlu1 %10716 }
 0x635   :  { %v11125_v58 = vsel %vm9245_vm2, %v10556_v50, %v10717_v38  ;;  %v11155_v19 = vsel %vm9327_vm10, %v11139_v18, %v10803_v24  ;;  %v536_v24 = vld [vmem:[#allocation5 + $0x8] sm:$0x2]  ;;  %v512_v50 = vld [vmem:[#allocation5 + $0xa] sm:$0x1] }
 0x636   :  { %v11141_v30 = vsel %vm9294_vm4, %v11125_v58, %v10765_v34  ;;  %v503_v34 = vld [vmem:[#allocation5 + $0x4] sm:$0x1]  ;;  %v537_v38 = vsel %vm20157_vm0, 0, %v536_v24  ;;  %v513_v44 = vsel %vm17291_vm3, 0, %v512_v50  ;;  %v12053_v58 = vshrl.u32 %v13931_v20, 16 }
 0x637   :  { %v11157_v37 = vsel %vm9327_vm10, %v11141_v30, %v10805_v53  ;;  %v500_v53 = vld [vmem:[#allocation5 + $0x2] sm:$0x1]  ;;  %v504_v25 = vsel %vm17291_vm3, 0, %v503_v34  ;;  %538 = vst [vmem:[#allocation5 + $0x8] sm:$0x2] %v537_v38 }
 0x638   :  { %v10931_v0 = vpop.permute.xlu0 %10930  ;;  %v11065_v21 = vpop.permute.xlu1 %11064  ;;  %v501_v12 = vsel %vm17291_vm3, 0, %v500_v53  ;;  %505 = vst [vmem:[#allocation5 + $0x4] sm:$0x1] %v504_v25  ;;  %514 = vst [vmem:[#allocation5 + $0xa] sm:$0x1] %v513_v44 }
 0x639   :  { %v11178_v4 = vsel %vm9245_vm2, %v10878_v59, %v10931_v0  ;;  %v11209_v5 = vsel %vm9327_vm10, %v11193_v47, %v11065_v21  ;;  %502 = vst [vmem:[#allocation5 + $0x2] sm:$0x1] %v501_v12  ;;  %v534_v59 = vsel %vm20157_vm0, 0, %v533_v15  ;;  %v12055_v0 = vshll.u32 %v13931_v20, 16 }
 0x63a   :  { %v11310_v41 = vcombine.low %v11153_v16, %v11209_v5  ;;  %v11195_v57 = vsel %vm9294_vm4, %v11178_v4, %v10971_v17  ;;  %v528_v17 = vsel %vm20157_vm0, 0, %v527_v55  ;;  %535 = vst [vmem:[#allocation5 + $0x6] sm:$0x2] %v534_v59 }
 0x63b   :  { %529 = vst [vmem:[#allocation5 + $0x2] sm:$0x2] %v528_v17  ;;  %v13952_v4 = vld.sshfl [vmem:[#allocation5 + $0x6] sm:$0x1 pattern:$0x76325410] }
 0x63c   :  { %v11067_v61 = vpop.permute.xlu0 %11066  ;;  %v11317_v33 = vrot.slane %v11310_v41, %v17372_v62  ;;  %v11069_v7 = vpop.permute.xlu1 %11068  ;;  %v12057_v21 = vrot.slane %v12055_v0, 1  ;;  %12310 = vrot.lane.b32.xlu1 %v13952_v4, %s15052_s16  ;;  %v13954_v16 = vld.sshfl [vmem:[#allocation5 + $0xe] sm:$0x1 pattern:$0x76325410] }
 0x63d   :  { %v11211_v13 = vsel %vm9327_vm10, %v11195_v57, %v11067_v61  ;;  %v11213_v31 = vsel %vm9327_vm10, %v11197_v63, %v11069_v7  ;;  %v13935_v57 = vld.sshfl [vmem:[#allocation5] sm:$0x2 pattern:$0x76325410]  ;;  %v515_v7 = vld [vmem:[#allocation5 + $0xc] sm:$0x1] }
 0x63e   :  { %v11326_v40 = vcombine.low %v11155_v19, %v11211_v13  ;;  %v11342_v43 = vcombine.low %v11157_v37, %v11213_v31  ;;  %v13899_v1 = vcombine.low %v11301_v52, %v11317_v33  ;;  %v13933_v23 = vld.sshfl [vmem:[#allocation5 + $0x8] sm:$0x3 pattern:$0x76325410]  ;;  %v12058_v5 = vor.u32 %v12057_v21, %v12053_v58  ;;  %v545_v52 = vld [vmem:[#allocation5 + $0xe] sm:$0x2] }
 0x63f   :  { %v12069_v47 = vshll.u32 %v13933_v23, 16  ;;  %v12067_v39 = vshrl.u32 %v13933_v23, 16  ;;  %v12120_v19 = vrot.slane %v13935_v57, 1  ;;  %v516_v37 = vsel %vm17291_vm3, 0, %v515_v7 }
 0x640   :  { %v11333_v45 = vrot.slane %v11326_v40, %v17372_v62  ;;  %v11349_v26 = vrot.slane %v11342_v43, %v17372_v62  ;;  %v11446_v22 = vrot.slane %v13899_v1, %v17372_v62  ;;  %12080 = vrot.lane.b32.xlu0 %v12058_v5, %s15051_s0  ;;  %12314 = vrot.lane.b32.xlu1 %v13954_v16, %s15052_s16  ;;  %v13937_v13 = vld.sshfl [vmem:[#allocation5 + $0x8] sm:$0x2 pattern:$0x76325410]  ;;  %v542_v40 = vld [vmem:[#allocation5 + $0xc] sm:$0x2] }
 0x641   :  { %v12071_v11 = vrot.slane %v12069_v47, 1  ;;  %v13956_v32 = vld.sshfl [vmem:[#allocation5 + $0x6] sm:$0x3 pattern:$0x76325410]  ;;  %v12122_v63 = vrot.slane %v13937_v13, 1 }
 0x642   :  { %v13901_v56 = vcombine.low %v11333_v45, %v11349_v26  ;;  %v12356_v41 = vshrl.u32 %v13956_v32, 16  ;;  %v12358_v18 = vshll.u32 %v13956_v32, 16  ;;  %v543_v31 = vsel %vm20157_vm0, 0, %v542_v40  ;;  %517 = vst [vmem:[#allocation5 + $0xc] sm:$0x1] %v516_v37 }
 0x643   :  { %v12072_v30 = vor.u32 %v12071_v11, %v12067_v39  ;;  %544 = vst [vmem:[#allocation5 + $0xc] sm:$0x2] %v543_v31  ;;  %v546_v43 = vsel %vm20157_vm0, 0, %v545_v52  ;;  %vm11969_vm3 = vsmask.f32 1282 }
 0x644   :  { %v11460_v49 = vrot.slane %v13901_v56, %v17372_v62  ;;  %v12360_v61 = vrot.slane %v12358_v18, 1  ;;  %547 = vst [vmem:[#allocation5 + $0xe] sm:$0x2] %v546_v43  ;;  %v20211_v56 = vld [vmem:[%s20430_s6] ss:$0 sm:$0xff]  ;;  %vm20229_vm9 = vmand %vm491_vm11, %vm11969_vm3 }
 0x645   :  { %12084 = vrot.lane.b32.xlu0 %v12072_v30, %s15051_s0  ;;  %v11974_v52 = vld [vmem:[#allocation5 + $0x4] sm:$0x3] }
 0x646   :  { %v11469_v42 = vcombine.high %v11446_v22, %v11460_v49  ;;  %v11468_v8 = vcombine.low %v11446_v22, %v11460_v49  ;;  %v12361_v33 = vor.u32 %v12360_v61, %v12356_v41 }
 0x648   :  { %11629 = vmatprep.mubr.bf16.mxu1 %v11469_v42  ;;  %12378 = vrot.lane.b32.xlu1 %v12361_v33, %s15053_s13  ;;  %v11971_v33 = vld [vmem:[#allocation5 + $0x2] sm:$0x3] }
 0x649   :  { %11630 = vmatmul.mubr.bf16.gmra.mxu1 %v11468_v8  ;;  %12124 = vrot.lane.b32.xlu0 %v12120_v19, %s15052_s16 }
 0x64b   :  { %v13958_v19 = vld.sshfl [vmem:[#allocation5 + $0xe] sm:$0x3 pattern:$0x76325410] }
 0x64d   :  { %12128 = vrot.lane.b32.xlu0 %v12122_v63, %s15052_s16 }
 0x663   :  { %v20206_v1 = vpop.f32.mrf.mxu0 }
 0x665   :  { %v11672_v26 = vpop.f32.mrf.mxu0 }
 0x667   :  { %v20214_v8 = vpop.f32.mrf.mxu0 }
 0x669   :  { %v11675_v34 = vpop.f32.mrf.mxu0 }
 0x6e1   :  { %v14287_v45 = vpop.f32.mrf.mxu1 }
 0x6e3   :  { %v14288_v60 = vpop.f32.mrf.mxu1 }
 0x6e4   :  { %v14289_v22 = vadd.f32 %v14288_v60, %v14287_v45 }
 0x6e5   :  { %v14290_v49 = vpop.f32.mrf.mxu1 }
 0x6e6   :  { %v11624_v42 = vadd.f32 %v14289_v22, %v20211_v56 }
 0x6e7   :  { %v14291_v53 = vpop.f32.mrf.mxu1 }
 0x6e8   :  { %v11673_v12 = vadd.f32 %v11672_v26, %v11624_v42  ;;  %v14292_v27 = vadd.f32 %v14291_v53, %v14290_v49 }
 0x6ea   :  { %v11687_v55 = vmax.f32 %v11673_v12, 0.0  ;;  %v11627_v17 = vadd.f32 %v14292_v27, %v20211_v56 }
 0x6ec   :  { %v11695_v3 = vcombine.high %v11687_v55, %v11687_v55  ;;  %v11676_v25 = vadd.f32 %v11675_v34, %v11627_v17 }
 0x6ee   :  { %v11703_v14 = vmax.f32 %v11687_v55, %v11695_v3  ;;  %v11688_v6 = vmax.f32 %v11676_v25, 0.0 }
 0x6f0   :  { %v11717_v46 = vrot.slane %v11703_v14, %v17372_v62  ;;  %v11696_v35 = vcombine.high %v11688_v6, %v11688_v6 }
 0x6f2   :  { %v11718_v54 = vcombine.high %v11717_v46, %v11717_v46  ;;  %v13923_v29 = vrot.slane %v11717_v46, 9  ;;  %v11704_v48 = vmax.f32 %v11688_v6, %v11696_v35 }
 0x6f4   :  { %v13924_v24 = vrot.slane %v11718_v54, 9  ;;  %v11775_v38 = vmax.f32 %v11717_v46, %v13923_v29  ;;  %v11725_v2 = vrot.slane %v11704_v48, %v17372_v62 }
 0x6f6   :  { %v11776_v51 = vmax.f32 %v11718_v54, %v13924_v24  ;;  %v11783_v10 = vpack.c.bf16 %v11775_v38, %v11775_v38  ;;  %v11726_v28 = vcombine.high %v11725_v2, %v11725_v2  ;;  %v13925_v15 = vrot.slane %v11725_v2, 9 }
 0x6f8   :  { %v11784_v50 = vpack.c.bf16 %v11776_v51, %v11776_v51  ;;  %v11805_v59 = vrot.slane %v11783_v10, %v17372_v62  ;;  %v13926_v44 = vrot.slane %v11726_v28, 9  ;;  %v11777_v9 = vmax.f32 %v11725_v2, %v13925_v15 }
 0x6fa   :  { %v11812_v36 = vrot.slane %v11784_v50, %v17372_v62  ;;  %v11861_v20 = vrot.slane %v11805_v59, %v17372_v62  ;;  %v11778_v58 = vmax.f32 %v11726_v28, %v13926_v44  ;;  %v11785_v0 = vpack.c.bf16 %v11777_v9, %v11777_v9 }
 0x6fc   :  { %v11868_v23 = vrot.slane %v11812_v36, %v17372_v62  ;;  %v11911_v47 = vunpack.c.l.b16 %v11861_v20  ;;  %v11786_v4 = vpack.c.bf16 %v11778_v58, %v11778_v58  ;;  %v11819_v21 = vrot.slane %v11785_v0, %v17372_v62 }
 0x6fe   :  { %v11912_v39 = vunpack.c.l.b16 %v11868_v23  ;;  %v11826_v11 = vrot.slane %v11786_v4, %v17372_v62  ;;  %v11875_v16 = vrot.slane %v11819_v21, %v17372_v62  ;;  %v11919_v5 = vrot.slane %v11911_v47, 7 }
 0x700   :  { %v11920_v32 = vrot.slane %v11912_v39, 6  ;;  %v11882_v30 = vrot.slane %v11826_v11, %v17372_v62  ;;  %v11913_v41 = vunpack.c.l.b16 %v11875_v16 }
 0x702   :  { %v11921_v18 = vsel %vm20727_vm12, %v11920_v32, %v11919_v5  ;;  %v11914_v57 = vunpack.c.l.b16 %v11882_v30  ;;  %v11922_v13 = vrot.slane %v11913_v41, 7 }
 0x703   :  { %v11931_v61 = vpack.c.b16 %v11921_v18, %v11921_v18 }
 0x704   :  { %v11923_v63 = vrot.slane %v11914_v57, 6 }
 0x705   :  { %v11941_v7 = vrot.slane %v11931_v61, %v17372_v62 }
 0x706   :  { %v11924_v40 = vsel %vm20730_vm6, %v11923_v63, %v11922_v13 }
 0x707   :  { %v11972_v37 = vsel %vm20229_vm9, %v11941_v7, %v11971_v33  ;;  %v11932_v31 = vpack.c.b16 %v11924_v40, %v11924_v40 }
 0x708   :  { %11973 = vst [vmem:[#allocation5 + $0x2] sm:$0x3] %v11972_v37 }
 0x709   :  { %v11948_v43 = vrot.slane %v11932_v31, %v17372_v62  ;;  %v14293_v45 = vpop.f32.mrf.mxu1 }
 0x70b   :  { %v11975_v26 = vsel %vm20229_vm9, %v11948_v43, %v11974_v52  ;;  %v14294_v60 = vpop.f32.mrf.mxu1 }
 0x70c   :  { %11976 = vst [vmem:[#allocation5 + $0x4] sm:$0x3] %v11975_v26  ;;  %v14295_v22 = vadd.f32 %v14294_v60, %v14293_v45 }
 0x70d   :  { %v14296_v49 = vpop.f32.mrf.mxu1 }
 0x70e   :  { %v11632_v42 = vadd.f32 %v14295_v22, %v20211_v56  ;;  %v11977_v22 = vld [vmem:[#allocation5 + $0xa] sm:$0x3] }
 0x70f   :  { %v13939_v53 = vld.sshfl [vmem:[#allocation5 + $0x2] sm:$0x1 pattern:$0x76325410]  ;;  %v14297_v27 = vpop.f32.mrf.mxu1 }
 0x710   :  { %12164 = vrot.lane.b32.xlu0 %v13939_v53, %s15053_s13  ;;  %v13936_v12 = vld.sshfl [vmem:[#allocation5 + $0x2] sm:$0x2 pattern:$0x76325410]  ;;  %v11681_v55 = vadd.f32 %v20206_v1, %v11632_v42  ;;  %v14298_v34 = vadd.f32 %v14297_v27, %v14296_v49 }
 0x711   :  { %v12121_v17 = vrot.slane %v13936_v12, 1  ;;  %v13932_v3 = vld.sshfl [vmem:[#allocation5 + $0x2] sm:$0x3 pattern:$0x76325410] }
 0x712   :  { %v12062_v25 = vshll.u32 %v13932_v3, 16  ;;  %v11689_v14 = vmax.f32 %v11681_v55, 0.0  ;;  %v11635_v6 = vadd.f32 %v14298_v34, %v20211_v56  ;;  %v12060_v2 = vshrl.u32 %v13932_v3, 16  ;;  %v14972_v34 = vld [vmem:[%s20431_s7 + $0x38] sm:$0xff]   ;;  %v11980_v3 = vld [vmem:[#allocation5 + $0xc] sm:$0x3] }
 0x713   :  { %12126 = vrot.lane.b32.xlu1 %v12121_v17, %s15052_s16  ;;  %v13955_v46 = vld.sshfl [vmem:[#allocation5 + $0x4] sm:$0x3 pattern:$0x76325410] }
 0x714   :  { %12268 = vrot.lane.b32.xlu0 %v12121_v17, %s15051_s0  ;;  %v11697_v35 = vcombine.high %v11689_v14, %v11689_v14  ;;  %v11684_v54 = vadd.f32 %v20214_v8, %v11635_v6  ;;  %v12064_v29 = vrot.slane %v12062_v25, 1  ;;  %v12351_v48 = vshll.u32 %v13955_v46, 16  ;;  %v13940_v24 = vld.sshfl [vmem:[#allocation5 + $0x4] sm:$0x1 pattern:$0x76325410] }
 0x715   :  { %v12349_v10 = vshrl.u32 %v13955_v46, 16  ;;  %v20254_v8 = vld.sshfl [vmem:[#allocation5 + $0x4] sm:$0x2 pattern:$0x76325410]  ;;  %v14971_v17 = vld [vmem:[%s20431_s7 + $0x78] sm:$0xff]  }
 0x716   :  { %v11705_v38 = vmax.f32 %v11689_v14, %v11697_v35  ;;  %v11690_v1 = vmax.f32 %v11684_v54, 0.0  ;;  %v12353_v51 = vrot.slane %v12351_v48, 1  ;;  %v20250_v15 = vor.u32 %v12064_v29, %v12060_v2  ;;  %14303 = vmatprep.subr.bf16.mxu1 %v14971_v17  ;;  %v14973_v6 = vld [vmem:[%s20431_s7 + $0x70] sm:$0xff]  }
 0x717   :  { %12166 = vrot.lane.b32.xlu1 %v13940_v24, %s15053_s13  ;;  %v12265_v0 = vrot.slane %v20254_v8, 1  ;;  %14304 = vmatpush3.bf16.msra.mxu1 %v14972_v34  ;;  %v14974_v46 = vld [vmem:[%s20431_s7 + $0x30] sm:$0xff]   ;;  %v11983_v34 = vld [vmem:[#allocation5] sm:$0x1] }
 0x718   :  { %12308 = vrot.lane.b32.xlu0 %v13940_v24, %s15052_s16  ;;  %v11733_v56 = vrot.slane %v11705_v38, %v17372_v62  ;;  %v11698_v28 = vcombine.high %v11690_v1, %v11690_v1  ;;  %v20252_v50 = vor.u32 %v12353_v51, %v12349_v10  ;;  %14305 = vmatprep.subr.bf16.mxu1 %v14973_v6  ;;  %v14975_v10 = vld [vmem:[%s20431_s7 + $0x68] sm:$0xff]  }
 0x71a   :  { %v11734_v59 = vcombine.high %v11733_v56, %v11733_v56  ;;  %v13927_v44 = vrot.slane %v11733_v56, 9  ;;  %v11706_v9 = vmax.f32 %v11690_v1, %v11698_v28  ;;  %v14977_v28 = vld [vmem:[%s20431_s7 + $0x60] sm:$0xff]  }
 0x71b   :  { %12082 = vrot.lane.b32.xlu1 %v20250_v15, %s15051_s0  ;;  %14306 = vmatpush3.bf16.msra.mxu1 %v14974_v46  ;;  %v15056_v46 = vmov 1966171168  }
 0x71c   :  { %12376 = vrot.lane.b32.xlu0 %v20252_v50, %s15053_s13  ;;  %v13928_v36 = vrot.slane %v11734_v59, 9  ;;  %v11779_v20 = vmax.f32 %v11733_v56, %v13927_v44  ;;  %v11741_v58 = vrot.slane %v11706_v9, %v17372_v62  ;;  %v14976_v56 = vld [vmem:[%s20431_s7 + $0x28] sm:$0xff]   ;;  %v12372_v9 = vshll.u32 %v13958_v19, 16  ;;  %14307 = vmatprep.subr.bf16.mxu1 %v14975_v10 }
 0x71e   :  { %v11780_v23 = vmax.f32 %v11734_v59, %v13928_v36  ;;  %v11787_v47 = vpack.c.bf16 %v11779_v20, %v11779_v20  ;;  %v11742_v4 = vcombine.high %v11741_v58, %v11741_v58  ;;  %v13929_v21 = vrot.slane %v11741_v58, 9 }
 0x71f   :  { %12270 = vrot.lane.b32.xlu1 %v12265_v0, %s15051_s0  ;;  %14308 = vmatpush3.bf16.msra.mxu1 %v14976_v56 }
 0x720   :  { %v11788_v39 = vpack.c.bf16 %v11780_v23, %v11780_v23  ;;  %v11833_v11 = vrot.slane %v11787_v47, %v17372_v62  ;;  %v13930_v16 = vrot.slane %v11742_v4, 9  ;;  %v11781_v5 = vmax.f32 %v11741_v58, %v13929_v21  ;;  %v14978_v58 = vld [vmem:[%s20431_s7 + $0x20] sm:$0xff]   ;;  %14309 = vmatprep.subr.bf16.mxu1 %v14977_v28 }
 0x721   :  { %v12374_v21 = vrot.slane %v12372_v9, 1 }
 0x722   :  { %v11840_v32 = vrot.slane %v11788_v39, %v17372_v62  ;;  %v11889_v30 = vrot.slane %v11833_v11, %v17372_v62  ;;  %v11782_v41 = vmax.f32 %v11742_v4, %v13930_v16  ;;  %v11789_v18 = vpack.c.bf16 %v11781_v5, %v11781_v5  ;;  %v14979_v11 = vld [vmem:[%s20431_s7 + $0x58] sm:$0xff]   ;;  %v14981_v5 = vld [vmem:[%s20431_s7 + $0x50] sm:$0xff]  }
 0x723   :  { %v12370_v4 = vshrl.u32 %v13958_v19, 16  ;;  %14310 = vmatpush3.bf16.msra.mxu1 %v14978_v58  ;;  %v14980_v16 = vld [vmem:[%s20431_s7 + $0x18] sm:$0xff]  }
 0x724   :  { %v11896_v57 = vrot.slane %v11840_v32, %v17372_v62  ;;  %v11915_v61 = vunpack.c.l.b16 %v11889_v30  ;;  %v11790_v33 = vpack.c.bf16 %v11782_v41, %v11782_v41  ;;  %v11847_v13 = vrot.slane %v11789_v18, %v17372_v62  ;;  %14311 = vmatprep.subr.bf16.mxu1 %v14979_v11  ;;  %v14985_v41 = vld [vmem:[%s20431_s7 + $0x88] sm:$0xff]   ;;  %v14982_v18 = vld [vmem:[%s20431_s7 + $0x10] sm:$0xff]  }
 0x725   :  { %v15054_v32 = vmov 0.0   ;;  %v12375_v30 = vor.u32 %v12374_v21, %v12370_v4 }
 0x726   :  { %v11916_v63 = vunpack.c.l.b16 %v11896_v57  ;;  %v11854_v7 = vrot.slane %v11790_v33, %v17372_v62  ;;  %v11903_v40 = vrot.slane %v11847_v13, %v17372_v62  ;;  %v11925_v37 = vrot.slane %v11915_v61, 7  ;;  %14429 = vmatprep.subr.bf16.mxu0 %v15054_v32  ;;  %v14988_v57 = vld [vmem:[%s20431_s7 + $0x80] sm:$0xff]   ;;  %v14983_v61 = vld [vmem:[%s20431_s7 + $0x48] sm:$0xff]   ;;  %14433 = vmatprep.mubr.msk.bf16.mxu0 %vm15055_vm13, %v15054_v32 }
 0x727   :  { %14312 = vmatpush3.bf16.msra.mxu1 %v14980_v16  ;;  %14430 = vmatpush3.bf16.msra.mxu0 %v14985_v41  ;;  %v14984_v33 = vld [vmem:[%s20431_s7 + $0x8] sm:$0xff]   ;;  %v14986_v13 = vld [vmem:[%s20431_s7 + $0x40] sm:$0xff]  }
 0x728   :  { %v11926_v31 = vrot.slane %v11916_v63, 6  ;;  %v11910_v52 = vrot.slane %v11854_v7, %v17372_v62  ;;  %v11917_v43 = vunpack.c.l.b16 %v11903_v40  ;;  %14313 = vmatprep.subr.bf16.mxu1 %v14981_v5  ;;  %14431 = vmatprep.subr.bf16.mxu0 %v15054_v32  ;;  %v14987_v63 = vld [vmem:[%s20431_s7] sm:$0xff]   ;;  %v12081_v7 = vpop.permute.xlu0 %12080 }
 0x729   :  { %v20733_v5 = vld [vmem:[#allocation11_spill] sm:$0xff] }
 0x72a   :  { %v11927_v45 = vsel %vm20731_vm7, %v11926_v31, %v11925_v37  ;;  %v11918_v26 = vunpack.c.l.b16 %v11910_v52  ;;  %v11928_v49 = vrot.slane %v11917_v43, 7  ;;  %v12311_v37 = vpop.permute.xlu1 %12310 }
 0x72b   :  { %v11933_v60 = vpack.c.b16 %v11927_v45, %v11927_v45  ;;  %14314 = vmatpush3.bf16.msra.mxu1 %v14982_v18  ;;  %14432 = vmatpush3.bf16.msra.mxu0 %v14988_v57 }
 0x72c   :  { %v11929_v42 = vrot.slane %v11918_v26, 6  ;;  %14315 = vmatprep.subr.bf16.mxu1 %v14983_v61  ;;  %14437 = vmatprep.subr.mxu0 %v15054_v32  ;;  %v12085_v40 = vpop.permute.xlu0 %12084 }
 0x72d   :  { %v11955_v53 = vrot.slane %v11933_v60, %v17372_v62 }
 0x72e   :  { %v11930_v12 = vsel %vm20732_vm5, %v11929_v42, %v11928_v49  ;;  %v12315_v52 = vpop.permute.xlu1 %12314 }
 0x72f   :  { %v11978_v27 = vsel %vm20229_vm9, %v11955_v53, %v11977_v22  ;;  %v11934_v55 = vpack.c.b16 %v11930_v12, %v11930_v12  ;;  %14316 = vmatpush3.bf16.msra.mxu1 %v14984_v33 }
 0x730   :  { %11979 = vst [vmem:[#allocation5 + $0xa] sm:$0x3] %v11978_v27  ;;  %14317 = vmatprep.subr.bf16.mxu1 %v14986_v13  ;;  %v12125_v31 = vpop.permute.xlu0 %12124  ;;  %v13962_v13 = vld.sshfl [vmem:[#allocation5 + $0xe] sm:$0x2 pattern:$0x76325410] }
 0x731   :  { %v11962_v25 = vrot.slane %v11934_v55, %v17372_v62 }
 0x732   :  { %v12379_v45 = vpop.permute.xlu1 %12378 }
 0x733   :  { %v11981_v14 = vsel %vm20229_vm9, %v11962_v25, %v11980_v3  ;;  %14318 = vmatpush3.bf16.msra.mxu1 %v14987_v63  ;;  %v11984_v3 = vld [vmem:[#allocation5 + $0x2] sm:$0x1] }
 0x734   :  { %11982 = vst [vmem:[#allocation5 + $0xc] sm:$0x3] %v11981_v14  ;;  %v12129_v43 = vpop.permute.xlu0 %12128 }
 0x737   :  { %v13941_v35 = vld.sshfl [vmem:[#allocation5 + $0xa] sm:$0x1 pattern:$0x76325410] }
 0x738   :  { %12168 = vrot.lane.b32.xlu0 %v13941_v35, %s15053_s13  ;;  %v13938_v54 = vld.sshfl [vmem:[#allocation5 + $0xa] sm:$0x2 pattern:$0x76325410]  ;;  %v12486_v35 = vunpack.c.l.s4 %v15056_v46  ;;  %v11986_v18 = vld [vmem:[#allocation5 + $0xa] sm:$0x1] }
 0x739   :  { %v12123_v29 = vrot.slane %v13938_v54, 1  ;;  %v13934_v48 = vld.sshfl [vmem:[#allocation5 + $0xa] sm:$0x3 pattern:$0x76325410] }
 0x73a   :  { %v12076_v24 = vshll.u32 %v13934_v48, 16  ;;  %v12074_v59 = vshrl.u32 %v13934_v48, 16  ;;  %v11985_v48 = vld [vmem:[#allocation5 + $0x8] sm:$0x1]  ;;  %v12487_v56 = vunpack.c.0.s8 %v12486_v35 }
 0x73b   :  { %12130 = vrot.lane.b32.xlu1 %v12123_v29, %s15052_s16  ;;  %v13957_v38 = vld.sshfl [vmem:[#allocation5 + $0xc] sm:$0x3 pattern:$0x76325410]  ;;  %v12428_v28 = vsel %vm9245_vm2, %v11985_v48, %v12085_v40 }
 0x73c   :  { %12272 = vrot.lane.b32.xlu0 %v12123_v29, %s15051_s0  ;;  %v13942_v1 = vld.sshfl [vmem:[#allocation5 + $0xc] sm:$0x1 pattern:$0x76325410]  ;;  %v12078_v2 = vrot.slane %v12076_v24, 1  ;;  %v12365_v51 = vshll.u32 %v13957_v38, 16  ;;  %v12422_v29 = vsel %vm9245_vm2, %v11983_v34, %v12081_v7  ;;  %v12437_v16 = vsel %vm9294_vm4, %v12428_v28, %v12129_v43 }
 0x73d   :  { %v12363_v36 = vshrl.u32 %v13957_v38, 16  ;;  %v20314_v47 = vld.sshfl [vmem:[#allocation5 + $0xc] sm:$0x2 pattern:$0x76325410] }
 0x73e   :  { %v12367_v44 = vrot.slane %v12365_v51, 1  ;;  %v20307_v20 = vor.u32 %v12078_v2, %v12074_v59  ;;  %v12267_v39 = vrot.slane %v20314_v47, 1  ;;  %v12433_v51 = vsel %vm9294_vm4, %v12422_v29, %v12125_v31 }
 0x73f   :  { %12170 = vrot.lane.b32.xlu1 %v13942_v1, %s15053_s13 }
 0x740   :  { %12312 = vrot.lane.b32.xlu0 %v13942_v1, %s15052_s16  ;;  %v20312_v23 = vor.u32 %v12367_v44, %v12363_v36 }
 0x743   :  { %12086 = vrot.lane.b32.xlu1 %v20307_v20, %s15051_s0 }
 0x744   :  { %12380 = vrot.lane.b32.xlu0 %v20312_v23, %s15053_s13 }
 0x747   :  { %12274 = vrot.lane.b32.xlu1 %v12267_v39, %s15051_s0 }
 0x74b   :  { %12382 = vrot.lane.b32.xlu1 %v12375_v30, %s15053_s13  ;;  %v12490_v30 = vsub.s32 %v12487_v56, %v20733_v5 }
 0x782   :  { %v12165_v26 = vpop.permute.xlu0 %12164 }
 0x783   :  { %v12441_v4 = vsel %vm9327_vm10, %v12433_v51, %v12165_v26  ;;  %v12498_v26 = vrot.slane %v12265_v0, %v12490_v30 }
 0x785   :  { %v12127_v60 = vpop.permute.xlu1 %12126 }
 0x786   :  { %v12269_v22 = vpop.permute.xlu0 %12268 }
 0x787   :  { %v12450_v38 = vsel %vm9245_vm2, %v20250_v15, %v12269_v22 }
 0x789   :  { %v12167_v49 = vpop.permute.xlu1 %12166 }
 0x78a   :  { %v12309_v42 = vpop.permute.xlu0 %12308 }
 0x78b   :  { %v12461_v10 = vsel %vm9294_vm4, %v12450_v38, %v12309_v42  ;;  %v12884_v38 = vld [vmem:[%s20433_s9 + $0x10] sm:$0xff] }
 0x78d   :  { %v12083_v53 = vpop.permute.xlu1 %12082 }
 0x78e   :  { %v12377_v12 = vpop.permute.xlu0 %12376  ;;  %v12425_v14 = vsel %vm9245_vm2, %v11984_v3, %v12083_v53 }
 0x78f   :  { %v12435_v24 = vsel %vm9294_vm4, %v12425_v14, %v12127_v60  ;;  %v12469_v44 = vsel %vm9327_vm10, %v12461_v10, %v12377_v12  ;;  %v13963_v10 = vld [vmem:[%s20432_s8] ss:$0 sm:$0xff] }
 0x790   :  { %v12443_v59 = vsel %vm9327_vm10, %v12435_v24, %v12167_v49  ;;  %v12484_v41 = vcombine.low %v12441_v4, %v12469_v44 }
 0x791   :  { %v12271_v27 = vpop.permute.xlu1 %12270 }
 0x792   :  { %v12453_v17 = vsel %vm9245_vm2, %v20252_v50, %v12271_v27  ;;  %v13960_v50 = vld.sshfl [vmem:[#allocation5 + $0x6] sm:$0x2 pattern:$0x76325410]  ;;  %v12491_v31 = vrot.slane %v12484_v41, %v12490_v30 }
 0x793   :  { %v12463_v54 = vsel %vm9294_vm4, %v12453_v17, %v12311_v37  ;;  %v12417_v9 = vrot.slane %v13960_v50, 1  ;;  %v12883_v50 = vld [vmem:[%s20433_s9 + $0x8] sm:$0xff] }
 0x794   :  { %v12471_v1 = vsel %vm9327_vm10, %v12463_v54, %v12379_v45  ;;  %v12419_v45 = vrot.slane %v13962_v13, 1  ;;  %v12499_v27 = vcombine.low %v12491_v31, %v12498_v26 }
 0x795   :  { %v12507_v36 = vcombine.low %v12443_v59, %v12471_v1  ;;  %v12882_v1 = vld [vmem:[%s20433_s9] sm:$0xff] }
 0x796   :  { %v12506_v8 = vrot.slane %v12499_v27, %v12490_v30 }
 0x797   :  { %v12514_v63 = vrot.slane %v12507_v36, %v12490_v30 }
 0x7aa   :  { %v12169_v55 = vpop.permute.xlu0 %12168 }
 0x7ab   :  { %v12445_v61 = vsel %vm9327_vm10, %v12437_v16, %v12169_v55  ;;  %v12567_v55 = vrot.slane %v12419_v45, %v12490_v30 }
 0x7ad   :  { %v12131_v25 = vpop.permute.xlu1 %12130 }
 0x7ae   :  { %v12273_v6 = vpop.permute.xlu0 %12272 }
 0x7af   :  { %v12456_v15 = vsel %vm9245_vm2, %v20307_v20, %v12273_v6  ;;  %v12521_v20 = vrot.slane %v12417_v9, %v12490_v30 }
 0x7b1   :  { %v12171_v19 = vpop.permute.xlu1 %12170  ;;  %v12522_v60 = vcombine.low %v12514_v63, %v12521_v20  ;;  %v12897_v20 = vsub.s32 0, %v20733_v5 }
 0x7b2   :  { %v12313_v2 = vpop.permute.xlu0 %12312 }
 0x7b3   :  { %v12465_v21 = vsel %vm9294_vm4, %v12456_v15, %v12313_v2 }
 0x7b5   :  { %v12087_v58 = vpop.permute.xlu1 %12086 }
 0x7b6   :  { %v12381_v11 = vpop.permute.xlu0 %12380  ;;  %v12431_v33 = vsel %vm9245_vm2, %v11986_v18, %v12087_v58 }
 0x7b7   :  { %v12473_v57 = vsel %vm9327_vm10, %v12465_v21, %v12381_v11  ;;  %v12439_v43 = vsel %vm9294_vm4, %v12431_v33, %v12131_v25  ;;  %v12529_v25 = vrot.slane %v12522_v60, %v12490_v30 }
 0x7b8   :  { %v12530_v7 = vcombine.low %v12445_v61, %v12473_v57  ;;  %v12447_v53 = vsel %vm9327_vm10, %v12439_v43, %v12171_v19 }
 0x7b9   :  { %v12275_v40 = vpop.permute.xlu1 %12274  ;;  %v12619_v46 = vcombine.low %v12506_v8, %v12529_v25 }
 0x7ba   :  { %v12459_v37 = vsel %vm9245_vm2, %v20312_v23, %v12275_v40  ;;  %v12537_v22 = vrot.slane %v12530_v7, %v12490_v30  ;;  %v12544_v23 = vrot.slane %v12267_v39, %v12490_v30  ;;  %v12885_v39 = vld [vmem:[%s20433_s9 + $0x18] sm:$0xff] }
 0x7bb   :  { %v12467_v49 = vsel %vm9294_vm4, %v12459_v37, %v12315_v52  ;;  %v12627_v35 = vrot.slane %v12619_v46, %v12490_v30  ;;  %vm12903_vm4 = vcmask 1041409  }
 0x7bc   :  { %v12545_v34 = vcombine.low %v12537_v22, %v12544_v23 }
 0x7bd   :  { %v12383_v42 = vpop.permute.xlu1 %12382 }
 0x7be   :  { %v12475_v12 = vsel %vm9327_vm10, %v12467_v49, %v12383_v42  ;;  %v12552_v14 = vrot.slane %v12545_v34, %v12490_v30 }
 0x7bf   :  { %v12553_v17 = vcombine.low %v12447_v53, %v12475_v12 }
 0x7c1   :  { %v12560_v3 = vrot.slane %v12553_v17, %v12490_v30 }
 0x7c3   :  { %v12568_v0 = vcombine.low %v12560_v3, %v12567_v55 }
 0x7c5   :  { %v12575_v6 = vrot.slane %v12568_v0, %v12490_v30 }
 0x7c7   :  { %v12620_v52 = vcombine.low %v12552_v14, %v12575_v6 }
 0x7c9   :  { %v12634_v54 = vrot.slane %v12620_v52, %v12490_v30 }
 0x7cb   :  { %v12635_v29 = vcombine.low %v12627_v35, %v12634_v54  ;;  %v12636_v48 = vcombine.high %v12627_v35, %v12634_v54 }
 0x7cd   :  { %v12650_v24 = vrot.slane %v12636_v48, %v12490_v30  ;;  %v12643_v19 = vrot.slane %v12635_v29, %v12490_v30 }
 0x7cf   :  { %12797 = vmatprep.mubr.bf16.mxu1 %v12650_v24  ;;  %v12651_v47 = vcombine.high %v12643_v19, %v12643_v19 }
 0x7d0   :  { %12798 = vmatmul.mubr.bf16.vlgmr.msra.gmra.mxu1 %v12643_v19 }
 0x7d1   :  { %14434 = vmatmul.mubr.msk.bf16.vlgmr.msra.gmra.mxu0 %vm9245_vm2, %v12651_v47 }
 0x7d2   :  { %14445 = vmatprep.mubr.msk.f32.mxu0 %vm15055_vm13, %v15054_v32  ;;  %14438 = vmatpush3.msra.mxu0 %v12885_v39 }
 0x7d3   :  { %14439 = vmatprep.subr.mxu0 %v15054_v32 }
 0x7d4   :  { %14440 = vmatpush3.msra.mxu0 %v12884_v38 }
 0x7d5   :  { %14441 = vmatprep.subr.mxu0 %v15054_v32 }
 0x7d6   :  { %14442 = vmatpush3.msra.mxu0 %v12883_v50 }
 0x7d7   :  { %14443 = vmatprep.subr.mxu0 %v15054_v32 }
 0x7d8   :  { %14444 = vmatpush3.msra.mxu0 %v12882_v1 }
 0x890   :  { %v14319_v2 = vpop.f32.mrf.mxu1 }
 0x891   :  { %v12839_v51 = vpop.f32.mrf.mxu0 }
 0x892   :  { %v14320_v56 = vpop.f32.mrf.mxu1 }
 0x893   :  { %v14321_v28 = vadd.f32 %v14320_v56, %v14319_v2  ;;  %v14435_v59 = vpop.f32.mrf.mxu0 }
 0x894   :  { %v14322_v44 = vpop.f32.mrf.mxu1 }
 0x895   :  { %v12800_v9 = vadd.f32 %v14321_v28, %v13963_v10  ;;  %v12842_v36 = vpop.f32.mrf.mxu0 }
 0x896   :  { %v14323_v15 = vpop.f32.mrf.mxu1 }
 0x897   :  { %v12840_v58 = vadd.f32 %v12839_v51, %v12800_v9  ;;  %v14436_v4 = vpop.f32.mrf.mxu0 }
 0x899   :  { %v12845_v21 = vmax.f32 %v12840_v58, 0.0 }
 0x89b   :  { %v12847_v11 = vcombine.high %v12845_v21, %v12845_v21  ;;  %v12854_v32 = vrot.slane %v12845_v21, %v17372_v62 }
 0x89d   :  { %v12861_v16 = vrot.slane %v12847_v11, %v17372_v62  ;;  %v12862_v30 = vcombine.high %v12854_v32, %v12854_v32  ;;  %v13985_v62 = vld [vmem:[%s20434_s10] ss:$0 sm:$0xff] }
 0x89f   :  { %v12863_v41 = vcombine.high %v12861_v16, %v12861_v16  ;;  %v12868_v18 = vmax.f32 %v12854_v32, %v12862_v30 }
 0x8a1   :  { %v12869_v57 = vmax.f32 %v12861_v16, %v12863_v41  ;;  %v13983_v61 = vrot.slane %v12868_v18, 9 }
 0x8a3   :  { %v13984_v33 = vrot.slane %v12869_v57, 9  ;;  %v12878_v13 = vmax.f32 %v12868_v18, %v13983_v61 }
 0x8a5   :  { %v12879_v63 = vmax.f32 %v12869_v57, %v13984_v33  ;;  %v12898_v7 = vrot.slane %v12878_v13, %v12897_v20 }
 0x8a7   :  { %v12902_v40 = vrot.slane %v12879_v63, %v12897_v20 }
 0x8a9   :  { %v12904_v37 = vsel %vm12903_vm4, %v12902_v40, %v12898_v7 }
 0x8aa   :  { %14446 = vmatmul.mubr.msk.f32.vlgmr.msra.gmra.mxu0 %vm9245_vm2, %v12904_v37 }
 0x96a   :  { %v12973_v31 = vpop.f32.mrf.mxu0 }
 0x96b   :  { %v12974_v43 = vadd.f32 %v13985_v62, %v12973_v31 }
 0x96c   :  { %v14447_v45 = vpop.f32.mrf.mxu0 }
 0x96d   :  { %12977 = vst [vmem:[#allocation6] sm:$0x3] %v12974_v43 }
 0x96e   :  { %15029 = shalt.err (!%p15026_p4)
}
 0x96f   :  { %12987 = dma.vmem_to_hbm [thread:$0]  %s12985_s18, 32, %s20435_s11, [#allocation7]  }
 0x970   :  { %15038 = dma.done.wait [#allocation7], 32  }
 0x971   :  { %15039 = vsyncadd [#allocation7], 4294967264 }
 0x972   :  { %12991 = vsyncpa [#allocation7], 1 }

</bundles_post_ra>
